<compile_context>
chip_gen: v7x
topology: tpu7x:2x2x1
jax: 0.10.0
libtpu: 0.0.40
codegen_flags: <defaults>
</compile_context>

<pallas_src>
import numpy as np
import jax
import jax.numpy as jnp
from jax.experimental import pallas as pl
from jax.experimental.pallas import tpu as pltpu

TILE_B = 32  # batch tile: >=16 keeps bf16 row slices sublane-aligned; 32 keeps grid>=2 at modest B


# ---------------------------------------------------------------------------
# Fused Pallas kernel: conv1 + ReLU + pool1 + conv2 + ReLU + pool2 + fc
# ---------------------------------------------------------------------------
def _cnn_fused_kernel(x_ref, w1_ref, b1_ref, w2_ref, b2_ref, wf_ref, bf_ref, o_ref):
    tb = x_ref.shape[1]  # batch tile size (static)

    # ---- stage 1: conv(1->16, k5, p2) + ReLU + maxpool(2) -------------------
    # x rows = yp*tb + b (padded y major, batch minor), lanes = padded x (32), bf16
    x = x_ref[...].reshape(32 * tb, 32)
    # fold the 5 ky taps into K by concatenating row-shifted views -> [28*tb, 160] bf16
    p1 = jnp.concatenate([x[ky * tb:(ky + 28) * tb] for ky in range(5)], axis=-1)
    a1 = jnp.dot(p1, w1_ref[...], preferred_element_type=jnp.float32)   # [28*tb, 448]
    a1 = jnp.maximum(a1 + b1_ref[...], 0.0)                             # bias + ReLU (f32)
    # output columns are ordered (x%2 major, x//2, co) -> pools are contiguous maxes
    a1 = a1.reshape(14, 2 * tb, 448)
    h1 = jnp.maximum(a1[:, :tb, :], a1[:, tb:, :])                      # y pool  -> [14, tb, 448]
    h1 = jnp.maximum(h1[:, :, :224], h1[:, :, 224:])                    # x pool  -> [14, tb, 224]
    h1 = h1.astype(jnp.bfloat16)                                        # dense (x_pool, ci) lanes

    # ---- stage 2: conv(16->32, k5, p2) + ReLU + maxpool(2) ------------------
    zp = jnp.zeros((2, tb, 224), jnp.bfloat16)
    h1p = jnp.concatenate([zp, h1, zp], axis=0)                         # y zero pad -> [18, tb, 224]
    acc = None
    for ky in range(5):                                                 # accumulate-over-ky (no 2160 slab)
        p2 = h1p[ky:ky + 14].reshape(14 * tb, 224)                      # zero-copy view
        d = jnp.dot(p2, w2_ref[ky], preferred_element_type=jnp.float32)  # [14*tb, 448]
        acc = d if acc is None else acc + d
    a2 = jnp.maximum(acc + b2_ref[...], 0.0)
    a2 = a2.reshape(7, 2 * tb, 448)
    h2 = jnp.maximum(a2[:, :tb, :], a2[:, tb:, :])                      # y pool -> [7, tb, 448]
    h2 = jnp.maximum(h2[:, :, :224], h2[:, :, 224:])                    # x pool -> [7, tb, 224]
    h2 = h2.astype(jnp.bfloat16)

    # ---- fc: flatten via lane concat (weight rows were permuted to match) ---
    f = jnp.concatenate([h2[j] for j in range(7)], axis=-1)             # [tb, 1568] bf16
    out = jnp.dot(f, wf_ref[...], preferred_element_type=jnp.float32) + bf_ref[...]
    o_ref[...] = out                                                    # dense (tb, 128) store


# ---------------------------------------------------------------------------
# One-time parameter restructuring (pure weight reshuffling, outside the kernel)
# ---------------------------------------------------------------------------
def pack_params(params):
    """Build the banded, parity-ordered GEMM operands used by the fused kernel
    from torch-layout parameters (cnn1/cnn2/fc1 weights & biases)."""
    w1, b1, w2, b2, wf, bf = params
    f32 = jnp.float32

    # stage 1: B1[ky*32 + xp, col(x, co)] = w1[co, 0, ky, xp - x] for 0 <= xp-x < 5
    # columns reordered to (x%2 major, x//2, co) so the x-pool is a half-slab max.
    ky = np.arange(5)[:, None, None, None]
    xp = np.arange(32)[None, :, None, None]
    x = np.arange(28)[None, None, :, None]
    co = np.arange(16)[None, None, None, :]
    kx = xp - x
    valid = (kx >= 0) & (kx < 5)
    w1sq = w1[:, 0, :, :].astype(f32)                                   # [16, 5, 5]
    band1 = jnp.where(valid, w1sq[co, ky, np.clip(kx, 0, 4)], 0.0)      # [5, 32, 28, 16]
    band1 = jnp.concatenate([band1[:, :, 0::2, :], band1[:, :, 1::2, :]], axis=2)
    w1m = band1.reshape(5 * 32, 28 * 16).astype(jnp.bfloat16)           # [160, 448]

    # stage 2: pooled stage-1 lanes are dense (i1, ci) with i1 in [0,14).
    # B2[ky][i1*16 + ci, col(i2, co2)] = w2[co2, ci, ky, i1 - i2 + 2]; columns
    # reordered to (i2%2 major, i2//2, co2).  K per ky = 224 (total 1120).
    ky = np.arange(5)[:, None, None, None, None]
    i1 = np.arange(14)[None, :, None, None, None]
    ci = np.arange(16)[None, None, :, None, None]
    i2 = np.arange(14)[None, None, None, :, None]
    co2 = np.arange(32)[None, None, None, None, :]
    kx = i1 - i2 + 2
    valid = (kx >= 0) & (kx < 5)
    band2 = jnp.where(valid, w2.astype(f32)[co2, ci, ky, np.clip(kx, 0, 4)], 0.0)  # [5,14,16,14,32]
    band2 = jnp.concatenate([band2[:, :, :, 0::2, :], band2[:, :, :, 1::2, :]], axis=3)
    w2m = band2.reshape(5, 14 * 16, 14 * 32).astype(jnp.bfloat16)       # [5, 224, 448]

    # fc: feature lanes are (j, p, co2); torch flatten order is co2*49 + j*7 + p.
    # Pad output columns 10 -> 128 for dense DMA / dense output store.
    j = np.arange(7)[:, None, None, None]
    p = np.arange(7)[None, :, None, None]
    co2 = np.arange(32)[None, None, :, None]
    n = np.arange(10)[None, None, None, :]
    cols = co2 * 49 + j * 7 + p
    wfm = wf.astype(f32)[n, cols].reshape(7 * 7 * 32, 10)               # [1568, 10]
    wfm = jnp.pad(wfm, ((0, 0), (0, 118))).astype(jnp.bfloat16)         # [1568, 128]

    bias1 = jnp.tile(b1.astype(f32), 28).reshape(1, 448)
    bias2 = jnp.tile(b2.astype(f32), 14).reshape(1, 448)
    biasf = jnp.pad(bf.astype(f32), (0, 118)).reshape(1, 128)
    return w1m, bias1, w2m, bias2, wfm, biasf


# ---------------------------------------------------------------------------
# Forward wrapper (only cheap pad / transpose / bf16 cast of the raw input outside)
# ---------------------------------------------------------------------------
def cnn_forward(x_nchw, packed, tile_b=TILE_B):
    w1m, bias1, w2m, bias2, wfm, biasf = packed
    B = x_nchw.shape[0]
    Bp = ((B + tile_b - 1) // tile_b) * tile_b

    x = x_nchw[:, 0, :, :].astype(jnp.bfloat16)           # bf16 input: halves the DMA
    x = jnp.pad(x, ((0, Bp - B), (2, 2), (2, 2)))         # batch pad + conv zero pad
    x = jnp.transpose(x, (1, 0, 2))                       # [32, Bp, 32] = (yp, b, xp)

    w_bytes = (160 * 448 + 5 * 224 * 448 + 1568 * 128) * 2 + (448 + 448 + 128) * 4
    cost = pl.CostEstimate(
        flops=2 * Bp * (28 * 160 * 448 + 14 * 1120 * 448 + 1568 * 128),
        transcendentals=0,
        bytes_accessed=32 * Bp * 32 * 2 + w_bytes + Bp * 128 * 4,
    )

    out = pl.pallas_call(
        _cnn_fused_kernel,
        out_shape=jax.ShapeDtypeStruct((Bp, 128), jnp.float32),
        grid=(Bp // tile_b,),
        in_specs=[
            pl.BlockSpec((32, tile_b, 32), lambda i: (0, i, 0)),   # input tile (pipelined)
            pl.BlockSpec((160, 448), lambda i: (0, 0)),            # stage-1 banded weights
            pl.BlockSpec((1, 448), lambda i: (0, 0)),
            pl.BlockSpec((5, 224, 448), lambda i: (0, 0, 0)),      # stage-2 per-ky banded weights
            pl.BlockSpec((1, 448), lambda i: (0, 0)),
            pl.BlockSpec((1568, 128), lambda i: (0, 0)),           # permuted, lane-padded fc weights
            pl.BlockSpec((1, 128), lambda i: (0, 0)),
        ],
        out_specs=pl.BlockSpec((tile_b, 128), lambda i: (i, 0)),
        compiler_params=pltpu.CompilerParams(
            dimension_semantics=("parallel",),
            vmem_limit_bytes=32 * 1024 * 1024,   # plenty at TILE_B=32 (<~8 MiB live), safe on v7x
        ),
        cost_estimate=cost,
    )(x, w1m, bias1, w2m, bias2, wfm, biasf)
    return out[:B, :10]


# ---------------------------------------------------------------------------
# Pure-JAX reference (same math via lax conv / reduce_window) for validation
# ---------------------------------------------------------------------------
def ref_forward(x_nchw, params):
    w1, b1, w2, b2, wf, bf = params
    dn = ("NCHW", "OIHW", "NCHW")
    y = jax.lax.conv_general_dilated(x_nchw, w1, (1, 1), ((2, 2), (2, 2)),
                                     dimension_numbers=dn) + b1[None, :, None, None]
    y = jnp.maximum(y, 0.0)
    y = jax.lax.reduce_window(y, -jnp.inf, jax.lax.max, (1, 1, 2, 2), (1, 1, 2, 2), "VALID")
    y = jax.lax.conv_general_dilated(y, w2, (1, 1), ((2, 2), (2, 2)),
                                     dimension_numbers=dn) + b2[None, :, None, None]
    y = jnp.maximum(y, 0.0)
    y = jax.lax.reduce_window(y, -jnp.inf, jax.lax.max, (1, 1, 2, 2), (1, 1, 2, 2), "VALID")
    y = y.reshape(y.shape[0], -1)
    return y @ wf.T + bf


if __name__ == "__main__":
    key = jax.random.PRNGKey(0)
    kx, k1, k2, k3, k4, k5, k6 = jax.random.split(key, 7)

    B = 48  # pads to 64 -> grid of 2 tiles: exercises DMA pipelining + batch-pad slicing
    # fc1 = Linear(32*7*7, 10) implies 28x28 spatial input (MNIST-style), 1 channel.
    x = jax.random.normal(kx, (B, 1, 28, 28), jnp.float32)

    params = (
        0.1 * jax.random.normal(k1, (16, 1, 5, 5), jnp.float32),     # cnn1.weight
        0.1 * jax.random.normal(k2, (16,), jnp.float32),             # cnn1.bias
        0.1 * jax.random.normal(k3, (32, 16, 5, 5), jnp.float32),    # cnn2.weight
        0.1 * jax.random.normal(k4, (32,), jnp.float32),             # cnn2.bias
        0.1 * jax.random.normal(k5, (10, 32 * 7 * 7), jnp.float32),  # fc1.weight
        0.1 * jax.random.normal(k6, (10,), jnp.float32),             # fc1.bias
    )

    packed = pack_params(params)          # one-time weight restructuring
    fwd = jax.jit(cnn_forward)
    out = jax.block_until_ready(fwd(x, packed))
    assert out.shape == (B, 10) and out.dtype == jnp.float32

    ref = jax.block_until_ready(ref_forward(x, params))
    rel_err = float(jnp.max(jnp.abs(out - ref)) / (jnp.max(jnp.abs(ref)) + 1e-6))
    # bf16 MXU inputs/weights with f32 accumulation: expect <~1% error.
    assert rel_err < 2e-2, f"mismatch vs reference, rel_err={rel_err}"

    print("KERNEL_OK")
</pallas_src>

<mosaic_0001>
module attributes {stable_mosaic.version = 11 : i64} {
  func.func @_cnn_fused_kernel(%arg0: i32, %arg1: memref<32x32x32xbf16, #tpu.memory_space<vmem>>, %arg2: memref<160x448xbf16, #tpu.memory_space<vmem>>, %arg3: memref<1x448xf32, #tpu.memory_space<vmem>>, %arg4: memref<5x224x448xbf16, #tpu.memory_space<vmem>>, %arg5: memref<1x448xf32, #tpu.memory_space<vmem>>, %arg6: memref<1568x128xbf16, #tpu.memory_space<vmem>>, %arg7: memref<1x128xf32, #tpu.memory_space<vmem>>, %arg8: memref<32x128xf32, #tpu.memory_space<vmem>>) attributes {dimension_semantics = [#tpu.dimension_semantics<parallel>], iteration_bounds = array<i64: 2>, scalar_prefetch = 0 : i64, scratch_operands = 0 : i64, tpu.core_type = #tpu.core_type<tc>, window_params = [{transform_indices = @transform_0, window_bounds = array<i64: 32, 32, 32>}, {pipeline_mode = #tpu.pipeline_mode<synchronous>, transform_indices = @transform_1, window_bounds = array<i64: 160, 448>}, {pipeline_mode = #tpu.pipeline_mode<synchronous>, transform_indices = @transform_2, window_bounds = array<i64: 1, 448>}, {pipeline_mode = #tpu.pipeline_mode<synchronous>, transform_indices = @transform_3, window_bounds = array<i64: 5, 224, 448>}, {pipeline_mode = #tpu.pipeline_mode<synchronous>, transform_indices = @transform_4, window_bounds = array<i64: 1, 448>}, {pipeline_mode = #tpu.pipeline_mode<synchronous>, transform_indices = @transform_5, window_bounds = array<i64: 1568, 128>}, {pipeline_mode = #tpu.pipeline_mode<synchronous>, transform_indices = @transform_6, window_bounds = array<i64: 1, 128>}, {transform_indices = @transform_7, window_bounds = array<i64: 32, 128>}]} {
    %c0 = arith.constant 0 : index
    %c0_0 = arith.constant 0 : index
    %c0_1 = arith.constant 0 : index
    %0 = vector.load %arg1[%c0, %c0_0, %c0_1] : memref<32x32x32xbf16, #tpu.memory_space<vmem>>, vector<32x32x32xbf16>
    %1 = vector.shape_cast %0 : vector<32x32x32xbf16> to vector<1024x32xbf16>
    %2 = vector.extract_strided_slice %1 {offsets = [0, 0], sizes = [896, 32], strides = [1, 1]} : vector<1024x32xbf16> to vector<896x32xbf16>
    %3 = vector.extract_strided_slice %1 {offsets = [32, 0], sizes = [896, 32], strides = [1, 1]} : vector<1024x32xbf16> to vector<896x32xbf16>
    %4 = vector.extract_strided_slice %1 {offsets = [64, 0], sizes = [896, 32], strides = [1, 1]} : vector<1024x32xbf16> to vector<896x32xbf16>
    %5 = vector.extract_strided_slice %1 {offsets = [96, 0], sizes = [896, 32], strides = [1, 1]} : vector<1024x32xbf16> to vector<896x32xbf16>
    %6 = vector.extract_strided_slice %1 {offsets = [128, 0], sizes = [896, 32], strides = [1, 1]} : vector<1024x32xbf16> to vector<896x32xbf16>
    %7 = tpu.concatenate %2, %3, %4, %5, %6 in 1 : vector<896x32xbf16>, vector<896x32xbf16>, vector<896x32xbf16>, vector<896x32xbf16>, vector<896x32xbf16> -> vector<896x160xbf16>
    %c0_2 = arith.constant 0 : index
    %c0_3 = arith.constant 0 : index
    %8 = vector.load %arg2[%c0_2, %c0_3] : memref<160x448xbf16, #tpu.memory_space<vmem>>, vector<160x448xbf16>
    %cst = arith.constant dense<0.000000e+00> : vector<896x448xf32>
    %9 = tpu.matmul %7, %8, %cst {dimension_numbers = #tpu.dot_dimension_numbers<[1], [0], [0], [1], [0, 0, 1, 1], [], []>} : vector<896x160xbf16>, vector<160x448xbf16>, vector<896x448xf32> -> vector<896x448xf32>
    %c0_4 = arith.constant 0 : index
    %c0_5 = arith.constant 0 : index
    %10 = vector.load %arg3[%c0_4, %c0_5] : memref<1x448xf32, #tpu.memory_space<vmem>>, vector<1x448xf32>
    %11 = vector.broadcast %10 : vector<1x448xf32> to vector<896x448xf32>
    %12 = arith.addf %9, %11 : vector<896x448xf32>
    %cst_6 = arith.constant 0.000000e+00 : f32
    %13 = vector.broadcast %cst_6 : f32 to vector<896x448xf32>
    %14 = arith.maximumf %12, %13 : vector<896x448xf32>
    %15 = vector.shape_cast %14 : vector<896x448xf32> to vector<14x64x448xf32>
    %16 = vector.extract_strided_slice %15 {offsets = [0, 0, 0], sizes = [14, 32, 448], strides = [1, 1, 1]} : vector<14x64x448xf32> to vector<14x32x448xf32>
    %17 = vector.extract_strided_slice %15 {offsets = [0, 32, 0], sizes = [14, 32, 448], strides = [1, 1, 1]} : vector<14x64x448xf32> to vector<14x32x448xf32>
    %18 = arith.maximumf %16, %17 : vector<14x32x448xf32>
    %19 = vector.extract_strided_slice %18 {offsets = [0, 0, 0], sizes = [14, 32, 224], strides = [1, 1, 1]} : vector<14x32x448xf32> to vector<14x32x224xf32>
    %20 = vector.extract_strided_slice %18 {offsets = [0, 0, 224], sizes = [14, 32, 224], strides = [1, 1, 1]} : vector<14x32x448xf32> to vector<14x32x224xf32>
    %21 = arith.maximumf %19, %20 : vector<14x32x224xf32>
    %22 = arith.truncf %21 : vector<14x32x224xf32> to vector<14x32x224xbf16>
    %cst_7 = arith.constant 0.000000e+00 : bf16
    %23 = vector.broadcast %cst_7 : bf16 to vector<2x32x224xbf16>
    %24 = tpu.concatenate %23, %22, %23 in 0 : vector<2x32x224xbf16>, vector<14x32x224xbf16>, vector<2x32x224xbf16> -> vector<18x32x224xbf16>
    %25 = vector.extract_strided_slice %24 {offsets = [0, 0, 0], sizes = [14, 32, 224], strides = [1, 1, 1]} : vector<18x32x224xbf16> to vector<14x32x224xbf16>
    %26 = vector.shape_cast %25 : vector<14x32x224xbf16> to vector<448x224xbf16>
    %c0_8 = arith.constant 0 : index
    %c0_9 = arith.constant 0 : index
    %c0_10 = arith.constant 0 : index
    %27 = vector.load %arg4[%c0_8, %c0_9, %c0_10] : memref<5x224x448xbf16, #tpu.memory_space<vmem>>, vector<1x224x448xbf16>
    %28 = vector.shape_cast %27 : vector<1x224x448xbf16> to vector<224x448xbf16>
    %cst_11 = arith.constant dense<0.000000e+00> : vector<448x448xf32>
    %29 = tpu.matmul %26, %28, %cst_11 {dimension_numbers = #tpu.dot_dimension_numbers<[1], [0], [0], [1], [0, 0, 1, 1], [], []>} : vector<448x224xbf16>, vector<224x448xbf16>, vector<448x448xf32> -> vector<448x448xf32>
    %30 = vector.extract_strided_slice %24 {offsets = [1, 0, 0], sizes = [14, 32, 224], strides = [1, 1, 1]} : vector<18x32x224xbf16> to vector<14x32x224xbf16>
    %31 = vector.shape_cast %30 : vector<14x32x224xbf16> to vector<448x224xbf16>
    %c1 = arith.constant 1 : index
    %c0_12 = arith.constant 0 : index
    %c0_13 = arith.constant 0 : index
    %32 = vector.load %arg4[%c1, %c0_12, %c0_13] : memref<5x224x448xbf16, #tpu.memory_space<vmem>>, vector<1x224x448xbf16>
    %33 = vector.shape_cast %32 : vector<1x224x448xbf16> to vector<224x448xbf16>
    %cst_14 = arith.constant dense<0.000000e+00> : vector<448x448xf32>
    %34 = tpu.matmul %31, %33, %cst_14 {dimension_numbers = #tpu.dot_dimension_numbers<[1], [0], [0], [1], [0, 0, 1, 1], [], []>} : vector<448x224xbf16>, vector<224x448xbf16>, vector<448x448xf32> -> vector<448x448xf32>
    %35 = arith.addf %29, %34 : vector<448x448xf32>
    %36 = vector.extract_strided_slice %24 {offsets = [2, 0, 0], sizes = [14, 32, 224], strides = [1, 1, 1]} : vector<18x32x224xbf16> to vector<14x32x224xbf16>
    %37 = vector.shape_cast %36 : vector<14x32x224xbf16> to vector<448x224xbf16>
    %c2 = arith.constant 2 : index
    %c0_15 = arith.constant 0 : index
    %c0_16 = arith.constant 0 : index
    %38 = vector.load %arg4[%c2, %c0_15, %c0_16] : memref<5x224x448xbf16, #tpu.memory_space<vmem>>, vector<1x224x448xbf16>
    %39 = vector.shape_cast %38 : vector<1x224x448xbf16> to vector<224x448xbf16>
    %cst_17 = arith.constant dense<0.000000e+00> : vector<448x448xf32>
    %40 = tpu.matmul %37, %39, %cst_17 {dimension_numbers = #tpu.dot_dimension_numbers<[1], [0], [0], [1], [0, 0, 1, 1], [], []>} : vector<448x224xbf16>, vector<224x448xbf16>, vector<448x448xf32> -> vector<448x448xf32>
    %41 = arith.addf %35, %40 : vector<448x448xf32>
    %42 = vector.extract_strided_slice %24 {offsets = [3, 0, 0], sizes = [14, 32, 224], strides = [1, 1, 1]} : vector<18x32x224xbf16> to vector<14x32x224xbf16>
    %43 = vector.shape_cast %42 : vector<14x32x224xbf16> to vector<448x224xbf16>
    %c3 = arith.constant 3 : index
    %c0_18 = arith.constant 0 : index
    %c0_19 = arith.constant 0 : index
    %44 = vector.load %arg4[%c3, %c0_18, %c0_19] : memref<5x224x448xbf16, #tpu.memory_space<vmem>>, vector<1x224x448xbf16>
    %45 = vector.shape_cast %44 : vector<1x224x448xbf16> to vector<224x448xbf16>
    %cst_20 = arith.constant dense<0.000000e+00> : vector<448x448xf32>
    %46 = tpu.matmul %43, %45, %cst_20 {dimension_numbers = #tpu.dot_dimension_numbers<[1], [0], [0], [1], [0, 0, 1, 1], [], []>} : vector<448x224xbf16>, vector<224x448xbf16>, vector<448x448xf32> -> vector<448x448xf32>
    %47 = arith.addf %41, %46 : vector<448x448xf32>
    %48 = vector.extract_strided_slice %24 {offsets = [4, 0, 0], sizes = [14, 32, 224], strides = [1, 1, 1]} : vector<18x32x224xbf16> to vector<14x32x224xbf16>
    %49 = vector.shape_cast %48 : vector<14x32x224xbf16> to vector<448x224xbf16>
    %c4 = arith.constant 4 : index
    %c0_21 = arith.constant 0 : index
    %c0_22 = arith.constant 0 : index
    %50 = vector.load %arg4[%c4, %c0_21, %c0_22] : memref<5x224x448xbf16, #tpu.memory_space<vmem>>, vector<1x224x448xbf16>
    %51 = vector.shape_cast %50 : vector<1x224x448xbf16> to vector<224x448xbf16>
    %cst_23 = arith.constant dense<0.000000e+00> : vector<448x448xf32>
    %52 = tpu.matmul %49, %51, %cst_23 {dimension_numbers = #tpu.dot_dimension_numbers<[1], [0], [0], [1], [0, 0, 1, 1], [], []>} : vector<448x224xbf16>, vector<224x448xbf16>, vector<448x448xf32> -> vector<448x448xf32>
    %53 = arith.addf %47, %52 : vector<448x448xf32>
    %c0_24 = arith.constant 0 : index
    %c0_25 = arith.constant 0 : index
    %54 = vector.load %arg5[%c0_24, %c0_25] : memref<1x448xf32, #tpu.memory_space<vmem>>, vector<1x448xf32>
    %55 = vector.broadcast %54 : vector<1x448xf32> to vector<448x448xf32>
    %56 = arith.addf %53, %55 : vector<448x448xf32>
    %cst_26 = arith.constant 0.000000e+00 : f32
    %57 = vector.broadcast %cst_26 : f32 to vector<448x448xf32>
    %58 = arith.maximumf %56, %57 : vector<448x448xf32>
    %59 = vector.shape_cast %58 : vector<448x448xf32> to vector<7x64x448xf32>
    %60 = vector.extract_strided_slice %59 {offsets = [0, 0, 0], sizes = [7, 32, 448], strides = [1, 1, 1]} : vector<7x64x448xf32> to vector<7x32x448xf32>
    %61 = vector.extract_strided_slice %59 {offsets = [0, 32, 0], sizes = [7, 32, 448], strides = [1, 1, 1]} : vector<7x64x448xf32> to vector<7x32x448xf32>
    %62 = arith.maximumf %60, %61 : vector<7x32x448xf32>
    %63 = vector.extract_strided_slice %62 {offsets = [0, 0, 0], sizes = [7, 32, 224], strides = [1, 1, 1]} : vector<7x32x448xf32> to vector<7x32x224xf32>
    %64 = vector.extract_strided_slice %62 {offsets = [0, 0, 224], sizes = [7, 32, 224], strides = [1, 1, 1]} : vector<7x32x448xf32> to vector<7x32x224xf32>
    %65 = arith.maximumf %63, %64 : vector<7x32x224xf32>
    %66 = arith.truncf %65 : vector<7x32x224xf32> to vector<7x32x224xbf16>
    %67 = vector.extract_strided_slice %66 {offsets = [0, 0, 0], sizes = [1, 32, 224], strides = [1, 1, 1]} : vector<7x32x224xbf16> to vector<1x32x224xbf16>
    %68 = vector.shape_cast %67 : vector<1x32x224xbf16> to vector<32x224xbf16>
    %69 = vector.extract_strided_slice %66 {offsets = [1, 0, 0], sizes = [1, 32, 224], strides = [1, 1, 1]} : vector<7x32x224xbf16> to vector<1x32x224xbf16>
    %70 = vector.shape_cast %69 : vector<1x32x224xbf16> to vector<32x224xbf16>
    %71 = vector.extract_strided_slice %66 {offsets = [2, 0, 0], sizes = [1, 32, 224], strides = [1, 1, 1]} : vector<7x32x224xbf16> to vector<1x32x224xbf16>
    %72 = vector.shape_cast %71 : vector<1x32x224xbf16> to vector<32x224xbf16>
    %73 = vector.extract_strided_slice %66 {offsets = [3, 0, 0], sizes = [1, 32, 224], strides = [1, 1, 1]} : vector<7x32x224xbf16> to vector<1x32x224xbf16>
    %74 = vector.shape_cast %73 : vector<1x32x224xbf16> to vector<32x224xbf16>
    %75 = vector.extract_strided_slice %66 {offsets = [4, 0, 0], sizes = [1, 32, 224], strides = [1, 1, 1]} : vector<7x32x224xbf16> to vector<1x32x224xbf16>
    %76 = vector.shape_cast %75 : vector<1x32x224xbf16> to vector<32x224xbf16>
    %77 = vector.extract_strided_slice %66 {offsets = [5, 0, 0], sizes = [1, 32, 224], strides = [1, 1, 1]} : vector<7x32x224xbf16> to vector<1x32x224xbf16>
    %78 = vector.shape_cast %77 : vector<1x32x224xbf16> to vector<32x224xbf16>
    %79 = vector.extract_strided_slice %66 {offsets = [6, 0, 0], sizes = [1, 32, 224], strides = [1, 1, 1]} : vector<7x32x224xbf16> to vector<1x32x224xbf16>
    %80 = vector.shape_cast %79 : vector<1x32x224xbf16> to vector<32x224xbf16>
    %81 = tpu.concatenate %68, %70, %72, %74, %76, %78, %80 in 1 : vector<32x224xbf16>, vector<32x224xbf16>, vector<32x224xbf16>, vector<32x224xbf16>, vector<32x224xbf16>, vector<32x224xbf16>, vector<32x224xbf16> -> vector<32x1568xbf16>
    %c0_27 = arith.constant 0 : index
    %c0_28 = arith.constant 0 : index
    %82 = vector.load %arg6[%c0_27, %c0_28] : memref<1568x128xbf16, #tpu.memory_space<vmem>>, vector<1568x128xbf16>
    %cst_29 = arith.constant dense<0.000000e+00> : vector<32x128xf32>
    %83 = tpu.matmul %81, %82, %cst_29 {dimension_numbers = #tpu.dot_dimension_numbers<[1], [0], [0], [1], [0, 0, 1, 1], [], []>} : vector<32x1568xbf16>, vector<1568x128xbf16>, vector<32x128xf32> -> vector<32x128xf32>
    %c0_30 = arith.constant 0 : index
    %c0_31 = arith.constant 0 : index
    %84 = vector.load %arg7[%c0_30, %c0_31] : memref<1x128xf32, #tpu.memory_space<vmem>>, vector<1x128xf32>
    %85 = vector.broadcast %84 : vector<1x128xf32> to vector<32x128xf32>
    %86 = arith.addf %83, %85 : vector<32x128xf32>
    %c0_32 = arith.constant 0 : index
    %c0_33 = arith.constant 0 : index
    %87 = vector.load %arg8[%c0_32, %c0_33] : memref<32x128xf32, #tpu.memory_space<vmem>>, vector<32x128xf32>
    tpu.vector_store %arg8[%c0_32, %c0_33], %86 {strides = array<i32>} : memref<32x128xf32, #tpu.memory_space<vmem>>, vector<32x128xf32>,
    return
  }
  func.func @transform_0(%arg0: i32) -> (i32, i32, i32) {
    %c0_i32 = arith.constant 0 : i32
    %c0_i32_0 = arith.constant 0 : i32
    %c0_i32_1 = arith.constant 0 : i32
    return %c0_i32, %arg0, %c0_i32_0 : i32, i32, i32
  }
  func.func @transform_1(%arg0: i32) -> (i32, i32) {
    %c0_i32 = arith.constant 0 : i32
    %c0_i32_0 = arith.constant 0 : i32
    %c0_i32_1 = arith.constant 0 : i32
    return %c0_i32, %c0_i32_0 : i32, i32
  }
  func.func @transform_2(%arg0: i32) -> (i32, i32) {
    %c0_i32 = arith.constant 0 : i32
    %c0_i32_0 = arith.constant 0 : i32
    %c0_i32_1 = arith.constant 0 : i32
    return %c0_i32, %c0_i32_0 : i32, i32
  }
  func.func @transform_3(%arg0: i32) -> (i32, i32, i32) {
    %c0_i32 = arith.constant 0 : i32
    %c0_i32_0 = arith.constant 0 : i32
    %c0_i32_1 = arith.constant 0 : i32
    %c0_i32_2 = arith.constant 0 : i32
    return %c0_i32, %c0_i32_0, %c0_i32_1 : i32, i32, i32
  }
  func.func @transform_4(%arg0: i32) -> (i32, i32) {
    %c0_i32 = arith.constant 0 : i32
    %c0_i32_0 = arith.constant 0 : i32
    %c0_i32_1 = arith.constant 0 : i32
    return %c0_i32, %c0_i32_0 : i32, i32
  }
  func.func @transform_5(%arg0: i32) -> (i32, i32) {
    %c0_i32 = arith.constant 0 : i32
    %c0_i32_0 = arith.constant 0 : i32
    %c0_i32_1 = arith.constant 0 : i32
    return %c0_i32, %c0_i32_0 : i32, i32
  }
  func.func @transform_6(%arg0: i32) -> (i32, i32) {
    %c0_i32 = arith.constant 0 : i32
    %c0_i32_0 = arith.constant 0 : i32
    %c0_i32_1 = arith.constant 0 : i32
    return %c0_i32, %c0_i32_0 : i32, i32
  }
  func.func @transform_7(%arg0: i32) -> (i32, i32) {
    %c0_i32 = arith.constant 0 : i32
    %c0_i32_0 = arith.constant 0 : i32
    return %arg0, %c0_i32 : i32, i32
  }
}

</mosaic_0001>

<bundles_post_ra>
// kernel: cnn_forward.1
= control target key start
LH: loop header
LB: loop body
LE: loop exit
PB: predicated region body
PF: predicated region fallthrough
CT: control target
= control target key end

     0   :  { %12 = vsyncpa [#allocation4], 0  ;;  %s16807_s24 = smov 0   ;;  %s16809_s25 = smov 0   ;;  %s23802_s0 = inlined_call_operand.vmem [shape: bf16[32,64,32], index: 0, kind: input, shape index: {}]   ;;  %s23803_s1 = inlined_call_operand.hbm [shape: bf16[160,448], index: 1, kind: input, shape index: {}]   ;;  %s23804_s2 = inlined_call_operand.vmem [shape: f32[1,448], index: 2, kind: input, shape index: {}]   ;;  %s23805_s3 = inlined_call_operand.vmem [shape: bf16[5,224,448], index: 3, kind: input, shape index: {}]   ;;  %s23806_s4 = inlined_call_operand.vmem [shape: f32[1,448], index: 4, kind: input, shape index: {}]   ;;  %s23807_s5 = inlined_call_operand.vmem [shape: bf16[1568,128], index: 5, kind: input, shape index: {}]   ;;  %s23808_s6 = inlined_call_operand.vmem [shape: f32[1,128], index: 6, kind: input, shape index: {}]   ;;  %s23809_s7 = inlined_call_operand.vmem [shape: f32[64,128], index: 7, kind: output, shape index: {}]  }
   0x1   :  { %s16811_s26 = smov 0  }
   0x2 LB: > { %s13162_s27 = sadd.s32 4294967295, %s16758_s26   ;;  %s16824_s28 = sadd.s32 1, %s16758_s26   ;;  %s16758_s26 = sphi %s16811_s26, %s24514_s26   ;;  %s16754_s25 = sphi %s16809_s25, %s24513_s25   ;;  %s16750_s24 = sphi %s16807_s24, %s24512_s24  }
   0x3   : > { %s22_s29 = ssub.s32 %s16758_s26, %s16824_s28  ;;  %s25_s30 = sadd.s32 1, %s16754_s25 }
   0x4   : > { %p23_p0 = scmp.eq.s32.totalorder %s22_s29, 0  ;;  %p32_p1 = scmp.ne.s32.totalorder %s16754_s25, %s16750_s24 }
   0x5   : > { %p33_p2 = scmp.eq.s32.totalorder %s16758_s26, 0  ;;  %p13164_p3 = scmp.ge.s32.totalorder %s16758_s26, 1 }
   0x6   : > { %s16834_s8 = scalar_select %p23_p0, %s16754_s25, %s25_s30  }
   0x7   : > { %p16836_p4 = por %p33_p2, %p32_p1  ;;  %p201_p5 = scmp.lt.s32.totalorder %s16758_s26, 3 }
   0x8   : > { %p16843_p6 = scmp.eq.s32.totalorder %s13162_s27, 0  ;;  %s16760_s12 = smov [#allocation3]  }
   0x9   : > { %s23984_s9 = scalar_select %p16836_p4, 1, 0 }
   0xa   : > { %s23985_s10 = scalar_select %p16843_p6, 1, 0 }
   0xb   : > { %p16847_p7 = pnand %p13164_p3, %p201_p5  ;;  %s213_s13 = sshll.u32 %s16760_s12, 4  ;;  %s214_s13 = int_to_ptr.vmem [resolvable:$true] %s213_s13 }
   0xc   : > { %s16704_s17 = scalar_lea.hbm %s23803_s1, 5120 }
   0xd   : > { %s23986_s11 = scalar_select %p16847_p7, 1, 0 }
   0xe   : > { %p15335_p8 = pneg %p16847_p7  ;;  %p16705_p10 = scmp.ne.s32.totalorder %s23803_s1, %s16704_s17 }
   0xf   : > { %p16711_p0 = scmp.lt.u32.totalorder %s16704_s17, %s23803_s1 }
  0x10   : > { %p16855_p9 = pnand %p16843_p6, %p15335_p8 }
  0x12   : > { %p16706_p11 = pneg %p16855_p9 }
  0x14   : > { %p16707_p12 = pnand %p16706_p11, %p16705_p10 }
  0x16   : > { %p16708_p13 = pneg %p16707_p12 }
  0x18   : > { %p16713_p1 = pnand %p16711_p0, %p16708_p13 }
  0x1a   : > { %16716 = shalt.err (!%p16713_p1)
}
  0x1b   : > { %s16717_s22 = scalar_lea.vmem %s214_s13, 5120  ;;  %p16725_p8 = scmp.lt.s32.totalorder %s214_s13, %s214_s13 }
  0x1c   : > { %p16718_p2 = scmp.ne.s32.totalorder %s214_s13, %s16717_s22  ;;  %p16726_p6 = scmp.lt.s32.totalorder %s16717_s22, %s16717_s22 }
  0x1e   : > { %p16720_p3 = pnand %p16718_p2, %p16706_p11  ;;  %p16727_p7 = por %p16726_p6, %p16725_p8 }
  0x20   : > { %p16721_p5 = pneg %p16720_p3 }
  0x22   : > { %p16728_p4 = pnand %p16727_p7, %p16721_p5 }
  0x24   : > { %16731 = shalt.err (!%p16728_p4)
}
  0x25   : > { %s16761_s23 = smov 256   ;;  %s16762_s29 = smov 16  }
  0x26   : > { %15338 = dma.hbm_to_vmem [thread:$0]  (!%p16855_p9), %s23803_s1, 5120, %s214_s13, [#allocation4], %s16761_s23, %s16761_s23, %s16762_s29  }
  0x27   : > { %p13166_p10 = scmp.ge.s32.totalorder %s16758_s26, 2 }
  0x28   : > { %p23988_p12 = scmp.ne.s32.totalorder (!%p13166_p10), %s23984_s9, 0 }
  0x29   : > { %238 = sbr.rel (%p13166_p10) target bundleno = 84 (0x54), region = 40 }
  0x30   : > { %241 = sbr.rel (!%p23988_p12) target bundleno = 84 (0x54), region = 44  ;;  %s243_s15 = sand.u32 (%p23988_p12), 1, %s16754_s25  }
  0x31   : > { %s14254_s16 = sshll.u32 (%p23988_p12), %s16758_s26, 4  ;;  %s13167_s17 = sshll.u32 (%p23988_p12), %s243_s15, 9 }
  0x32   : > { %s16883_s20 = scalar_lea.vmem (%p23988_p12), %s23802_s0, %s14254_s16  ;;  %s16888_s9 = scalar_lea.vmem (%p23988_p12), [#allocation2], %s13167_s17 }
  0x33   : > { %v264_v0 = vld [vmem:[%s16883_s20] sm:$0xff] (%p23988_p12)   ;;  %v268_v1 = vld [vmem:[%s16883_s20 + $0x8] sm:$0xff] (%p23988_p12)  }
  0x34   : > { %v272_v2 = vld [vmem:[%s16883_s20 + $0x20] sm:$0xff] (%p23988_p12)   ;;  %265 = vst [vmem:[%s16888_s9] sm:$0xff] (%p23988_p12), %v264_v0   ;;  %269 = vst [vmem:[%s16888_s9 + $0x8] sm:$0xff] (%p23988_p12), %v268_v1   ;;  %v276_v3 = vld [vmem:[%s16883_s20 + $0x28] sm:$0xff] (%p23988_p12)  }
  0x35   : > { %273 = vst [vmem:[%s16888_s9 + $0x10] sm:$0xff] (%p23988_p12), %v272_v2   ;;  %v280_v4 = vld [vmem:[%s16883_s20 + $0x40] sm:$0xff] (%p23988_p12)   ;;  %v284_v5 = vld [vmem:[%s16883_s20 + $0x48] sm:$0xff] (%p23988_p12)   ;;  %277 = vst [vmem:[%s16888_s9 + $0x18] sm:$0xff] (%p23988_p12), %v276_v3  }
  0x36   : > { %281 = vst [vmem:[%s16888_s9 + $0x20] sm:$0xff] (%p23988_p12), %v280_v4   ;;  %285 = vst [vmem:[%s16888_s9 + $0x28] sm:$0xff] (%p23988_p12), %v284_v5   ;;  %v288_v6 = vld [vmem:[%s16883_s20 + $0x60] sm:$0xff] (%p23988_p12)   ;;  %v292_v7 = vld [vmem:[%s16883_s20 + $0x68] sm:$0xff] (%p23988_p12)  }
  0x37   : > { %v296_v8 = vld [vmem:[%s16883_s20 + $0x80] sm:$0xff]   ;;  %289 = vst [vmem:[%s16888_s9 + $0x30] sm:$0xff] %v288_v6   ;;  %293 = vst [vmem:[%s16888_s9 + $0x38] sm:$0xff] %v292_v7   ;;  %v300_v9 = vld [vmem:[%s16883_s20 + $0x88] sm:$0xff]  }
  0x38   : > { %297 = vst [vmem:[%s16888_s9 + $0x40] sm:$0xff] %v296_v8   ;;  %v304_v10 = vld [vmem:[%s16883_s20 + $0xa0] sm:$0xff]   ;;  %v308_v11 = vld [vmem:[%s16883_s20 + $0xa8] sm:$0xff]   ;;  %301 = vst [vmem:[%s16888_s9 + $0x48] sm:$0xff] %v300_v9  }
  0x39   : > { %305 = vst [vmem:[%s16888_s9 + $0x50] sm:$0xff] %v304_v10   ;;  %309 = vst [vmem:[%s16888_s9 + $0x58] sm:$0xff] %v308_v11   ;;  %v312_v12 = vld [vmem:[%s16883_s20 + $0xc0] sm:$0xff]   ;;  %v316_v13 = vld [vmem:[%s16883_s20 + $0xc8] sm:$0xff]  }
  0x3a   : > { %v320_v14 = vld [vmem:[%s16883_s20 + $0xe0] sm:$0xff]   ;;  %313 = vst [vmem:[%s16888_s9 + $0x60] sm:$0xff] %v312_v12   ;;  %317 = vst [vmem:[%s16888_s9 + $0x68] sm:$0xff] %v316_v13   ;;  %v324_v15 = vld [vmem:[%s16883_s20 + $0xe8] sm:$0xff]  }
  0x3b   : > { %321 = vst [vmem:[%s16888_s9 + $0x70] sm:$0xff] %v320_v14   ;;  %v328_v16 = vld [vmem:[%s16883_s20 + $0x100] sm:$0xff]   ;;  %v332_v17 = vld [vmem:[%s16883_s20 + $0x108] sm:$0xff]   ;;  %325 = vst [vmem:[%s16888_s9 + $0x78] sm:$0xff] %v324_v15  }
  0x3c   : > { %329 = vst [vmem:[%s16888_s9 + $0x80] sm:$0xff] %v328_v16   ;;  %333 = vst [vmem:[%s16888_s9 + $0x88] sm:$0xff] %v332_v17   ;;  %v336_v18 = vld [vmem:[%s16883_s20 + $0x120] sm:$0xff]   ;;  %v340_v19 = vld [vmem:[%s16883_s20 + $0x128] sm:$0xff]  }
  0x3d   : > { %v344_v20 = vld [vmem:[%s16883_s20 + $0x140] sm:$0xff]   ;;  %337 = vst [vmem:[%s16888_s9 + $0x90] sm:$0xff] %v336_v18   ;;  %341 = vst [vmem:[%s16888_s9 + $0x98] sm:$0xff] %v340_v19   ;;  %v348_v21 = vld [vmem:[%s16883_s20 + $0x148] sm:$0xff]  }
  0x3e   : > { %345 = vst [vmem:[%s16888_s9 + $0xa0] sm:$0xff] %v344_v20   ;;  %v352_v22 = vld [vmem:[%s16883_s20 + $0x160] sm:$0xff]   ;;  %v356_v23 = vld [vmem:[%s16883_s20 + $0x168] sm:$0xff]   ;;  %349 = vst [vmem:[%s16888_s9 + $0xa8] sm:$0xff] %v348_v21  }
  0x3f   : > { %353 = vst [vmem:[%s16888_s9 + $0xb0] sm:$0xff] %v352_v22   ;;  %357 = vst [vmem:[%s16888_s9 + $0xb8] sm:$0xff] %v356_v23   ;;  %v360_v24 = vld [vmem:[%s16883_s20 + $0x180] sm:$0xff]   ;;  %v364_v25 = vld [vmem:[%s16883_s20 + $0x188] sm:$0xff]  }
  0x40   : > { %v368_v26 = vld [vmem:[%s16883_s20 + $0x1a0] sm:$0xff]   ;;  %361 = vst [vmem:[%s16888_s9 + $0xc0] sm:$0xff] %v360_v24   ;;  %365 = vst [vmem:[%s16888_s9 + $0xc8] sm:$0xff] %v364_v25   ;;  %v372_v27 = vld [vmem:[%s16883_s20 + $0x1a8] sm:$0xff]  }
  0x41   : > { %369 = vst [vmem:[%s16888_s9 + $0xd0] sm:$0xff] %v368_v26   ;;  %v376_v28 = vld [vmem:[%s16883_s20 + $0x1c0] sm:$0xff]   ;;  %v380_v29 = vld [vmem:[%s16883_s20 + $0x1c8] sm:$0xff]   ;;  %373 = vst [vmem:[%s16888_s9 + $0xd8] sm:$0xff] %v372_v27  }
  0x42   : > { %377 = vst [vmem:[%s16888_s9 + $0xe0] sm:$0xff] %v376_v28   ;;  %381 = vst [vmem:[%s16888_s9 + $0xe8] sm:$0xff] %v380_v29   ;;  %v384_v30 = vld [vmem:[%s16883_s20 + $0x1e0] sm:$0xff]   ;;  %v388_v31 = vld [vmem:[%s16883_s20 + $0x1e8] sm:$0xff]  }
  0x43   : > { %v392_v32 = vld [vmem:[%s16883_s20 + $0x200] sm:$0xff]   ;;  %385 = vst [vmem:[%s16888_s9 + $0xf0] sm:$0xff] %v384_v30   ;;  %389 = vst [vmem:[%s16888_s9 + $0xf8] sm:$0xff] %v388_v31   ;;  %v396_v33 = vld [vmem:[%s16883_s20 + $0x208] sm:$0xff]  }
  0x44   : > { %393 = vst [vmem:[%s16888_s9 + $0x100] sm:$0xff] %v392_v32   ;;  %v400_v34 = vld [vmem:[%s16883_s20 + $0x220] sm:$0xff]   ;;  %v404_v35 = vld [vmem:[%s16883_s20 + $0x228] sm:$0xff]   ;;  %397 = vst [vmem:[%s16888_s9 + $0x108] sm:$0xff] %v396_v33  }
  0x45   : > { %401 = vst [vmem:[%s16888_s9 + $0x110] sm:$0xff] %v400_v34   ;;  %405 = vst [vmem:[%s16888_s9 + $0x118] sm:$0xff] %v404_v35   ;;  %v408_v36 = vld [vmem:[%s16883_s20 + $0x240] sm:$0xff]   ;;  %v412_v37 = vld [vmem:[%s16883_s20 + $0x248] sm:$0xff]  }
  0x46   : > { %v416_v38 = vld [vmem:[%s16883_s20 + $0x260] sm:$0xff]   ;;  %409 = vst [vmem:[%s16888_s9 + $0x120] sm:$0xff] %v408_v36   ;;  %413 = vst [vmem:[%s16888_s9 + $0x128] sm:$0xff] %v412_v37   ;;  %v420_v39 = vld [vmem:[%s16883_s20 + $0x268] sm:$0xff]  }
  0x47   : > { %417 = vst [vmem:[%s16888_s9 + $0x130] sm:$0xff] %v416_v38   ;;  %v424_v40 = vld [vmem:[%s16883_s20 + $0x280] sm:$0xff]   ;;  %v428_v41 = vld [vmem:[%s16883_s20 + $0x288] sm:$0xff]   ;;  %421 = vst [vmem:[%s16888_s9 + $0x138] sm:$0xff] %v420_v39  }
  0x48   : > { %425 = vst [vmem:[%s16888_s9 + $0x140] sm:$0xff] %v424_v40   ;;  %429 = vst [vmem:[%s16888_s9 + $0x148] sm:$0xff] %v428_v41   ;;  %v432_v42 = vld [vmem:[%s16883_s20 + $0x2a0] sm:$0xff]   ;;  %v436_v43 = vld [vmem:[%s16883_s20 + $0x2a8] sm:$0xff]  }
  0x49   : > { %v440_v44 = vld [vmem:[%s16883_s20 + $0x2c0] sm:$0xff]   ;;  %433 = vst [vmem:[%s16888_s9 + $0x150] sm:$0xff] %v432_v42   ;;  %437 = vst [vmem:[%s16888_s9 + $0x158] sm:$0xff] %v436_v43   ;;  %v444_v45 = vld [vmem:[%s16883_s20 + $0x2c8] sm:$0xff]  }
  0x4a   : > { %441 = vst [vmem:[%s16888_s9 + $0x160] sm:$0xff] %v440_v44   ;;  %v448_v46 = vld [vmem:[%s16883_s20 + $0x2e0] sm:$0xff]   ;;  %v452_v47 = vld [vmem:[%s16883_s20 + $0x2e8] sm:$0xff]   ;;  %445 = vst [vmem:[%s16888_s9 + $0x168] sm:$0xff] %v444_v45  }
  0x4b   : > { %449 = vst [vmem:[%s16888_s9 + $0x170] sm:$0xff] %v448_v46   ;;  %453 = vst [vmem:[%s16888_s9 + $0x178] sm:$0xff] %v452_v47   ;;  %v456_v48 = vld [vmem:[%s16883_s20 + $0x300] sm:$0xff]   ;;  %v460_v49 = vld [vmem:[%s16883_s20 + $0x308] sm:$0xff]  }
  0x4c   : > { %v464_v50 = vld [vmem:[%s16883_s20 + $0x320] sm:$0xff]   ;;  %457 = vst [vmem:[%s16888_s9 + $0x180] sm:$0xff] %v456_v48   ;;  %461 = vst [vmem:[%s16888_s9 + $0x188] sm:$0xff] %v460_v49   ;;  %v468_v51 = vld [vmem:[%s16883_s20 + $0x328] sm:$0xff]  }
  0x4d   : > { %465 = vst [vmem:[%s16888_s9 + $0x190] sm:$0xff] %v464_v50   ;;  %v472_v52 = vld [vmem:[%s16883_s20 + $0x340] sm:$0xff]   ;;  %v476_v53 = vld [vmem:[%s16883_s20 + $0x348] sm:$0xff]   ;;  %469 = vst [vmem:[%s16888_s9 + $0x198] sm:$0xff] %v468_v51  }
  0x4e   : > { %473 = vst [vmem:[%s16888_s9 + $0x1a0] sm:$0xff] %v472_v52   ;;  %477 = vst [vmem:[%s16888_s9 + $0x1a8] sm:$0xff] %v476_v53   ;;  %v480_v54 = vld [vmem:[%s16883_s20 + $0x360] sm:$0xff]   ;;  %v484_v55 = vld [vmem:[%s16883_s20 + $0x368] sm:$0xff]  }
  0x4f   : > { %v488_v56 = vld [vmem:[%s16883_s20 + $0x380] sm:$0xff]   ;;  %481 = vst [vmem:[%s16888_s9 + $0x1b0] sm:$0xff] %v480_v54   ;;  %485 = vst [vmem:[%s16888_s9 + $0x1b8] sm:$0xff] %v484_v55   ;;  %v492_v57 = vld [vmem:[%s16883_s20 + $0x388] sm:$0xff]  }
  0x50   : > { %489 = vst [vmem:[%s16888_s9 + $0x1c0] sm:$0xff] %v488_v56   ;;  %v496_v58 = vld [vmem:[%s16883_s20 + $0x3a0] sm:$0xff]   ;;  %v500_v59 = vld [vmem:[%s16883_s20 + $0x3a8] sm:$0xff]   ;;  %493 = vst [vmem:[%s16888_s9 + $0x1c8] sm:$0xff] %v492_v57  }
  0x51   : > { %497 = vst [vmem:[%s16888_s9 + $0x1d0] sm:$0xff] %v496_v58   ;;  %501 = vst [vmem:[%s16888_s9 + $0x1d8] sm:$0xff] %v500_v59   ;;  %v504_v60 = vld [vmem:[%s16883_s20 + $0x3c0] sm:$0xff]   ;;  %v508_v61 = vld [vmem:[%s16883_s20 + $0x3c8] sm:$0xff]  }
  0x52   : > { %v512_v62 = vld [vmem:[%s16883_s20 + $0x3e0] sm:$0xff]   ;;  %505 = vst [vmem:[%s16888_s9 + $0x1e0] sm:$0xff] %v504_v60   ;;  %509 = vst [vmem:[%s16888_s9 + $0x1e8] sm:$0xff] %v508_v61   ;;  %v516_v63 = vld [vmem:[%s16883_s20 + $0x3e8] sm:$0xff]  }
  0x53   : > { %513 = vst [vmem:[%s16888_s9 + $0x1f0] sm:$0xff] %v512_v62   ;;  %517 = vst [vmem:[%s16888_s9 + $0x1f8] sm:$0xff] %v516_v63  }
  0x54 PF: > { %p23989_p4 = scmp.ne.s32.totalorder %s23986_s11, 0 }
  0x56   : > { %801 = sbr.rel (%p23989_p4) target bundleno = 2576 (0xa10), region = 85 }
  0x5d   : > { %s804_s13 = sand.u32 1, %s16750_s24   ;;  %p23990_p6 = scmp.ne.s32.totalorder %s23985_s10, 0 }
  0x5e   : > { %s13171_s14 = sshll.u32 %s804_s13, 9 }
  0x5f   : > { %s17018_s21 = scalar_lea.vmem [#allocation2], %s13171_s14 }
  0x60   : > { %16745 = dma.done.wait (%p23990_p6), [#allocation4], 5120  }
  0x61   : > { %16747 = vsyncadd (%p23990_p6), [#allocation4], 4294962176  ;;  %v16002_v0 = vld [vmem:[%s17018_s21 + $0x10] sm:$0xff]   ;;  %s16763_s11 = smov 32   ;;  %v16004_v2 = vld [vmem:[%s17018_s21 + $0x20] sm:$0xff]   ;;  %s16764_s24 = smov 96  }
  0x62   : > { %v16003_v1 = vld [vmem:[%s17018_s21 + $0x30] sm:$0xff]   ;;  %1265 = vrot.lane.b32.xlu0 %v16002_v0, %s16763_s11  ;;  %v16005_v3 = vld [vmem:[%s17018_s21 + $0x18] sm:$0xff]   ;;  %v16006_v4 = vld [vmem:[%s17018_s21 + $0x28] sm:$0xff]   ;;  %s16765_s10 = smov 64   ;;  %vm1631_vm0 = vcmask 261120   ;;  %vm1800_vm1 = vcmask 523264  }
  0x63   : > { %1509 = vrot.lane.b32.xlu1 %v16003_v1, %s16764_s24  ;;  %v17033_v5 = vld [vmem:[%s17018_s21 + $0x40] sm:$0xff]   ;;  %v16007_v6 = vld [vmem:[%s17018_s21 + $0x38] sm:$0xff]   ;;  %v17046_v11 = vld [vmem:[%s17018_s21 + $0x48] sm:$0xff]   ;;  %vm1913_vm2 = vcmask 785408   ;;  %s13173_s30 = sshll.u32 %s13162_s27, 2 }
  0x64   : > { %13279 = vmatprep.mubr.msk.bf16.mxu0 %vm1631_vm0, %v17033_v5  ;;  %13335 = vmatprep.mubr.msk.bf16.mxu1 %vm1631_vm0, %v17033_v5  ;;  %v16016_v7 = vld [vmem:[#allocation3 + $0x4] ss:$16 sps:$4 sm:$0xff]   ;;  %v16018_v8 = vld [vmem:[#allocation3 + $0xc] ss:$16 sps:$4 sm:$0xff]   ;;  %v16020_v9 = vld [vmem:[#allocation3] ss:$16 sps:$4 sm:$0xff]  }
  0x65   : > { %2464 = vmatprep.subr.bf16.mxu0 %v16016_v7  ;;  %v16021_v10 = vld [vmem:[#allocation3 + $0x8] ss:$16 sps:$4 sm:$0xff]   ;;  %3057 = vmatprep.subr.bf16.mxu1 %v16018_v8  ;;  %v16023_v12 = vld [vmem:[#allocation3 + $0x24] ss:$16 sps:$4 sm:$0xff]   ;;  %v16025_v13 = vld [vmem:[#allocation3 + $0x2c] ss:$16 sps:$4 sm:$0xff]  }
  0x66   : > { %1387 = vrot.lane.b32.xlu0 %v16004_v2, %s16765_s10  ;;  %2465 = vmatpush1.bf16.msra.mxu0 %v16020_v9  ;;  %v16027_v14 = vld [vmem:[#allocation3 + $0x20] ss:$16 sps:$4 sm:$0xff]   ;;  %v16028_v15 = vld [vmem:[#allocation3 + $0x28] ss:$16 sps:$4 sm:$0xff]   ;;  %v16029_v16 = vld [vmem:[#allocation3 + $0x44] ss:$16 sps:$4 sm:$0xff]  }
  0x67   : > { %1267 = vrot.lane.b32.xlu1 %v16005_v3, %s16763_s11  ;;  %3058 = vmatpush1.bf16.msra.mxu1 %v16021_v10  ;;  %v16031_v17 = vld [vmem:[#allocation3 + $0x4c] ss:$16 sps:$4 sm:$0xff]   ;;  %v16033_v18 = vld [vmem:[#allocation3 + $0x40] ss:$16 sps:$4 sm:$0xff]   ;;  %v16034_v19 = vld [vmem:[#allocation3 + $0x48] ss:$16 sps:$4 sm:$0xff]  }
  0x68   : > { %2466 = vmatprep.subr.bf16.mxu0 %v16023_v12  ;;  %3059 = vmatprep.subr.bf16.mxu1 %v16025_v13  ;;  %v16036_v20 = vld [vmem:[#allocation3 + $0x64] ss:$16 sps:$4 sm:$0xff]   ;;  %v16038_v21 = vld [vmem:[#allocation3 + $0x6c] ss:$16 sps:$4 sm:$0xff]   ;;  %v16040_v23 = vld [vmem:[#allocation3 + $0x60] ss:$16 sps:$4 sm:$0xff]  }
  0x69   : > { %v17056_v22 = vld [vmem:[%s17018_s21 + $0x50] sm:$0xff]   ;;  %v16041_v24 = vld [vmem:[#allocation3 + $0x68] ss:$16 sps:$4 sm:$0xff]   ;;  %v16044_v26 = vld [vmem:[#allocation3 + $0x8c] ss:$16 sps:$4 sm:$0xff]   ;;  %p841_p7 = scmp.lt.s32.totalorder %s13173_s30, 7 }
  0x6a   : > { %1389 = vrot.lane.b32.xlu0 %v16006_v4, %s16765_s10  ;;  %2467 = vmatpush1.bf16.msra.mxu0 %v16027_v14  ;;  %v16042_v25 = vld [vmem:[#allocation3 + $0x84] ss:$16 sps:$4 sm:$0xff]   ;;  %v17061_v27 = vld [vmem:[%s17018_s21 + $0x58] sm:$0xff]   ;;  %v16046_v28 = vld [vmem:[#allocation3 + $0x80] ss:$16 sps:$4 sm:$0xff]  }
  0x6b   : > { %1511 = vrot.lane.b32.xlu1 %v16007_v6, %s16764_s24  ;;  %3060 = vmatpush1.bf16.msra.mxu1 %v16028_v15  ;;  %v16047_v29 = vld [vmem:[#allocation3 + $0x88] ss:$16 sps:$4 sm:$0xff]   ;;  %v16049_v30 = vld [vmem:[#allocation3 + $0xa4] ss:$16 sps:$4 sm:$0xff]   ;;  %v16051_v31 = vld [vmem:[#allocation3 + $0xac] ss:$16 sps:$4 sm:$0xff]  }
  0x6c   : > { %2468 = vmatprep.subr.bf16.mxu0 %v16029_v16  ;;  %3061 = vmatprep.subr.bf16.mxu1 %v16031_v17  ;;  %v16053_v32 = vld [vmem:[#allocation3 + $0xa0] ss:$16 sps:$4 sm:$0xff]   ;;  %v16054_v33 = vld [vmem:[#allocation3 + $0xa8] ss:$16 sps:$4 sm:$0xff]   ;;  %v16056_v34 = vld [vmem:[#allocation3 + $0xc4] ss:$16 sps:$4 sm:$0xff]  }
  0x6d   : > { %v16058_v35 = vld [vmem:[#allocation3 + $0xcc] ss:$16 sps:$4 sm:$0xff]   ;;  %v17071_v36 = vld [vmem:[%s17018_s21 + $0x60] sm:$0xff]   ;;  %v16061_v38 = vld [vmem:[#allocation3 + $0xc8] ss:$16 sps:$4 sm:$0xff]   ;;  %s24516_s30 = smov (!%p841_p7, %s13173_s30), 7 }
  0x6e   : > { %1269 = vrot.lane.b32.xlu0 %v16004_v2, %s16763_s11  ;;  %2469 = vmatpush1.bf16.msra.mxu0 %v16033_v18  ;;  %v16060_v37 = vld [vmem:[#allocation3 + $0xc0] ss:$16 sps:$4 sm:$0xff]   ;;  %v16062_v39 = vld [vmem:[#allocation3 + $0xe4] ss:$16 sps:$4 sm:$0xff]   ;;  %v16064_v40 = vld [vmem:[#allocation3 + $0xec] ss:$16 sps:$4 sm:$0xff]  }
  0x6f   : > { %1391 = vrot.lane.b32.xlu1 %v16003_v1, %s16765_s10  ;;  %3062 = vmatpush1.bf16.msra.mxu1 %v16034_v19  ;;  %v17080_v41 = vld [vmem:[%s17018_s21 + $0x68] sm:$0xff]   ;;  %v16066_v42 = vld [vmem:[#allocation3 + $0xe0] ss:$16 sps:$4 sm:$0xff]   ;;  %v16069_v44 = vld [vmem:[#allocation3 + $0x104] ss:$16 sps:$4 sm:$0xff]   ;;  %s13174_s26 = sshll.u32 %s24516_s30, 3 }
  0x70   : > { %2470 = vmatprep.subr.bf16.mxu0 %v16036_v20  ;;  %3063 = vmatprep.subr.bf16.mxu1 %v16038_v21  ;;  %v16067_v43 = vld [vmem:[#allocation3 + $0xe8] ss:$16 sps:$4 sm:$0xff]   ;;  %v16071_v45 = vld [vmem:[#allocation3 + $0x10c] ss:$16 sps:$4 sm:$0xff]   ;;  %v16073_v46 = vld [vmem:[#allocation3 + $0x100] ss:$16 sps:$4 sm:$0xff]  }
  0x71   : > { %v16074_v47 = vld [vmem:[#allocation3 + $0x108] ss:$16 sps:$4 sm:$0xff]   ;;  %v16077_v48 = vld [vmem:[#allocation3 + $0x124] ss:$16 sps:$4 sm:$0xff]   ;;  %v16079_v49 = vld [vmem:[#allocation3 + $0x12c] ss:$16 sps:$4 sm:$0xff]  }
  0x72   : > { %1513 = vrot.lane.b32.xlu0 %v17033_v5, %s16764_s24  ;;  %2471 = vmatpush1.bf16.msra.mxu0 %v16040_v23  ;;  %v17089_v50 = vld [vmem:[%s17018_s21 + $0x70] sm:$0xff]   ;;  %v16082_v52 = vld [vmem:[#allocation3 + $0x128] ss:$16 sps:$4 sm:$0xff]   ;;  %v16022_v54 = vld [vmem:[%s17018_s21 + $0x80] sm:$0xff]  }
  0x73   : > { %1271 = vrot.lane.b32.xlu1 %v16006_v4, %s16763_s11  ;;  %3064 = vmatpush1.bf16.msra.mxu1 %v16041_v24  ;;  %v16081_v51 = vld [vmem:[#allocation3 + $0x120] ss:$16 sps:$4 sm:$0xff]   ;;  %v17100_v53 = vld [vmem:[%s17018_s21 + $0x78] sm:$0xff]   ;;  %v16035_v55 = vld [vmem:[%s17018_s21 + $0x88] sm:$0xff]  }
  0x74   : > { %2472 = vmatprep.subr.bf16.mxu0 %v16042_v25  ;;  %3065 = vmatprep.subr.bf16.mxu1 %v16044_v26  ;;  %v16048_v56 = vld [vmem:[%s17018_s21 + $0x90] sm:$0xff]   ;;  %v16055_v57 = vld [vmem:[%s17018_s21 + $0x98] sm:$0xff]   ;;  %v16068_v59 = vld [vmem:[%s17018_s21 + $0xa0] sm:$0xff]  }
  0x75   : > { %v16101_v58 = vld [vmem:[%s23805_s3 + $0x1c4] ss:$16 sps:$4 sm:$0xff]   ;;  %v16104_v60 = vld [vmem:[%s23805_s3 + $0x1cc] ss:$16 sps:$4 sm:$0xff]   ;;  %v16102_v10 = vld [vmem:[%s23805_s3 + $0x1c8] ss:$16 sps:$4 sm:$0xff]  }
  0x76   : > { %1393 = vrot.lane.b32.xlu0 %v16007_v6, %s16765_s10  ;;  %2473 = vmatpush1.bf16.msra.mxu0 %v16046_v28  ;;  %v16076_v61 = vld [vmem:[%s17018_s21 + $0xa8] sm:$0xff]   ;;  %v16084_v62 = vld [vmem:[%s17018_s21 + $0xb0] sm:$0xff]   ;;  %v16085_v63 = vld [vmem:[%s17018_s21 + $0xb8] sm:$0xff]  }
  0x77   : > { %1515 = vrot.lane.b32.xlu1 %v17046_v11, %s16764_s24  ;;  %3066 = vmatpush1.bf16.msra.mxu1 %v16047_v29  ;;  %v16086_v0 = vld [vmem:[%s17018_s21 + $0xc0] sm:$0xff]   ;;  %v17168_v9 = vld [vmem:[%s17018_s21 + $0xd0] sm:$0xff]   ;;  %v16116_v17 = vld [vmem:[%s23805_s3 + $0x1ec] ss:$16 sps:$4 sm:$0xff]  }
  0x78   : > { %2474 = vmatprep.subr.bf16.mxu0 %v16049_v30  ;;  %3067 = vmatprep.subr.bf16.mxu1 %v16051_v31  ;;  %v16075_v3 = vld [vmem:[%s17018_s21] sm:$0xff]   ;;  %v16114_v20 = vld [vmem:[%s23805_s3 + $0x1e8] ss:$16 sps:$4 sm:$0xff]   ;;  %v16644_v28 = vld [vmem:[%s17018_s21 + $0x10] sm:$0xff]  }
  0x79   : > { %v16113_v14 = vld [vmem:[%s23805_s3 + $0x1e4] ss:$16 sps:$4 sm:$0xff]   ;;  %v16111_v16 = vld [vmem:[%s23805_s3 + $0x1e0] ss:$16 sps:$4 sm:$0xff]   ;;  %v17198_v24 = vld [vmem:[%s17018_s21 + $0xd8] sm:$0xff]  }
  0x7a   : > { %1273 = vrot.lane.b32.xlu0 %v16003_v1, %s16763_s11  ;;  %2475 = vmatpush1.bf16.msra.mxu0 %v16053_v32  ;;  %v17156_v1 = vld [vmem:[%s17018_s21 + $0xc8] sm:$0xff]   ;;  %v16090_v31 = vld [vmem:[%s17018_s21 + $0xe0] sm:$0xff]  }
  0x7b   : > { %1395 = vrot.lane.b32.xlu1 %v17033_v5, %s16765_s10  ;;  %3068 = vmatpush1.bf16.msra.mxu1 %v16054_v33 }
  0x7c   : > { %2476 = vmatprep.subr.bf16.mxu0 %v16056_v34  ;;  %3069 = vmatprep.subr.bf16.mxu1 %v16058_v35 }
  0x7e   : > { %1517 = vrot.lane.b32.xlu0 %v17056_v22, %s16764_s24  ;;  %2477 = vmatpush1.bf16.msra.mxu0 %v16060_v37 }
  0x7f   : > { %1275 = vrot.lane.b32.xlu1 %v16007_v6, %s16763_s11  ;;  %3070 = vmatpush1.bf16.msra.mxu1 %v16061_v38  ;;  %v16099_v6 = vld [vmem:[%s23805_s3 + $0x1c0] ss:$16 sps:$4 sm:$0xff]   ;;  %v16645_v38 = vld [vmem:[%s17018_s21 + $0x18] sm:$0xff]  }
  0x80   : > { %2478 = vmatprep.subr.bf16.mxu0 %v16062_v39  ;;  %3071 = vmatprep.subr.bf16.mxu1 %v16064_v40 }
  0x82   : > { %1397 = vrot.lane.b32.xlu0 %v17046_v11, %s16765_s10  ;;  %2479 = vmatpush1.bf16.msra.mxu0 %v16066_v42 }
  0x83   : > { %1519 = vrot.lane.b32.xlu1 %v17061_v27, %s16764_s24  ;;  %3072 = vmatpush1.bf16.msra.mxu1 %v16067_v43 }
  0x84   : > { %2480 = vmatprep.subr.bf16.mxu0 %v16069_v44  ;;  %3073 = vmatprep.subr.bf16.mxu1 %v16071_v45  ;;  %v17234_v45 = vld [vmem:[%s17018_s21 + $0xf0] sm:$0xff]  }
  0x86   : > { %1277 = vrot.lane.b32.xlu0 %v17033_v5, %s16763_s11  ;;  %2481 = vmatpush1.bf16.msra.mxu0 %v16073_v46  ;;  %v16083_v5 = vld [vmem:[%s17018_s21 + $0x8] sm:$0xff]  }
  0x87   : > { %1399 = vrot.lane.b32.xlu1 %v17056_v22, %s16765_s10  ;;  %3074 = vmatpush1.bf16.msra.mxu1 %v16074_v47  ;;  %v16122_v47 = vld [vmem:[%s23805_s3 + $0x200] ss:$16 sps:$4 sm:$0xff]  }
  0x88   : > { %2482 = vmatprep.subr.bf16.mxu0 %v16077_v48  ;;  %3075 = vmatprep.subr.bf16.mxu1 %v16079_v49  ;;  %v16124_v48 = vld [vmem:[%s23805_s3 + $0x204] ss:$16 sps:$4 sm:$0xff]  }
  0x89   : > { %v16646_v49 = vld [vmem:[%s17018_s21 + $0x20] sm:$0xff]  }
  0x8a   : > { %1521 = vrot.lane.b32.xlu0 %v17071_v36, %s16764_s24  ;;  %2483 = vmatpush1.bf16.msra.mxu0 %v16081_v51 }
  0x8b   : > { %1279 = vrot.lane.b32.xlu1 %v17046_v11, %s16763_s11  ;;  %3076 = vmatpush1.bf16.msra.mxu1 %v16082_v52 }
  0x8c   : > { %5692 = vmatprep.subr.bf16.mxu0 %v16101_v58  ;;  %6005 = vmatprep.subr.bf16.mxu1 %v16104_v60 }
  0x8e   : > { %1401 = vrot.lane.b32.xlu0 %v17061_v27, %s16765_s10 }
  0x8f   : > { %1523 = vrot.lane.b32.xlu1 %v17080_v41, %s16764_s24 }
  0x92   : > { %1281 = vrot.lane.b32.xlu0 %v17056_v22, %s16763_s11 }
  0x93   : > { %1403 = vrot.lane.b32.xlu1 %v17071_v36, %s16765_s10 }
  0x96   : > { %1525 = vrot.lane.b32.xlu0 %v17089_v50, %s16764_s24 }
  0x97   : > { %1283 = vrot.lane.b32.xlu1 %v17061_v27, %s16763_s11 }
  0x9a   : > { %1405 = vrot.lane.b32.xlu0 %v17080_v41, %s16765_s10 }
  0x9b   : > { %1527 = vrot.lane.b32.xlu1 %v17100_v53, %s16764_s24 }
  0x9e   : > { %1285 = vrot.lane.b32.xlu0 %v17071_v36, %s16763_s11 }
  0x9f   : > { %1407 = vrot.lane.b32.xlu1 %v17089_v50, %s16765_s10 }
  0xa2   : > { %1529 = vrot.lane.b32.xlu0 %v16022_v54, %s16764_s24 }
  0xa3   : > { %1287 = vrot.lane.b32.xlu1 %v17080_v41, %s16763_s11 }
  0xa6   : > { %1409 = vrot.lane.b32.xlu0 %v17100_v53, %s16765_s10 }
  0xa7   : > { %1531 = vrot.lane.b32.xlu1 %v16035_v55, %s16764_s24 }
  0xaa   : > { %1289 = vrot.lane.b32.xlu0 %v17089_v50, %s16763_s11 }
  0xab   : > { %1411 = vrot.lane.b32.xlu1 %v16022_v54, %s16765_s10 }
  0xae   : > { %1533 = vrot.lane.b32.xlu0 %v16048_v56, %s16764_s24 }
  0xaf   : > { %1291 = vrot.lane.b32.xlu1 %v17100_v53, %s16763_s11 }
  0xb2   : > { %1413 = vrot.lane.b32.xlu0 %v16035_v55, %s16765_s10 }
  0xb3   : > { %1535 = vrot.lane.b32.xlu1 %v16055_v57, %s16764_s24 }
  0xb6   : > { %1293 = vrot.lane.b32.xlu0 %v16022_v54, %s16763_s11  ;;  %v16125_v54 = vld [vmem:[%s23805_s3 + $0x208] ss:$16 sps:$4 sm:$0xff]  }
  0xb7   : > { %1415 = vrot.lane.b32.xlu1 %v16048_v56, %s16765_s10 }
  0xba   : > { %1537 = vrot.lane.b32.xlu0 %v16068_v59, %s16764_s24 }
  0xbb   : > { %1295 = vrot.lane.b32.xlu1 %v16035_v55, %s16763_s11  ;;  %v16127_v55 = vld [vmem:[%s23805_s3 + $0x20c] ss:$16 sps:$4 sm:$0xff]  }
  0xbe   : > { %1417 = vrot.lane.b32.xlu0 %v16055_v57, %s16765_s10 }
  0xbf   : > { %1539 = vrot.lane.b32.xlu1 %v16076_v61, %s16764_s24 }
  0xc2   : > { %1297 = vrot.lane.b32.xlu0 %v16048_v56, %s16763_s11 }
  0xc3   : > { %1419 = vrot.lane.b32.xlu1 %v16068_v59, %s16765_s10 }
  0xc6   : > { %1541 = vrot.lane.b32.xlu0 %v16084_v62, %s16764_s24 }
  0xc7   : > { %1299 = vrot.lane.b32.xlu1 %v16055_v57, %s16763_s11  ;;  %v16093_v57 = vld [vmem:[%s17018_s21 + $0xf8] sm:$0xff]  }
  0xca   : > { %1421 = vrot.lane.b32.xlu0 %v16076_v61, %s16765_s10 }
  0xcb   : > { %1543 = vrot.lane.b32.xlu1 %v16085_v63, %s16764_s24 }
  0xce   : > { %1301 = vrot.lane.b32.xlu0 %v16068_v59, %s16763_s11 }
  0xcf   : > { %1423 = vrot.lane.b32.xlu1 %v16084_v62, %s16765_s10 }
  0xd2   : > { %1545 = vrot.lane.b32.xlu0 %v16086_v0, %s16764_s24 }
  0xd3   : > { %1303 = vrot.lane.b32.xlu1 %v16076_v61, %s16763_s11  ;;  %v16647_v61 = vld [vmem:[%s17018_s21 + $0x28] sm:$0xff]  }
  0xd4   : > { %v1266_v2 = vpop.permute.xlu0 %1265 }
  0xd5   : > { %v1510_v4 = vpop.permute.xlu1 %1509  ;;  %v1634_v7 = vsel %vm1631_vm0, %v16075_v3, %v1266_v2 }
  0xd6   : > { %1425 = vrot.lane.b32.xlu0 %v16085_v63, %s16765_s10 }
  0xd7   : > { %1547 = vrot.lane.b32.xlu1 %v17156_v1, %s16764_s24 }
  0xd8   : > { %v1388_v8 = vpop.permute.xlu0 %1387 }
  0xd9   : > { %v1802_v12 = vsel %vm1800_vm1, %v1634_v7, %v1388_v8  ;;  %v1268_v13 = vpop.permute.xlu1 %1267 }
  0xda   : > { %v1915_v15 = vsel %vm1913_vm2, %v1802_v12, %v1510_v4  ;;  %1305 = vrot.lane.b32.xlu0 %v16084_v62, %s16763_s11  ;;  %v1637_v18 = vsel %vm1631_vm0, %v16083_v5, %v1268_v13  ;;  %v17297_v13 = vld [vmem:[%s17018_s21 + $0x110] sm:$0xff]  }
  0xdb   : > { %2497 = vmatmul.mubr.bf16.vlgmr.msra.gmra.mrb[0].mxu0 %v1915_v15  ;;  %3090 = vmatmul.mubr.bf16.vlgmr.msra.gmra.mrb[0].mxu1 %v1915_v15 }
  0xdc   : > { %v1390_v19 = vpop.permute.xlu0 %1389  ;;  %13280 = vmatprep.mubr.msk.bf16.mxu0 %vm1631_vm0, %v17046_v11  ;;  %13336 = vmatprep.mubr.msk.bf16.mxu1 %vm1631_vm0, %v17046_v11 }
  0xdd   : > { %v1512_v21 = vpop.permute.xlu1 %1511  ;;  %1427 = vrot.lane.b32.xlu1 %v16086_v0, %s16765_s10  ;;  %5693 = vmatpush1.bf16.msra.mxu0 %v16099_v6  ;;  %v1804_v23 = vsel %vm1800_vm1, %v1637_v18, %v1390_v19  ;;  %v16648_v6 = vld [vmem:[%s17018_s21 + $0x30] sm:$0xff]  }
  0xde   : > { %1549 = vrot.lane.b32.xlu0 %v17168_v9, %s16764_s24  ;;  %6006 = vmatpush1.bf16.msra.mxu1 %v16102_v10  ;;  %v1918_v26 = vsel %vm1913_vm2, %v1804_v23, %v1512_v21 }
  0xdf   : > { %5694 = vmatprep.subr.bf16.mxu0 %v16113_v14  ;;  %6007 = vmatprep.subr.bf16.mxu1 %v16116_v17 }
  0xe0   : > { %v1270_v11 = vpop.permute.xlu0 %1269 }
  0xe1   : > { %v1392_v25 = vpop.permute.xlu1 %1391  ;;  %1307 = vrot.lane.b32.xlu1 %v16085_v63, %s16763_s11  ;;  %5695 = vmatpush1.bf16.msra.mxu0 %v16111_v16  ;;  %v1640_v29 = vsel %vm1631_vm0, %v16644_v28, %v1270_v11  ;;  %v16135_v11 = vld [vmem:[%s23805_s3 + $0x224] ss:$16 sps:$4 sm:$0xff]  }
  0xe2   : > { %1429 = vrot.lane.b32.xlu0 %v17156_v1, %s16765_s10  ;;  %6008 = vmatpush1.bf16.msra.mxu1 %v16114_v20  ;;  %v1806_v33 = vsel %vm1800_vm1, %v1640_v29, %v1392_v25  ;;  %v17315_v20 = vld [vmem:[%s17018_s21 + $0x118] sm:$0xff]   ;;  %v16650_v25 = vld [vmem:[%s17018_s21 + $0x40] sm:$0xff]  }
  0xe3   : > { %2507 = vmatmul.mubr.bf16.gmra.mrb[4].mxu0 %v1918_v26  ;;  %3100 = vmatmul.mubr.bf16.gmra.mrb[4].mxu1 %v1918_v26  ;;  %v17330_v28 = vld [vmem:[%s17018_s21 + $0x80] sm:$0xff]  }
  0xe4   : > { %v1514_v30 = vpop.permute.xlu0 %1513  ;;  %13281 = vmatprep.mubr.msk.bf16.mxu0 %vm1631_vm0, %v17056_v22  ;;  %13337 = vmatprep.mubr.msk.bf16.mxu1 %vm1631_vm0, %v17056_v22  ;;  %v17220_v22 = vld [vmem:[%s17018_s21 + $0xe8] sm:$0xff]  }
  0xe5   : > { %v1272_v32 = vpop.permute.xlu1 %1271  ;;  %1551 = vrot.lane.b32.xlu1 %v17198_v24, %s16764_s24  ;;  %v1921_v37 = vsel %vm1913_vm2, %v1806_v33, %v1514_v30  ;;  %5696 = vmatprep.subr.bf16.mxu0 %v16124_v48  ;;  %v17337_v30 = vld [vmem:[%s17018_s21 + $0x120] sm:$0xff]  }
  0xe6   : > { %1309 = vrot.lane.b32.xlu0 %v16086_v0, %s16763_s11  ;;  %v1643_v39 = vsel %vm1631_vm0, %v16645_v38, %v1272_v32  ;;  %5697 = vmatpush1.bf16.msra.mxu0 %v16122_v47  ;;  %v16094_v0 = vld [vmem:[%s17018_s21 + $0x100] sm:$0xff]   ;;  %v16139_v32 = vld [vmem:[%s23805_s3 + $0x22c] ss:$16 sps:$4 sm:$0xff]  }
  0xe7   : > { %6009 = vmatprep.subr.bf16.mxu1 %v16127_v55  ;;  %5698 = vmatprep.subr.bf16.mxu0 %v16135_v11  ;;  %v17355_v38 = vld [vmem:[%s17018_s21 + $0x128] sm:$0xff]  }
  0xe8   : > { %v1394_v34 = vpop.permute.xlu0 %1393  ;;  %6010 = vmatpush1.bf16.msra.mxu1 %v16125_v54 }
  0xe9   : > { %v1516_v35 = vpop.permute.xlu1 %1515  ;;  %1431 = vrot.lane.b32.xlu1 %v17168_v9, %s16765_s10  ;;  %v1808_v43 = vsel %vm1800_vm1, %v1643_v39, %v1394_v34  ;;  %6011 = vmatprep.subr.bf16.mxu1 %v16139_v32  ;;  %v16652_v39 = vld [vmem:[%s17018_s21 + $0x48] sm:$0xff]  }
  0xea   : > { %1553 = vrot.lane.b32.xlu0 %v16090_v31, %s16764_s24 }
  0xeb   : > { %2517 = vmatmul.mubr.bf16.gmra.mrb[8].mxu0 %v1921_v37  ;;  %3110 = vmatmul.mubr.bf16.gmra.mrb[8].mxu1 %v1921_v37 }
  0xec   : > { %13282 = vmatprep.mubr.msk.bf16.mxu0 %vm1631_vm0, %v17061_v27  ;;  %13338 = vmatprep.mubr.msk.bf16.mxu1 %vm1631_vm0, %v17061_v27  ;;  %v1274_v40 = vpop.permute.xlu0 %1273  ;;  %v1924_v27 = vsel %vm1913_vm2, %v1808_v43, %v1516_v35 }
  0xed   : > { %v1396_v42 = vpop.permute.xlu1 %1395  ;;  %1311 = vrot.lane.b32.xlu1 %v17156_v1, %s16763_s11  ;;  %v1646_v51 = vsel %vm1631_vm0, %v16646_v49, %v1274_v40  ;;  %v16654_v49 = vld [vmem:[%s17018_s21 + $0x50] sm:$0xff]  }
  0xee   : > { %1433 = vrot.lane.b32.xlu0 %v17198_v24, %s16765_s10 }
  0xf0   : > { %v1518_v44 = vpop.permute.xlu0 %1517 }
  0xf1   : > { %v1276_v46 = vpop.permute.xlu1 %1275  ;;  %1555 = vrot.lane.b32.xlu1 %v17220_v22, %s16764_s24 }
  0xf2   : > { %1313 = vrot.lane.b32.xlu0 %v17168_v9, %s16763_s11  ;;  %v1649_v62 = vsel %vm1631_vm0, %v16647_v61, %v1276_v46 }
  0xf3   : > { %2527 = vmatmul.mubr.bf16.gmra.mrb[12].mxu0 %v1924_v27  ;;  %3120 = vmatmul.mubr.bf16.gmra.mrb[12].mxu1 %v1924_v27  ;;  %v17376_v27 = vld [vmem:[%s17018_s21 + $0x130] sm:$0xff]  }
  0xf4   : > { %13283 = vmatprep.mubr.msk.bf16.mxu0 %vm1631_vm0, %v17071_v36  ;;  %13339 = vmatprep.mubr.msk.bf16.mxu1 %vm1631_vm0, %v17071_v36  ;;  %v1398_v52 = vpop.permute.xlu0 %1397  ;;  %v1810_v36 = vsel %vm1800_vm1, %v1646_v51, %v1396_v42  ;;  %v17360_v42 = vld [vmem:[%s17018_s21 + $0x88] sm:$0xff]  }
  0xf5   : > { %v1520_v56 = vpop.permute.xlu1 %1519  ;;  %1435 = vrot.lane.b32.xlu1 %v16090_v31, %s16765_s10  ;;  %v1927_v60 = vsel %vm1913_vm2, %v1810_v36, %v1518_v44  ;;  %v1812_v2 = vsel %vm1800_vm1, %v1649_v62, %v1398_v52  ;;  %v17388_v52 = vld [vmem:[%s17018_s21 + $0x90] sm:$0xff]   ;;  %v17416_v62 = vld [vmem:[%s17018_s21 + $0x98] sm:$0xff]  }
  0xf6   : > { %1557 = vrot.lane.b32.xlu0 %v17234_v45, %s16764_s24  ;;  %v1930_v5 = vsel %vm1913_vm2, %v1812_v2, %v1520_v56 }
  0xf8   : > { %v1278_v58 = vpop.permute.xlu0 %1277 }
  0xf9   : > { %v1400_v59 = vpop.permute.xlu1 %1399  ;;  %1315 = vrot.lane.b32.xlu1 %v17198_v24, %s16763_s11  ;;  %v1652_v7 = vsel %vm1631_vm0, %v16648_v6, %v1278_v58  ;;  %v16133_v24 = vld [vmem:[%s23805_s3 + $0x220] ss:$16 sps:$4 sm:$0xff]   ;;  %v16107_v58 = vld [vmem:[%s17018_s21 + $0x138] sm:$0xff]  }
  0xfa   : > { %1437 = vrot.lane.b32.xlu0 %v17220_v22, %s16765_s10  ;;  %v1814_v10 = vsel %vm1800_vm1, %v1652_v7, %v1400_v59  ;;  %5699 = vmatpush1.bf16.msra.mxu0 %v16133_v24  ;;  %v16145_v6 = vld [vmem:[%s23805_s3 + $0x240] ss:$16 sps:$4 sm:$0xff]   ;;  %v16147_v7 = vld [vmem:[%s23805_s3 + $0x244] ss:$16 sps:$4 sm:$0xff]  }
  0xfb   : > { %2537 = vmatmul.mubr.bf16.gmra.mrb[16].mxu0 %v1927_v60  ;;  %3130 = vmatmul.mubr.bf16.gmra.mrb[16].mxu1 %v1927_v60  ;;  %v16656_v60 = vld [vmem:[%s17018_s21 + $0x58] sm:$0xff]  }
  0xfc   : > { %13284 = vmatprep.mubr.msk.bf16.mxu0 %vm1631_vm0, %v17080_v41  ;;  %13340 = vmatprep.mubr.msk.bf16.mxu1 %vm1631_vm0, %v17080_v41  ;;  %v1522_v63 = vpop.permute.xlu0 %1521  ;;  %v17284_v41 = vld [vmem:[%s17018_s21 + $0x108] sm:$0xff]  }
  0xfd   : > { %v1280_v1 = vpop.permute.xlu1 %1279  ;;  %1559 = vrot.lane.b32.xlu1 %v16093_v57, %s16764_s24  ;;  %v1933_v15 = vsel %vm1913_vm2, %v1814_v10, %v1522_v63  ;;  %v17454_v10 = vld [vmem:[%s17018_s21 + $0xa0] sm:$0xff]   ;;  %5700 = vmatprep.subr.bf16.mxu0 %v16147_v7 }
  0xfe   : > { %1317 = vrot.lane.b32.xlu0 %v16090_v31, %s16763_s11  ;;  %v16137_v31 = vld [vmem:[%s23805_s3 + $0x228] ss:$16 sps:$4 sm:$0xff]   ;;  %5701 = vmatpush1.bf16.msra.mxu0 %v16145_v6  ;;  %v16128_v6 = vld [vmem:[%s17018_s21 + $0x180] sm:$0xff]  }
  0xff   : > { %6012 = vmatpush1.bf16.msra.mxu1 %v16137_v31  ;;  %v16662_v31 = vld [vmem:[%s17018_s21 + $0x70] sm:$0xff]  }
 0x100   : > { %v1402_v3 = vpop.permute.xlu0 %1401 }
 0x101   : > { %v1524_v4 = vpop.permute.xlu1 %1523  ;;  %1439 = vrot.lane.b32.xlu1 %v17234_v45, %s16765_s10 }
 0x102   : > { %1561 = vrot.lane.b32.xlu0 %v16094_v0, %s16764_s24 }
 0x103   : > { %2547 = vmatmul.mubr.bf16.gmra.mrb[20].mxu0 %v1930_v5  ;;  %3140 = vmatmul.mubr.bf16.gmra.mrb[20].mxu1 %v1930_v5 }
 0x104   : > { %13285 = vmatprep.mubr.msk.bf16.mxu0 %vm1631_vm0, %v17089_v50  ;;  %13341 = vmatprep.mubr.msk.bf16.mxu1 %vm1631_vm0, %v17089_v50  ;;  %v1282_v8 = vpop.permute.xlu0 %1281  ;;  %v16649_v50 = vld [vmem:[%s17018_s21 + $0x38] sm:$0xff]  }
 0x105   : > { %v1404_v9 = vpop.permute.xlu1 %1403  ;;  %1319 = vrot.lane.b32.xlu1 %v17220_v22, %s16763_s11  ;;  %v1655_v16 = vsel %vm1631_vm0, %v16649_v50, %v1280_v1  ;;  %v1658_v26 = vsel %vm1631_vm0, %v16650_v25, %v1282_v8  ;;  %v16658_v8 = vld [vmem:[%s17018_s21 + $0x60] sm:$0xff]   ;;  %v16117_v25 = vld [vmem:[%s17018_s21 + $0x158] sm:$0xff]  }
 0x106   : > { %1441 = vrot.lane.b32.xlu0 %v16093_v57, %s16765_s10  ;;  %v1816_v19 = vsel %vm1800_vm1, %v1655_v16, %v1402_v3  ;;  %v1818_v34 = vsel %vm1800_vm1, %v1658_v26, %v1404_v9 }
 0x108   : > { %v1526_v12 = vpop.permute.xlu0 %1525 }
 0x109   : > { %v1284_v14 = vpop.permute.xlu1 %1283  ;;  %1563 = vrot.lane.b32.xlu1 %v17284_v41, %s16764_s24  ;;  %v1939_v22 = vsel %vm1913_vm2, %v1818_v34, %v1526_v12 }
 0x10a   : > { %1321 = vrot.lane.b32.xlu0 %v17234_v45, %s16763_s11  ;;  %v1661_v40 = vsel %vm1631_vm0, %v16652_v39, %v1284_v14  ;;  %v16148_v14 = vld [vmem:[%s23805_s3 + $0x248] ss:$16 sps:$4 sm:$0xff]  }
 0x10b   : > { %2557 = vmatmul.mubr.bf16.gmra.mrb[24].mxu0 %v1933_v15  ;;  %3150 = vmatmul.mubr.bf16.gmra.mrb[24].mxu1 %v1933_v15  ;;  %v16150_v15 = vld [vmem:[%s23805_s3 + $0x24c] ss:$16 sps:$4 sm:$0xff]  }
 0x10c   : > { %13286 = vmatprep.mubr.msk.bf16.mxu0 %vm1631_vm0, %v17100_v53  ;;  %13342 = vmatprep.mubr.msk.bf16.mxu1 %vm1631_vm0, %v17100_v53  ;;  %v1406_v17 = vpop.permute.xlu0 %1405  ;;  %v1936_v53 = vsel %vm1913_vm2, %v1816_v19, %v1524_v4 }
 0x10d   : > { %v1528_v18 = vpop.permute.xlu1 %1527  ;;  %1443 = vrot.lane.b32.xlu1 %v16094_v0, %s16765_s10  ;;  %v1820_v45 = vsel %vm1800_vm1, %v1661_v40, %v1406_v17  ;;  %v16110_v17 = vld [vmem:[%s17018_s21 + $0x150] sm:$0xff]   ;;  %6013 = vmatprep.subr.bf16.mxu1 %v16150_v15 }
 0x10e   : > { %1565 = vrot.lane.b32.xlu0 %v17297_v13, %s16764_s24  ;;  %v1942_v48 = vsel %vm1913_vm2, %v1820_v45, %v1528_v18  ;;  %6014 = vmatpush1.bf16.msra.mxu1 %v16148_v14  ;;  %v17650_v14 = vld [vmem:[%s17018_s21 + $0xd0] sm:$0xff]  }
 0x110   : > { %v1286_v21 = vpop.permute.xlu0 %1285 }
 0x111   : > { %1323 = vrot.lane.b32.xlu1 %v16093_v57, %s16763_s11  ;;  %v1408_v23 = vpop.permute.xlu1 %1407  ;;  %v1664_v51 = vsel %vm1631_vm0, %v16654_v49, %v1286_v21 }
 0x112   : > { %1445 = vrot.lane.b32.xlu0 %v17284_v41, %s16765_s10  ;;  %v1822_v56 = vsel %vm1800_vm1, %v1664_v51, %v1408_v23  ;;  %v17490_v23 = vld [vmem:[%s17018_s21 + $0xa8] sm:$0xff]   ;;  %v17568_v51 = vld [vmem:[%s17018_s21 + $0x170] sm:$0xff]  }
 0x113   : > { %2567 = vmatmul.mubr.bf16.gmra.mrb[28].mxu0 %v1936_v53  ;;  %3160 = vmatmul.mubr.bf16.gmra.mrb[28].mxu1 %v1936_v53 }
 0x114   : > { %13287 = vmatprep.mubr.msk.bf16.mxu0 %vm1631_vm0, %v17330_v28  ;;  %13343 = vmatprep.mubr.msk.bf16.mxu1 %vm1631_vm0, %v17330_v28  ;;  %v1530_v29 = vpop.permute.xlu0 %1529 }
 0x115   : > { %1567 = vrot.lane.b32.xlu1 %v17315_v20, %s16764_s24  ;;  %v1288_v33 = vpop.permute.xlu1 %1287  ;;  %v1945_v59 = vsel %vm1913_vm2, %v1822_v56, %v1530_v29 }
 0x116   : > { %1325 = vrot.lane.b32.xlu0 %v16094_v0, %s16763_s11  ;;  %v1667_v61 = vsel %vm1631_vm0, %v16656_v60, %v1288_v33  ;;  %v17425_v0 = vld [vmem:[%s17018_s21 + $0x140] sm:$0xff]   ;;  %v17519_v33 = vld [vmem:[%s17018_s21 + $0xb0] sm:$0xff]   ;;  %v16159_v60 = vld [vmem:[%s23805_s3 + $0x26c] ss:$16 sps:$4 sm:$0xff]  }
 0x117   : > { %6015 = vmatprep.subr.bf16.mxu1 %v16159_v60 }
 0x118   : > { %v1410_v35 = vpop.permute.xlu0 %1409 }
 0x119   : > { %1447 = vrot.lane.b32.xlu1 %v17297_v13, %s16765_s10  ;;  %v1532_v37 = vpop.permute.xlu1 %1531  ;;  %v1824_v2 = vsel %vm1800_vm1, %v1667_v61, %v1410_v35  ;;  %v16118_v35 = vld [vmem:[%s17018_s21 + $0x160] sm:$0xff]  }
 0x11a   : > { %1569 = vrot.lane.b32.xlu0 %v17337_v30, %s16764_s24  ;;  %v1948_v5 = vsel %vm1913_vm2, %v1824_v2, %v1532_v37 }
 0x11b   : > { %2577 = vmatmul.mubr.bf16.gmra.mrb[32].mxu0 %v1939_v22  ;;  %3170 = vmatmul.mubr.bf16.gmra.mrb[32].mxu1 %v1939_v22 }
 0x11c   : > { %13288 = vmatprep.mubr.msk.bf16.mxu0 %vm1631_vm0, %v17360_v42  ;;  %13344 = vmatprep.mubr.msk.bf16.mxu1 %vm1631_vm0, %v17360_v42  ;;  %v1290_v43 = vpop.permute.xlu0 %1289 }
 0x11d   : > { %1327 = vrot.lane.b32.xlu1 %v17284_v41, %s16763_s11  ;;  %v17368_v44 = vpop.permute.xlu1 %1411  ;;  %v17443_v41 = vld [vmem:[%s17018_s21 + $0x148] sm:$0xff]   ;;  %v1670_v9 = vsel %vm1631_vm0, %v16658_v8, %v1290_v43 }
 0x11e   : > { %1449 = vrot.lane.b32.xlu0 %v17315_v20, %s16765_s10  ;;  %v1826_v50 = vsel %vm1800_vm1, %v1670_v9, %v17368_v44  ;;  %v17544_v43 = vld [vmem:[%s17018_s21 + $0x168] sm:$0xff]   ;;  %v16664_v44 = vld [vmem:[%s17018_s21 + $0x78] sm:$0xff]  }
 0x120   : > { %v17373_v46 = vpop.permute.xlu0 %1533 }
 0x121   : > { %1571 = vrot.lane.b32.xlu1 %v17355_v38, %s16764_s24  ;;  %v17380_v47 = vpop.permute.xlu1 %1291  ;;  %v1951_v19 = vsel %vm1913_vm2, %v1826_v50, %v17373_v46  ;;  %v17550_v46 = vld [vmem:[%s17018_s21 + $0xb8] sm:$0xff]   ;;  %v16129_v50 = vld [vmem:[%s17018_s21 + $0x188] sm:$0xff]  }
 0x122   : > { %1329 = vrot.lane.b32.xlu0 %v17297_v13, %s16763_s11 }
 0x123   : > { %2587 = vmatmul.mubr.bf16.gmra.mrb[36].mxu0 %v1942_v48  ;;  %3180 = vmatmul.mubr.bf16.gmra.mrb[36].mxu1 %v1942_v48 }
 0x124   : > { %13289 = vmatprep.mubr.msk.bf16.mxu0 %vm1631_vm0, %v17388_v52  ;;  %13345 = vmatprep.mubr.msk.bf16.mxu1 %vm1631_vm0, %v17388_v52  ;;  %v17394_v54 = vpop.permute.xlu0 %1413 }
 0x125   : > { %1451 = vrot.lane.b32.xlu1 %v17337_v30, %s16765_s10  ;;  %v17398_v55 = vpop.permute.xlu1 %1535 }
 0x126   : > { %1573 = vrot.lane.b32.xlu0 %v17376_v27, %s16764_s24 }
 0x128   : > { %v17403_v36 = vpop.permute.xlu0 %1293 }
 0x129   : > { %1331 = vrot.lane.b32.xlu1 %v17315_v20, %s16763_s11  ;;  %v17407_v57 = vpop.permute.xlu1 %1415  ;;  %v16660_v20 = vld [vmem:[%s17018_s21 + $0x68] sm:$0xff]   ;;  %v1676_v32 = vsel %vm1631_vm0, %v16662_v31, %v17403_v36  ;;  %v17581_v36 = vld [vmem:[%s17018_s21 + $0xc0] sm:$0xff]  }
 0x12a   : > { %1453 = vrot.lane.b32.xlu0 %v17355_v38, %s16765_s10  ;;  %v1673_v21 = vsel %vm1631_vm0, %v16660_v20, %v17380_v47  ;;  %v1830_v22 = vsel %vm1800_vm1, %v1676_v32, %v17407_v57  ;;  %v17707_v32 = vld [vmem:[%s17018_s21 + $0xe0] sm:$0xff]  }
 0x12b   : > { %2597 = vmatmul.mubr.bf16.gmra.mrb[40].mxu0 %v1945_v59  ;;  %3190 = vmatmul.mubr.bf16.gmra.mrb[40].mxu1 %v1945_v59  ;;  %v1828_v11 = vsel %vm1800_vm1, %v1673_v21, %v17394_v54  ;;  %v16156_v59 = vld [vmem:[%s23805_s3 + $0x264] ss:$16 sps:$4 sm:$0xff]  }
 0x12c   : > { %13290 = vmatprep.mubr.msk.bf16.mxu0 %vm1631_vm0, %v17416_v62  ;;  %13346 = vmatprep.mubr.msk.bf16.mxu1 %vm1631_vm0, %v17416_v62  ;;  %v17422_v63 = vpop.permute.xlu0 %1537 }
 0x12d   : > { %1575 = vrot.lane.b32.xlu1 %v16107_v58, %s16764_s24  ;;  %v17428_v1 = vpop.permute.xlu1 %1295  ;;  %v1957_v40 = vsel %vm1913_vm2, %v1830_v22, %v17422_v63  ;;  %5702 = vmatprep.subr.bf16.mxu0 %v16156_v59  ;;  %v17774_v59 = vld [vmem:[%s17018_s21 + $0xf0] sm:$0xff]  }
 0x12e   : > { %1333 = vrot.lane.b32.xlu0 %v17337_v30, %s16763_s11  ;;  %v1954_v30 = vsel %vm1913_vm2, %v1828_v11, %v17398_v55  ;;  %v1679_v45 = vsel %vm1631_vm0, %v16664_v44, %v17428_v1 }
 0x130   : > { %v17433_v3 = vpop.permute.xlu0 %1417 }
 0x131   : > { %1455 = vrot.lane.b32.xlu1 %v17376_v27, %s16765_s10  ;;  %v17437_v4 = vpop.permute.xlu1 %1539  ;;  %v1832_v47 = vsel %vm1800_vm1, %v1679_v45, %v17433_v3 }
 0x132   : > { %1577 = vrot.lane.b32.xlu0 %v17425_v0, %s16764_s24  ;;  %v1960_v54 = vsel %vm1913_vm2, %v1832_v47, %v17437_v4  ;;  %v17746_v47 = vld [vmem:[%s17018_s21 + $0xe8] sm:$0xff]  }
 0x133   : > { %2607 = vmatmul.mubr.bf16.gmra.mrb[44].mxu0 %v1948_v5  ;;  %3200 = vmatmul.mubr.bf16.gmra.mrb[44].mxu1 %v1948_v5  ;;  %v17622_v5 = vld [vmem:[%s17018_s21 + $0xc8] sm:$0xff]  }
 0x134   : > { %13291 = vmatprep.mubr.msk.bf16.mxu0 %vm1631_vm0, %v17454_v10  ;;  %13347 = vmatprep.mubr.msk.bf16.mxu1 %vm1631_vm0, %v17454_v10  ;;  %v17460_v12 = vpop.permute.xlu0 %1297 }
 0x135   : > { %1335 = vrot.lane.b32.xlu1 %v17355_v38, %s16763_s11  ;;  %v17464_v13 = vpop.permute.xlu1 %1419  ;;  %v1682_v56 = vsel %vm1631_vm0, %v17330_v28, %v17460_v12  ;;  %v16157_v28 = vld [vmem:[%s23805_s3 + $0x268] ss:$16 sps:$4 sm:$0xff]  }
 0x136   : > { %1457 = vrot.lane.b32.xlu0 %v16107_v58, %s16765_s10  ;;  %v1834_v61 = vsel %vm1800_vm1, %v1682_v56, %v17464_v13  ;;  %6016 = vmatpush1.bf16.msra.mxu1 %v16157_v28  ;;  %v16140_v56 = vld [vmem:[%s17018_s21 + $0x1b0] sm:$0xff]  }
 0x138   : > { %v17475_v16 = vpop.permute.xlu0 %1541 }
 0x139   : > { %1579 = vrot.lane.b32.xlu1 %v17443_v41, %s16764_s24  ;;  %v17480_v18 = vpop.permute.xlu1 %1299  ;;  %v1963_v2 = vsel %vm1913_vm2, %v1834_v61, %v17475_v16 }
 0x13a   : > { %1337 = vrot.lane.b32.xlu0 %v17376_v27, %s16763_s11  ;;  %v1685_v4 = vsel %vm1631_vm0, %v17360_v42, %v17480_v18 }
 0x13b   : > { %2617 = vmatmul.mubr.bf16.gmra.mrb[48].mxu0 %v1951_v19  ;;  %3210 = vmatmul.mubr.bf16.gmra.mrb[48].mxu1 %v1951_v19  ;;  %v16130_v19 = vld [vmem:[%s17018_s21 + $0x190] sm:$0xff]  }
 0x13c   : > { %13292 = vmatprep.mubr.msk.bf16.mxu0 %vm1631_vm0, %v17490_v23  ;;  %13348 = vmatprep.mubr.msk.bf16.mxu1 %vm1631_vm0, %v17490_v23  ;;  %v17496_v53 = vpop.permute.xlu0 %1421 }
 0x13d   : > { %1459 = vrot.lane.b32.xlu1 %v17425_v0, %s16765_s10  ;;  %v17500_v24 = vpop.permute.xlu1 %1543  ;;  %v1836_v42 = vsel %vm1800_vm1, %v1685_v4, %v17496_v53  ;;  %v17680_v53 = vld [vmem:[%s17018_s21 + $0xd8] sm:$0xff]  }
 0x13e   : > { %1581 = vrot.lane.b32.xlu0 %v16110_v17, %s16764_s24  ;;  %v1966_v9 = vsel %vm1913_vm2, %v1836_v42, %v17500_v24 }
 0x140   : > { %v17506_v26 = vpop.permute.xlu0 %1301 }
 0x141   : > { %1339 = vrot.lane.b32.xlu1 %v16107_v58, %s16763_s11  ;;  %v17509_v29 = vpop.permute.xlu1 %1423  ;;  %v16154_v58 = vld [vmem:[%s23805_s3 + $0x260] ss:$16 sps:$4 sm:$0xff]   ;;  %v1688_v13 = vsel %vm1631_vm0, %v17388_v52, %v17506_v26  ;;  %v16131_v26 = vld [vmem:[%s17018_s21 + $0x198] sm:$0xff]  }
 0x142   : > { %1461 = vrot.lane.b32.xlu0 %v17443_v41, %s16765_s10  ;;  %5703 = vmatpush1.bf16.msra.mxu0 %v16154_v58  ;;  %v1838_v52 = vsel %vm1800_vm1, %v1688_v13, %v17509_v29 }
 0x143   : > { %2627 = vmatmul.mubr.bf16.gmra.mrb[52].mxu0 %v1954_v30  ;;  %3220 = vmatmul.mubr.bf16.gmra.mrb[52].mxu1 %v1954_v30 }
 0x144   : > { %13293 = vmatprep.mubr.msk.bf16.mxu0 %vm1631_vm0, %v17519_v33  ;;  %13349 = vmatprep.mubr.msk.bf16.mxu1 %vm1631_vm0, %v17519_v33  ;;  %v17525_v34 = vpop.permute.xlu0 %1545 }
 0x145   : > { %1583 = vrot.lane.b32.xlu1 %v16117_v25, %s16764_s24  ;;  %v17529_v37 = vpop.permute.xlu1 %1303  ;;  %v1969_v18 = vsel %vm1913_vm2, %v1838_v52, %v17525_v34  ;;  %v16166_v52 = vld [vmem:[%s23805_s3 + $0x2a0] ss:$16 sps:$4 sm:$0xff]  }
 0x146   : > { %1341 = vrot.lane.b32.xlu0 %v17425_v0, %s16763_s11  ;;  %v16121_v0 = vld [vmem:[%s17018_s21 + $0x178] sm:$0xff]   ;;  %v1691_v21 = vsel %vm1631_vm0, %v17416_v62, %v17529_v37  ;;  %v16132_v37 = vld [vmem:[%s17018_s21 + $0x1a0] sm:$0xff]  }
 0x148   : > { %v17535_v38 = vpop.permute.xlu0 %1425 }
 0x149   : > { %1463 = vrot.lane.b32.xlu1 %v16110_v17, %s16765_s10  ;;  %v17538_v39 = vpop.permute.xlu1 %1547  ;;  %v1840_v11 = vsel %vm1800_vm1, %v1691_v21, %v17535_v38  ;;  %v16171_v21 = vld [vmem:[%s23805_s3 + $0x2ac] ss:$16 sps:$4 sm:$0xff]  }
 0x14a   : > { %1585 = vrot.lane.b32.xlu0 %v16118_v35, %s16764_s24  ;;  %v1972_v29 = vsel %vm1913_vm2, %v1840_v11, %v17538_v39  ;;  %v16163_v39 = vld [vmem:[%s23805_s3 + $0x288] ss:$16 sps:$4 sm:$0xff]  }
 0x14b   : > { %2637 = vmatmul.mubr.bf16.gmra.mrb[56].mxu0 %v1957_v40  ;;  %3230 = vmatmul.mubr.bf16.gmra.mrb[56].mxu1 %v1957_v40  ;;  %v16165_v40 = vld [vmem:[%s23805_s3 + $0x28c] ss:$16 sps:$4 sm:$0xff]   ;;  %v16169_v11 = vld [vmem:[%s23805_s3 + $0x2a8] ss:$16 sps:$4 sm:$0xff]  }
 0x14c   : > { %13294 = vmatprep.mubr.msk.bf16.mxu0 %vm1631_vm0, %v17550_v46  ;;  %13350 = vmatprep.mubr.msk.bf16.mxu1 %vm1631_vm0, %v17550_v46  ;;  %v17556_v27 = vpop.permute.xlu0 %1305 }
 0x14d   : > { %1343 = vrot.lane.b32.xlu1 %v17443_v41, %s16763_s11  ;;  %v1694_v31 = vsel %vm1631_vm0, %v17454_v10, %v17556_v27  ;;  %v16162_v10 = vld [vmem:[%s23805_s3 + $0x284] ss:$16 sps:$4 sm:$0xff]   ;;  %6017 = vmatprep.subr.bf16.mxu1 %v16165_v40 }
 0x14e   : > { %1465 = vrot.lane.b32.xlu0 %v16117_v25, %s16765_s10  ;;  %5704 = vmatprep.subr.bf16.mxu0 %v16162_v10  ;;  %v17895_v40 = vld [vmem:[%s17018_s21 + $0x110] sm:$0xff]  }
 0x14f   : > { %v17563_v48 = vpop.permute.xlu1 %1427  ;;  %6018 = vmatpush1.bf16.msra.mxu1 %v16163_v39 }
 0x150   : > { %v17565_v49 = vpop.permute.xlu0 %1549  ;;  %v1842_v22 = vsel %vm1800_vm1, %v1694_v31, %v17563_v48  ;;  %6019 = vmatprep.subr.bf16.mxu1 %v16171_v21 }
 0x151   : > { %1587 = vrot.lane.b32.xlu1 %v17544_v43, %s16764_s24  ;;  %v1975_v44 = vsel %vm1913_vm2, %v1842_v22, %v17565_v49  ;;  %v16136_v49 = vld [vmem:[%s17018_s21 + $0x1a8] sm:$0xff]  }
 0x152   : > { %1345 = vrot.lane.b32.xlu0 %v16110_v17, %s16763_s11 }
 0x153   : > { %2647 = vmatmul.mubr.bf16.gmra.mrb[60].mxu0 %v1960_v54  ;;  %3240 = vmatmul.mubr.bf16.gmra.mrb[60].mxu1 %v1960_v54  ;;  %v17575_v55 = vpop.permute.xlu1 %1307 }
 0x154   : > { %13295 = vmatprep.mubr.msk.bf16.mxu0 %vm1631_vm0, %v17581_v36  ;;  %13351 = vmatprep.mubr.msk.bf16.mxu1 %vm1631_vm0, %v17581_v36  ;;  %v17587_v57 = vpop.permute.xlu0 %1429  ;;  %v1697_v27 = vsel %vm1631_vm0, %v17490_v23, %v17575_v55 }
 0x155   : > { %1467 = vrot.lane.b32.xlu1 %v16118_v35, %s16765_s10  ;;  %6020 = vmatpush1.bf16.msra.mxu1 %v16169_v11 }
 0x156   : > { %1589 = vrot.lane.b32.xlu0 %v17568_v51, %s16764_s24 }
 0x157   : > { %v17606_v63 = vpop.permute.xlu1 %1551 }
 0x158   : > { %v17609_v1 = vpop.permute.xlu0 %1309 }
 0x159   : > { %1347 = vrot.lane.b32.xlu1 %v16117_v25, %s16763_s11 }
 0x15a   : > { %1469 = vrot.lane.b32.xlu0 %v17544_v43, %s16765_s10 }
 0x15b   : > { %2657 = vmatmul.mubr.bf16.gmra.mrb[64].mxu0 %v1963_v2  ;;  %3250 = vmatmul.mubr.bf16.gmra.mrb[64].mxu1 %v1963_v2  ;;  %v17616_v3 = vpop.permute.xlu1 %1431 }
 0x15c   : > { %13296 = vmatprep.mubr.msk.bf16.mxu0 %vm1631_vm0, %v17622_v5  ;;  %13352 = vmatprep.mubr.msk.bf16.mxu1 %vm1631_vm0, %v17622_v5  ;;  %v17628_v41 = vpop.permute.xlu0 %1553 }
 0x15d   : > { %1591 = vrot.lane.b32.xlu1 %v16121_v0, %s16764_s24 }
 0x15e   : > { %1349 = vrot.lane.b32.xlu0 %v16118_v35, %s16763_s11  ;;  %v16160_v35 = vld [vmem:[%s23805_s3 + $0x280] ss:$16 sps:$4 sm:$0xff]  }
 0x15f   : > { %v17635_v7 = vpop.permute.xlu1 %1311  ;;  %5705 = vmatpush1.bf16.msra.mxu0 %v16160_v35  ;;  %v17868_v35 = vld [vmem:[%s17018_s21 + $0x108] sm:$0xff]  }
 0x160   : > { %v17637_v8 = vpop.permute.xlu0 %1433  ;;  %v1703_v2 = vsel %vm1631_vm0, %v17550_v46, %v17635_v7 }
 0x161   : > { %1471 = vrot.lane.b32.xlu1 %v17568_v51, %s16765_s10  ;;  %v1848_v46 = vsel %vm1800_vm1, %v1703_v2, %v17637_v8  ;;  %v17828_v8 = vld [vmem:[%s17018_s21 + $0x100] sm:$0xff]  }
 0x162   : > { %1593 = vrot.lane.b32.xlu0 %v16128_v6, %s16764_s24 }
 0x163   : > { %2667 = vmatmul.mubr.bf16.gmra.mrb[68].mxu0 %v1966_v9  ;;  %3260 = vmatmul.mubr.bf16.gmra.mrb[68].mxu1 %v1966_v9  ;;  %v17644_v12 = vpop.permute.xlu1 %1555 }
 0x164   : > { %13297 = vmatprep.mubr.msk.bf16.mxu0 %vm1631_vm0, %v17650_v14  ;;  %13353 = vmatprep.mubr.msk.bf16.mxu1 %vm1631_vm0, %v17650_v14  ;;  %v17656_v15 = vpop.permute.xlu0 %1313  ;;  %v1984_v7 = vsel %vm1913_vm2, %v1848_v46, %v17644_v12  ;;  %v16143_v12 = vld [vmem:[%s17018_s21 + $0x1c8] sm:$0xff]  }
 0x165   : > { %1351 = vrot.lane.b32.xlu1 %v17544_v43, %s16763_s11  ;;  %v1706_v13 = vsel %vm1631_vm0, %v17581_v36, %v17656_v15  ;;  %v16168_v36 = vld [vmem:[%s23805_s3 + $0x2a4] ss:$16 sps:$4 sm:$0xff]  }
 0x166   : > { %1473 = vrot.lane.b32.xlu0 %v16121_v0, %s16765_s10  ;;  %5706 = vmatprep.subr.bf16.mxu0 %v16168_v36 }
 0x167   : > { %v17664_v16 = vpop.permute.xlu1 %1435  ;;  %5707 = vmatpush1.bf16.msra.mxu0 %v16166_v52 }
 0x168   : > { %v17666_v17 = vpop.permute.xlu0 %1557  ;;  %v1850_v15 = vsel %vm1800_vm1, %v1706_v13, %v17664_v16 }
 0x169   : > { %1595 = vrot.lane.b32.xlu1 %v16129_v50, %s16764_s24  ;;  %v1987_v16 = vsel %vm1913_vm2, %v1850_v15, %v17666_v17 }
 0x16a   : > { %1353 = vrot.lane.b32.xlu0 %v17568_v51, %s16763_s11  ;;  %v1844_v51 = vsel %vm1800_vm1, %v1697_v27, %v17587_v57  ;;  %v1700_v57 = vsel %vm1631_vm0, %v17519_v33, %v17609_v1 }
 0x16b   : > { %2677 = vmatmul.mubr.bf16.gmra.mrb[72].mxu0 %v1969_v18  ;;  %3270 = vmatmul.mubr.bf16.gmra.mrb[72].mxu1 %v1969_v18  ;;  %v17674_v20 = vpop.permute.xlu1 %1315  ;;  %v1978_v55 = vsel %vm1913_vm2, %v1844_v51, %v17606_v63  ;;  %v1846_v60 = vsel %vm1800_vm1, %v1700_v57, %v17616_v3  ;;  %v16141_v63 = vld [vmem:[%s17018_s21 + $0x1b8] sm:$0xff]  }
 0x16c   : > { %13298 = vmatprep.mubr.msk.bf16.mxu0 %vm1631_vm0, %v17680_v53  ;;  %13354 = vmatprep.mubr.msk.bf16.mxu1 %vm1631_vm0, %v17680_v53  ;;  %v17686_v24 = vpop.permute.xlu0 %1437  ;;  %v17801_v3 = vld [vmem:[%s17018_s21 + $0xf8] sm:$0xff]   ;;  %v1709_v31 = vsel %vm1631_vm0, %v17622_v5, %v17674_v20 }
 0x16d   : > { %1475 = vrot.lane.b32.xlu1 %v16128_v6, %s16765_s10  ;;  %v1852_v10 = vsel %vm1800_vm1, %v1709_v31, %v17686_v24 }
 0x16e   : > { %1597 = vrot.lane.b32.xlu0 %v16130_v19, %s16764_s24 }
 0x16f   : > { %v17692_v25 = vpop.permute.xlu1 %1559 }
 0x170   : > { %v17694_v62 = vpop.permute.xlu0 %1317  ;;  %v1990_v22 = vsel %vm1913_vm2, %v1852_v10, %v17692_v25  ;;  %v17962_v10 = vld [vmem:[%s17018_s21 + $0x120] sm:$0xff]  }
 0x171   : > { %1355 = vrot.lane.b32.xlu1 %v16121_v0, %s16763_s11  ;;  %v1981_v0 = vsel %vm1913_vm2, %v1846_v60, %v17628_v41  ;;  %v16142_v41 = vld [vmem:[%s17018_s21 + $0x1c0] sm:$0xff]   ;;  %v1712_v24 = vsel %vm1631_vm0, %v17650_v14, %v17694_v62  ;;  %v2124_v62 = vlaneseq  ;;  %v16153_v60 = vld [vmem:[%s17018_s21 + $0x1e8] sm:$0xff]  }
 0x172   : > { %1477 = vrot.lane.b32.xlu0 %v16129_v50, %s16765_s10 }
 0x173   : > { %2687 = vmatmul.mubr.bf16.gmra.mrb[76].mxu0 %v1972_v29  ;;  %3280 = vmatmul.mubr.bf16.gmra.mrb[76].mxu1 %v1972_v29  ;;  %v17701_v30 = vpop.permute.xlu1 %1439 }
 0x174   : > { %13299 = vmatprep.mubr.msk.bf16.mxu0 %vm1631_vm0, %v17707_v32  ;;  %13355 = vmatprep.mubr.msk.bf16.mxu1 %vm1631_vm0, %v17707_v32  ;;  %v17713_v34 = vpop.permute.xlu0 %1561  ;;  %v1854_v27 = vsel %vm1800_vm1, %v1712_v24, %v17701_v30 }
 0x175   : > { %1599 = vrot.lane.b32.xlu1 %v16131_v26, %s16764_s24  ;;  %v1993_v51 = vsel %vm1913_vm2, %v1854_v27, %v17713_v34 }
 0x176   : > { %1357 = vrot.lane.b32.xlu0 %v16128_v6, %s16763_s11 }
 0x177   : > { %v17726_v38 = vpop.permute.xlu1 %1319 }
 0x178   : > { %v17734_v43 = vpop.permute.xlu0 %1441  ;;  %v1715_v30 = vsel %vm1631_vm0, %v17680_v53, %v17726_v38 }
 0x179   : > { %1479 = vrot.lane.b32.xlu1 %v16130_v19, %s16765_s10  ;;  %v1856_v53 = vsel %vm1800_vm1, %v1715_v30, %v17734_v43 }
 0x17a   : > { %1601 = vrot.lane.b32.xlu0 %v16132_v37, %s16764_s24 }
 0x17b   : > { %2697 = vmatmul.mubr.bf16.gmra.mrb[80].mxu0 %v1975_v44  ;;  %3290 = vmatmul.mubr.bf16.gmra.mrb[80].mxu1 %v1975_v44  ;;  %v17740_v45 = vpop.permute.xlu1 %1563  ;;  %v16152_v44 = vld [vmem:[%s17018_s21 + $0x1e0] sm:$0xff]  }
 0x17c   : > { %13300 = vmatprep.mubr.msk.bf16.mxu0 %vm1631_vm0, %v17746_v47  ;;  %13356 = vmatprep.mubr.msk.bf16.mxu1 %vm1631_vm0, %v17746_v47  ;;  %v17752_v48 = vpop.permute.xlu0 %1321  ;;  %v1996_v21 = vsel %vm1913_vm2, %v1856_v53, %v17740_v45 }
 0x17d   : > { %1359 = vrot.lane.b32.xlu1 %v16129_v50, %s16763_s11 }
 0x17e   : > { %1481 = vrot.lane.b32.xlu0 %v16131_v26, %s16765_s10 }
 0x17f   : > { %v17759_v23 = vpop.permute.xlu1 %1443 }
 0x180   : > { %v17761_v54 = vpop.permute.xlu0 %1565 }
 0x181   : > { %1603 = vrot.lane.b32.xlu1 %v16136_v49, %s16764_s24 }
 0x182   : > { %1361 = vrot.lane.b32.xlu0 %v16130_v19, %s16763_s11 }
 0x183   : > { %2707 = vmatmul.mubr.bf16.gmra.mrb[84].mxu0 %v1978_v55  ;;  %3300 = vmatmul.mubr.bf16.gmra.mrb[84].mxu1 %v1978_v55  ;;  %v17768_v58 = vpop.permute.xlu1 %1323  ;;  %v17916_v55 = vshrl.u32 %v2124_v62, 7 }
 0x184   : > { %13301 = vmatprep.mubr.msk.bf16.mxu0 %vm1631_vm0, %v17774_v59  ;;  %13357 = vmatprep.mubr.msk.bf16.mxu1 %vm1631_vm0, %v17774_v59  ;;  %v17780_v28 = vpop.permute.xlu0 %1445  ;;  %v1721_v31 = vsel %vm1631_vm0, %v17746_v47, %v17768_v58  ;;  %v16172_v58 = vld [vmem:[%s23805_s3 + $0x2c0] ss:$16 sps:$4 sm:$0xff]  }
 0x185   : > { %1483 = vrot.lane.b32.xlu1 %v16132_v37, %s16765_s10  ;;  %23991 = vst [vmem:[#allocation6_spill] sm:$0xff] %v17916_v55  ;;  %v23813_v46 = vsub.s32 3, %v17916_v55  ;;  %v23816_v52 = vsub.s32 0, %v17916_v55  ;;  %v23814_v43 = vsub.s32 1, %v17916_v55 }
 0x186   : > { %1605 = vrot.lane.b32.xlu0 %v16140_v56, %s16764_s24 }
 0x187   : > { %v17786_v61 = vpop.permute.xlu1 %1567 }
 0x188   : > { %v17788_v33 = vpop.permute.xlu0 %1325 }
 0x189   : > { %1363 = vrot.lane.b32.xlu1 %v16131_v26, %s16763_s11  ;;  %v16144_v26 = vld [vmem:[%s17018_s21 + $0x1d0] sm:$0xff]  }
 0x18a   : > { %1485 = vrot.lane.b32.xlu0 %v16136_v49, %s16765_s10 }
 0x18b   : > { %2717 = vmatmul.mubr.bf16.gmra.mrb[88].mxu0 %v1981_v0  ;;  %3310 = vmatmul.mubr.bf16.gmra.mrb[88].mxu1 %v1981_v0  ;;  %v17795_v1 = vpop.permute.xlu1 %1447 }
 0x18c   : > { %13302 = vmatprep.mubr.msk.bf16.mxu0 %vm1631_vm0, %v17801_v3  ;;  %13358 = vmatprep.mubr.msk.bf16.mxu1 %vm1631_vm0, %v17801_v3  ;;  %v17807_v4 = vpop.permute.xlu0 %1569 }
 0x18d   : > { %1607 = vrot.lane.b32.xlu1 %v16141_v63, %s16764_s24 }
 0x18e   : > { %1365 = vrot.lane.b32.xlu0 %v16132_v37, %s16763_s11  ;;  %v16151_v37 = vld [vmem:[%s17018_s21 + $0x1d8] sm:$0xff]  }
 0x18f   : > { %v17814_v6 = vpop.permute.xlu1 %1327 }
 0x190   : > { %v17816_v42 = vpop.permute.xlu0 %1449 }
 0x191   : > { %1487 = vrot.lane.b32.xlu1 %v16140_v56, %s16765_s10 }
 0x192   : > { %1609 = vrot.lane.b32.xlu0 %v16142_v41, %s16764_s24 }
 0x193   : > { %2727 = vmatmul.mubr.bf16.gmra.mrb[92].mxu0 %v1984_v7  ;;  %3320 = vmatmul.mubr.bf16.gmra.mrb[92].mxu1 %v1984_v7  ;;  %v17822_v9 = vpop.permute.xlu1 %1571 }
 0x194   : > { %13303 = vmatprep.mubr.msk.bf16.mxu0 %vm1631_vm0, %v17828_v8  ;;  %13359 = vmatprep.mubr.msk.bf16.mxu1 %vm1631_vm0, %v17828_v8  ;;  %v17834_v50 = vpop.permute.xlu0 %1329 }
 0x195   : > { %1367 = vrot.lane.b32.xlu1 %v16136_v49, %s16763_s11 }
 0x196   : > { %1489 = vrot.lane.b32.xlu0 %v16141_v63, %s16765_s10 }
 0x197   : > { %v17847_v18 = vpop.permute.xlu1 %1451 }
 0x198   : > { %v17849_v19 = vpop.permute.xlu0 %1573 }
 0x199   : > { %1611 = vrot.lane.b32.xlu1 %v16143_v12, %s16764_s24 }
 0x19a   : > { %1369 = vrot.lane.b32.xlu0 %v16140_v56, %s16763_s11  ;;  %v17922_v56 = vld [vmem:[%s17018_s21 + $0x118] sm:$0xff]  }
 0x19b   : > { %2737 = vmatmul.mubr.bf16.gmra.mrb[96].mxu0 %v1987_v16  ;;  %3330 = vmatmul.mubr.bf16.gmra.mrb[96].mxu1 %v1987_v16  ;;  %v17862_v29 = vpop.permute.xlu1 %1331 }
 0x19c   : > { %13304 = vmatprep.mubr.msk.bf16.mxu0 %vm1631_vm0, %v17868_v35  ;;  %13360 = vmatprep.mubr.msk.bf16.mxu1 %vm1631_vm0, %v17868_v35  ;;  %v17874_v17 = vpop.permute.xlu0 %1453 }
 0x19d   : > { %1491 = vrot.lane.b32.xlu1 %v16142_v41, %s16765_s10 }
 0x19e   : > { %1613 = vrot.lane.b32.xlu0 %v16144_v26, %s16764_s24 }
 0x19f   : > { %v17880_v5 = vpop.permute.xlu1 %1575 }
 0x1a0   : > { %v17882_v20 = vpop.permute.xlu0 %1333 }
 0x1a1   : > { %1371 = vrot.lane.b32.xlu1 %v16141_v63, %s16763_s11 }
 0x1a2   : > { %1493 = vrot.lane.b32.xlu0 %v16143_v12, %s16765_s10 }
 0x1a3   : > { %2747 = vmatmul.mubr.bf16.gmra.mrb[100].mxu0 %v1990_v22  ;;  %3340 = vmatmul.mubr.bf16.gmra.mrb[100].mxu1 %v1990_v22  ;;  %v17889_v39 = vpop.permute.xlu1 %1455  ;;  %v16174_v22 = vld [vmem:[%s23805_s3 + $0x2c4] ss:$16 sps:$4 sm:$0xff]  }
 0x1a4   : > { %13305 = vmatprep.mubr.msk.bf16.mxu0 %vm1631_vm0, %v17895_v40  ;;  %13361 = vmatprep.mubr.msk.bf16.mxu1 %vm1631_vm0, %v17895_v40  ;;  %v17901_v25 = vpop.permute.xlu0 %1577 }
 0x1a5   : > { %1615 = vrot.lane.b32.xlu1 %v16151_v37, %s16764_s24  ;;  %5708 = vmatprep.subr.bf16.mxu0 %v16174_v22 }
 0x1a6   : > { %1373 = vrot.lane.b32.xlu0 %v16142_v41, %s16763_s11  ;;  %v23815_v41 = vsub.s32 2, %v17916_v55  ;;  %5709 = vmatpush1.bf16.msra.mxu0 %v16172_v58 }
 0x1a7   : > { %v17908_v14 = vpop.permute.xlu1 %1335 }
 0x1a8   : > { %v17910_v49 = vpop.permute.xlu0 %1457 }
 0x1a9   : > { %1495 = vrot.lane.b32.xlu1 %v16144_v26, %s16765_s10  ;;  %v1718_v26 = vsel %vm1631_vm0, %v17707_v32, %v17752_v48  ;;  %v1724_v32 = vsel %vm1631_vm0, %v17774_v59, %v17788_v33  ;;  %v1860_v33 = vsel %vm1800_vm1, %v1721_v31, %v17780_v28  ;;  %v16175_v31 = vld [vmem:[%s23805_s3 + $0x2c8] ss:$16 sps:$4 sm:$0xff]  }
 0x1aa   : > { %1617 = vrot.lane.b32.xlu0 %v16152_v44, %s16764_s24  ;;  %v1858_v59 = vsel %vm1800_vm1, %v1718_v26, %v17759_v23  ;;  %v16177_v23 = vld [vmem:[%s23805_s3 + $0x2cc] ss:$16 sps:$4 sm:$0xff]  }
 0x1ab   : > { %2757 = vmatmul.mubr.bf16.gmra.mrb[104].mxu0 %v1993_v51  ;;  %3350 = vmatmul.mubr.bf16.gmra.mrb[104].mxu1 %v1993_v51  ;;  %v17928_v57 = vpop.permute.xlu1 %1579  ;;  %v1862_v51 = vsel %vm1800_vm1, %v1724_v32, %v17795_v1  ;;  %v1999_v32 = vsel %vm1913_vm2, %v1858_v59, %v17761_v54 }
 0x1ac   : > { %13306 = vmatprep.mubr.msk.bf16.mxu0 %vm1631_vm0, %v17922_v56  ;;  %13362 = vmatprep.mubr.msk.bf16.mxu1 %vm1631_vm0, %v17922_v56  ;;  %v17931_v34 = vpop.permute.xlu0 %1337  ;;  %v18041_v54 = vsel %vm1913_vm2, %v1862_v51, %v17807_v4 }
 0x1ad   : > { %1375 = vrot.lane.b32.xlu1 %v16143_v12, %s16763_s11  ;;  %v2122_v12 = vld [vmem:[%s23804_s2] sm:$0xf]  ;;  %6021 = vmatprep.subr.bf16.mxu1 %v16177_v23 }
 0x1ae   : > { %v2498_v63 = vpop.f32.mrb[0].mxu0  ;;  %v3091_v0 = vpop.f32.mrb[0].mxu1  ;;  %1497 = vrot.lane.b32.xlu0 %v16151_v37, %s16765_s10  ;;  %v17949_v11 = vrot.slane %v2122_v12, %v23815_v41  ;;  %v17953_v16 = vrot.slane %v2122_v12, %v23813_v46  ;;  %v17970_v45 = vrot.slane %v2122_v12, %v23816_v52  ;;  %v17981_v47 = vrot.slane %v2122_v12, %v23814_v43 }
 0x1af   : > { %v2500_v38 = vpop.f32.mrb[1].mxu0  ;;  %v3093_v2 = vpop.f32.mrb[1].mxu1  ;;  %6022 = vmatpush1.bf16.msra.mxu1 %v16175_v31 }
 0x1b0   : > { %v2502_v7 = vpop.f32.mrb[2].mxu0  ;;  %v3095_v13 = vpop.f32.mrb[2].mxu1  ;;  %v17996_v53 = vadd.f32 %v3091_v0, %v17949_v11  ;;  %v17999_v12 = vadd.f32 %v3093_v2, %v17953_v16  ;;  %v18005_v28 = vadd.f32 %v2498_v63, %v17970_v45  ;;  %v18016_v2 = vadd.f32 %v2500_v38, %v17981_v47 }
 0x1b1   : > { %v2504_v36 = vpop.f32.mrb[3].mxu0  ;;  %v3097_v15 = vpop.f32.mrb[3].mxu1  ;;  %1619 = vrot.lane.b32.xlu1 %v16153_v60, %s16764_s24  ;;  %v18010_v1 = vadd.f32 %v3095_v13, %v17949_v11  ;;  %v18022_v63 = vadd.f32 %v2502_v7, %v17970_v45  ;;  %v2002_v13 = vsel %vm1913_vm2, %v1860_v33, %v17786_v61  ;;  %v18037_v38 = vsel %vm1631_vm0, %v17801_v3, %v17814_v6  ;;  %v18047_v7 = vld [vmem:[%s17018_s21 + $0x128] sm:$0xff]  }
 0x1b2   : > { %v17975_v48 = vpop.permute.xlu1 %1459  ;;  %v17977_v37 = vpop.permute.xlu0 %1581  ;;  %v18013_v0 = vadd.f32 %v3097_v15, %v17953_v16  ;;  %v18029_v58 = vadd.f32 %v2504_v36, %v17981_v47  ;;  %23993 = vst [vmem:[#allocation8_spill] sm:$0xff] %v18047_v7  ;;  %v3652_v3 = vmax.f32 %v17996_v53, 0.0  ;;  %v3653_v6 = vmax.f32 %v17999_v12, 0.0 }
 0x1b3   : > { %2767 = vmatmul.mubr.bf16.gmra.mrb[108].mxu0 %v1996_v21  ;;  %3360 = vmatmul.mubr.bf16.gmra.mrb[108].mxu1 %v1996_v21  ;;  %23992 = vst [vmem:[#allocation7_spill] sm:$0xff] %v17977_v37  ;;  %v3650_v4 = vmax.f32 %v18005_v28, 0.0  ;;  %v3651_v33 = vmax.f32 %v18016_v2, 0.0  ;;  %v3654_v51 = vmax.f32 %v18022_v63, 0.0 }
 0x1b4   : > { %13307 = vmatprep.mubr.msk.bf16.mxu0 %vm1631_vm0, %v17962_v10  ;;  %13363 = vmatprep.mubr.msk.bf16.mxu1 %vm1631_vm0, %v17962_v10  ;;  %v3657_v59 = vmax.f32 %v18013_v0, 0.0 }
 0x1b6   : > { %v2508_v24 = vpop.f32.mrb[4].mxu0  ;;  %v3101_v44 = vpop.f32.mrb[4].mxu1 }
 0x1b7   : > { %v2510_v27 = vpop.f32.mrb[5].mxu0  ;;  %v3103_v62 = vpop.f32.mrb[5].mxu1  ;;  %v18032_v15 = vadd.f32 %v3101_v44, %v17949_v11  ;;  %v18044_v61 = vadd.f32 %v2508_v24, %v17970_v45  ;;  %v3656_v44 = vmax.f32 %v18010_v1, 0.0 }
 0x1b8   : > { %v2512_v30 = vpop.f32.mrb[6].mxu0  ;;  %v3105_v60 = vpop.f32.mrb[6].mxu1  ;;  %v18056_v36 = vadd.f32 %v3103_v62, %v17953_v16  ;;  %v3655_v62 = vmax.f32 %v18029_v58, 0.0 }
 0x1b9   : > { %v18007_v21 = vpop.f32.mrb[7].mxu0  ;;  %v3107_v26 = vpop.f32.mrb[7].mxu1  ;;  %v18070_v28 = vadd.f32 %v3105_v60, %v17949_v11  ;;  %v18078_v31 = vadd.f32 %v2512_v30, %v17970_v45 }
 0x1ba   : > { %v18059_v22 = vpop.permute.xlu1 %1339  ;;  %v18061_v24 = vpop.permute.xlu0 %1461  ;;  %v18085_v52 = vadd.f32 %v3107_v26, %v17953_v16 }
 0x1bb   : > { %2777 = vmatmul.mubr.bf16.gmra.mrb[112].mxu0 %v1999_v32  ;;  %3370 = vmatmul.mubr.bf16.gmra.mrb[112].mxu1 %v1999_v32  ;;  %23994 = vst [vmem:[#allocation9_spill] sm:$0xff] %v18059_v22  ;;  %23995 = vst [vmem:[#allocation10_spill] sm:$0xff] %v18061_v24  ;;  %v18073_v32 = vadd.f32 %v2510_v27, %v17981_v47  ;;  %v18097_v22 = vld [vmem:[%s17018_s21 + $0x130] sm:$0xff]  }
 0x1bc   : > { %13308 = vmatprep.mubr.msk.bf16.mxu0 %vm1631_vm0, %v18047_v7  ;;  %13364 = vmatprep.mubr.msk.bf16.mxu1 %vm1631_vm0, %v18047_v7  ;;  %v18093_v7 = vadd.f32 %v18007_v21, %v17981_v47 }
 0x1be   : > { %v2518_v53 = vpop.f32.mrb[8].mxu0  ;;  %v3111_v12 = vpop.f32.mrb[8].mxu1 }
 0x1bf   : > { %v2520_v1 = vpop.f32.mrb[9].mxu0  ;;  %v3113_v46 = vpop.f32.mrb[9].mxu1  ;;  %v3112_v0 = vadd.f32 %v3111_v12, %v17949_v11  ;;  %v2519_v2 = vadd.f32 %v2518_v53, %v17970_v45 }
 0x1c0   : > { %v2522_v58 = vpop.f32.mrb[10].mxu0  ;;  %v3115_v43 = vpop.f32.mrb[10].mxu1  ;;  %v3114_v41 = vadd.f32 %v3113_v46, %v17953_v16  ;;  %v2521_v60 = vadd.f32 %v2520_v1, %v17981_v47 }
 0x1c1   : > { %v2524_v23 = vpop.f32.mrb[11].mxu0  ;;  %v3117_v12 = vpop.f32.mrb[11].mxu1  ;;  %v3668_v53 = vmax.f32 %v3112_v0, 0.0  ;;  %v3116_v30 = vadd.f32 %v3115_v43, %v17949_v11  ;;  %v2523_v55 = vadd.f32 %v2522_v58, %v17970_v45  ;;  %v3666_v63 = vmax.f32 %v2519_v2, 0.0 }
 0x1c2   : > { %v3669_v24 = vmax.f32 %v3114_v41, 0.0  ;;  %v3118_v37 = vadd.f32 %v3117_v12, %v17953_v16  ;;  %v2525_v46 = vadd.f32 %v2524_v23, %v17981_v47  ;;  %v3667_v1 = vmax.f32 %v2521_v60, 0.0  ;;  %v18105_v2 = vpop.permute.xlu1 %1583  ;;  %v18107_v21 = vpop.permute.xlu0 %1341 }
 0x1c3   : > { %2787 = vmatmul.mubr.bf16.gmra.mrb[116].mxu0 %v2002_v13  ;;  %3380 = vmatmul.mubr.bf16.gmra.mrb[116].mxu1 %v2002_v13  ;;  %v4100_v27 = vmax.f32 %v3652_v3, %v3668_v53  ;;  %v3672_v26 = vmax.f32 %v3116_v30, 0.0  ;;  %v3659_v0 = vmax.f32 %v18073_v32, 0.0  ;;  %v3664_v32 = vmax.f32 %v18070_v28, 0.0 }
 0x1c4   : > { %v4101_v43 = vmax.f32 %v3653_v6, %v3669_v24  ;;  %13365 = vmatprep.mubr.msk.bf16.mxu1 %vm1631_vm0, %v18097_v22  ;;  %v3673_v41 = vmax.f32 %v3118_v37, 0.0  ;;  %13309 = vmatprep.mubr.msk.bf16.mxu0 %vm1631_vm0, %v18097_v22  ;;  %v3671_v23 = vmax.f32 %v2525_v46, 0.0  ;;  %v18103_v13 = vmax.f32 %v3651_v33, %v3667_v1 }
 0x1c5   : > { %v4104_v3 = vmax.f32 %v3656_v44, %v3672_v26  ;;  %v3670_v6 = vmax.f32 %v2523_v55, 0.0  ;;  %v18110_v24 = vmax.f32 %v3650_v4, %v3666_v63  ;;  %v3662_v30 = vmax.f32 %v18078_v31, 0.0 }
 0x1c6   : > { %23996 = vst [vmem:[#allocation11_spill] sm:$0xff] %v18103_v13  ;;  %v2528_v58 = vpop.f32.mrb[12].mxu0  ;;  %v3121_v60 = vpop.f32.mrb[12].mxu1  ;;  %v15372_v12 = vpack.i.bf16 %v4101_v43, %v4100_v27  ;;  %v4105_v37 = vmax.f32 %v3657_v59, %v3673_v41  ;;  %v18112_v53 = vmax.f32 %v3655_v62, %v3671_v23  ;;  %v3665_v1 = vmax.f32 %v18085_v52, 0.0 }
 0x1c7   : > { %23997 = vst [vmem:[#allocation12_spill] sm:$0xff] %v18110_v24  ;;  %v2530_v33 = vpop.f32.mrb[13].mxu0  ;;  %v3123_v46 = vpop.f32.mrb[13].mxu1  ;;  %v3122_v44 = vadd.f32 %v3121_v60, %v17949_v11  ;;  %v18117_v26 = vmax.f32 %v3654_v51, %v3670_v6  ;;  %v2529_v55 = vadd.f32 %v2528_v58, %v17970_v45 }
 0x1c8   : > { %23998 = vst [vmem:[#allocation13_spill] sm:$0xff] %v18112_v53  ;;  %v3125_v4 = vpop.f32.mrb[14].mxu1  ;;  %15373 = vrot.lane.b32.xlu0 %v15372_v12, %s16763_s11  ;;  %v2532_v28 = vpop.f32.mrb[14].mxu0  ;;  %v15377_v63 = vpack.i.bf16 %v4105_v37, %v4104_v3  ;;  %v15382_v59 = vpack.i.bf16 %v18112_v53, %v18103_v13  ;;  %v3124_v62 = vadd.f32 %v3123_v46, %v17953_v16  ;;  %v24000_v12 = vmax.f32 %v18032_v15, 0.0 }
 0x1c9   : > { %23999 = vst [vmem:[#allocation14_spill] sm:$0xff] %v18117_v26  ;;  %v2531_v31 = vadd.f32 %v2530_v33, %v17981_v47  ;;  %v2534_v27 = vpop.f32.mrb[15].mxu0  ;;  %v3127_v43 = vpop.f32.mrb[15].mxu1  ;;  %v3676_v41 = vmax.f32 %v3122_v44, 0.0  ;;  %v3126_v52 = vadd.f32 %v3125_v4, %v17949_v11  ;;  %v2533_v51 = vadd.f32 %v2532_v28, %v17970_v45 }
 0x1ca   : > { %v3674_v23 = vmax.f32 %v2529_v55, 0.0  ;;  %15378 = vrot.lane.b32.xlu1 %v15377_v63, %s16763_s11  ;;  %v3677_v6 = vmax.f32 %v3124_v62, 0.0  ;;  %v3128_v3 = vadd.f32 %v3127_v43, %v17953_v16  ;;  %v2535_v58 = vadd.f32 %v2534_v27, %v17981_v47  ;;  %v18136_v55 = vpop.permute.xlu1 %1463  ;;  %v18141_v63 = vld [vmem:[%s17018_s21 + $0x138] sm:$0xff]  }
 0x1cb   : > { %v3675_v60 = vmax.f32 %v2531_v31, 0.0  ;;  %2797 = vmatmul.mubr.bf16.gmra.mrb[120].mxu0 %v18041_v54  ;;  %3390 = vmatmul.mubr.bf16.gmra.mrb[120].mxu1 %v18041_v54  ;;  %v4108_v37 = vmax.f32 %v24000_v12, %v3676_v41  ;;  %v3680_v33 = vmax.f32 %v3126_v52, 0.0  ;;  %v3663_v46 = vmax.f32 %v18093_v7, 0.0  ;;  %v18147_v31 = vpop.permute.xlu0 %1585 }
 0x1cc   : > { %v3678_v44 = vmax.f32 %v2533_v51, 0.0  ;;  %15383 = vrot.lane.b32.xlu0 %v15382_v59, %s16763_s11  ;;  %v24001_v4 = vmax.f32 %v18056_v36, 0.0  ;;  %13310 = vmatprep.mubr.msk.bf16.mxu0 %vm1631_vm0, %v18141_v63  ;;  %v3681_v54 = vmax.f32 %v3128_v3, 0.0  ;;  %v3679_v62 = vmax.f32 %v2535_v58, 0.0 }
 0x1cd   : > { %v18145_v15 = vmax.f32 %v3659_v0, %v3675_v60  ;;  %13366 = vmatprep.mubr.msk.bf16.mxu1 %vm1631_vm0, %v18141_v63  ;;  %v4112_v7 = vmax.f32 %v3664_v32, %v3680_v33  ;;  %v24004_v36 = vmax.f32 %v18044_v61, 0.0  ;;  %v1864_v0 = vsel %vm1800_vm1, %v18037_v38, %v17816_v42  ;;  %v18177_v33 = vld [vmem:[%s17018_s21 + $0x140] sm:$0xff]  }
 0x1ce   : > { %v4109_v28 = vmax.f32 %v24001_v4, %v3677_v6  ;;  %v18151_v59 = vmax.f32 %v3662_v30, %v3678_v44  ;;  %v2538_v43 = vpop.f32.mrb[16].mxu0  ;;  %v3131_v41 = vpop.f32.mrb[16].mxu1  ;;  %v4113_v51 = vmax.f32 %v3665_v1, %v3681_v54  ;;  %v18157_v6 = vmax.f32 %v3663_v46, %v3679_v62 }
 0x1cf   : > { %24002 = vst [vmem:[#allocation15_spill] sm:$0xff] %v18145_v15  ;;  %v18155_v27 = vmax.f32 %v24004_v36, %v3674_v23  ;;  %v2540_v3 = vpop.f32.mrb[17].mxu0  ;;  %v3133_v58 = vpop.f32.mrb[17].mxu1  ;;  %v1730_v1 = vsel %vm1631_vm0, %v17828_v8, %v17834_v50  ;;  %v2008_v12 = vsel %vm1913_vm2, %v1864_v0, %v17822_v9  ;;  %v1733_v9 = vsel %vm1631_vm0, %v17868_v35, %v17862_v29 }
 0x1d0   : > { %24003 = vst [vmem:[#allocation16_spill] sm:$0xff] %v18151_v59  ;;  %v15387_v52 = vpack.i.bf16 %v4109_v28, %v4108_v37  ;;  %24006 = vst [vmem:[#allocation18_spill] sm:$0xff] %v18157_v6  ;;  %v3135_v32 = vpop.f32.mrb[18].mxu1  ;;  %v2542_v30 = vpop.f32.mrb[18].mxu0  ;;  %v15392_v61 = vpack.i.bf16 %v4113_v51, %v4112_v7  ;;  %v15397_v38 = vpack.i.bf16 %v18157_v6, %v18145_v15 }
 0x1d1   : > { %24005 = vst [vmem:[#allocation17_spill] sm:$0xff] %v18155_v27  ;;  %v2544_v23 = vpop.f32.mrb[19].mxu0  ;;  %v3137_v60 = vpop.f32.mrb[19].mxu1  ;;  %v1866_v8 = vsel %vm1800_vm1, %v1730_v1, %v17847_v18  ;;  %v1736_v50 = vsel %vm1631_vm0, %v17895_v40, %v17882_v20  ;;  %v1868_v7 = vsel %vm1800_vm1, %v1733_v9, %v17874_v17  ;;  %v18204_v20 = vadd.f32 %v3131_v41, %v17949_v11  ;;  %v16178_v41 = vld [vmem:[%s23805_s3 + $0x2e0] ss:$16 sps:$4 sm:$0xff]  }
 0x1d2   : > { %15388 = vrot.lane.b32.xlu1 %v15387_v52, %s16763_s11  ;;  %15393 = vrot.lane.b32.xlu0 %v15392_v61, %s16763_s11  ;;  %v18169_v42 = vpop.permute.xlu1 %1343  ;;  %v18174_v37 = vpop.permute.xlu0 %1465  ;;  %v2011_v18 = vsel %vm1913_vm2, %v1866_v8, %v17849_v19  ;;  %v1870_v29 = vsel %vm1800_vm1, %v1736_v50, %v17889_v39  ;;  %v18207_v40 = vadd.f32 %v2538_v43, %v17970_v45  ;;  %v16180_v43 = vld [vmem:[%s23805_s3 + $0x2e4] ss:$16 sps:$4 sm:$0xff]   ;;  %v16183_v61 = vld [vmem:[%s23805_s3 + $0x2ec] ss:$16 sps:$4 sm:$0xff]  }
 0x1d3   : > { %2807 = vmatmul.mubr.bf16.gmra.mrb[124].mxu0 %v2008_v12  ;;  %3400 = vmatmul.mubr.bf16.gmra.mrb[124].mxu1 %v2008_v12  ;;  %v18214_v17 = vadd.f32 %v3133_v58, %v17953_v16  ;;  %v18217_v39 = vadd.f32 %v3135_v32, %v17949_v11  ;;  %v18220_v51 = vadd.f32 %v2540_v3, %v17981_v47  ;;  %v16181_v3 = vld [vmem:[%s23805_s3 + $0x2e8] ss:$16 sps:$4 sm:$0xff]   ;;  %v3684_v8 = vmax.f32 %v18204_v20, 0.0 }
 0x1d4   : > { %13311 = vmatprep.mubr.msk.bf16.mxu0 %vm1631_vm0, %v18177_v33  ;;  %13367 = vmatprep.mubr.msk.bf16.mxu1 %vm1631_vm0, %v18177_v33  ;;  %v18229_v0 = vadd.f32 %v2542_v30, %v17970_v45  ;;  %v18232_v58 = vadd.f32 %v3137_v60, %v17953_v16  ;;  %v18235_v32 = vadd.f32 %v2544_v23, %v17981_v47  ;;  %v18246_v30 = vld [vmem:[%s17018_s21 + $0x148] sm:$0xff]   ;;  %v3682_v9 = vmax.f32 %v18207_v40, 0.0 }
 0x1d5   : > { %v2014_v23 = vsel %vm1913_vm2, %v1868_v7, %v17880_v5  ;;  %v18256_v60 = vsel %vm1913_vm2, %v1870_v29, %v17901_v25  ;;  %5710 = vmatprep.subr.bf16.mxu0 %v16180_v43  ;;  %6023 = vmatprep.subr.bf16.mxu1 %v16183_v61  ;;  %v3683_v7 = vmax.f32 %v18220_v51, 0.0 }
 0x1d6   : > { %15398 = vrot.lane.b32.xlu1 %v15397_v38, %s16763_s11  ;;  %v2548_v46 = vpop.f32.mrb[20].mxu0  ;;  %v3141_v44 = vpop.f32.mrb[20].mxu1  ;;  %v18264_v38 = vsel %vm1631_vm0, %v17922_v56, %v17908_v14  ;;  %5711 = vmatpush1.bf16.msra.mxu0 %v16178_v41  ;;  %v3686_v14 = vmax.f32 %v18229_v0, 0.0  ;;  %v3689_v20 = vmax.f32 %v18232_v58, 0.0 }
 0x1d7   : > { %v2550_v4 = vpop.f32.mrb[21].mxu0  ;;  %v3143_v28 = vpop.f32.mrb[21].mxu1  ;;  %v18259_v12 = vadd.f32 %v3141_v44, %v17949_v11  ;;  %v18269_v5 = vadd.f32 %v2548_v46, %v17970_v45  ;;  %v3685_v44 = vmax.f32 %v18214_v17, 0.0  ;;  %6024 = vmatpush1.bf16.msra.mxu1 %v16181_v3  ;;  %v3687_v46 = vmax.f32 %v18235_v32, 0.0 }
 0x1d8   : > { %v18191_v54 = vpop.permute.xlu1 %1587  ;;  %v2552_v62 = vpop.f32.mrb[22].mxu0  ;;  %v18280_v40 = vadd.f32 %v3143_v28, %v17953_v16  ;;  %v18289_v0 = vadd.f32 %v2550_v4, %v17981_v47 }
 0x1d9   : > { %v18199_v35 = vpop.f32.mrb[22].mxu1  ;;  %v18201_v36 = vpop.f32.mrb[23].mxu0  ;;  %v18293_v15 = vadd.f32 %v2552_v62, %v17970_v45 }
 0x1da   : > { %v18209_v52 = vpop.f32.mrb[23].mxu1  ;;  %v18211_v19 = vpop.permute.xlu0 %1345 }
 0x1db   : > { %2817 = vmatmul.mubr.bf16.gmra.mrb[128].mxu0 %v2011_v18  ;;  %3410 = vmatmul.mubr.bf16.gmra.mrb[128].mxu1 %v2011_v18  ;;  %v3688_v18 = vmax.f32 %v18217_v39, 0.0 }
 0x1dc   : > { %v18243_v1 = vpop.permute.xlu1 %1467  ;;  %13312 = vmatprep.mubr.msk.bf16.mxu0 %vm1631_vm0, %v18246_v30  ;;  %13368 = vmatprep.mubr.msk.bf16.mxu1 %vm1631_vm0, %v18246_v30 }
 0x1de   : > { %v18271_v50 = vpop.permute.xlu0 %1589  ;;  %v2558_v25 = vpop.f32.mrb[24].mxu0 }
 0x1df   : > { %v3151_v56 = vpop.f32.mrb[24].mxu1  ;;  %v2560_v29 = vpop.f32.mrb[25].mxu0  ;;  %v2559_v43 = vadd.f32 %v2558_v25, %v17970_v45 }
 0x1e0   : > { %v3153_v17 = vpop.f32.mrb[25].mxu1  ;;  %v18283_v61 = vpop.permute.xlu1 %1347  ;;  %v3152_v39 = vadd.f32 %v3151_v56, %v17949_v11  ;;  %v2561_v51 = vadd.f32 %v2560_v29, %v17981_v47 }
 0x1e1   : > { %v2562_v58 = vpop.f32.mrb[26].mxu0  ;;  %v3155_v3 = vpop.f32.mrb[26].mxu1  ;;  %v3154_v32 = vadd.f32 %v3153_v17, %v17953_v16  ;;  %v3698_v28 = vmax.f32 %v2559_v43, 0.0 }
 0x1e2   : > { %v2564_v6 = vpop.f32.mrb[27].mxu0  ;;  %v3157_v56 = vpop.f32.mrb[27].mxu1  ;;  %v3700_v53 = vmax.f32 %v3152_v39, 0.0  ;;  %v3156_v29 = vadd.f32 %v3155_v3, %v17949_v11  ;;  %v3699_v41 = vmax.f32 %v2561_v51, 0.0  ;;  %v2563_v4 = vadd.f32 %v2562_v58, %v17970_v45  ;;  %v18307_v39 = vld [vmem:[%s17018_s21 + $0x150] sm:$0xff]  }
 0x1e3   : > { %v18298_v13 = vpop.permute.xlu0 %1469  ;;  %2827 = vmatmul.mubr.bf16.gmra.mrb[132].mxu0 %v2014_v23  ;;  %3420 = vmatmul.mubr.bf16.gmra.mrb[132].mxu1 %v2014_v23  ;;  %v3701_v17 = vmax.f32 %v3154_v32, 0.0  ;;  %v3158_v43 = vadd.f32 %v3157_v56, %v17953_v16  ;;  %v2565_v62 = vadd.f32 %v2564_v6, %v17981_v47  ;;  %v18302_v59 = vmax.f32 %v3682_v9, %v3698_v28 }
 0x1e4   : > { %v18304_v25 = vpop.permute.xlu1 %1591  ;;  %v4116_v27 = vmax.f32 %v3684_v8, %v3700_v53  ;;  %13313 = vmatprep.mubr.msk.bf16.mxu0 %vm1631_vm0, %v18307_v39  ;;  %13369 = vmatprep.mubr.msk.bf16.mxu1 %vm1631_vm0, %v18307_v39  ;;  %v3704_v51 = vmax.f32 %v3156_v29, 0.0  ;;  %v18313_v23 = vmax.f32 %v3683_v7, %v3699_v41  ;;  %v3693_v58 = vmax.f32 %v18280_v40, 0.0 }
 0x1e5   : > { %24007 = vst [vmem:[#allocation19_spill] sm:$0xff] %v18302_v59  ;;  %v4117_v3 = vmax.f32 %v3685_v44, %v3701_v17  ;;  %v3705_v6 = vmax.f32 %v3158_v43, 0.0  ;;  %v3703_v9 = vmax.f32 %v2565_v62, 0.0  ;;  %v3146_v32 = vadd.f32 %v18199_v35, %v17949_v11 }
 0x1e6   : > { %24008 = vst [vmem:[#allocation20_spill] sm:$0xff] %v18313_v23  ;;  %v2568_v53 = vpop.f32.mrb[28].mxu0  ;;  %v3161_v8 = vpop.f32.mrb[28].mxu1  ;;  %v4120_v28 = vmax.f32 %v3688_v18, %v3704_v51  ;;  %v2555_v56 = vadd.f32 %v18201_v36, %v17981_v47  ;;  %v3691_v59 = vmax.f32 %v18289_v0, 0.0  ;;  %v3702_v24 = vmax.f32 %v2563_v4, 0.0 }
 0x1e7   : > { %v18321_v29 = vpop.permute.xlu0 %1349  ;;  %v2570_v7 = vpop.f32.mrb[29].mxu0  ;;  %v15402_v41 = vpack.i.bf16 %v4117_v3, %v4116_v27  ;;  %v4121_v40 = vmax.f32 %v3689_v20, %v3705_v6  ;;  %v18323_v44 = vmax.f32 %v3687_v46, %v3703_v9  ;;  %v3162_v17 = vadd.f32 %v3161_v8, %v17949_v11 }
 0x1e8   : > { %v3163_v43 = vpop.f32.mrb[29].mxu1  ;;  %v18326_v35 = vpop.permute.xlu1 %1471  ;;  %v3148_v18 = vadd.f32 %v18209_v52, %v17953_v16  ;;  %v2571_v36 = vadd.f32 %v2570_v7, %v17981_v47  ;;  %v18331_v62 = vmax.f32 %v3686_v14, %v3702_v24  ;;  %v2569_v0 = vadd.f32 %v2568_v53, %v17970_v45 }
 0x1e9   : > { %24009 = vst [vmem:[#allocation21_spill] sm:$0xff] %v18323_v44  ;;  %v2572_v4 = vpop.f32.mrb[30].mxu0  ;;  %v3165_v51 = vpop.f32.mrb[30].mxu1  ;;  %15403 = vrot.lane.b32.xlu0 %v15402_v41, %s16763_s11  ;;  %v15407_v27 = vpack.i.bf16 %v4121_v40, %v4120_v28  ;;  %v15412_v20 = vpack.i.bf16 %v18323_v44, %v18313_v23  ;;  %v3164_v46 = vadd.f32 %v3163_v43, %v17953_v16  ;;  %v3696_v3 = vmax.f32 %v3146_v32, 0.0 }
 0x1ea   : > { %24010 = vst [vmem:[#allocation22_spill] sm:$0xff] %v18331_v62  ;;  %v2574_v6 = vpop.f32.mrb[31].mxu0  ;;  %v3167_v52 = vpop.f32.mrb[31].mxu1  ;;  %v3708_v9 = vmax.f32 %v3162_v17, 0.0  ;;  %v3166_v24 = vadd.f32 %v3165_v51, %v17949_v11  ;;  %v3707_v14 = vmax.f32 %v2571_v36, 0.0  ;;  %v2573_v53 = vadd.f32 %v2572_v4, %v17970_v45  ;;  %v18352_v36 = vld [vmem:[%s17018_s21 + $0x158] sm:$0xff]  }
 0x1eb   : > { %v18340_v8 = vpop.permute.xlu0 %1593  ;;  %15408 = vrot.lane.b32.xlu1 %v15407_v27, %s16763_s11  ;;  %2837 = vmatmul.mubr.bf16.gmra.mrb[136].mxu0 %v18256_v60  ;;  %v3709_v28 = vmax.f32 %v3164_v46, 0.0  ;;  %v3168_v7 = vadd.f32 %v3167_v52, %v17953_v16  ;;  %v2575_v32 = vadd.f32 %v2574_v6, %v17981_v47  ;;  %v3706_v41 = vmax.f32 %v2569_v0, 0.0 }
 0x1ec   : > { %3430 = vmatmul.mubr.bf16.gmra.mrb[136].mxu1 %v18256_v60  ;;  %v18347_v40 = vpop.permute.xlu1 %1351  ;;  %v24011_v17 = vmax.f32 %v18259_v12, 0.0  ;;  %13314 = vmatprep.mubr.msk.bf16.mxu0 %vm1631_vm0, %v18352_v36  ;;  %v3712_v4 = vmax.f32 %v3166_v24, 0.0  ;;  %v3695_v51 = vmax.f32 %v2555_v56, 0.0  ;;  %v18356_v27 = vmax.f32 %v3691_v59, %v3707_v14 }
 0x1ed   : > { %15413 = vrot.lane.b32.xlu0 %v15412_v20, %s16763_s11  ;;  %v4125_v46 = vmax.f32 %v3693_v58, %v3709_v28  ;;  %13370 = vmatprep.mubr.msk.bf16.mxu1 %vm1631_vm0, %v18352_v36  ;;  %v3697_v60 = vmax.f32 %v3148_v18, 0.0  ;;  %v3713_v0 = vmax.f32 %v3168_v7, 0.0  ;;  %v3711_v6 = vmax.f32 %v2575_v32, 0.0 }
 0x1ee   : > { %v4124_v43 = vmax.f32 %v24011_v17, %v3708_v9  ;;  %24012 = vst [vmem:[#allocation23_spill] sm:$0xff] %v18356_v27  ;;  %v2578_v12 = vpop.f32.mrb[32].mxu0  ;;  %v3171_v52 = vpop.f32.mrb[32].mxu1  ;;  %v4128_v9 = vmax.f32 %v3696_v3, %v3712_v4  ;;  %v3694_v17 = vmax.f32 %v18293_v15, 0.0  ;;  %v3710_v23 = vmax.f32 %v2573_v53, 0.0 }
 0x1ef   : > { %v24013_v24 = vmax.f32 %v18269_v5, 0.0  ;;  %v1872_v59 = vsel %vm1800_vm1, %v18264_v38, %v17910_v49  ;;  %v18369_v58 = vpop.permute.xlu0 %1473  ;;  %v2580_v20 = vpop.f32.mrb[33].mxu0  ;;  %v4129_v14 = vmax.f32 %v3697_v60, %v3713_v0  ;;  %v18371_v28 = vmax.f32 %v3695_v51, %v3711_v6 }
 0x1f0   : > { %v15417_v18 = vpack.i.bf16 %v4125_v46, %v4124_v43  ;;  %v3173_v7 = vpop.f32.mrb[33].mxu1  ;;  %v18373_v3 = vpop.permute.xlu1 %1595  ;;  %v18375_v15 = vmax.f32 %v3694_v17, %v3710_v23  ;;  %v1742_v49 = vsel %vm1631_vm0, %v17962_v10, %v17931_v34  ;;  %v2020_v43 = vsel %vm1913_vm2, %v1872_v59, %v17928_v57  ;;  %v18391_v46 = vld [vmem:[%s17018_s21 + $0x160] sm:$0xff]   ;;  %v24018_v57 = vld [vmem:[#allocation9_spill] sm:$0xff]  ;;  %v24019_v10 = vld [vmem:[#allocation8_spill] sm:$0xff] }
 0x1f1   : > { %v18364_v56 = vmax.f32 %v24013_v24, %v3706_v41  ;;  %24015 = vst [vmem:[#allocation25_spill] sm:$0xff] %v18371_v28  ;;  %v2582_v5 = vpop.f32.mrb[34].mxu0  ;;  %v3175_v53 = vpop.f32.mrb[34].mxu1  ;;  %v15422_v32 = vpack.i.bf16 %v4129_v14, %v4128_v9  ;;  %v15427_v23 = vpack.i.bf16 %v18371_v28, %v18356_v27  ;;  %v1874_v34 = vsel %vm1800_vm1, %v1742_v49, %v17975_v48  ;;  %v16189_v28 = vld [vmem:[%s23805_s3 + $0x30c] ss:$16 sps:$4 sm:$0xff]  }
 0x1f2   : > { %24016 = vst [vmem:[#allocation26_spill] sm:$0xff] %v18375_v15  ;;  %15418 = vrot.lane.b32.xlu1 %v15417_v18, %s16763_s11  ;;  %v2584_v38 = vpop.f32.mrb[35].mxu0  ;;  %v3177_v41 = vpop.f32.mrb[35].mxu1  ;;  %v1745_v60 = vsel %vm1631_vm0, %v24019_v10, %v24018_v57  ;;  %v1748_v0 = vsel %vm1631_vm0, %v18097_v22, %v18107_v21  ;;  %v24021_v18 = vld [vmem:[#allocation7_spill] sm:$0xff]  ;;  %v18419_v21 = vadd.f32 %v3171_v52, %v17949_v11 }
 0x1f3   : > { %24014 = vst [vmem:[#allocation24_spill] sm:$0xff] %v18364_v56  ;;  %v18383_v4 = vpop.permute.xlu0 %1353  ;;  %15423 = vrot.lane.b32.xlu0 %v15422_v32, %s16763_s11  ;;  %2847 = vmatmul.mubr.bf16.gmra.mrb[140].mxu0 %v2020_v43  ;;  %v2023_v14 = vsel %vm1913_vm2, %v1874_v34, %v24021_v18  ;;  %v24022_v32 = vld [vmem:[#allocation10_spill] sm:$0xff]  ;;  %v18422_v57 = vadd.f32 %v2580_v20, %v17981_v47 }
 0x1f4   : > { %3440 = vmatmul.mubr.bf16.gmra.mrb[140].mxu1 %v2020_v43  ;;  %v18388_v51 = vpop.permute.xlu1 %1475  ;;  %13315 = vmatprep.mubr.msk.bf16.mxu0 %vm1631_vm0, %v18391_v46  ;;  %v1876_v49 = vsel %vm1800_vm1, %v1745_v60, %v24022_v32  ;;  %v1878_v43 = vsel %vm1800_vm1, %v1748_v0, %v18136_v55  ;;  %v18429_v34 = vadd.f32 %v3173_v7, %v17953_v16  ;;  %v16184_v7 = vld [vmem:[%s23805_s3 + $0x300] ss:$16 sps:$4 sm:$0xff]  }
 0x1f5   : > { %24017 = vst [vmem:[#allocation27_spill] sm:$0xff] %v18388_v51  ;;  %13371 = vmatprep.mubr.msk.bf16.mxu1 %vm1631_vm0, %v18391_v46  ;;  %v18432_v60 = vadd.f32 %v3175_v53, %v17949_v11  ;;  %v18435_v55 = vadd.f32 %v2578_v12, %v17970_v45  ;;  %v18438_v52 = vadd.f32 %v2582_v5, %v17970_v45  ;;  %v16186_v12 = vld [vmem:[%s23805_s3 + $0x304] ss:$16 sps:$4 sm:$0xff]   ;;  %v18457_v53 = vld [vmem:[%s17018_s21 + $0x168] sm:$0xff]  }
 0x1f6   : > { %15428 = vrot.lane.b32.xlu1 %v15427_v23, %s16763_s11  ;;  %v2588_v6 = vpop.f32.mrb[36].mxu0  ;;  %v3181_v9 = vpop.f32.mrb[36].mxu1  ;;  %v18443_v20 = vadd.f32 %v3177_v41, %v17953_v16  ;;  %v18446_v18 = vadd.f32 %v2584_v38, %v17981_v47  ;;  %v2026_v38 = vsel %vm1913_vm2, %v1876_v49, %v18105_v2  ;;  %v18465_v41 = vsel %vm1913_vm2, %v1878_v43, %v18147_v31 }
 0x1f7   : > { %v18406_v17 = vpop.permute.xlu0 %1597  ;;  %v2590_v24 = vpop.f32.mrb[37].mxu0  ;;  %v18468_v32 = vadd.f32 %v3181_v9, %v17949_v11  ;;  %v18479_v44 = vsel %vm1631_vm0, %v18141_v63, %v18169_v42  ;;  %v3716_v2 = vmax.f32 %v18419_v21, 0.0  ;;  %v3715_v31 = vmax.f32 %v18422_v57, 0.0  ;;  %5712 = vmatprep.subr.bf16.mxu0 %v16186_v12  ;;  %6025 = vmatprep.subr.bf16.mxu1 %v16189_v28 }
 0x1f8   : > { %24020 = vst [vmem:[#allocation9_spill] sm:$0xff] %v18406_v17  ;;  %v3183_v59 = vpop.f32.mrb[37].mxu1  ;;  %v18408_v48 = vpop.permute.xlu1 %1355  ;;  %v18486_v9 = vadd.f32 %v2588_v6, %v17970_v45  ;;  %v3717_v56 = vmax.f32 %v18429_v34, 0.0  ;;  %v3720_v15 = vmax.f32 %v18432_v60, 0.0  ;;  %5713 = vmatpush1.bf16.msra.mxu0 %v16184_v7  ;;  %v3714_v63 = vmax.f32 %v18435_v55, 0.0 }
 0x1f9   : > { %v18416_v23 = vpop.f32.mrb[38].mxu0  ;;  %v3185_v22 = vpop.f32.mrb[38].mxu1  ;;  %v3718_v42 = vmax.f32 %v18438_v52, 0.0  ;;  %v3721_v6 = vmax.f32 %v18443_v20, 0.0  ;;  %v3719_v12 = vmax.f32 %v18446_v18, 0.0  ;;  %v18502_v55 = vadd.f32 %v3183_v59, %v17953_v16 }
 0x1fa   : > { %v18424_v10 = vpop.f32.mrb[39].mxu0  ;;  %v18426_v27 = vpop.f32.mrb[39].mxu1  ;;  %v18506_v7 = vadd.f32 %v2590_v24, %v17981_v47 }
 0x1fb   : > { %v18440_v0 = vpop.permute.xlu0 %1477  ;;  %2857 = vmatmul.mubr.bf16.gmra.mrb[144].mxu0 %v2023_v14 }
 0x1fc   : > { %24023 = vst [vmem:[#allocation8_spill] sm:$0xff] %v18440_v0  ;;  %3450 = vmatmul.mubr.bf16.gmra.mrb[144].mxu1 %v2023_v14  ;;  %v18454_v5 = vpop.permute.xlu1 %1599  ;;  %13316 = vmatprep.mubr.msk.bf16.mxu0 %vm1631_vm0, %v18457_v53  ;;  %v16187_v14 = vld [vmem:[%s23805_s3 + $0x308] ss:$16 sps:$4 sm:$0xff]  }
 0x1fd   : > { %24024 = vst [vmem:[#allocation7_spill] sm:$0xff] %v18454_v5  ;;  %13372 = vmatprep.mubr.msk.bf16.mxu1 %vm1631_vm0, %v18457_v53  ;;  %6026 = vmatpush1.bf16.msra.mxu1 %v16187_v14  ;;  %v18522_v5 = vld [vmem:[%s17018_s21 + $0x170] sm:$0xff]  }
 0x1fe   : > { %v2598_v49 = vpop.f32.mrb[40].mxu0  ;;  %v3191_v43 = vpop.f32.mrb[40].mxu1 }
 0x1ff   : > { %v18492_v62 = vpop.permute.xlu0 %1357  ;;  %v2600_v21 = vpop.f32.mrb[41].mxu0  ;;  %v3192_v57 = vadd.f32 %v3191_v43, %v17949_v11  ;;  %v2599_v34 = vadd.f32 %v2598_v49, %v17970_v45  ;;  %v18510_v49 = vadd.f32 %v3185_v22, %v17949_v11 }
 0x200   : > { %24025 = vst [vmem:[#allocation10_spill] sm:$0xff] %v18492_v62  ;;  %v3193_v26 = vpop.f32.mrb[41].mxu1  ;;  %v18498_v60 = vpop.permute.xlu1 %1479  ;;  %v2601_v28 = vadd.f32 %v2600_v21, %v17981_v47 }
 0x201   : > { %24026 = vst [vmem:[#allocation28_spill] sm:$0xff] %v18498_v60  ;;  %v2602_v43 = vpop.f32.mrb[42].mxu0  ;;  %v3195_v20 = vpop.f32.mrb[42].mxu1  ;;  %v3194_v18 = vadd.f32 %v3193_v26, %v17953_v16  ;;  %v3732_v14 = vmax.f32 %v3192_v57, 0.0  ;;  %v3730_v24 = vmax.f32 %v2599_v34, 0.0  ;;  %v3723_v34 = vmax.f32 %v18506_v7, 0.0 }
 0x202   : > { %v2604_v21 = vpop.f32.mrb[43].mxu0  ;;  %v3197_v17 = vpop.f32.mrb[43].mxu1  ;;  %v3196_v59 = vadd.f32 %v3195_v20, %v17949_v11  ;;  %v3731_v60 = vmax.f32 %v2601_v28, 0.0  ;;  %v2603_v52 = vadd.f32 %v2602_v43, %v17970_v45 }
 0x203   : > { %v18515_v0 = vpop.permute.xlu0 %1601  ;;  %2867 = vmatmul.mubr.bf16.gmra.mrb[148].mxu0 %v2026_v38  ;;  %v3733_v51 = vmax.f32 %v3194_v18, 0.0  ;;  %v4132_v26 = vmax.f32 %v3716_v2, %v3732_v14  ;;  %v3198_v57 = vadd.f32 %v3197_v17, %v17953_v16  ;;  %v2605_v22 = vadd.f32 %v2604_v21, %v17981_v47 }
 0x204   : > { %24027 = vst [vmem:[#allocation29_spill] sm:$0xff] %v18515_v0  ;;  %3460 = vmatmul.mubr.bf16.gmra.mrb[148].mxu1 %v2026_v38  ;;  %v18519_v62 = vpop.permute.xlu1 %1359  ;;  %13317 = vmatprep.mubr.msk.bf16.mxu0 %vm1631_vm0, %v18522_v5  ;;  %v3736_v28 = vmax.f32 %v3196_v59, 0.0  ;;  %v18526_v43 = vmax.f32 %v3715_v31, %v3731_v60  ;;  %v3734_v20 = vmax.f32 %v2603_v52, 0.0  ;;  %v18533_v38 = vadd.f32 %v18416_v23, %v17970_v45 }
 0x205   : > { %24028 = vst [vmem:[#allocation30_spill] sm:$0xff] %v18519_v62  ;;  %v4133_v18 = vmax.f32 %v3717_v56, %v3733_v51  ;;  %13373 = vmatprep.mubr.msk.bf16.mxu1 %vm1631_vm0, %v18522_v5  ;;  %v3737_v17 = vmax.f32 %v3198_v57, 0.0  ;;  %v3735_v2 = vmax.f32 %v2605_v22, 0.0  ;;  %v3725_v59 = vmax.f32 %v18502_v55, 0.0 }
 0x206   : > { %24029 = vst [vmem:[#allocation31_spill] sm:$0xff] %v18526_v43  ;;  %v2608_v14 = vpop.f32.mrb[44].mxu0  ;;  %v3201_v21 = vpop.f32.mrb[44].mxu1  ;;  %v4136_v0 = vmax.f32 %v3720_v15, %v3736_v28  ;;  %v18536_v31 = vmax.f32 %v3714_v63, %v3730_v24  ;;  %v18538_v60 = vmax.f32 %v3718_v42, %v3734_v20  ;;  %v3188_v15 = vadd.f32 %v18426_v27, %v17953_v16 }
 0x207   : > { %v18540_v52 = vpop.permute.xlu0 %1481  ;;  %v2610_v56 = vpop.f32.mrb[45].mxu0  ;;  %v15432_v51 = vpack.i.bf16 %v4133_v18, %v4132_v26  ;;  %v4137_v7 = vmax.f32 %v3721_v6, %v3737_v17  ;;  %v18542_v57 = vmax.f32 %v3719_v12, %v3735_v2  ;;  %v3202_v22 = vadd.f32 %v3201_v21, %v17949_v11 }
 0x208   : > { %24030 = vst [vmem:[#allocation32_spill] sm:$0xff] %v18536_v31  ;;  %24031 = vst [vmem:[#allocation33_spill] sm:$0xff] %v18538_v60  ;;  %v3203_v23 = vpop.f32.mrb[45].mxu1  ;;  %v18545_v62 = vpop.permute.xlu1 %1603  ;;  %v2595_v63 = vadd.f32 %v18424_v10, %v17981_v47  ;;  %v2611_v42 = vadd.f32 %v2610_v56, %v17981_v47  ;;  %v2609_v55 = vadd.f32 %v2608_v14, %v17970_v45  ;;  %v3728_v20 = vmax.f32 %v18510_v49, 0.0 }
 0x209   : > { %24032 = vst [vmem:[#allocation34_spill] sm:$0xff] %v18542_v57  ;;  %v2612_v24 = vpop.f32.mrb[46].mxu0  ;;  %v3205_v26 = vpop.f32.mrb[46].mxu1  ;;  %15433 = vrot.lane.b32.xlu0 %v15432_v51, %s16763_s11  ;;  %v15437_v6 = vpack.i.bf16 %v4137_v7, %v4136_v0  ;;  %v3204_v12 = vadd.f32 %v3203_v23, %v17953_v16  ;;  %v3740_v28 = vmax.f32 %v3202_v22, 0.0  ;;  %v15442_v10 = vpack.i.bf16 %v18542_v57, %v18526_v43  ;;  %v18572_v23 = vld [vmem:[%s17018_s21 + $0x178] sm:$0xff]  }
 0x20a   : > { %v2614_v18 = vpop.f32.mrb[47].mxu0  ;;  %v3207_v27 = vpop.f32.mrb[47].mxu1  ;;  %v3206_v17 = vadd.f32 %v3205_v26, %v17949_v11  ;;  %v3739_v2 = vmax.f32 %v2611_v42, 0.0  ;;  %v2613_v14 = vadd.f32 %v2612_v24, %v17970_v45  ;;  %v24033_v49 = vmax.f32 %v18468_v32, 0.0 }
 0x20b   : > { %v18560_v21 = vpop.permute.xlu0 %1361  ;;  %15438 = vrot.lane.b32.xlu1 %v15437_v6, %s16763_s11  ;;  %2877 = vmatmul.mubr.bf16.gmra.mrb[152].mxu0 %v18465_v41  ;;  %v3741_v0 = vmax.f32 %v3204_v12, 0.0  ;;  %v3208_v51 = vadd.f32 %v3207_v27, %v17953_v16  ;;  %v2615_v7 = vadd.f32 %v2614_v18, %v17981_v47  ;;  %v3729_v42 = vmax.f32 %v3188_v15, 0.0 }
 0x20c   : > { %v4140_v56 = vmax.f32 %v24033_v49, %v3740_v28  ;;  %3470 = vmatmul.mubr.bf16.gmra.mrb[152].mxu1 %v18465_v41  ;;  %v18569_v22 = vpop.permute.xlu1 %1483  ;;  %13318 = vmatprep.mubr.msk.bf16.mxu0 %vm1631_vm0, %v18572_v23  ;;  %v3744_v24 = vmax.f32 %v3206_v17, 0.0  ;;  %v18576_v26 = vmax.f32 %v3723_v34, %v3739_v2  ;;  %v3738_v6 = vmax.f32 %v2609_v55, 0.0 }
 0x20d   : > { %15443 = vrot.lane.b32.xlu0 %v15442_v10, %s16763_s11  ;;  %v4141_v32 = vmax.f32 %v3725_v59, %v3741_v0  ;;  %13374 = vmatprep.mubr.msk.bf16.mxu1 %vm1631_vm0, %v18572_v23  ;;  %v3745_v12 = vmax.f32 %v3208_v51, 0.0  ;;  %v3727_v41 = vmax.f32 %v2595_v63, 0.0  ;;  %v3743_v28 = vmax.f32 %v2615_v7, 0.0 }
 0x20e   : > { %24034 = vst [vmem:[#allocation35_spill] sm:$0xff] %v18576_v26  ;;  %v2618_v18 = vpop.f32.mrb[48].mxu0  ;;  %v3211_v27 = vpop.f32.mrb[48].mxu1  ;;  %v4144_v49 = vmax.f32 %v3728_v20, %v3744_v24  ;;  %v3726_v43 = vmax.f32 %v18533_v38, 0.0  ;;  %v3742_v57 = vmax.f32 %v2613_v14, 0.0  ;;  %v24035_v15 = vmax.f32 %v18486_v9, 0.0 }
 0x20f   : > { %v1880_v59 = vsel %vm1800_vm1, %v18479_v44, %v18174_v37  ;;  %v18589_v55 = vpop.permute.xlu0 %1605  ;;  %v2620_v10 = vpop.f32.mrb[49].mxu0  ;;  %v15447_v17 = vpack.i.bf16 %v4141_v32, %v4140_v56  ;;  %v4145_v63 = vmax.f32 %v3729_v42, %v3745_v12  ;;  %v18591_v2 = vmax.f32 %v3727_v41, %v3743_v28  ;;  %v18611_v24 = vld [vmem:[%s17018_s21 + $0x180] sm:$0xff]  }
 0x210   : > { %v18584_v34 = vmax.f32 %v24035_v15, %v3738_v6  ;;  %v3213_v0 = vpop.f32.mrb[49].mxu1  ;;  %v18593_v20 = vpop.permute.xlu1 %1363  ;;  %v18595_v38 = vmax.f32 %v3726_v43, %v3742_v57  ;;  %v2032_v44 = vsel %vm1913_vm2, %v1880_v59, %v18191_v54  ;;  %v1754_v43 = vsel %vm1631_vm0, %v18177_v33, %v18211_v19  ;;  %v16191_v32 = vld [vmem:[%s23805_s3 + $0x320] ss:$16 sps:$4 sm:$0xff]   ;;  %v16193_v33 = vld [vmem:[%s23805_s3 + $0x324] ss:$16 sps:$4 sm:$0xff]  }
 0x211   : > { %24037 = vst [vmem:[#allocation37_spill] sm:$0xff] %v18591_v2  ;;  %v2622_v9 = vpop.f32.mrb[50].mxu0  ;;  %v3215_v14 = vpop.f32.mrb[50].mxu1  ;;  %15448 = vrot.lane.b32.xlu1 %v15447_v17, %s16763_s11  ;;  %v15452_v51 = vpack.i.bf16 %v4145_v63, %v4144_v49  ;;  %v15457_v42 = vpack.i.bf16 %v18591_v2, %v18576_v26  ;;  %v1882_v19 = vsel %vm1800_vm1, %v1754_v43, %v18243_v1  ;;  %v16194_v49 = vld [vmem:[%s23805_s3 + $0x328] ss:$16 sps:$4 sm:$0xff]  }
 0x212   : > { %24036 = vst [vmem:[#allocation36_spill] sm:$0xff] %v18584_v34  ;;  %24038 = vst [vmem:[#allocation38_spill] sm:$0xff] %v18595_v38  ;;  %v2624_v7 = vpop.f32.mrb[51].mxu0  ;;  %v3217_v37 = vpop.f32.mrb[51].mxu1  ;;  %v1757_v12 = vsel %vm1631_vm0, %v18246_v30, %v18283_v61  ;;  %v16196_v15 = vld [vmem:[%s23805_s3 + $0x32c] ss:$16 sps:$4 sm:$0xff]   ;;  %v1760_v1 = vsel %vm1631_vm0, %v18307_v39, %v18321_v29  ;;  %v18647_v30 = vadd.f32 %v3211_v27, %v17949_v11  ;;  %5714 = vmatprep.subr.bf16.mxu0 %v16193_v33 }
 0x213   : > { %v18600_v56 = vpop.permute.xlu0 %1485  ;;  %15453 = vrot.lane.b32.xlu0 %v15452_v51, %s16763_s11  ;;  %2887 = vmatmul.mubr.bf16.gmra.mrb[156].mxu0 %v2032_v44  ;;  %v18650_v61 = vadd.f32 %v3213_v0, %v17953_v16  ;;  %v18653_v63 = vadd.f32 %v2620_v10, %v17981_v47  ;;  %v16200_v51 = vld [vmem:[%s23805_s3 + $0x344] ss:$16 sps:$4 sm:$0xff]   ;;  %v18663_v29 = vadd.f32 %v3215_v14, %v17949_v11  ;;  %v16198_v27 = vld [vmem:[%s23805_s3 + $0x340] ss:$16 sps:$4 sm:$0xff]  }
 0x214   : > { %3480 = vmatmul.mubr.bf16.gmra.mrb[156].mxu1 %v2032_v44  ;;  %v18608_v57 = vpop.permute.xlu1 %1607  ;;  %13319 = vmatprep.mubr.msk.bf16.mxu0 %vm1631_vm0, %v18611_v24  ;;  %v18669_v10 = vadd.f32 %v2618_v18, %v17970_v45  ;;  %v18672_v0 = vadd.f32 %v2622_v9, %v17970_v45  ;;  %v2035_v14 = vsel %vm1913_vm2, %v1882_v19, %v18271_v50  ;;  %v16203_v18 = vld [vmem:[%s23805_s3 + $0x34c] ss:$16 sps:$4 sm:$0xff]  }
 0x215   : > { %24039 = vst [vmem:[#allocation39_spill] sm:$0xff] %v18608_v57  ;;  %15458 = vrot.lane.b32.xlu1 %v15457_v42, %s16763_s11  ;;  %13375 = vmatprep.mubr.msk.bf16.mxu1 %vm1631_vm0, %v18611_v24  ;;  %v1884_v9 = vsel %vm1800_vm1, %v1757_v12, %v18298_v13  ;;  %v1886_v33 = vsel %vm1800_vm1, %v1760_v1, %v18326_v35  ;;  %v18704_v13 = vld [vmem:[%s17018_s21 + $0x188] sm:$0xff]   ;;  %v3748_v35 = vmax.f32 %v18647_v30, 0.0  ;;  %v3747_v12 = vmax.f32 %v18653_v63, 0.0 }
 0x216   : > { %v2628_v54 = vpop.f32.mrb[52].mxu0  ;;  %v3221_v6 = vpop.f32.mrb[52].mxu1  ;;  %6027 = vmatprep.subr.bf16.mxu1 %v16196_v15  ;;  %5715 = vmatpush1.bf16.msra.mxu0 %v16191_v32  ;;  %v16201_v32 = vld [vmem:[%s23805_s3 + $0x348] ss:$16 sps:$4 sm:$0xff]   ;;  %v18693_v50 = vadd.f32 %v3217_v37, %v17953_v16  ;;  %v18696_v19 = vadd.f32 %v2624_v7, %v17981_v47  ;;  %v3749_v37 = vmax.f32 %v18650_v61, 0.0  ;;  %v2038_v34 = vsel %vm1913_vm2, %v1884_v9, %v18304_v25 }
 0x217   : > { %v18629_v41 = vpop.permute.xlu0 %1365  ;;  %v18631_v28 = vpop.f32.mrb[53].mxu0  ;;  %6028 = vmatpush1.bf16.msra.mxu1 %v16194_v49  ;;  %5716 = vmatprep.subr.bf16.mxu0 %v16200_v51  ;;  %v16206_v49 = vld [vmem:[%s23805_s3 + $0x364] ss:$16 sps:$4 sm:$0xff]   ;;  %v18712_v7 = vadd.f32 %v3221_v6, %v17949_v11  ;;  %v16209_v1 = vld [vmem:[%s23805_s3 + $0x36c] ss:$16 sps:$4 sm:$0xff]   ;;  %v18723_v61 = vadd.f32 %v2628_v54, %v17970_v45  ;;  %v18728_v6 = vsel %vm1631_vm0, %v18352_v36, %v18347_v40 }
 0x218   : > { %v18642_v59 = vpop.f32.mrb[53].mxu1  ;;  %v18644_v17 = vpop.permute.xlu1 %1487  ;;  %6029 = vmatprep.subr.bf16.mxu1 %v16203_v18  ;;  %v18734_v18 = vsel %vm1913_vm2, %v1886_v33, %v18340_v8  ;;  %v16204_v54 = vld [vmem:[%s23805_s3 + $0x360] ss:$16 sps:$4 sm:$0xff]   ;;  %v16207_v40 = vld [vmem:[%s23805_s3 + $0x368] ss:$16 sps:$4 sm:$0xff]   ;;  %v3753_v25 = vmax.f32 %v18693_v50, 0.0 }
 0x219   : > { %v18658_v44 = vpop.f32.mrb[54].mxu0  ;;  %v18660_v39 = vpop.f32.mrb[54].mxu1  ;;  %v3751_v8 = vmax.f32 %v18696_v19, 0.0 }
 0x21a   : > { %v18674_v42 = vpop.f32.mrb[55].mxu0  ;;  %v18676_v43 = vpop.f32.mrb[55].mxu1  ;;  %5717 = vmatpush1.bf16.msra.mxu0 %v16198_v27 }
 0x21b   : > { %v18690_v15 = vpop.permute.xlu0 %1609  ;;  %2897 = vmatmul.mubr.bf16.gmra.mrb[160].mxu0 %v2035_v14  ;;  %6030 = vmatpush1.bf16.msra.mxu1 %v16201_v32 }
 0x21c   : > { %24040 = vst [vmem:[#allocation40_spill] sm:$0xff] %v18690_v15  ;;  %3490 = vmatmul.mubr.bf16.gmra.mrb[160].mxu1 %v2035_v14  ;;  %v18701_v51 = vpop.permute.xlu1 %1367  ;;  %13320 = vmatprep.mubr.msk.bf16.mxu0 %vm1631_vm0, %v18704_v13  ;;  %v18753_v14 = vadd.f32 %v18642_v59, %v17953_v16 }
 0x21d   : > { %13376 = vmatprep.mubr.msk.bf16.mxu1 %vm1631_vm0, %v18704_v13  ;;  %5718 = vmatprep.subr.bf16.mxu0 %v16206_v49 }
 0x21e   : > { %v2638_v63 = vpop.f32.mrb[56].mxu0  ;;  %v3231_v2 = vpop.f32.mrb[56].mxu1  ;;  %6031 = vmatprep.subr.bf16.mxu1 %v16209_v1  ;;  %5719 = vmatpush1.bf16.msra.mxu0 %v16204_v54 }
 0x21f   : > { %v18742_v36 = vpop.permute.xlu0 %1489  ;;  %v2640_v30 = vpop.f32.mrb[57].mxu0  ;;  %v3232_v26 = vadd.f32 %v3231_v2, %v17949_v11  ;;  %v2639_v27 = vadd.f32 %v2638_v63, %v17970_v45  ;;  %v18758_v2 = vadd.f32 %v18631_v28, %v17981_v47  ;;  %v18763_v63 = vadd.f32 %v18660_v39, %v17949_v11  ;;  %6032 = vmatpush1.bf16.msra.mxu1 %v16207_v40 }
 0x220   : > { %24041 = vst [vmem:[#allocation41_spill] sm:$0xff] %v18742_v36  ;;  %v3233_v32 = vpop.f32.mrb[57].mxu1  ;;  %v18748_v9 = vpop.permute.xlu1 %1611  ;;  %v2641_v33 = vadd.f32 %v2640_v30, %v17981_v47  ;;  %v18775_v36 = vld [vmem:[%s17018_s21 + $0x190] sm:$0xff]  }
 0x221   : > { %24042 = vst [vmem:[#allocation42_spill] sm:$0xff] %v18748_v9  ;;  %v2642_v50 = vpop.f32.mrb[58].mxu0  ;;  %v3235_v19 = vpop.f32.mrb[58].mxu1  ;;  %v3234_v49 = vadd.f32 %v3233_v32, %v17953_v16  ;;  %v3764_v1 = vmax.f32 %v3232_v26, 0.0  ;;  %v3762_v9 = vmax.f32 %v2639_v27, 0.0  ;;  %v3755_v27 = vmax.f32 %v18758_v2, 0.0 }
 0x222   : > { %v2644_v31 = vpop.f32.mrb[59].mxu0  ;;  %v3237_v59 = vpop.f32.mrb[59].mxu1  ;;  %v3236_v38 = vadd.f32 %v3235_v19, %v17949_v11  ;;  %v3763_v60 = vmax.f32 %v2641_v33, 0.0  ;;  %v2643_v28 = vadd.f32 %v2642_v50, %v17970_v45 }
 0x223   : > { %v18768_v15 = vpop.permute.xlu0 %1369  ;;  %2907 = vmatmul.mubr.bf16.gmra.mrb[164].mxu0 %v2038_v34  ;;  %v3765_v26 = vmax.f32 %v3234_v49, 0.0  ;;  %v4148_v32 = vmax.f32 %v3748_v35, %v3764_v1  ;;  %v3238_v39 = vadd.f32 %v3237_v59, %v17953_v16  ;;  %v2645_v30 = vadd.f32 %v2644_v31, %v17981_v47 }
 0x224   : > { %3500 = vmatmul.mubr.bf16.gmra.mrb[164].mxu1 %v2038_v34  ;;  %v18772_v57 = vpop.permute.xlu1 %1491  ;;  %13321 = vmatprep.mubr.msk.bf16.mxu0 %vm1631_vm0, %v18775_v36  ;;  %v3768_v54 = vmax.f32 %v3236_v38, 0.0  ;;  %v18779_v40 = vmax.f32 %v3747_v12, %v3763_v60  ;;  %v3766_v33 = vmax.f32 %v2643_v28, 0.0  ;;  %v18786_v34 = vadd.f32 %v18658_v44, %v17970_v45 }
 0x225   : > { %v4149_v50 = vmax.f32 %v3749_v37, %v3765_v26  ;;  %13377 = vmatprep.mubr.msk.bf16.mxu1 %vm1631_vm0, %v18775_v36  ;;  %v3769_v35 = vmax.f32 %v3238_v39, 0.0  ;;  %v3767_v31 = vmax.f32 %v2645_v30, 0.0  ;;  %v24044_v1 = vmax.f32 %v18663_v29, 0.0 }
 0x226   : > { %24043 = vst [vmem:[#allocation43_spill] sm:$0xff] %v18779_v40  ;;  %v2648_v19 = vpop.f32.mrb[60].mxu0  ;;  %v3241_v49 = vpop.f32.mrb[60].mxu1  ;;  %v3757_v60 = vmax.f32 %v18753_v14, 0.0  ;;  %v24045_v12 = vmax.f32 %v18669_v10, 0.0  ;;  %v24047_v37 = vmax.f32 %v18672_v0, 0.0  ;;  %v3228_v10 = vadd.f32 %v18676_v43, %v17953_v16 }
 0x227   : > { %v4152_v38 = vmax.f32 %v24044_v1, %v3768_v54  ;;  %v18799_v30 = vpop.permute.xlu0 %1613  ;;  %v2650_v28 = vpop.f32.mrb[61].mxu0  ;;  %v15462_v44 = vpack.i.bf16 %v4149_v50, %v4148_v32  ;;  %v4153_v26 = vmax.f32 %v3753_v25, %v3769_v35  ;;  %v18801_v39 = vmax.f32 %v3751_v8, %v3767_v31 }
 0x228   : > { %v18793_v2 = vmax.f32 %v24045_v12, %v3762_v9  ;;  %v18797_v59 = vmax.f32 %v24047_v37, %v3766_v33  ;;  %24049 = vst [vmem:[#allocation46_spill] sm:$0xff] %v18799_v30  ;;  %v3242_v29 = vadd.f32 %v3241_v49, %v17949_v11  ;;  %v3243_v54 = vpop.f32.mrb[61].mxu1  ;;  %v18804_v1 = vpop.permute.xlu1 %1371  ;;  %v2635_v0 = vadd.f32 %v18674_v42, %v17981_v47 }
 0x229   : > { %24050 = vst [vmem:[#allocation47_spill] sm:$0xff] %v18801_v39  ;;  %v2651_v14 = vadd.f32 %v2650_v28, %v17981_v47  ;;  %v2649_v9 = vadd.f32 %v2648_v19, %v17970_v45  ;;  %v2652_v33 = vpop.f32.mrb[62].mxu0  ;;  %v3245_v32 = vpop.f32.mrb[62].mxu1  ;;  %15463 = vrot.lane.b32.xlu0 %v15462_v44, %s16763_s11  ;;  %v15467_v25 = vpack.i.bf16 %v4153_v26, %v4152_v38  ;;  %v3760_v35 = vmax.f32 %v18763_v63, 0.0 }
 0x22a   : > { %24046 = vst [vmem:[#allocation44_spill] sm:$0xff] %v18793_v2  ;;  %24048 = vst [vmem:[#allocation45_spill] sm:$0xff] %v18797_v59  ;;  %v15472_v8 = vpack.i.bf16 %v18801_v39, %v18779_v40  ;;  %v3244_v50 = vadd.f32 %v3243_v54, %v17953_v16  ;;  %v2654_v43 = vpop.f32.mrb[63].mxu0  ;;  %v3247_v31 = vpop.f32.mrb[63].mxu1  ;;  %v3772_v42 = vmax.f32 %v3242_v29, 0.0  ;;  %v3246_v49 = vadd.f32 %v3245_v32, %v17949_v11 }
 0x22b   : > { %v3771_v12 = vmax.f32 %v2651_v14, 0.0  ;;  %v2653_v19 = vadd.f32 %v2652_v33, %v17970_v45  ;;  %v18819_v37 = vpop.permute.xlu0 %1493  ;;  %15468 = vrot.lane.b32.xlu1 %v15467_v25, %s16763_s11  ;;  %2917 = vmatmul.mubr.bf16.gmra.mrb[168].mxu0 %v18734_v18  ;;  %v3248_v28 = vadd.f32 %v3247_v31, %v17953_v16  ;;  %v2655_v63 = vadd.f32 %v2654_v43, %v17981_v47  ;;  %v18831_v14 = vld [vmem:[%s17018_s21 + $0x198] sm:$0xff]  }
 0x22c   : > { %v3773_v38 = vmax.f32 %v3244_v50, 0.0  ;;  %v3770_v44 = vmax.f32 %v2649_v9, 0.0  ;;  %3510 = vmatmul.mubr.bf16.gmra.mrb[168].mxu1 %v18734_v18  ;;  %v18826_v26 = vpop.permute.xlu1 %1615  ;;  %v24052_v29 = vmax.f32 %v18712_v7, 0.0  ;;  %13322 = vmatprep.mubr.msk.bf16.mxu0 %vm1631_vm0, %v18831_v14  ;;  %v3761_v33 = vmax.f32 %v3228_v10, 0.0 }
 0x22d   : > { %24051 = vst [vmem:[#allocation48_spill] sm:$0xff] %v18826_v26  ;;  %v3776_v32 = vmax.f32 %v3246_v49, 0.0  ;;  %v18835_v25 = vmax.f32 %v3755_v27, %v3771_v12  ;;  %15473 = vrot.lane.b32.xlu0 %v15472_v8, %s16763_s11  ;;  %13378 = vmatprep.mubr.msk.bf16.mxu1 %vm1631_vm0, %v18831_v14  ;;  %v3777_v18 = vmax.f32 %v3248_v28, 0.0  ;;  %v3759_v9 = vmax.f32 %v2635_v0, 0.0  ;;  %v24073_v26 = vld [vmem:[#allocation12_spill] sm:$0xff] }
 0x22e   : > { %v4156_v54 = vmax.f32 %v24052_v29, %v3772_v42  ;;  %v4157_v50 = vmax.f32 %v3757_v60, %v3773_v38  ;;  %v3775_v43 = vmax.f32 %v2655_v63, 0.0  ;;  %v18840_v7 = vpop.f32.mrb[64].mxu0  ;;  %v3251_v31 = vpop.f32.mrb[64].mxu1  ;;  %v3758_v29 = vmax.f32 %v18786_v34, 0.0 }
 0x22f   : > { %24053 = vst [vmem:[#allocation49_spill] sm:$0xff] %v18835_v25  ;;  %v4160_v42 = vmax.f32 %v3760_v35, %v3776_v32  ;;  %v3774_v40 = vmax.f32 %v2653_v19, 0.0  ;;  %v24054_v10 = vmax.f32 %v18723_v61, 0.0  ;;  %v1888_v60 = vsel %vm1800_vm1, %v18728_v6, %v18369_v58  ;;  %v18850_v8 = vpop.permute.xlu0 %1373  ;;  %v2660_v49 = vpop.f32.mrb[65].mxu0 }
 0x230   : > { %v15477_v0 = vpack.i.bf16 %v4157_v50, %v4156_v54  ;;  %v4161_v12 = vmax.f32 %v3761_v33, %v3777_v18  ;;  %v18852_v38 = vmax.f32 %v3759_v9, %v3775_v43  ;;  %v3253_v28 = vpop.f32.mrb[65].mxu1  ;;  %v18854_v35 = vpop.permute.xlu1 %1495  ;;  %v1766_v33 = vsel %vm1631_vm0, %v18391_v46, %v18383_v4  ;;  %v24060_v18 = vld [vmem:[#allocation10_spill] sm:$0xff]  ;;  %v24062_v43 = vld [vmem:[#allocation27_spill] sm:$0xff] }
 0x231   : > { %v18845_v27 = vmax.f32 %v24054_v10, %v3770_v44  ;;  %24057 = vst [vmem:[#allocation52_spill] sm:$0xff] %v18854_v35  ;;  %v18856_v34 = vmax.f32 %v3758_v29, %v3774_v40  ;;  %v18858_v61 = vpop.f32.mrb[66].mxu0  ;;  %v3255_v19 = vpop.f32.mrb[66].mxu1  ;;  %v2044_v44 = vsel %vm1913_vm2, %v1888_v60, %v18373_v3  ;;  %v1769_v32 = vsel %vm1631_vm0, %v18457_v53, %v18408_v48  ;;  %v18877_v3 = vld [vmem:[%s17018_s21 + $0x1a0] sm:$0xff]   ;;  %v24063_v29 = vld [vmem:[#allocation8_spill] sm:$0xff] }
 0x232   : > { %24056 = vst [vmem:[#allocation51_spill] sm:$0xff] %v18852_v38  ;;  %15478 = vrot.lane.b32.xlu1 %v15477_v0, %s16763_s11  ;;  %v15482_v63 = vpack.i.bf16 %v4161_v12, %v4160_v42  ;;  %v2664_v58 = vpop.f32.mrb[67].mxu0  ;;  %v3257_v6 = vpop.f32.mrb[67].mxu1  ;;  %v15487_v40 = vpack.i.bf16 %v18852_v38, %v18835_v25  ;;  %v1772_v9 = vsel %vm1631_vm0, %v18522_v5, %v24060_v18  ;;  %v24061_v4 = vld [vmem:[#allocation30_spill] sm:$0xff]  ;;  %v24065_v0 = vld [vmem:[#allocation28_spill] sm:$0xff] }
 0x233   : > { %24055 = vst [vmem:[#allocation50_spill] sm:$0xff] %v18845_v27  ;;  %24058 = vst [vmem:[#allocation53_spill] sm:$0xff] %v18856_v34  ;;  %v18863_v54 = vpop.permute.xlu0 %1617  ;;  %2927 = vmatmul.mubr.bf16.gmra.mrb[172].mxu0 %v2044_v44  ;;  %v1775_v46 = vsel %vm1631_vm0, %v18572_v23, %v24061_v4  ;;  %v1890_v42 = vsel %vm1800_vm1, %v1766_v33, %v24062_v43  ;;  %v1892_v10 = vsel %vm1800_vm1, %v1769_v32, %v24063_v29  ;;  %v24067_v43 = vld [vmem:[#allocation9_spill] sm:$0xff]  ;;  %v24068_v29 = vld [vmem:[#allocation7_spill] sm:$0xff] }
 0x234   : > { %24059 = vst [vmem:[#allocation54_spill] sm:$0xff] %v18863_v54  ;;  %15483 = vrot.lane.b32.xlu0 %v15482_v63, %s16763_s11  ;;  %3520 = vmatmul.mubr.bf16.gmra.mrb[172].mxu1 %v2044_v44  ;;  %v18874_v50 = vpop.permute.xlu1 %1375  ;;  %v1894_v12 = vsel %vm1800_vm1, %v1772_v9, %v24065_v0  ;;  %v1896_v23 = vsel %vm1800_vm1, %v1775_v46, %v18540_v52 }
 0x235   : > { %13323 = vmatprep.mubr.msk.bf16.mxu0 %vm1631_vm0, %v18877_v3  ;;  %13379 = vmatprep.mubr.msk.bf16.mxu1 %vm1631_vm0, %v18877_v3  ;;  %v2047_v9 = vsel %vm1913_vm2, %v1890_v42, %v24067_v43  ;;  %v2050_v0 = vsel %vm1913_vm2, %v1892_v10, %v24068_v29  ;;  %v3252_v52 = vadd.f32 %v3251_v31, %v17949_v11  ;;  %v24070_v42 = vld [vmem:[#allocation29_spill] sm:$0xff] }
 0x236   : > { %15488 = vrot.lane.b32.xlu1 %v15487_v40, %s16763_s11  ;;  %v18890_v48 = vpop.f32.mrb[68].mxu0  ;;  %v3261_v53 = vpop.f32.mrb[68].mxu1  ;;  %v1778_v40 = vsel %vm1631_vm0, %v18611_v24, %v18560_v21  ;;  %v18921_v46 = vadd.f32 %v2660_v49, %v17981_v47  ;;  %v18926_v24 = vadd.f32 %v3253_v28, %v17953_v16  ;;  %v18929_v38 = vadd.f32 %v3255_v19, %v17949_v11  ;;  %v18948_v28 = vld [vmem:[%s17018_s21 + $0x1a8] sm:$0xff]  }
 0x237   : > { %v18896_v60 = vpop.permute.xlu0 %1497  ;;  %v18898_v5 = vpop.f32.mrb[69].mxu0  ;;  %v18932_v25 = vadd.f32 %v3257_v6, %v17953_v16  ;;  %v18936_v10 = vsel %vm1913_vm2, %v1894_v12, %v24070_v42  ;;  %v18940_v31 = vsel %vm1800_vm1, %v1778_v40, %v18569_v22  ;;  %v18945_v49 = vsel %vm1631_vm0, %v18704_v13, %v18593_v20 }
 0x238   : > { %24064 = vst [vmem:[#allocation10_spill] sm:$0xff] %v18896_v60  ;;  %v3263_v63 = vpop.f32.mrb[69].mxu1  ;;  %v18902_v44 = vpop.permute.xlu1 %1619  ;;  %v18954_v19 = vsel %vm1913_vm2, %v1896_v23, %v18545_v62  ;;  %v18959_v22 = vsel %vm1631_vm0, %v18775_v36, %v18629_v41  ;;  %v18964_v20 = vsel %vm1631_vm0, %v18831_v14, %v18701_v51  ;;  %v18971_v6 = vadd.f32 %v2664_v58, %v17981_v47 }
 0x239   : > { %24066 = vst [vmem:[#allocation30_spill] sm:$0xff] %v18902_v44  ;;  %v18909_v33 = vpop.f32.mrb[70].mxu0  ;;  %v3265_v32 = vpop.f32.mrb[70].mxu1  ;;  %v18975_v62 = vadd.f32 %v18840_v7, %v17970_v45  ;;  %v3780_v36 = vmax.f32 %v3252_v52, 0.0  ;;  %v18979_v51 = vadd.f32 %v3261_v53, %v17949_v11  ;;  %v18983_v14 = vadd.f32 %v18858_v61, %v17970_v45 }
 0x23a   : > { %v18911_v18 = vpop.f32.mrb[71].mxu0  ;;  %v18913_v4 = vpop.f32.mrb[71].mxu1  ;;  %v3784_v7 = vmax.f32 %v18929_v38, 0.0  ;;  %v3785_v29 = vmax.f32 %v18932_v25, 0.0  ;;  %v18994_v38 = vadd.f32 %v3263_v63, %v17953_v16 }
 0x23b   : > { %v18923_v21 = vpop.permute.xlu0 %15373  ;;  %2937 = vmatmul.mubr.bf16.gmra.mrb[176].mxu0 %v2047_v9 }
 0x23c   : > { %24069 = vst [vmem:[#allocation27_spill] sm:$0xff] %v18923_v21  ;;  %3530 = vmatmul.mubr.bf16.gmra.mrb[176].mxu1 %v2047_v9  ;;  %13324 = vmatprep.mubr.msk.bf16.mxu0 %vm1631_vm0, %v18948_v28  ;;  %v18966_v13 = vpop.permute.xlu1 %15378  ;;  %v3781_v9 = vmax.f32 %v18926_v24, 0.0  ;;  %v23840_v52 = vunpack.i.l.bf16 %v18923_v21 }
 0x23d   : > { %24071 = vst [vmem:[#allocation8_spill] sm:$0xff] %v18966_v13  ;;  %13380 = vmatprep.mubr.msk.bf16.mxu1 %vm1631_vm0, %v18948_v28  ;;  %v23839_v42 = vunpack.i.l.bf16 %v18966_v13 }
 0x23e   : > { %v2678_v12 = vpop.f32.mrb[72].mxu0  ;;  %v3271_v41 = vpop.f32.mrb[72].mxu1 }
 0x23f   : > { %v15384_v40 = vpop.permute.xlu0 %15383  ;;  %v2680_v43 = vpop.f32.mrb[73].mxu0  ;;  %v3272_v58 = vadd.f32 %v3271_v41, %v17949_v11  ;;  %v3783_v41 = vmax.f32 %v18971_v6, 0.0  ;;  %v24072_v6 = vld [vmem:[#allocation14_spill] sm:$0xff] }
 0x240   : > { %v15386_v53 = vunpack.i.h.bf16 %v15384_v40  ;;  %v15385_v23 = vunpack.i.l.bf16 %v15384_v40  ;;  %v3273_v39 = vpop.f32.mrb[73].mxu1  ;;  %v2682_v27 = vpop.f32.mrb[74].mxu0  ;;  %v2681_v30 = vadd.f32 %v2680_v43, %v17981_v47 }
 0x241   : > { %v3275_v61 = vpop.f32.mrb[74].mxu1  ;;  %v2684_v34 = vpop.f32.mrb[75].mxu0  ;;  %v3274_v2 = vadd.f32 %v3273_v39, %v17953_v16  ;;  %v3796_v59 = vmax.f32 %v3272_v58, 0.0  ;;  %v3788_v58 = vmax.f32 %v18979_v51, 0.0 }
 0x242   : > { %v4828_v25 = vsel %vm1631_vm0, %v15386_v53, %v23839_v42  ;;  %v4826_v24 = vsel %vm1631_vm0, %v15385_v23, %v23840_v52  ;;  %v3277_v40 = vpop.f32.mrb[75].mxu1  ;;  %v3276_v39 = vadd.f32 %v3275_v61, %v17949_v11  ;;  %v19010_v53 = vadd.f32 %v3265_v32, %v17949_v11  ;;  %v19013_v52 = vld [vmem:[%s17018_s21 + $0x1b0] sm:$0xff]  }
 0x243   : > { %v5052_v54 = vmax.f32 %v24072_v6, %v4828_v25  ;;  %v5050_v63 = vmax.f32 %v24073_v26, %v4826_v24  ;;  %2947 = vmatmul.mubr.bf16.gmra.mrb[180].mxu0 %v2050_v0  ;;  %v3797_v42 = vmax.f32 %v3274_v2, 0.0  ;;  %v4164_v23 = vmax.f32 %v3780_v36, %v3796_v59 }
 0x244   : > { %v19002_v44 = vpop.permute.xlu1 %15388  ;;  %3540 = vmatmul.mubr.bf16.gmra.mrb[180].mxu1 %v2050_v0  ;;  %13325 = vmatprep.mubr.msk.bf16.mxu0 %vm1631_vm0, %v19013_v52  ;;  %v3278_v51 = vadd.f32 %v3277_v40, %v17953_v16  ;;  %v3800_v61 = vmax.f32 %v3276_v39, 0.0  ;;  %v19020_v26 = vpop.permute.xlu0 %15393  ;;  %v3789_v32 = vmax.f32 %v18994_v38, 0.0  ;;  %v19027_v2 = vadd.f32 %v18913_v4, %v17953_v16 }
 0x245   : > { %v19018_v25 = vpack.c.bf16 %v5052_v54, %v5050_v63  ;;  %24075 = vst [vmem:[#allocation9_spill] sm:$0xff] %v19020_v26  ;;  %13381 = vmatprep.mubr.msk.bf16.mxu1 %vm1631_vm0, %v19013_v52  ;;  %v2679_v59 = vadd.f32 %v2678_v12, %v17970_v45  ;;  %v4165_v43 = vmax.f32 %v3781_v9, %v3797_v42  ;;  %v23848_v12 = vunpack.i.l.bf16 %v19020_v26  ;;  %v19060_v26 = vld [vmem:[%s17018_s21 + $0x1b8] sm:$0xff]  }
 0x246   : > { %v19030_v0 = vpop.f32.mrb[76].mxu0  ;;  %v3281_v36 = vpop.f32.mrb[76].mxu1  ;;  %v3801_v24 = vmax.f32 %v3278_v51, 0.0  ;;  %v4168_v54 = vmax.f32 %v3784_v7, %v3800_v61  ;;  %v19033_v40 = vadd.f32 %v2682_v27, %v17970_v45  ;;  %v2685_v38 = vadd.f32 %v2684_v34, %v17981_v47 }
 0x247   : > { %24074 = vst [vmem:[#allocation28_spill] sm:$0xff] %v19018_v25  ;;  %v2690_v63 = vpop.f32.mrb[77].mxu0  ;;  %v3795_v25 = vmax.f32 %v2681_v30, 0.0  ;;  %v3282_v4 = vadd.f32 %v3281_v36, %v17949_v11  ;;  %v3283_v21 = vpop.f32.mrb[77].mxu1  ;;  %v15492_v7 = vpack.i.bf16 %v4165_v43, %v4164_v23  ;;  %v24076_v39 = vmax.f32 %v18921_v46, 0.0 }
 0x248   : > { %v15399_v6 = vpop.permute.xlu1 %15398  ;;  %v19039_v9 = vpop.f32.mrb[78].mxu0  ;;  %v4169_v51 = vmax.f32 %v3785_v29, %v3801_v24  ;;  %v3799_v61 = vmax.f32 %v2685_v38, 0.0  ;;  %v3284_v30 = vadd.f32 %v3283_v21, %v17953_v16  ;;  %v24078_v34 = vunpack.i.l.bf16 %v19002_v44  ;;  %v24079_v24 = vld [vmem:[#allocation17_spill] sm:$0xff] }
 0x249   : > { %v15401_v60 = vunpack.i.h.bf16 %v15399_v6  ;;  %v15400_v13 = vunpack.i.l.bf16 %v15399_v6  ;;  %v3285_v42 = vpop.f32.mrb[78].mxu1  ;;  %v2694_v27 = vpop.f32.mrb[79].mxu0  ;;  %v19043_v35 = vmax.f32 %v24076_v39, %v3795_v25  ;;  %15493 = vrot.lane.b32.xlu0 %v15492_v7, %s16763_s11  ;;  %v3804_v29 = vmax.f32 %v3282_v4, 0.0  ;;  %v24080_v25 = vld [vmem:[#allocation16_spill] sm:$0xff] }
 0x24a   : > { %v3287_v23 = vpop.f32.mrb[79].mxu1  ;;  %v3794_v43 = vmax.f32 %v2679_v59, 0.0  ;;  %v15497_v38 = vpack.i.bf16 %v4169_v51, %v4168_v54  ;;  %v19056_v21 = vmax.f32 %v3783_v41, %v3799_v61 }
 0x24b   : > { %24077 = vst [vmem:[#allocation7_spill] sm:$0xff] %v19043_v35  ;;  %v4830_v36 = vsel %vm1631_vm0, %v15400_v13, %v24078_v34  ;;  %v4832_v6 = vsel %vm1631_vm0, %v15401_v60, %v23848_v12  ;;  %2957 = vmatmul.mubr.bf16.gmra.mrb[184].mxu0 %v18936_v10  ;;  %v3805_v13 = vmax.f32 %v3284_v30, 0.0  ;;  %v4172_v34 = vmax.f32 %v3788_v58, %v3804_v29  ;;  %v24092_v12 = vld [vmem:[#allocation22_spill] sm:$0xff] }
 0x24c   : > { %v5054_v46 = vmax.f32 %v24079_v24, %v4830_v36  ;;  %v5056_v39 = vmax.f32 %v24080_v25, %v4832_v6  ;;  %24081 = vst [vmem:[#allocation29_spill] sm:$0xff] %v19056_v21  ;;  %3550 = vmatmul.mubr.bf16.gmra.mrb[184].mxu1 %v18936_v10  ;;  %13326 = vmatprep.mubr.msk.bf16.mxu0 %vm1631_vm0, %v19060_v26  ;;  %v3778_v58 = vmax.f32 %v18975_v62, 0.0 }
 0x24d   : > { %v3286_v60 = vadd.f32 %v3285_v42, %v17949_v11  ;;  %v3288_v59 = vadd.f32 %v3287_v23, %v17953_v16  ;;  %15498 = vrot.lane.b32.xlu1 %v15497_v38, %s16763_s11  ;;  %v15502_v41 = vpack.i.bf16 %v19056_v21, %v19043_v35  ;;  %13382 = vmatprep.mubr.msk.bf16.mxu1 %vm1631_vm0, %v19060_v26  ;;  %v3792_v42 = vmax.f32 %v19010_v53, 0.0  ;;  %v24126_v21 = vld [vmem:[#allocation33_spill] sm:$0xff] }
 0x24e   : > { %v19066_v4 = vpack.c.bf16 %v5056_v39, %v5054_v46  ;;  %v2691_v10 = vadd.f32 %v2690_v63, %v17981_v47  ;;  %v2698_v54 = vpop.f32.mrb[80].mxu0  ;;  %v3291_v7 = vpop.f32.mrb[80].mxu1  ;;  %v4173_v51 = vmax.f32 %v3789_v32, %v3805_v13  ;;  %v2671_v30 = vadd.f32 %v18898_v5, %v17981_v47 }
 0x24f   : > { %v3808_v61 = vmax.f32 %v3286_v60, 0.0  ;;  %15503 = vrot.lane.b32.xlu0 %v15502_v41, %s16763_s11  ;;  %v2700_v36 = vpop.f32.mrb[81].mxu0  ;;  %v3293_v6 = vpop.f32.mrb[81].mxu1  ;;  %v3809_v23 = vmax.f32 %v3288_v59, 0.0  ;;  %v2675_v29 = vadd.f32 %v18911_v18, %v17981_v47  ;;  %v2695_v63 = vadd.f32 %v2694_v27, %v17981_v47  ;;  %v24085_v59 = vld [vmem:[#allocation39_spill] sm:$0xff] }
 0x250   : > { %24082 = vst [vmem:[#allocation14_spill] sm:$0xff] %v19066_v4  ;;  %v19082_v62 = vmax.f32 %v3778_v58, %v3794_v43  ;;  %v2702_v24 = vpop.f32.mrb[82].mxu0  ;;  %v3295_v32 = vpop.f32.mrb[82].mxu1  ;;  %v15507_v46 = vpack.i.bf16 %v4173_v51, %v4172_v34  ;;  %v3803_v25 = vmax.f32 %v2691_v10, 0.0  ;;  %v3798_v39 = vmax.f32 %v19033_v40, 0.0  ;;  %v24083_v34 = vld [vmem:[#allocation41_spill] sm:$0xff] }
 0x251   : > { %v4176_v53 = vmax.f32 %v3792_v42, %v3808_v61  ;;  %v1900_v5 = vsel %vm1800_vm1, %v18945_v49, %v18600_v56  ;;  %v1902_v38 = vsel %vm1800_vm1, %v18959_v22, %v18644_v17  ;;  %v2704_v18 = vpop.f32.mrb[83].mxu0  ;;  %v3297_v27 = vpop.f32.mrb[83].mxu1  ;;  %v3793_v43 = vmax.f32 %v19027_v2, 0.0 }
 0x252   : > { %v2059_v13 = vsel %vm1913_vm2, %v18940_v31, %v18589_v55  ;;  %v1904_v40 = vsel %vm1800_vm1, %v18964_v20, %v24083_v34  ;;  %15508 = vrot.lane.b32.xlu1 %v15507_v46, %s16763_s11  ;;  %v3787_v56 = vmax.f32 %v2671_v30, 0.0  ;;  %v3782_v49 = vmax.f32 %v18983_v14, 0.0  ;;  %v16698_v20 = vld [vmem:[%s17018_s21 + $0x1c0] sm:$0xff]   ;;  %v24087_v30 = vld [vmem:[#allocation40_spill] sm:$0xff] }
 0x253   : > { %v2669_v17 = vadd.f32 %v18890_v48, %v17970_v45  ;;  %v4177_v22 = vmax.f32 %v3793_v43, %v3809_v23  ;;  %2967 = vmatmul.mubr.bf16.gmra.mrb[188].mxu0 %v18954_v19  ;;  %v3791_v2 = vmax.f32 %v2675_v29, 0.0  ;;  %v3807_v60 = vmax.f32 %v2695_v63, 0.0  ;;  %v24088_v29 = vld [vmem:[#allocation42_spill] sm:$0xff] }
 0x254   : > { %v2673_v55 = vadd.f32 %v18909_v33, %v17970_v45  ;;  %3560 = vmatmul.mubr.bf16.gmra.mrb[188].mxu1 %v18954_v19  ;;  %v19106_v31 = vmax.f32 %v3787_v56, %v3803_v25  ;;  %13327 = vmatprep.mubr.msk.bf16.mxu0 %vm1631_vm0, %v16698_v20  ;;  %v19112_v14 = vsel %vm1913_vm2, %v1900_v5, %v24085_v59 }
 0x255   : > { %v19114_v48 = vmax.f32 %v3782_v49, %v3798_v39  ;;  %v15512_v41 = vpack.i.bf16 %v4177_v22, %v4176_v53  ;;  %v19116_v10 = vmax.f32 %v3791_v2, %v3807_v60  ;;  %13383 = vmatprep.mubr.msk.bf16.mxu1 %vm1631_vm0, %v16698_v20  ;;  %v2689_v33 = vadd.f32 %v19030_v0, %v17970_v45  ;;  %v16699_v2 = vld [vmem:[%s17018_s21 + $0x1c8] sm:$0xff]  }
 0x256   : > { %24084 = vst [vmem:[#allocation12_spill] sm:$0xff] %v19106_v31  ;;  %v2693_v19 = vadd.f32 %v19039_v9, %v17970_v45  ;;  %v1790_v58 = vsel %vm1631_vm0, %v18877_v3, %v18768_v15  ;;  %v1793_v51 = vsel %vm1631_vm0, %v18948_v28, %v18804_v1  ;;  %v2708_v42 = vpop.f32.mrb[84].mxu0  ;;  %v3301_v61 = vpop.f32.mrb[84].mxu1  ;;  %v19131_v23 = vsel %vm1913_vm2, %v1902_v38, %v24087_v30 }
 0x257   : > { %24086 = vst [vmem:[#allocation17_spill] sm:$0xff] %v19116_v10  ;;  %v19135_v0 = vsel %vm1913_vm2, %v1904_v40, %v24088_v29  ;;  %15513 = vrot.lane.b32.xlu0 %v15512_v41, %s16763_s11  ;;  %v15517_v9 = vpack.i.bf16 %v19116_v10, %v19106_v31  ;;  %v2710_v15 = vpop.f32.mrb[85].mxu0  ;;  %v3303_v3 = vpop.f32.mrb[85].mxu1  ;;  %v3786_v63 = vmax.f32 %v2669_v17, 0.0  ;;  %v3790_v46 = vmax.f32 %v2673_v55, 0.0 }
 0x258   : > { %v3802_v1 = vmax.f32 %v2689_v33, 0.0  ;;  %v19141_v28 = vadd.f32 %v2698_v54, %v17970_v45  ;;  %v19144_v53 = vadd.f32 %v3291_v7, %v17949_v11  ;;  %v19147_v25 = vadd.f32 %v2700_v36, %v17981_v47  ;;  %v2712_v39 = vpop.f32.mrb[86].mxu0  ;;  %v3305_v5 = vpop.f32.mrb[86].mxu1 }
 0x259   : > { %v3806_v38 = vmax.f32 %v2693_v19, 0.0  ;;  %v19150_v43 = vadd.f32 %v3293_v6, %v17953_v16  ;;  %v19153_v34 = vadd.f32 %v2702_v24, %v17970_v45  ;;  %v19156_v40 = vadd.f32 %v3295_v32, %v17949_v11  ;;  %15518 = vrot.lane.b32.xlu1 %v15517_v9, %s16763_s11  ;;  %v19162_v7 = vpop.f32.mrb[87].mxu0  ;;  %v19164_v36 = vpop.f32.mrb[87].mxu1 }
 0x25a   : > { %v19159_v54 = vadd.f32 %v2704_v18, %v17981_v47  ;;  %v19168_v6 = vsel %vm1800_vm1, %v1790_v58, %v18772_v57  ;;  %v19172_v24 = vsel %vm1800_vm1, %v1793_v51, %v18819_v37  ;;  %v19175_v32 = vadd.f32 %v3297_v27, %v17953_v16 }
 0x25b   : > { %v19178_v18 = vadd.f32 %v2708_v42, %v17970_v45  ;;  %v19183_v56 = vsel %vm1631_vm0, %v19013_v52, %v18850_v8  ;;  %v19186_v49 = vadd.f32 %v3301_v61, %v17949_v11  ;;  %v19188_v57 = vpop.permute.xlu0 %15403  ;;  %2977 = vmatmul.mubr.bf16.gmra.mrb[192].mxu0 %v2059_v13  ;;  %v19190_v17 = vmax.f32 %v3786_v63, %v3802_v1 }
 0x25c   : > { %v19192_v37 = vmax.f32 %v3790_v46, %v3806_v38  ;;  %v19197_v27 = vsel %vm1631_vm0, %v19060_v26, %v18874_v50  ;;  %v3810_v22 = vmax.f32 %v19141_v28, 0.0  ;;  %v3812_v8 = vmax.f32 %v19144_v53, 0.0  ;;  %3570 = vmatmul.mubr.bf16.gmra.mrb[192].mxu1 %v2059_v13  ;;  %13328 = vmatprep.mubr.msk.bf16.mxu0 %vm1631_vm0, %v16699_v2 }
 0x25d   : > { %24089 = vst [vmem:[#allocation16_spill] sm:$0xff] %v19190_v17  ;;  %v3811_v52 = vmax.f32 %v19147_v25, 0.0  ;;  %v3813_v60 = vmax.f32 %v19150_v43, 0.0  ;;  %v3814_v55 = vmax.f32 %v19153_v34, 0.0  ;;  %v3816_v20 = vmax.f32 %v19156_v40, 0.0  ;;  %v19208_v50 = vpop.permute.xlu1 %15408  ;;  %13384 = vmatprep.mubr.msk.bf16.mxu1 %vm1631_vm0, %v16699_v2 }
 0x25e   : > { %24090 = vst [vmem:[#allocation41_spill] sm:$0xff] %v19192_v37  ;;  %v3815_v59 = vmax.f32 %v19159_v54, 0.0  ;;  %v3817_v26 = vmax.f32 %v19175_v32, 0.0  ;;  %v19214_v13 = vadd.f32 %v2710_v15, %v17981_v47  ;;  %v19217_v33 = vadd.f32 %v3303_v3, %v17953_v16  ;;  %v2718_v19 = vpop.f32.mrb[88].mxu0  ;;  %v3311_v58 = vpop.f32.mrb[88].mxu1 }
 0x25f   : > { %v23850_v42 = vunpack.i.l.bf16 %v19188_v57  ;;  %v2719_v61 = vadd.f32 %v2718_v19, %v17970_v45  ;;  %v3312_v30 = vadd.f32 %v3311_v58, %v17949_v11  ;;  %v15414_v29 = vpop.permute.xlu0 %15413  ;;  %v2720_v9 = vpop.f32.mrb[89].mxu0  ;;  %v23849_v63 = vunpack.i.l.bf16 %v19208_v50 }
 0x260   : > { %v15416_v46 = vunpack.i.h.bf16 %v15414_v29  ;;  %v15415_v15 = vunpack.i.l.bf16 %v15414_v29  ;;  %v2721_v1 = vadd.f32 %v2720_v9, %v17981_v47  ;;  %v3313_v3 = vpop.f32.mrb[89].mxu1  ;;  %v2722_v28 = vpop.f32.mrb[90].mxu0  ;;  %v19226_v53 = vadd.f32 %v2712_v39, %v17970_v45 }
 0x261   : > { %v3826_v25 = vmax.f32 %v2719_v61, 0.0  ;;  %v3828_v38 = vmax.f32 %v3312_v30, 0.0  ;;  %v3314_v43 = vadd.f32 %v3313_v3, %v17953_v16  ;;  %v3315_v34 = vpop.f32.mrb[90].mxu1  ;;  %v2724_v2 = vpop.f32.mrb[91].mxu0  ;;  %v2723_v9 = vadd.f32 %v2722_v28, %v17970_v45 }
 0x262   : > { %v4836_v19 = vsel %vm1631_vm0, %v15416_v46, %v23849_v63  ;;  %v4834_v58 = vsel %vm1631_vm0, %v15415_v15, %v23850_v42  ;;  %v3827_v29 = vmax.f32 %v2721_v1, 0.0  ;;  %v3317_v39 = vpop.f32.mrb[91].mxu1  ;;  %v19237_v61 = vadd.f32 %v3305_v5, %v17949_v11  ;;  %v24093_v46 = vld [vmem:[#allocation19_spill] sm:$0xff]  ;;  %v16700_v5 = vld [vmem:[%s17018_s21 + $0x1d0] sm:$0xff]  }
 0x263   : > { %v19239_v30 = vmax.f32 %v3810_v22, %v3826_v25  ;;  %v19241_v3 = vmax.f32 %v3812_v8, %v3828_v38  ;;  %v5060_v51 = vmax.f32 %v24092_v12, %v4836_v19  ;;  %2987 = vmatmul.mubr.bf16.gmra.mrb[196].mxu0 %v19112_v14  ;;  %v5058_v63 = vmax.f32 %v24093_v46, %v4834_v58 }
 0x264   : > { %v19244_v41 = vpop.permute.xlu1 %15418  ;;  %v19248_v15 = vmax.f32 %v3811_v52, %v3827_v29  ;;  %v3829_v1 = vmax.f32 %v3314_v43, 0.0  ;;  %v3830_v28 = vmax.f32 %v2723_v9, 0.0  ;;  %3580 = vmatmul.mubr.bf16.gmra.mrb[196].mxu1 %v19112_v14  ;;  %13329 = vmatprep.mubr.msk.bf16.mxu0 %vm1631_vm0, %v16700_v5  ;;  %v3819_v22 = vmax.f32 %v19214_v13, 0.0 }
 0x265   : > { %24091 = vst [vmem:[#allocation39_spill] sm:$0xff] %v19239_v30  ;;  %v3316_v8 = vadd.f32 %v3315_v34, %v17949_v11  ;;  %v2725_v12 = vadd.f32 %v2724_v2, %v17981_v47  ;;  %v3318_v25 = vadd.f32 %v3317_v39, %v17953_v16  ;;  %v19257_v38 = vpop.permute.xlu0 %15423  ;;  %13385 = vmatprep.mubr.msk.bf16.mxu1 %vm1631_vm0, %v16700_v5  ;;  %v3821_v52 = vmax.f32 %v19217_v33, 0.0 }
 0x266   : > { %24094 = vst [vmem:[#allocation40_spill] sm:$0xff] %v19248_v15  ;;  %v19261_v43 = vpack.c.bf16 %v5060_v51, %v5058_v63  ;;  %v19263_v14 = vmax.f32 %v3813_v60, %v3829_v1  ;;  %v19265_v19 = vmax.f32 %v3814_v55, %v3830_v28  ;;  %v2728_v58 = vpop.f32.mrb[92].mxu0  ;;  %v3321_v13 = vpop.f32.mrb[92].mxu1  ;;  %v19269_v34 = vadd.f32 %v19162_v7, %v17981_v47 }
 0x267   : > { %v3832_v2 = vmax.f32 %v3316_v8, 0.0  ;;  %v3831_v29 = vmax.f32 %v2725_v12, 0.0  ;;  %v3833_v9 = vmax.f32 %v3318_v25, 0.0  ;;  %v2730_v46 = vpop.f32.mrb[93].mxu0  ;;  %v3822_v5 = vmax.f32 %v19226_v53, 0.0  ;;  %v3323_v51 = vpop.f32.mrb[93].mxu1 }
 0x268   : > { %24095 = vst [vmem:[#allocation42_spill] sm:$0xff] %v19261_v43  ;;  %24096 = vst [vmem:[#allocation22_spill] sm:$0xff] %v19265_v19  ;;  %v15429_v39 = vpop.permute.xlu1 %15428  ;;  %v19274_v33 = vadd.f32 %v19164_v36, %v17953_v16  ;;  %v2729_v60 = vadd.f32 %v2728_v58, %v17970_v45  ;;  %v3322_v55 = vadd.f32 %v3321_v13, %v17949_v11  ;;  %v2732_v63 = vpop.f32.mrb[94].mxu0  ;;  %v3824_v7 = vmax.f32 %v19237_v61, 0.0 }
 0x269   : > { %v4184_v1 = vmax.f32 %v3816_v20, %v3832_v2  ;;  %v19283_v28 = vmax.f32 %v3815_v59, %v3831_v29  ;;  %v4185_v53 = vmax.f32 %v3817_v26, %v3833_v9  ;;  %v3325_v36 = vpop.f32.mrb[94].mxu1  ;;  %v2734_v8 = vpop.f32.mrb[95].mxu0  ;;  %v23852_v12 = vunpack.i.l.bf16 %v19257_v38 }
 0x26a   : > { %v3834_v25 = vmax.f32 %v2729_v60, 0.0  ;;  %v3836_v58 = vmax.f32 %v3322_v55, 0.0  ;;  %v15431_v13 = vunpack.i.h.bf16 %v15429_v39  ;;  %v3327_v42 = vpop.f32.mrb[95].mxu1  ;;  %v23851_v61 = vunpack.i.l.bf16 %v19244_v41 }
 0x26b   : > { %24097 = vst [vmem:[#allocation19_spill] sm:$0xff] %v19283_v28  ;;  %v15430_v40 = vunpack.i.l.bf16 %v15429_v39  ;;  %v2731_v20 = vadd.f32 %v2730_v46, %v17981_v47  ;;  %v3324_v54 = vadd.f32 %v3323_v51, %v17953_v16  ;;  %2997 = vmatmul.mubr.bf16.gmra.mrb[200].mxu0 %v19131_v23  ;;  %v24098_v32 = vmax.f32 %v19178_v18, 0.0  ;;  %v24101_v46 = vld [vmem:[#allocation26_spill] sm:$0xff]  ;;  %v24102_v51 = vld [vmem:[#allocation24_spill] sm:$0xff] }
 0x26c   : > { %v24100_v26 = vmax.f32 %v19186_v49, 0.0  ;;  %v4840_v29 = vsel %vm1631_vm0, %v15431_v13, %v23852_v12  ;;  %v2733_v9 = vadd.f32 %v2732_v63, %v17970_v45  ;;  %3590 = vmatmul.mubr.bf16.gmra.mrb[200].mxu1 %v19131_v23  ;;  %v3823_v39 = vmax.f32 %v19269_v34, 0.0  ;;  %v16701_v49 = vld [vmem:[%s17018_s21 + $0x1d8] sm:$0xff]  }
 0x26d   : > { %v19294_v59 = vmax.f32 %v24098_v32, %v3834_v25  ;;  %v4838_v18 = vsel %vm1631_vm0, %v15430_v40, %v23851_v61  ;;  %v5064_v60 = vmax.f32 %v24101_v46, %v4840_v29  ;;  %v3835_v55 = vmax.f32 %v2731_v20, 0.0  ;;  %13330 = vmatprep.mubr.msk.bf16.mxu0 %vm1631_vm0, %v16701_v49  ;;  %13386 = vmatprep.mubr.msk.bf16.mxu1 %vm1631_vm0, %v16701_v49  ;;  %v24106_v61 = vld [vmem:[#allocation52_spill] sm:$0xff] }
 0x26e   : > { %v19298_v2 = vmax.f32 %v24100_v26, %v3836_v58  ;;  %v5062_v25 = vmax.f32 %v24102_v51, %v4838_v18  ;;  %v3837_v58 = vmax.f32 %v3324_v54, 0.0  ;;  %v3838_v63 = vmax.f32 %v2733_v9, 0.0  ;;  %v2738_v13 = vpop.f32.mrb[96].mxu0  ;;  %v3331_v34 = vpop.f32.mrb[96].mxu1 }
 0x26f   : > { %24099 = vst [vmem:[#allocation55_spill] sm:$0xff] %v19294_v59  ;;  %v3326_v23 = vadd.f32 %v3325_v36, %v17949_v11  ;;  %v19315_v32 = vmax.f32 %v3819_v22, %v3835_v55  ;;  %v15522_v40 = vpack.i.bf16 %v19263_v14, %v19241_v3  ;;  %v2735_v20 = vadd.f32 %v2734_v8, %v17981_v47  ;;  %v2740_v29 = vpop.f32.mrb[97].mxu0  ;;  %v3333_v46 = vpop.f32.mrb[97].mxu1 }
 0x270   : > { %v3328_v26 = vadd.f32 %v3327_v42, %v17953_v16  ;;  %v19321_v49 = vpack.c.bf16 %v5064_v60, %v5062_v25  ;;  %v4189_v18 = vmax.f32 %v3821_v52, %v3837_v58  ;;  %v19323_v54 = vmax.f32 %v3822_v5, %v3838_v63  ;;  %v2742_v36 = vpop.f32.mrb[98].mxu0  ;;  %v3335_v51 = vpop.f32.mrb[98].mxu1  ;;  %v24107_v52 = vld [vmem:[#allocation27_spill] sm:$0xff]  ;;  %v24108_v25 = vld [vmem:[#allocation8_spill] sm:$0xff] }
 0x271   : > { %24103 = vst [vmem:[#allocation26_spill] sm:$0xff] %v19315_v32  ;;  %v3840_v9 = vmax.f32 %v3326_v23, 0.0  ;;  %v3825_v22 = vmax.f32 %v19274_v33, 0.0  ;;  %15523 = vrot.lane.b32.xlu0 %v15522_v40, %s16763_s11  ;;  %v3839_v55 = vmax.f32 %v2735_v20, 0.0  ;;  %v15527_v14 = vpack.i.bf16 %v4185_v53, %v4184_v1  ;;  %v2744_v8 = vpop.f32.mrb[99].mxu0  ;;  %v3337_v42 = vpop.f32.mrb[99].mxu1 }
 0x272   : > { %24104 = vst [vmem:[#allocation24_spill] sm:$0xff] %v19321_v49  ;;  %24105 = vst [vmem:[#allocation56_spill] sm:$0xff] %v19323_v54  ;;  %v3841_v3 = vmax.f32 %v3328_v26, 0.0  ;;  %v1910_v60 = vsel %vm1800_vm1, %v19183_v56, %v24106_v61  ;;  %v15376_v5 = vunpack.i.h.bf16 %v24107_v52  ;;  %v15381_v58 = vunpack.i.h.bf16 %v24108_v25  ;;  %v24109_v23 = vld [vmem:[#allocation10_spill] sm:$0xff]  ;;  %v24112_v61 = vld [vmem:[#allocation48_spill] sm:$0xff] }
 0x273   : > { %v4192_v63 = vmax.f32 %v3824_v7, %v3840_v9  ;;  %v1912_v33 = vsel %vm1800_vm1, %v19197_v27, %v24109_v23  ;;  %v19335_v40 = vmax.f32 %v3823_v39, %v3839_v55  ;;  %15528 = vrot.lane.b32.xlu1 %v15527_v14, %s16763_s11  ;;  %v15532_v1 = vpack.i.bf16 %v19283_v28, %v19248_v15  ;;  %v24111_v56 = vld [vmem:[#allocation46_spill] sm:$0xff] }
 0x274   : > { %v4193_v20 = vmax.f32 %v3825_v22, %v3841_v3  ;;  %3007 = vmatmul.mubr.bf16.gmra.mrb[204].mxu0 %v19135_v0  ;;  %3600 = vmatmul.mubr.bf16.gmra.mrb[204].mxu1 %v19135_v0  ;;  %v2071_v7 = vsel %vm1913_vm2, %v19168_v6, %v24111_v56  ;;  %v15537_v27 = vpack.i.bf16 %v4189_v18, %v19298_v2  ;;  %v16702_v53 = vld [vmem:[%s17018_s21 + $0x1e0] sm:$0xff]   ;;  %v24114_v0 = vunpack.i.l.bf16 %v24107_v52  ;;  %v24117_v52 = vld [vmem:[#allocation9_spill] sm:$0xff] }
 0x275   : > { %24110 = vst [vmem:[#allocation52_spill] sm:$0xff] %v19335_v40  ;;  %15533 = vrot.lane.b32.xlu0 %v15532_v1, %s16763_s11  ;;  %13331 = vmatprep.mubr.msk.bf16.mxu0 %vm1631_vm0, %v16702_v53  ;;  %v19352_v39 = vsel %vm1913_vm2, %v19172_v24, %v24112_v61  ;;  %v24113_v26 = vld [vmem:[#allocation54_spill] sm:$0xff]  ;;  %v24115_v22 = vunpack.i.l.bf16 %v24108_v25  ;;  %v15396_v23 = vunpack.i.h.bf16 %v24117_v52  ;;  %v15411_v25 = vunpack.i.h.bf16 %v19208_v50 }
 0x276   : > { %v19356_v9 = vsel %vm1913_vm2, %v1910_v60, %v24113_v26  ;;  %v19361_v6 = vsel %vm1631_vm0, %v24114_v0, %v15376_v5  ;;  %v15542_v18 = vpack.i.bf16 %v4193_v20, %v4192_v63  ;;  %v2748_v55 = vpop.f32.mrb[100].mxu0  ;;  %v3341_v3 = vpop.f32.mrb[100].mxu1  ;;  %13387 = vmatprep.mubr.msk.bf16.mxu1 %vm1631_vm0, %v16702_v53  ;;  %v24116_v24 = vld [vmem:[#allocation30_spill] sm:$0xff]  ;;  %v15391_v60 = vunpack.i.h.bf16 %v19002_v44  ;;  %v24118_v0 = vld [vmem:[#allocation11_spill] sm:$0xff] }
 0x277   : > { %v19366_v2 = vsel %vm1631_vm0, %v24115_v22, %v15381_v58  ;;  %v19371_v14 = vsel %vm1913_vm2, %v1912_v33, %v24116_v24  ;;  %v15406_v5 = vunpack.i.h.bf16 %v19188_v57  ;;  %15538 = vrot.lane.b32.xlu1 %v15537_v27, %s16763_s11  ;;  %v2750_v58 = vpop.f32.mrb[101].mxu0  ;;  %v3343_v63 = vpop.f32.mrb[101].mxu1  ;;  %v19379_v20 = vadd.f32 %v2738_v13, %v17970_v45 }
 0x278   : > { %v19382_v1 = vadd.f32 %v3331_v34, %v17949_v11  ;;  %v19385_v33 = vadd.f32 %v2740_v29, %v17981_v47  ;;  %v19388_v56 = vadd.f32 %v3333_v46, %v17953_v16  ;;  %v2752_v53 = vpop.f32.mrb[102].mxu0  ;;  %v19390_v61 = vpop.f32.mrb[102].mxu1  ;;  %v19393_v26 = vadd.f32 %v2742_v36, %v17970_v45  ;;  %v24119_v36 = vld [vmem:[#allocation13_spill] sm:$0xff] }
 0x279   : > { %v19396_v27 = vadd.f32 %v3335_v51, %v17949_v11  ;;  %v19399_v13 = vadd.f32 %v2744_v8, %v17981_v47  ;;  %15543 = vrot.lane.b32.xlu0 %v15542_v18, %s16763_s11  ;;  %v15547_v34 = vpack.i.bf16 %v19335_v40, %v19315_v32  ;;  %v19404_v29 = vpop.f32.mrb[103].mxu0  ;;  %v19406_v46 = vpop.f32.mrb[103].mxu1  ;;  %v19413_v51 = vadd.f32 %v3337_v42, %v17953_v16 }
 0x27a   : > { %v19416_v8 = vadd.f32 %v2748_v55, %v17970_v45  ;;  %v24120_v18 = vunpack.i.l.bf16 %v19002_v44  ;;  %v24121_v32 = vunpack.i.l.bf16 %v24117_v52  ;;  %v24122_v22 = vunpack.i.l.bf16 %v19188_v57  ;;  %v16212_v55 = vld [vmem:[%s23805_s3 + $0x4] ss:$16 sps:$4 sm:$0xff]  }
 0x27b   : > { %15548 = vrot.lane.b32.xlu1 %v15547_v34, %s16763_s11  ;;  %v19435_v42 = vadd.f32 %v3341_v3, %v17949_v11  ;;  %v19437_v44 = vpop.permute.xlu0 %15433  ;;  %v3842_v57 = vmax.f32 %v19379_v20, 0.0  ;;  %v3844_v52 = vmax.f32 %v19382_v1, 0.0  ;;  %v16215_v3 = vld [vmem:[%s23805_s3 + $0xc] ss:$16 sps:$4 sm:$0xff]   ;;  %v3846_v34 = vmax.f32 %v19393_v26, 0.0  ;;  %6598 = vmatprep.subr.bf16.mxu0 %v16212_v55 }
 0x27c   : > { %v19421_v12 = vsel %vm1631_vm0, %v24120_v18, %v15391_v60  ;;  %v19426_v40 = vsel %vm1631_vm0, %v24121_v32, %v15396_v23  ;;  %v19431_v24 = vsel %vm1631_vm0, %v24122_v22, %v15406_v5  ;;  %v24123_v32 = vunpack.i.l.bf16 %v19208_v50  ;;  %3017 = vmatmul.mubr.bf16.gmra.mrb[208].mxu0 %v2071_v7  ;;  %3610 = vmatmul.mubr.bf16.gmra.mrb[208].mxu1 %v2071_v7  ;;  %v16703_v20 = vld [vmem:[%s17018_s21 + $0x1e8] sm:$0xff]  }
 0x27d   : > { %v3843_v23 = vmax.f32 %v19385_v33, 0.0  ;;  %v3845_v5 = vmax.f32 %v19388_v56, 0.0  ;;  %v19457_v22 = vpop.permute.xlu1 %15438  ;;  %13332 = vmatprep.mubr.msk.bf16.mxu0 %vm1631_vm0, %v16703_v20  ;;  %13388 = vmatprep.mubr.msk.bf16.mxu1 %vm1631_vm0, %v16703_v20  ;;  %v19465_v33 = vadd.f32 %v2750_v58, %v17981_v47  ;;  %v19468_v56 = vadd.f32 %v3343_v63, %v17953_v16 }
 0x27e   : > { %v19445_v60 = vsel %vm1631_vm0, %v24123_v32, %v15411_v25  ;;  %v2758_v26 = vpop.f32.mrb[104].mxu0  ;;  %v3351_v18 = vpop.f32.mrb[104].mxu1  ;;  %6911 = vmatprep.subr.bf16.mxu1 %v16215_v3  ;;  %v23861_v58 = vunpack.i.l.bf16 %v19457_v22  ;;  %v19477_v3 = vadd.f32 %v2752_v53, %v17970_v45 }
 0x27f   : > { %v2759_v20 = vadd.f32 %v2758_v26, %v17970_v45  ;;  %v3352_v7 = vadd.f32 %v3351_v18, %v17949_v11  ;;  %v15444_v1 = vpop.permute.xlu0 %15443  ;;  %v2760_v50 = vpop.f32.mrb[105].mxu0  ;;  %v16190_v18 = vld [vmem:[%s17018_s21 + $0x1f0] sm:$0xff]  }
 0x280   : > { %v15446_v54 = vunpack.i.h.bf16 %v15444_v1  ;;  %v15445_v63 = vunpack.i.l.bf16 %v15444_v1  ;;  %v2761_v59 = vadd.f32 %v2760_v50, %v17981_v47  ;;  %v3353_v15 = vpop.f32.mrb[105].mxu1  ;;  %v2762_v55 = vpop.f32.mrb[106].mxu0  ;;  %v24124_v1 = vunpack.i.l.bf16 %v19437_v44 }
 0x281   : > { %v3858_v32 = vmax.f32 %v2759_v20, 0.0  ;;  %v3860_v25 = vmax.f32 %v3352_v7, 0.0  ;;  %v3354_v26 = vadd.f32 %v3353_v15, %v17953_v16  ;;  %v3355_v30 = vpop.f32.mrb[106].mxu1  ;;  %v2764_v19 = vpop.f32.mrb[107].mxu0  ;;  %v2763_v31 = vadd.f32 %v2762_v55, %v17970_v45 }
 0x282   : > { %v4844_v28 = vsel %vm1631_vm0, %v15446_v54, %v23861_v58  ;;  %v4842_v50 = vsel %vm1631_vm0, %v15445_v63, %v24124_v1  ;;  %v3859_v10 = vmax.f32 %v2761_v59, 0.0  ;;  %v3357_v53 = vpop.f32.mrb[107].mxu1  ;;  %v19490_v7 = vadd.f32 %v19390_v61, %v17949_v11  ;;  %v24127_v54 = vld [vmem:[#allocation32_spill] sm:$0xff] }
 0x283   : > { %v19492_v15 = vmax.f32 %v3842_v57, %v3858_v32  ;;  %v4196_v20 = vmax.f32 %v3844_v52, %v3860_v25  ;;  %v5068_v35 = vmax.f32 %v24126_v21, %v4844_v28  ;;  %v19495_v37 = vpop.permute.xlu1 %15448  ;;  %v5066_v58 = vmax.f32 %v24127_v54, %v4842_v50 }
 0x284   : > { %v19498_v17 = vmax.f32 %v3843_v23, %v3859_v10  ;;  %v3861_v63 = vmax.f32 %v3354_v26, 0.0  ;;  %v3862_v59 = vmax.f32 %v2763_v31, 0.0  ;;  %3027 = vmatmul.mubr.bf16.gmra.mrb[212].mxu0 %v19352_v39  ;;  %3620 = vmatmul.mubr.bf16.gmra.mrb[212].mxu1 %v19352_v39  ;;  %v3851_v61 = vmax.f32 %v19465_v33, 0.0 }
 0x285   : > { %24125 = vst [vmem:[#allocation27_spill] sm:$0xff] %v19492_v15  ;;  %v3356_v57 = vadd.f32 %v3355_v30, %v17949_v11  ;;  %v2765_v52 = vadd.f32 %v2764_v19, %v17981_v47  ;;  %v3358_v21 = vadd.f32 %v3357_v53, %v17953_v16  ;;  %v19506_v28 = vpop.permute.xlu0 %15453  ;;  %13333 = vmatprep.mubr.msk.bf16.mxu0 %vm1631_vm0, %v16190_v18  ;;  %v3853_v31 = vmax.f32 %v19468_v56, 0.0 }
 0x286   : > { %24128 = vst [vmem:[#allocation8_spill] sm:$0xff] %v19498_v17  ;;  %13389 = vmatprep.mubr.msk.bf16.mxu1 %vm1631_vm0, %v16190_v18  ;;  %v19511_v10 = vpack.c.bf16 %v5068_v35, %v5066_v58  ;;  %v4197_v23 = vmax.f32 %v3845_v5, %v3861_v63  ;;  %v19513_v39 = vmax.f32 %v3846_v34, %v3862_v59  ;;  %v2768_v25 = vpop.f32.mrb[108].mxu0  ;;  %v3361_v33 = vpop.f32.mrb[108].mxu1  ;;  %v24131_v50 = vmax.f32 %v19396_v27, 0.0 }
 0x287   : > { %v19517_v30 = vadd.f32 %v19404_v29, %v17981_v47  ;;  %v3864_v19 = vmax.f32 %v3356_v57, 0.0  ;;  %v3863_v32 = vmax.f32 %v2765_v52, 0.0  ;;  %v3865_v55 = vmax.f32 %v3358_v21, 0.0  ;;  %v15459_v26 = vpop.permute.xlu1 %15458  ;;  %v2770_v1 = vpop.f32.mrb[109].mxu0  ;;  %v16197_v21 = vld [vmem:[%s17018_s21 + $0x1f8] sm:$0xff]  }
 0x288   : > { %24129 = vst [vmem:[#allocation10_spill] sm:$0xff] %v19511_v10  ;;  %24130 = vst [vmem:[#allocation46_spill] sm:$0xff] %v19513_v39  ;;  %v19522_v35 = vadd.f32 %v19406_v46, %v17953_v16  ;;  %v15552_v5 = vpack.i.bf16 %v4197_v23, %v4196_v20  ;;  %v2769_v34 = vadd.f32 %v2768_v25, %v17970_v45  ;;  %v3363_v56 = vpop.f32.mrb[109].mxu1  ;;  %v2772_v58 = vpop.f32.mrb[110].mxu0  ;;  %v3856_v29 = vmax.f32 %v19490_v7, 0.0 }
 0x289   : > { %v4200_v53 = vmax.f32 %v24131_v50, %v3864_v19  ;;  %v24132_v54 = vmax.f32 %v19399_v13, 0.0  ;;  %v24134_v59 = vmax.f32 %v19413_v51, 0.0  ;;  %v3365_v52 = vpop.f32.mrb[110].mxu1  ;;  %v2774_v46 = vpop.f32.mrb[111].mxu0  ;;  %v23863_v20 = vunpack.i.l.bf16 %v19506_v28 }
 0x28a   : > { %v3866_v23 = vmax.f32 %v2769_v34, 0.0  ;;  %v3362_v25 = vadd.f32 %v3361_v33, %v17949_v11  ;;  %v15461_v18 = vunpack.i.h.bf16 %v15459_v26  ;;  %15553 = vrot.lane.b32.xlu0 %v15552_v5, %s16763_s11  ;;  %v3367_v27 = vpop.f32.mrb[111].mxu1  ;;  %v23862_v13 = vunpack.i.l.bf16 %v19495_v37 }
 0x28b   : > { %v19530_v63 = vmax.f32 %v24132_v54, %v3863_v32  ;;  %v4201_v57 = vmax.f32 %v24134_v59, %v3865_v55  ;;  %v15460_v19 = vunpack.i.l.bf16 %v15459_v26  ;;  %v2771_v32 = vadd.f32 %v2770_v1, %v17981_v47  ;;  %v24139_v54 = vld [vmem:[#allocation36_spill] sm:$0xff] }
 0x28c   : > { %v24135_v51 = vmax.f32 %v19416_v8, 0.0  ;;  %v3868_v50 = vmax.f32 %v3362_v25, 0.0  ;;  %v4848_v34 = vsel %vm1631_vm0, %v15461_v18, %v23863_v20  ;;  %v3364_v33 = vadd.f32 %v3363_v56, %v17953_v16  ;;  %3037 = vmatmul.mubr.bf16.gmra.mrb[216].mxu0 %v19356_v9  ;;  %3630 = vmatmul.mubr.bf16.gmra.mrb[216].mxu1 %v19356_v9  ;;  %v24137_v8 = vld [vmem:[#allocation38_spill] sm:$0xff] }
 0x28d   : > { %24133 = vst [vmem:[#allocation48_spill] sm:$0xff] %v19530_v63  ;;  %v15557_v7 = vpack.i.bf16 %v4201_v57, %v4200_v53  ;;  %v3855_v5 = vmax.f32 %v19517_v30, 0.0  ;;  %v4846_v26 = vsel %vm1631_vm0, %v15460_v19, %v23862_v13  ;;  %v5072_v1 = vmax.f32 %v24137_v8, %v4848_v34  ;;  %13334 = vmatprep.mubr.msk.bf16.mxu0 %vm1631_vm0, %v16197_v21  ;;  %v24147_v13 = vld [vmem:[#allocation15_spill] sm:$0xff] }
 0x28e   : > { %v19542_v55 = vmax.f32 %v24135_v51, %v3866_v23  ;;  %v3867_v53 = vmax.f32 %v2771_v32, 0.0  ;;  %v24138_v18 = vmax.f32 %v19435_v42, 0.0  ;;  %v5070_v59 = vmax.f32 %v24139_v54, %v4846_v26  ;;  %v2778_v30 = vpop.f32.mrb[112].mxu0  ;;  %v3371_v23 = vpop.f32.mrb[112].mxu1  ;;  %13390 = vmatprep.mubr.msk.bf16.mxu1 %vm1631_vm0, %v16197_v21 }
 0x28f   : > { %15558 = vrot.lane.b32.xlu1 %v15557_v7, %s16763_s11  ;;  %v3869_v57 = vmax.f32 %v3364_v33, 0.0  ;;  %v2773_v9 = vadd.f32 %v2772_v58, %v17970_v45  ;;  %v3366_v19 = vadd.f32 %v3365_v52, %v17949_v11  ;;  %v2775_v7 = vadd.f32 %v2774_v46, %v17981_v47  ;;  %v2780_v51 = vpop.f32.mrb[113].mxu0  ;;  %v3373_v42 = vpop.f32.mrb[113].mxu1 }
 0x290   : > { %24136 = vst [vmem:[#allocation54_spill] sm:$0xff] %v19542_v55  ;;  %v4204_v56 = vmax.f32 %v24138_v18, %v3868_v50  ;;  %v19562_v25 = vmax.f32 %v3851_v61, %v3867_v53  ;;  %v3368_v32 = vadd.f32 %v3367_v27, %v17953_v16  ;;  %v19567_v50 = vpack.c.bf16 %v5072_v1, %v5070_v59  ;;  %v2782_v26 = vpop.f32.mrb[114].mxu0  ;;  %v3375_v8 = vpop.f32.mrb[114].mxu1  ;;  %v24142_v27 = vld [vmem:[#allocation18_spill] sm:$0xff]  ;;  %v24143_v1 = vld [vmem:[#allocation21_spill] sm:$0xff] }
 0x291   : > { %v4205_v34 = vmax.f32 %v3853_v31, %v3869_v57  ;;  %v3870_v33 = vmax.f32 %v2773_v9, 0.0  ;;  %v15562_v58 = vpack.i.bf16 %v19530_v63, %v19498_v17  ;;  %v3857_v61 = vmax.f32 %v19522_v35, 0.0  ;;  %v2784_v18 = vpop.f32.mrb[115].mxu0  ;;  %v3377_v46 = vpop.f32.mrb[115].mxu1 }
 0x292   : > { %24140 = vst [vmem:[#allocation30_spill] sm:$0xff] %v19562_v25  ;;  %24141 = vst [vmem:[#allocation9_spill] sm:$0xff] %v19567_v50  ;;  %v3872_v21 = vmax.f32 %v3366_v19, 0.0  ;;  %v3871_v53 = vmax.f32 %v2775_v7, 0.0  ;;  %v3873_v52 = vmax.f32 %v3368_v32, 0.0  ;;  %v5057_v54 = vmax.f32 %v24142_v27, %v19426_v40  ;;  %v24148_v40 = vld [vmem:[#allocation20_spill] sm:$0xff] }
 0x293   : > { %v5061_v59 = vmax.f32 %v24143_v1, %v19445_v60  ;;  %v15567_v31 = vpack.i.bf16 %v4205_v34, %v4204_v56  ;;  %v24144_v57 = vmax.f32 %v19477_v3, 0.0  ;;  %15563 = vrot.lane.b32.xlu0 %v15562_v58, %s16763_s11  ;;  %v15426_v35 = vunpack.i.h.bf16 %v19257_v38 }
 0x294   : > { %v4208_v19 = vmax.f32 %v3856_v29, %v3872_v21  ;;  %v19582_v7 = vmax.f32 %v3855_v5, %v3871_v53  ;;  %v4209_v32 = vmax.f32 %v3857_v61, %v3873_v52  ;;  %v5055_v20 = vmax.f32 %v24147_v13, %v19421_v12  ;;  %3047 = vmatmul.mubr.bf16.gmra.mrb[220].mxu0 %v19371_v14 }
 0x295   : > { %v19578_v9 = vmax.f32 %v24144_v57, %v3870_v33  ;;  %v5059_v27 = vmax.f32 %v24148_v40, %v19431_v24  ;;  %15568 = vrot.lane.b32.xlu1 %v15567_v31, %s16763_s11  ;;  %v24149_v60 = vmax.f32 %v24118_v0, %v19361_v6  ;;  %v24150_v3 = vmax.f32 %v24119_v36, %v19366_v2  ;;  %v24156_v57 = vld [vmem:[#allocation25_spill] sm:$0xff] }
 0x296   : > { %24146 = vst [vmem:[#allocation13_spill] sm:$0xff] %v19582_v7  ;;  %v15421_v5 = vunpack.i.h.bf16 %v19244_v41  ;;  %v15572_v56 = vpack.i.bf16 %v4209_v32, %v4208_v19  ;;  %3640 = vmatmul.mubr.bf16.gmra.mrb[220].mxu1 %v19371_v14  ;;  %v19600_v12 = vpack.c.bf16 %v5057_v54, %v5055_v20  ;;  %v15577_v13 = vpack.i.bf16 %v19582_v7, %v19562_v25  ;;  %v2788_v34 = vpop.f32.mrb[116].mxu0  ;;  %v3381_v33 = vpop.f32.mrb[116].mxu1 }
 0x297   : > { %24145 = vst [vmem:[#allocation11_spill] sm:$0xff] %v19578_v9  ;;  %v19596_v29 = vpack.c.bf16 %v24150_v3, %v24149_v60  ;;  %v19602_v24 = vpack.c.bf16 %v5061_v59, %v5059_v27  ;;  %v23864_v6 = vmov 0   ;;  %v24154_v2 = vunpack.i.l.bf16 %v19257_v38  ;;  %v2790_v58 = vpop.f32.mrb[117].mxu0  ;;  %v3383_v61 = vpop.f32.mrb[117].mxu1 }
 0x298   : > { %24152 = vst [vmem:[#allocation32_spill] sm:$0xff] %v19600_v12  ;;  %5724 = vmatprep.mubr.bf16.mxu0 %v23864_v6  ;;  %6037 = vmatprep.mubr.bf16.mxu1 %v23864_v6  ;;  %v15441_v14 = vunpack.i.h.bf16 %v19457_v22  ;;  %v15456_v36 = vunpack.i.h.bf16 %v19506_v28  ;;  %v19616_v20 = vadd.f32 %v2778_v30, %v17970_v45  ;;  %v19620_v21 = vadd.f32 %v3371_v23, %v17949_v11  ;;  %v2792_v30 = vpop.f32.mrb[118].mxu0  ;;  %v3385_v54 = vpop.f32.mrb[118].mxu1 }
 0x299   : > { %24151 = vst [vmem:[#allocation33_spill] sm:$0xff] %v19596_v29  ;;  %24153 = vst [vmem:[#allocation38_spill] sm:$0xff] %v19602_v24  ;;  %v19611_v0 = vsel %vm1631_vm0, %v24154_v2, %v15426_v35  ;;  %15573 = vrot.lane.b32.xlu0 %v15572_v56, %s16763_s11  ;;  %v19623_v53 = vadd.f32 %v2780_v51, %v17981_v47  ;;  %v19626_v38 = vadd.f32 %v3373_v42, %v17953_v16  ;;  %v19646_v31 = vpop.f32.mrb[119].mxu1  ;;  %v16213_v56 = vld [vmem:[%s23805_s3 + $0x8] ss:$16 sps:$4 sm:$0xff]  }
 0x29a   : > { %v19629_v52 = vadd.f32 %v2782_v26, %v17970_v45  ;;  %15578 = vrot.lane.b32.xlu1 %v15577_v13, %s16763_s11  ;;  %v24155_v1 = vunpack.i.l.bf16 %v19244_v41  ;;  %v19638_v23 = vadd.f32 %v3375_v8, %v17949_v11  ;;  %v19641_v51 = vadd.f32 %v2784_v18, %v17981_v47  ;;  %v2794_v26 = vpop.f32.mrb[119].mxu0  ;;  %v16210_v18 = vld [vmem:[%s23805_s3] ss:$16 sps:$4 sm:$0xff]   ;;  %v16221_v2 = vld [vmem:[%s23805_s3 + $0x2c] ss:$16 sps:$4 sm:$0xff]  }
 0x29b   : > { %v19644_v42 = vadd.f32 %v3377_v46, %v17953_v16  ;;  %v19652_v19 = vadd.f32 %v2788_v34, %v17970_v45  ;;  %v19655_v8 = vadd.f32 %v3381_v33, %v17949_v11  ;;  %v24157_v46 = vunpack.i.l.bf16 %v19457_v22  ;;  %v16218_v22 = vld [vmem:[%s23805_s3 + $0x24] ss:$16 sps:$4 sm:$0xff]  }
 0x29c   : > { %v19635_v59 = vsel %vm1631_vm0, %v24155_v1, %v15421_v5  ;;  %v24158_v27 = vunpack.i.l.bf16 %v19506_v28  ;;  %v3874_v3 = vmax.f32 %v19616_v20, 0.0  ;;  %v19672_v5 = vpop.permute.xlu0 %15463  ;;  %v3876_v13 = vmax.f32 %v19620_v21, 0.0  ;;  %5725 = vmatmul.mubr.bf16.vlgmr.msra.gmra.mrb[224].mxu0 %v23864_v6 }
 0x29d   : > { %v19663_v32 = vsel %vm1631_vm0, %v24157_v46, %v15441_v14  ;;  %v3875_v34 = vmax.f32 %v19623_v53, 0.0  ;;  %v19692_v21 = vadd.f32 %v2790_v58, %v17981_v47  ;;  %v19695_v53 = vpop.permute.xlu1 %15468  ;;  %5734 = vmatprep.mubr.bf16.mxu0 %v23864_v6  ;;  %v19704_v35 = vadd.f32 %v2792_v30, %v17970_v45  ;;  %6599 = vmatpush1.bf16.msra.mxu0 %v16210_v18  ;;  %v16216_v58 = vld [vmem:[%s23805_s3 + $0x20] ss:$16 sps:$4 sm:$0xff]   ;;  %v16219_v18 = vld [vmem:[%s23805_s3 + $0x28] ss:$16 sps:$4 sm:$0xff]  }
 0x29e   : > { %v19669_v60 = vsel %vm1631_vm0, %v24158_v27, %v15456_v36  ;;  %6038 = vmatmul.mubr.bf16.vlgmr.msra.gmra.mrb[224].mxu1 %v23864_v6  ;;  %v19701_v27 = vadd.f32 %v3383_v61, %v17953_v16  ;;  %v2798_v40 = vpop.f32.mrb[120].mxu0  ;;  %v3391_v41 = vpop.f32.mrb[120].mxu1  ;;  %v19711_v20 = vadd.f32 %v3385_v54, %v17949_v11  ;;  %6600 = vmatprep.subr.bf16.mxu0 %v16218_v22  ;;  %v24160_v7 = vunpack.i.l.bf16 %v19672_v5 }
 0x29f   : > { %6047 = vmatprep.mubr.bf16.mxu1 %v23864_v6  ;;  %v2799_v61 = vadd.f32 %v2798_v40, %v17970_v45  ;;  %v3392_v1 = vadd.f32 %v3391_v41, %v17949_v11  ;;  %v2800_v36 = vpop.f32.mrb[121].mxu0  ;;  %6912 = vmatpush1.bf16.msra.mxu1 %v16213_v56  ;;  %v3393_v6 = vpop.f32.mrb[121].mxu1  ;;  %v16224_v41 = vld [vmem:[%s23805_s3 + $0x44] ss:$16 sps:$4 sm:$0xff]   ;;  %v19725_v40 = vadd.f32 %v2794_v26, %v17981_v47  ;;  %v16222_v26 = vld [vmem:[%s23805_s3 + $0x40] ss:$16 sps:$4 sm:$0xff]  }
 0x2a0   : > { %v15474_v30 = vpop.permute.xlu0 %15473  ;;  %v2801_v54 = vadd.f32 %v2800_v36, %v17981_v47  ;;  %v2802_v46 = vpop.f32.mrb[122].mxu0  ;;  %6913 = vmatprep.subr.bf16.mxu1 %v16221_v2  ;;  %v3394_v9 = vadd.f32 %v3393_v6, %v17953_v16  ;;  %v19740_v6 = vadd.f32 %v19646_v31, %v17953_v16  ;;  %v24163_v31 = vmov 0  }
 0x2a1   : > { %v15476_v33 = vunpack.i.h.bf16 %v15474_v30  ;;  %v15475_v28 = vunpack.i.l.bf16 %v15474_v30  ;;  %v3890_v56 = vmax.f32 %v2799_v61, 0.0  ;;  %v3892_v22 = vmax.f32 %v3392_v1, 0.0  ;;  %v3395_v55 = vpop.f32.mrb[122].mxu1  ;;  %v2804_v14 = vpop.f32.mrb[123].mxu0  ;;  %6601 = vmatpush1.bf16.msra.mxu0 %v16216_v58  ;;  %v24161_v61 = vld [vmem:[#allocation45_spill] sm:$0xff] }
 0x2a2   : > { %v24159_v30 = vunpack.i.l.bf16 %v19695_v53  ;;  %v3891_v25 = vmax.f32 %v2801_v54, 0.0  ;;  %v2803_v15 = vadd.f32 %v2802_v46, %v17970_v45  ;;  %v3397_v39 = vpop.f32.mrb[123].mxu1  ;;  %v3893_v54 = vmax.f32 %v3394_v9, 0.0  ;;  %6602 = vmatprep.subr.bf16.mxu0 %v16224_v41 }
 0x2a3   : > { %v4850_v2 = vsel %vm1631_vm0, %v15475_v28, %v24160_v7  ;;  %v19742_v1 = vmax.f32 %v3874_v3, %v3890_v56  ;;  %6914 = vmatpush1.bf16.msra.mxu1 %v16219_v18  ;;  %v16227_v7 = vld [vmem:[%s23805_s3 + $0x4c] ss:$16 sps:$4 sm:$0xff]   ;;  %v24162_v28 = vld [vmem:[#allocation44_spill] sm:$0xff]  ;;  %v16225_v3 = vld [vmem:[%s23805_s3 + $0x48] ss:$16 sps:$4 sm:$0xff]   ;;  %v3396_v18 = vadd.f32 %v3395_v55, %v17949_v11  ;;  %v2805_v56 = vadd.f32 %v2804_v14, %v17981_v47 }
 0x2a4   : > { %v4852_v36 = vsel %vm1631_vm0, %v15476_v33, %v24159_v30  ;;  %v4212_v33 = vmax.f32 %v3876_v13, %v3892_v22  ;;  %v19745_v63 = vpop.permute.xlu1 %15478  ;;  %v5074_v46 = vmax.f32 %v24162_v28, %v4850_v2  ;;  %v19751_v58 = vmax.f32 %v3875_v34, %v3891_v25  ;;  %5735 = vmatmul.mubr.bf16.gmra.mrb[228].mxu0 %v24163_v31 }
 0x2a5   : > { %v5076_v30 = vmax.f32 %v24161_v61, %v4852_v36  ;;  %v3894_v17 = vmax.f32 %v2803_v15, 0.0  ;;  %v3398_v22 = vadd.f32 %v3397_v39, %v17953_v16  ;;  %13503 = vmatprep.mubr.msk.bf16.mxu0 %vm1913_vm2, %v19596_v29  ;;  %v24165_v34 = vmax.f32 %v19626_v38, 0.0  ;;  %6603 = vmatpush1.bf16.msra.mxu0 %v16222_v26 }
 0x2a6   : > { %6048 = vmatmul.mubr.bf16.gmra.mrb[228].mxu1 %v24163_v31  ;;  %v19762_v25 = vpop.permute.xlu0 %15483  ;;  %v24166_v55 = vmax.f32 %v19629_v52, 0.0  ;;  %v2808_v39 = vpop.f32.mrb[124].mxu0  ;;  %v3896_v61 = vmax.f32 %v3396_v18, 0.0  ;;  %v3895_v28 = vmax.f32 %v2805_v56, 0.0  ;;  %6915 = vmatprep.subr.bf16.mxu1 %v16227_v7  ;;  %v3889_v26 = vmax.f32 %v19740_v6, 0.0 }
 0x2a7   : > { %v19767_v9 = vpack.c.bf16 %v5076_v30, %v5074_v46  ;;  %v4213_v41 = vmax.f32 %v24165_v34, %v3893_v54  ;;  %13529 = vmatprep.mubr.msk.bf16.mxu1 %vm1913_vm2, %v19596_v29  ;;  %v3401_v14 = vpop.f32.mrb[124].mxu1  ;;  %v3897_v15 = vmax.f32 %v3398_v22, 0.0  ;;  %v2810_v46 = vpop.f32.mrb[125].mxu0  ;;  %v2809_v54 = vadd.f32 %v2808_v39, %v17970_v45  ;;  %6916 = vmatpush1.bf16.msra.mxu1 %v16225_v3 }
 0x2a8   : > { %v19773_v36 = vmax.f32 %v24166_v55, %v3894_v17  ;;  %v15489_v30 = vpop.permute.xlu1 %15488  ;;  %v3403_v34 = vpop.f32.mrb[125].mxu1  ;;  %v24167_v2 = vmax.f32 %v19638_v23, 0.0  ;;  %v24168_v56 = vmax.f32 %v19641_v51, 0.0  ;;  %v24169_v7 = vmax.f32 %v19644_v42, 0.0 }
 0x2a9   : > { %24164 = vst [vmem:[#allocation36_spill] sm:$0xff] %v19767_v9  ;;  %v15582_v17 = vpack.i.bf16 %v4213_v41, %v4212_v33  ;;  %v2812_v55 = vpop.f32.mrb[126].mxu0  ;;  %v3405_v13 = vpop.f32.mrb[126].mxu1  ;;  %v23870_v33 = vunpack.i.l.bf16 %v19762_v25  ;;  %v3898_v41 = vmax.f32 %v2809_v54, 0.0  ;;  %v3402_v39 = vadd.f32 %v3401_v14, %v17949_v11 }
 0x2aa   : > { %v4216_v18 = vmax.f32 %v24167_v2, %v3896_v61  ;;  %v19786_v22 = vmax.f32 %v24168_v56, %v3895_v28  ;;  %v4217_v38 = vmax.f32 %v24169_v7, %v3897_v15  ;;  %v2814_v52 = vpop.f32.mrb[127].mxu0  ;;  %v15491_v3 = vunpack.i.h.bf16 %v15489_v30  ;;  %v3407_v6 = vpop.f32.mrb[127].mxu1 }
 0x2ab   : > { %15583 = vrot.lane.b32.xlu0 %v15582_v17, %s16763_s11  ;;  %v23871_v2 = vunpack.i.l.bf16 %v19745_v63  ;;  %v15490_v61 = vunpack.i.l.bf16 %v15489_v30  ;;  %v24170_v42 = vmax.f32 %v19652_v19, 0.0  ;;  %v3900_v28 = vmax.f32 %v3402_v39, 0.0  ;;  %v24171_v17 = vld [vmem:[#allocation28_spill] sm:$0xff]  ;;  %v24172_v30 = vld [vmem:[#allocation53_spill] sm:$0xff]  ;;  %v24174_v39 = vld [vmem:[#allocation50_spill] sm:$0xff] }
 0x2ac   : > { %v15592_v23 = vpack.i.bf16 %v19786_v22, %v19751_v58  ;;  %v15587_v51 = vpack.i.bf16 %v4217_v38, %v4216_v18  ;;  %v4856_v14 = vsel %vm1631_vm0, %v15491_v3, %v23870_v33  ;;  %v2811_v54 = vadd.f32 %v2810_v46, %v17981_v47  ;;  %5745 = vmatmul.mubr.bf16.gmra.mrb[232].mxu0 %v24171_v17 }
 0x2ad   : > { %v19798_v15 = vmax.f32 %v24170_v42, %v3898_v41  ;;  %v15466_v56 = vunpack.i.h.bf16 %v19672_v5  ;;  %v4854_v38 = vsel %vm1631_vm0, %v15490_v61, %v23871_v2  ;;  %v5080_v18 = vmax.f32 %v24172_v30, %v4856_v14  ;;  %13504 = vmatprep.mubr.msk.bf16.mxu0 %vm1913_vm2, %v19600_v12 }
 0x2ae   : > { %v3404_v19 = vadd.f32 %v3403_v34, %v17953_v16  ;;  %15588 = vrot.lane.b32.xlu1 %v15587_v51, %s16763_s11  ;;  %v24173_v7 = vmax.f32 %v19655_v8, 0.0  ;;  %v5078_v3 = vmax.f32 %v24174_v39, %v4854_v38  ;;  %v3899_v46 = vmax.f32 %v2811_v54, 0.0  ;;  %6058 = vmatmul.mubr.bf16.gmra.mrb[232].mxu1 %v24171_v17  ;;  %v2818_v33 = vpop.f32.mrb[128].mxu0  ;;  %v19818_v61 = vpop.f32.mrb[128].mxu1 }
 0x2af   : > { %v2813_v42 = vadd.f32 %v2812_v55, %v17970_v45  ;;  %15593 = vrot.lane.b32.xlu0 %v15592_v23, %s16763_s11  ;;  %v3406_v34 = vadd.f32 %v3405_v13, %v17949_v11  ;;  %v2815_v51 = vadd.f32 %v2814_v52, %v17981_v47  ;;  %v3408_v8 = vadd.f32 %v3407_v6, %v17953_v16  ;;  %v2820_v55 = vpop.f32.mrb[129].mxu0 }
 0x2b0   : > { %v4220_v41 = vmax.f32 %v24173_v7, %v3900_v28  ;;  %v3901_v14 = vmax.f32 %v3404_v19, 0.0  ;;  %13530 = vmatprep.mubr.msk.bf16.mxu1 %vm1913_vm2, %v19600_v12  ;;  %v3413_v28 = vpop.f32.mrb[129].mxu1  ;;  %v15471_v23 = vunpack.i.h.bf16 %v19695_v53  ;;  %v19828_v54 = vpack.c.bf16 %v5080_v18, %v5078_v3  ;;  %v2822_v52 = vpop.f32.mrb[130].mxu0 }
 0x2b1   : > { %v24176_v38 = vmax.f32 %v19692_v21, 0.0  ;;  %v3902_v13 = vmax.f32 %v2813_v42, 0.0  ;;  %v3415_v19 = vpop.f32.mrb[130].mxu1  ;;  %v24177_v6 = vmax.f32 %v19701_v27, 0.0  ;;  %v3904_v39 = vmax.f32 %v3406_v34, 0.0  ;;  %v2824_v12 = vpop.f32.mrb[131].mxu0 }
 0x2b2   : > { %24175 = vst [vmem:[#allocation18_spill] sm:$0xff] %v19828_v54  ;;  %v3903_v2 = vmax.f32 %v2815_v51, 0.0  ;;  %v3905_v17 = vmax.f32 %v3408_v8, 0.0  ;;  %v3417_v29 = vpop.f32.mrb[131].mxu1  ;;  %v24178_v31 = vunpack.i.h.bf16 %v19437_v44  ;;  %v24179_v18 = vunpack.i.l.bf16 %v19437_v44  ;;  %v24180_v21 = vld [vmem:[#allocation34_spill] sm:$0xff] }
 0x2b3   : > { %v19832_v30 = vmax.f32 %v24176_v38, %v3899_v46  ;;  %v4221_v7 = vmax.f32 %v24177_v6, %v3901_v14  ;;  %v5069_v46 = vmax.f32 %v24180_v21, %v19663_v32  ;;  %v24181_v42 = vunpack.i.h.bf16 %v19495_v37  ;;  %v16230_v51 = vld [vmem:[%s23805_s3 + $0x64] ss:$16 sps:$4 sm:$0xff]  }
 0x2b4   : > { %v4843_v3 = vsel %vm1631_vm0, %v24179_v18, %v24178_v31  ;;  %v24182_v38 = vunpack.i.l.bf16 %v19495_v37  ;;  %v24183_v14 = vmax.f32 %v19704_v35, 0.0  ;;  %v24184_v31 = vmax.f32 %v19711_v20, 0.0  ;;  %v24186_v37 = vld [vmem:[#allocation23_spill] sm:$0xff]  ;;  %v24187_v35 = vld [vmem:[#allocation37_spill] sm:$0xff]  ;;  %5755 = vmatmul.mubr.bf16.gmra.mrb[236].mxu0 %v19066_v4  ;;  %v16228_v20 = vld [vmem:[%s23805_s3 + $0x60] ss:$16 sps:$4 sm:$0xff]   ;;  %6604 = vmatprep.subr.bf16.mxu0 %v16230_v51 }
 0x2b5   : > { %v15597_v44 = vpack.i.bf16 %v4221_v7, %v4220_v41  ;;  %v24185_v32 = vmax.f32 %v19725_v40, 0.0  ;;  %v4225_v18 = vmax.f32 %v3889_v26, %v3905_v17  ;;  %v5063_v21 = vmax.f32 %v24186_v37, %v19635_v59  ;;  %v16233_v40 = vld [vmem:[%s23805_s3 + $0x6c] ss:$16 sps:$4 sm:$0xff]   ;;  %v16231_v17 = vld [vmem:[%s23805_s3 + $0x68] ss:$16 sps:$4 sm:$0xff]   ;;  %13505 = vmatprep.mubr.msk.bf16.mxu0 %vm1913_vm2, %v19602_v24  ;;  %6605 = vmatpush1.bf16.msra.mxu0 %v16228_v20 }
 0x2b6   : > { %v4847_v27 = vsel %vm1631_vm0, %v24182_v38, %v24181_v42  ;;  %v19850_v34 = vmax.f32 %v24183_v14, %v3902_v13  ;;  %v4224_v8 = vmax.f32 %v24184_v31, %v3904_v39  ;;  %v5073_v13 = vmax.f32 %v24187_v35, %v19669_v60  ;;  %v24189_v26 = vld [vmem:[#allocation31_spill] sm:$0xff]  ;;  %6068 = vmatmul.mubr.bf16.gmra.mrb[236].mxu1 %v19066_v4 }
 0x2b7   : > { %v19859_v6 = vmax.f32 %v24185_v32, %v3903_v2  ;;  %v24188_v42 = vunpack.i.l.bf16 %v19695_v53  ;;  %v5067_v59 = vmax.f32 %v24189_v26, %v4843_v3  ;;  %v24190_v2 = vunpack.i.l.bf16 %v19672_v5  ;;  %15598 = vrot.lane.b32.xlu1 %v15597_v44, %s16763_s11  ;;  %v24193_v7 = vld [vmem:[#allocation35_spill] sm:$0xff]  ;;  %v2828_v5 = vpop.f32.mrb[132].mxu0  ;;  %13531 = vmatprep.mubr.msk.bf16.mxu1 %vm1913_vm2, %v19602_v24 }
 0x2b8   : > { %v15602_v53 = vpack.i.bf16 %v4225_v18, %v4224_v8  ;;  %v24191_v41 = vmax.f32 %v24156_v57, %v19611_v0  ;;  %v5071_v39 = vmax.f32 %v24193_v7, %v4847_v27  ;;  %v24195_v14 = vld [vmem:[#allocation47_spill] sm:$0xff]  ;;  %v15481_v44 = vunpack.i.h.bf16 %v19745_v63  ;;  %v2830_v57 = vpop.f32.mrb[133].mxu0  ;;  %6917 = vmatprep.subr.bf16.mxu1 %v16233_v40  ;;  %v16236_v40 = vld [vmem:[%s23805_s3 + $0x84] ss:$16 sps:$4 sm:$0xff]  }
 0x2b9   : > { %v4853_v38 = vsel %vm1631_vm0, %v24188_v42, %v15471_v23  ;;  %v4851_v60 = vsel %vm1631_vm0, %v24190_v2, %v15466_v56  ;;  %v3421_v56 = vpop.f32.mrb[132].mxu1  ;;  %v19892_v3 = vpack.c.bf16 %v5069_v46, %v5067_v59  ;;  %v15607_v0 = vpack.i.bf16 %v19859_v6, %v19832_v30  ;;  %v24197_v8 = vld [vmem:[#allocation43_spill] sm:$0xff]  ;;  %v2832_v37 = vpop.f32.mrb[134].mxu0  ;;  %6918 = vmatpush1.bf16.msra.mxu1 %v16231_v17 }
 0x2ba   : > { %v19886_v23 = vpack.c.bf16 %v24191_v41, %v5063_v21  ;;  %v5077_v51 = vmax.f32 %v24195_v14, %v4853_v38  ;;  %15603 = vrot.lane.b32.xlu0 %v15602_v53, %s16763_s11  ;;  %v3423_v27 = vpop.f32.mrb[133].mxu1  ;;  %v19901_v31 = vpack.c.bf16 %v5073_v13, %v5071_v39  ;;  %v5075_v32 = vmax.f32 %v24197_v8, %v4851_v60  ;;  %v2834_v38 = vpop.f32.mrb[135].mxu0  ;;  %v16239_v60 = vld [vmem:[%s23805_s3 + $0x8c] ss:$16 sps:$4 sm:$0xff]  }
 0x2bb   : > { %24194 = vst [vmem:[#allocation15_spill] sm:$0xff] %v19892_v3  ;;  %v15486_v46 = vunpack.i.h.bf16 %v19762_v25  ;;  %v19906_v18 = vadd.f32 %v2818_v33, %v17970_v45  ;;  %v3425_v21 = vpop.f32.mrb[134].mxu1  ;;  %v19910_v35 = vadd.f32 %v19818_v61, %v17949_v11  ;;  %v19913_v42 = vadd.f32 %v2820_v55, %v17981_v47  ;;  %15608 = vrot.lane.b32.xlu1 %v15607_v0, %s16763_s11  ;;  %v16234_v33 = vld [vmem:[%s23805_s3 + $0x80] ss:$16 sps:$4 sm:$0xff]   ;;  %v19969_v7 = vpop.permute.xlu0 %15493 }
 0x2bc   : > { %24192 = vst [vmem:[#allocation21_spill] sm:$0xff] %v19886_v23  ;;  %24196 = vst [vmem:[#allocation20_spill] sm:$0xff] %v19901_v31  ;;  %v19916_v13 = vadd.f32 %v3413_v28, %v17953_v16  ;;  %v19919_v26 = vpop.f32.mrb[135].mxu1  ;;  %v19925_v20 = vadd.f32 %v2822_v52, %v17970_v45  ;;  %v19928_v61 = vadd.f32 %v3415_v19, %v17949_v11  ;;  %v24199_v2 = vunpack.i.l.bf16 %v19745_v63 }
 0x2bd   : > { %v19931_v55 = vadd.f32 %v2824_v12, %v17981_v47  ;;  %v19934_v28 = vadd.f32 %v3417_v29, %v17953_v16  ;;  %v19939_v59 = vpack.c.bf16 %v5077_v51, %v5075_v32  ;;  %v19947_v19 = vadd.f32 %v2828_v5, %v17970_v45  ;;  %v16237_v29 = vld [vmem:[%s23805_s3 + $0x88] ss:$16 sps:$4 sm:$0xff]   ;;  %5765 = vmatmul.mubr.bf16.gmra.mrb[240].mxu0 %v19261_v43 }
 0x2be   : > { %v19944_v52 = vsel %vm1631_vm0, %v24199_v2, %v15481_v44  ;;  %v19950_v12 = vadd.f32 %v3421_v56, %v17949_v11  ;;  %v24200_v53 = vunpack.i.l.bf16 %v19762_v25  ;;  %v19964_v17 = vadd.f32 %v2830_v57, %v17981_v47  ;;  %6606 = vmatprep.subr.bf16.mxu0 %v16236_v40  ;;  %13506 = vmatprep.mubr.msk.bf16.mxu0 %vm1913_vm2, %v19886_v23  ;;  %v2838_v57 = vpop.f32.mrb[136].mxu0 }
 0x2bf   : > { %24198 = vst [vmem:[#allocation25_spill] sm:$0xff] %v19939_v59  ;;  %v19967_v41 = vadd.f32 %v3423_v27, %v17953_v16  ;;  %v3906_v39 = vmax.f32 %v19906_v18, 0.0  ;;  %v3908_v5 = vmax.f32 %v19910_v35, 0.0  ;;  %v3907_v25 = vmax.f32 %v19913_v42, 0.0  ;;  %6607 = vmatpush1.bf16.msra.mxu0 %v16234_v33  ;;  %6078 = vmatmul.mubr.bf16.gmra.mrb[240].mxu1 %v19261_v43  ;;  %v3431_v35 = vpop.f32.mrb[136].mxu1 }
 0x2c0   : > { %v19961_v63 = vsel %vm1631_vm0, %v24200_v53, %v15486_v46  ;;  %v3909_v56 = vmax.f32 %v19916_v13, 0.0  ;;  %6919 = vmatprep.subr.bf16.mxu1 %v16239_v60  ;;  %v19986_v32 = vadd.f32 %v2832_v37, %v17970_v45  ;;  %v19988_v46 = vpop.permute.xlu1 %15498  ;;  %13532 = vmatprep.mubr.msk.bf16.mxu1 %vm1913_vm2, %v19886_v23  ;;  %v2839_v18 = vadd.f32 %v2838_v57, %v17970_v45  ;;  %v2840_v37 = vpop.f32.mrb[137].mxu0 }
 0x2c1   : > { %6920 = vmatpush1.bf16.msra.mxu1 %v16237_v29  ;;  %v19996_v33 = vadd.f32 %v3425_v21, %v17949_v11  ;;  %v3432_v40 = vadd.f32 %v3431_v35, %v17949_v11  ;;  %v3433_v2 = vpop.f32.mrb[137].mxu1  ;;  %v15504_v8 = vpop.permute.xlu0 %15503  ;;  %v2841_v27 = vadd.f32 %v2840_v37, %v17981_v47  ;;  %v23882_v42 = vunpack.i.l.bf16 %v19988_v46 }
 0x2c2   : > { %v3922_v53 = vmax.f32 %v2839_v18, 0.0  ;;  %v3434_v57 = vadd.f32 %v3433_v2, %v17953_v16  ;;  %v2842_v29 = vpop.f32.mrb[138].mxu0  ;;  %v15506_v13 = vunpack.i.h.bf16 %v15504_v8  ;;  %v15505_v44 = vunpack.i.l.bf16 %v15504_v8  ;;  %v3435_v21 = vpop.f32.mrb[138].mxu1 }
 0x2c3   : > { %v3924_v0 = vmax.f32 %v3432_v40, 0.0  ;;  %v2844_v51 = vpop.f32.mrb[139].mxu0  ;;  %v20004_v35 = vadd.f32 %v2834_v38, %v17981_v47  ;;  %v3923_v60 = vmax.f32 %v2841_v27, 0.0  ;;  %v3437_v23 = vpop.f32.mrb[139].mxu1  ;;  %v24201_v2 = vunpack.i.l.bf16 %v19969_v7 }
 0x2c4   : > { %v20006_v14 = vmax.f32 %v3906_v39, %v3922_v53  ;;  %v3925_v18 = vmax.f32 %v3434_v57, 0.0  ;;  %v4860_v37 = vsel %vm1631_vm0, %v15506_v13, %v23882_v42  ;;  %v2843_v8 = vadd.f32 %v2842_v29, %v17970_v45  ;;  %v20024_v27 = vpop.permute.xlu1 %15508 }
 0x2c5   : > { %v4228_v43 = vmax.f32 %v3908_v5, %v3924_v0  ;;  %v4858_v40 = vsel %vm1631_vm0, %v15505_v44, %v24201_v2  ;;  %5775 = vmatmul.mubr.bf16.gmra.mrb[244].mxu0 %v19321_v49  ;;  %v20018_v38 = vadd.f32 %v19919_v26, %v17953_v16  ;;  %v5084_v39 = vmax.f32 %v19114_v48, %v4860_v37 }
 0x2c6   : > { %v5082_v5 = vmax.f32 %v19082_v62, %v4858_v40  ;;  %v20022_v0 = vmax.f32 %v3907_v25, %v3923_v60  ;;  %13507 = vmatprep.mubr.msk.bf16.mxu0 %vm1913_vm2, %v19892_v3  ;;  %v4229_v44 = vmax.f32 %v3909_v56, %v3925_v18  ;;  %v3926_v13 = vmax.f32 %v2843_v8, 0.0  ;;  %v2848_v26 = vpop.f32.mrb[140].mxu0 }
 0x2c7   : > { %v3436_v53 = vadd.f32 %v3435_v21, %v17949_v11  ;;  %v2845_v57 = vadd.f32 %v2844_v51, %v17981_v47  ;;  %6088 = vmatmul.mubr.bf16.gmra.mrb[244].mxu1 %v19321_v49  ;;  %v3438_v60 = vadd.f32 %v3437_v23, %v17953_v16  ;;  %v3441_v56 = vpop.f32.mrb[140].mxu1  ;;  %v2850_v29 = vpop.f32.mrb[141].mxu0  ;;  %v24203_v21 = vmax.f32 %v19925_v20, 0.0 }
 0x2c8   : > { %v20033_v25 = vpack.c.bf16 %v5084_v39, %v5082_v5  ;;  %13533 = vmatprep.mubr.msk.bf16.mxu1 %vm1913_vm2, %v19892_v3  ;;  %v15612_v18 = vpack.i.bf16 %v4229_v44, %v4228_v43  ;;  %v3443_v40 = vpop.f32.mrb[141].mxu1  ;;  %v2852_v8 = vpop.f32.mrb[142].mxu0  ;;  %v2849_v23 = vadd.f32 %v2848_v26, %v17970_v45  ;;  %v3442_v48 = vadd.f32 %v3441_v56, %v17949_v11 }
 0x2c9   : > { %v20040_v51 = vmax.f32 %v24203_v21, %v3926_v13  ;;  %v3928_v37 = vmax.f32 %v3436_v53, 0.0  ;;  %v3927_v2 = vmax.f32 %v2845_v57, 0.0  ;;  %v3929_v39 = vmax.f32 %v3438_v60, 0.0  ;;  %v20043_v5 = vpop.permute.xlu0 %15513  ;;  %v3445_v42 = vpop.f32.mrb[142].mxu1 }
 0x2ca   : > { %24202 = vst [vmem:[#allocation45_spill] sm:$0xff] %v20033_v25  ;;  %v15496_v43 = vunpack.i.h.bf16 %v19969_v7  ;;  %v24205_v20 = vmax.f32 %v19928_v61, 0.0  ;;  %v24206_v13 = vmax.f32 %v19931_v55, 0.0  ;;  %v15510_v57 = vunpack.i.l.bf16 %v20024_v27  ;;  %15613 = vrot.lane.b32.xlu0 %v15612_v18, %s16763_s11  ;;  %v2854_v60 = vpop.f32.mrb[143].mxu0  ;;  %v3447_v21 = vpop.f32.mrb[143].mxu1 }
 0x2cb   : > { %24204 = vst [vmem:[#allocation44_spill] sm:$0xff] %v20040_v51  ;;  %v24207_v26 = vmax.f32 %v19934_v28, 0.0  ;;  %v15515_v56 = vunpack.i.l.bf16 %v20043_v5  ;;  %v3930_v3 = vmax.f32 %v2849_v23, 0.0  ;;  %v3932_v49 = vmax.f32 %v3442_v48, 0.0  ;;  %v15519_v24 = vpop.permute.xlu1 %15518 }
 0x2cc   : > { %v4232_v44 = vmax.f32 %v24205_v20, %v3928_v37  ;;  %v20052_v53 = vmax.f32 %v24206_v13, %v3927_v2  ;;  %v15521_v55 = vunpack.i.h.bf16 %v15519_v24  ;;  %v15520_v37 = vunpack.i.l.bf16 %v15519_v24 }
 0x2cd   : > { %v4233_v62 = vmax.f32 %v24207_v26, %v3929_v39  ;;  %v2851_v2 = vadd.f32 %v2850_v29, %v17981_v47  ;;  %5785 = vmatmul.mubr.bf16.gmra.mrb[248].mxu0 %v19511_v10  ;;  %v15501_v18 = vunpack.i.h.bf16 %v19988_v46  ;;  %v24208_v28 = vmax.f32 %v19947_v19, 0.0 }
 0x2ce   : > { %v15622_v61 = vpack.i.bf16 %v20052_v53, %v20022_v0  ;;  %v24210_v23 = vmax.f32 %v19950_v12, 0.0  ;;  %13508 = vmatprep.mubr.msk.bf16.mxu0 %vm1913_vm2, %v19901_v31  ;;  %v15511_v13 = vunpack.i.h.bf16 %v20024_v27  ;;  %v4862_v24 = vsel %vm1631_vm0, %v15520_v37, %v15510_v57  ;;  %v2858_v19 = vpop.f32.mrb[144].mxu0 }
 0x2cf   : > { %v15617_v20 = vpack.i.bf16 %v4233_v62, %v4232_v44  ;;  %v20066_v39 = vmax.f32 %v24208_v28, %v3930_v3  ;;  %v4864_v29 = vsel %vm1631_vm0, %v15521_v55, %v15515_v56  ;;  %v3931_v26 = vmax.f32 %v2851_v2, 0.0  ;;  %6098 = vmatmul.mubr.bf16.gmra.mrb[248].mxu1 %v19511_v10  ;;  %v24211_v3 = vld [vmem:[#allocation16_spill] sm:$0xff]  ;;  %v24212_v44 = vld [vmem:[#allocation41_spill] sm:$0xff]  ;;  %v3451_v27 = vpop.f32.mrb[144].mxu1  ;;  %v2860_v37 = vpop.f32.mrb[145].mxu0 }
 0x2d0   : > { %v4236_v48 = vmax.f32 %v24210_v23, %v3932_v49  ;;  %15623 = vrot.lane.b32.xlu0 %v15622_v61, %s16763_s11  ;;  %v5086_v62 = vmax.f32 %v24211_v3, %v4862_v24  ;;  %v5088_v12 = vmax.f32 %v24212_v44, %v4864_v29  ;;  %v3444_v49 = vadd.f32 %v3443_v40, %v17953_v16  ;;  %v3453_v40 = vpop.f32.mrb[145].mxu1  ;;  %v2862_v29 = vpop.f32.mrb[146].mxu0 }
 0x2d1   : > { %24209 = vst [vmem:[#allocation53_spill] sm:$0xff] %v20066_v39  ;;  %v2853_v28 = vadd.f32 %v2852_v8, %v17970_v45  ;;  %15618 = vrot.lane.b32.xlu1 %v15617_v20, %s16763_s11  ;;  %v15516_v55 = vunpack.i.h.bf16 %v20043_v5  ;;  %v24213_v2 = vmax.f32 %v19964_v17, 0.0  ;;  %v3446_v61 = vadd.f32 %v3445_v42, %v17949_v11  ;;  %13534 = vmatprep.mubr.msk.bf16.mxu1 %vm1913_vm2, %v19901_v31  ;;  %v3455_v5 = vpop.f32.mrb[146].mxu1  ;;  %v2864_v10 = vpop.f32.mrb[147].mxu0  ;;  %v16240_v17 = vld [vmem:[%s23805_s3 + $0xa0] ss:$16 sps:$4 sm:$0xff]  }
 0x2d2   : > { %v2855_v24 = vadd.f32 %v2854_v60, %v17981_v47  ;;  %v20091_v8 = vpack.c.bf16 %v5088_v12, %v5086_v62  ;;  %v3933_v20 = vmax.f32 %v3444_v49, 0.0  ;;  %v3448_v44 = vadd.f32 %v3447_v21, %v17953_v16  ;;  %v3457_v62 = vpop.f32.mrb[147].mxu1  ;;  %v16242_v12 = vld [vmem:[%s23805_s3 + $0xa4] ss:$16 sps:$4 sm:$0xff]  }
 0x2d3   : > { %v20085_v23 = vmax.f32 %v24213_v2, %v3931_v26  ;;  %v3934_v3 = vmax.f32 %v2853_v28, 0.0  ;;  %v3921_v42 = vmax.f32 %v20018_v38, 0.0  ;;  %v24215_v60 = vunpack.i.l.bf16 %v19969_v7  ;;  %6608 = vmatprep.subr.bf16.mxu0 %v16242_v12 }
 0x2d4   : > { %24214 = vst [vmem:[#allocation50_spill] sm:$0xff] %v20091_v8  ;;  %v3936_v2 = vmax.f32 %v3446_v61, 0.0  ;;  %v3935_v31 = vmax.f32 %v2855_v24, 0.0  ;;  %v24216_v21 = vunpack.i.l.bf16 %v19988_v46  ;;  %v24217_v28 = vmax.f32 %v19967_v41, 0.0  ;;  %v16245_v41 = vld [vmem:[%s23805_s3 + $0xac] ss:$16 sps:$4 sm:$0xff]   ;;  %6609 = vmatpush1.bf16.msra.mxu0 %v16240_v17 }
 0x2d5   : > { %v4859_v26 = vsel %vm1631_vm0, %v24215_v60, %v15496_v43  ;;  %v24218_v38 = vmax.f32 %v19986_v32, 0.0  ;;  %v3937_v7 = vmax.f32 %v3448_v44, 0.0  ;;  %v4863_v43 = vsel %vm1631_vm0, %v15510_v57, %v15511_v13  ;;  %5795 = vmatmul.mubr.bf16.gmra.mrb[252].mxu0 %v19567_v50  ;;  %v24222_v57 = vld [vmem:[#allocation51_spill] sm:$0xff]  ;;  %6921 = vmatprep.subr.bf16.mxu1 %v16245_v41 }
 0x2d6   : > { %v4861_v49 = vsel %vm1631_vm0, %v24216_v21, %v15501_v18  ;;  %v4237_v4 = vmax.f32 %v24217_v28, %v3933_v20  ;;  %v24219_v61 = vmax.f32 %v19996_v33, 0.0  ;;  %v24220_v60 = vmax.f32 %v20004_v35, 0.0  ;;  %13509 = vmatprep.mubr.msk.bf16.mxu0 %vm1913_vm2, %v19939_v59  ;;  %v24221_v33 = vld [vmem:[#allocation49_spill] sm:$0xff]  ;;  %v24223_v20 = vld [vmem:[#allocation7_spill] sm:$0xff] }
 0x2d7   : > { %v20111_v39 = vmax.f32 %v24218_v38, %v3934_v3  ;;  %v4865_v32 = vsel %vm1631_vm0, %v15515_v56, %v15516_v55  ;;  %v4241_v18 = vmax.f32 %v3921_v42, %v3937_v7  ;;  %v5079_v35 = vmax.f32 %v24221_v33, %v19944_v52  ;;  %6108 = vmatmul.mubr.bf16.gmra.mrb[252].mxu1 %v19567_v50  ;;  %v24224_v56 = vld [vmem:[#allocation29_spill] sm:$0xff]  ;;  %v24225_v55 = vld [vmem:[#allocation12_spill] sm:$0xff]  ;;  %v3461_v42 = vpop.f32.mrb[148].mxu1 }
 0x2d8   : > { %v4240_v24 = vmax.f32 %v24219_v61, %v3936_v2  ;;  %v20118_v51 = vmax.f32 %v24220_v60, %v3935_v31  ;;  %v15627_v46 = vpack.i.bf16 %v4237_v4, %v4236_v48  ;;  %v16243_v31 = vld [vmem:[%s23805_s3 + $0xa8] ss:$16 sps:$4 sm:$0xff]   ;;  %v5081_v13 = vmax.f32 %v24222_v57, %v19961_v63  ;;  %v2868_v4 = vpop.f32.mrb[148].mxu0  ;;  %13535 = vmatprep.mubr.msk.bf16.mxu1 %vm1913_vm2, %v19939_v59  ;;  %v24236_v59 = vld [vmem:[#allocation40_spill] sm:$0xff] }
 0x2d9   : > { %v5083_v3 = vmax.f32 %v24223_v20, %v4859_v26  ;;  %v5085_v48 = vmax.f32 %v24224_v56, %v4861_v49  ;;  %v5087_v44 = vmax.f32 %v24225_v55, %v4863_v43  ;;  %v2870_v52 = vpop.f32.mrb[149].mxu0  ;;  %v24226_v2 = vld [vmem:[#allocation17_spill] sm:$0xff]  ;;  %v20143_v63 = vadd.f32 %v2858_v19, %v17970_v45  ;;  %v3463_v49 = vpop.f32.mrb[149].mxu1  ;;  %6922 = vmatpush1.bf16.msra.mxu1 %v16243_v31 }
 0x2da   : > { %v15632_v17 = vpack.i.bf16 %v4241_v18, %v4240_v24  ;;  %15628 = vrot.lane.b32.xlu1 %v15627_v46, %s16763_s11  ;;  %v5089_v12 = vmax.f32 %v24226_v2, %v4865_v32  ;;  %v20146_v26 = vadd.f32 %v3451_v27, %v17949_v11  ;;  %v20149_v21 = vadd.f32 %v2860_v37, %v17981_v47  ;;  %v2872_v28 = vpop.f32.mrb[150].mxu0  ;;  %v3465_v19 = vpop.f32.mrb[150].mxu1  ;;  %v16249_v33 = vld [vmem:[%s23805_s3 + $0xc8] ss:$16 sps:$4 sm:$0xff]  }
 0x2db   : > { %v15637_v38 = vpack.i.bf16 %v20118_v51, %v20085_v23  ;;  %v20154_v7 = vadd.f32 %v3453_v40, %v17953_v16  ;;  %v20157_v43 = vadd.f32 %v2862_v29, %v17970_v45  ;;  %v2874_v27 = vpop.f32.mrb[151].mxu0  ;;  %v20161_v37 = vadd.f32 %v3455_v5, %v17949_v11  ;;  %v20172_v60 = vpop.f32.mrb[151].mxu1 }
 0x2dc   : > { %15633 = vrot.lane.b32.xlu0 %v15632_v17, %s16763_s11  ;;  %v20164_v61 = vadd.f32 %v2864_v10, %v17981_v47  ;;  %v20167_v24 = vadd.f32 %v3457_v62, %v17953_v16  ;;  %v20170_v40 = vadd.f32 %v2868_v4, %v17970_v45  ;;  %v20174_v29 = vpack.c.bf16 %v5081_v13, %v5079_v35  ;;  %v16246_v10 = vld [vmem:[%s23805_s3 + $0xc0] ss:$16 sps:$4 sm:$0xff]   ;;  %v16248_v62 = vld [vmem:[%s23805_s3 + $0xc4] ss:$16 sps:$4 sm:$0xff]  }
 0x2dd   : > { %v20176_v41 = vpack.c.bf16 %v5085_v48, %v5083_v3  ;;  %v20180_v5 = vadd.f32 %v3461_v42, %v17949_v11  ;;  %v20188_v32 = vpack.c.bf16 %v5089_v12, %v5087_v44  ;;  %v3938_v46 = vmax.f32 %v20143_v63, 0.0  ;;  %5805 = vmatmul.mubr.bf16.gmra.mrb[0].mxu0 %v19767_v9  ;;  %6610 = vmatprep.subr.bf16.mxu0 %v16248_v62  ;;  %v16251_v3 = vld [vmem:[%s23805_s3 + $0xcc] ss:$16 sps:$4 sm:$0xff]  }
 0x2de   : > { %24227 = vst [vmem:[#allocation34_spill] sm:$0xff] %v20174_v29  ;;  %15638 = vrot.lane.b32.xlu1 %v15637_v38, %s16763_s11  ;;  %v3940_v18 = vmax.f32 %v20146_v26, 0.0  ;;  %v20193_v31 = vadd.f32 %v2870_v52, %v17981_v47  ;;  %v3939_v35 = vmax.f32 %v20149_v21, 0.0  ;;  %v3941_v57 = vmax.f32 %v20154_v7, 0.0  ;;  %13510 = vmatprep.mubr.msk.bf16.mxu0 %vm1913_vm2, %v20174_v29  ;;  %v2878_v44 = vpop.f32.mrb[152].mxu0 }
 0x2df   : > { %24228 = vst [vmem:[#allocation23_spill] sm:$0xff] %v20176_v41  ;;  %24229 = vst [vmem:[#allocation37_spill] sm:$0xff] %v20188_v32  ;;  %v3942_v13 = vmax.f32 %v20157_v43, 0.0  ;;  %v20203_v20 = vadd.f32 %v3463_v49, %v17953_v16  ;;  %v3944_v4 = vmax.f32 %v20161_v37, 0.0  ;;  %v3943_v56 = vmax.f32 %v20164_v61, 0.0  ;;  %6118 = vmatmul.mubr.bf16.gmra.mrb[0].mxu1 %v19767_v9  ;;  %6611 = vmatpush1.bf16.msra.mxu0 %v16246_v10  ;;  %v3471_v12 = vpop.f32.mrb[152].mxu1 }
 0x2e0   : > { %v20217_v42 = vadd.f32 %v2872_v28, %v17970_v45  ;;  %v20220_v52 = vadd.f32 %v3465_v19, %v17949_v11  ;;  %13536 = vmatprep.mubr.msk.bf16.mxu1 %vm1913_vm2, %v20174_v29  ;;  %v2879_v2 = vadd.f32 %v2878_v44, %v17970_v45  ;;  %v2880_v63 = vpop.f32.mrb[153].mxu0  ;;  %6923 = vmatprep.subr.bf16.mxu1 %v16251_v3  ;;  %v3473_v38 = vpop.f32.mrb[153].mxu1 }
 0x2e1   : > { %v20227_v21 = vadd.f32 %v2874_v27, %v17981_v47  ;;  %v3472_v49 = vadd.f32 %v3471_v12, %v17949_v11  ;;  %v2881_v28 = vadd.f32 %v2880_v63, %v17981_v47  ;;  %v2882_v7 = vpop.f32.mrb[154].mxu0  ;;  %6924 = vmatpush1.bf16.msra.mxu1 %v16249_v33  ;;  %v3474_v37 = vadd.f32 %v3473_v38, %v17953_v16  ;;  %v3475_v10 = vpop.f32.mrb[154].mxu1 }
 0x2e2   : > { %v3954_v19 = vmax.f32 %v2879_v2, 0.0  ;;  %v2883_v61 = vadd.f32 %v2882_v7, %v17970_v45  ;;  %v2884_v62 = vpop.f32.mrb[155].mxu0  ;;  %v3476_v27 = vadd.f32 %v3475_v10, %v17949_v11  ;;  %v3477_v26 = vpop.f32.mrb[155].mxu1 }
 0x2e3   : > { %v3956_v3 = vmax.f32 %v3472_v49, 0.0  ;;  %v3955_v44 = vmax.f32 %v2881_v28, 0.0  ;;  %v2885_v12 = vadd.f32 %v2884_v62, %v17981_v47  ;;  %v15524_v63 = vpop.permute.xlu0 %15523  ;;  %v3957_v33 = vmax.f32 %v3474_v37, 0.0 }
 0x2e4   : > { %v20236_v17 = vmax.f32 %v3938_v46, %v3954_v19  ;;  %v3958_v55 = vmax.f32 %v2883_v61, 0.0  ;;  %v3478_v2 = vadd.f32 %v3477_v26, %v17953_v16  ;;  %v15526_v43 = vunpack.i.h.bf16 %v15524_v63 }
 0x2e5   : > { %v15525_v38 = vunpack.i.l.bf16 %v15524_v63  ;;  %v4244_v48 = vmax.f32 %v3940_v18, %v3956_v3  ;;  %v20239_v7 = vmax.f32 %v3939_v35, %v3955_v44  ;;  %5815 = vmatmul.mubr.bf16.gmra.mrb[4].mxu0 %v19828_v54  ;;  %v15529_v49 = vpop.permute.xlu1 %15528  ;;  %v4245_v28 = vmax.f32 %v3941_v57, %v3957_v33 }
 0x2e6   : > { %24230 = vst [vmem:[#allocation31_spill] sm:$0xff] %v20236_v17  ;;  %v20242_v10 = vmax.f32 %v3942_v13, %v3958_v55  ;;  %v3960_v62 = vmax.f32 %v3476_v27, 0.0  ;;  %v3959_v29 = vmax.f32 %v2885_v12, 0.0  ;;  %13511 = vmatprep.mubr.msk.bf16.mxu0 %vm1913_vm2, %v20176_v41  ;;  %v20248_v46 = vadd.f32 %v20172_v60, %v17953_v16  ;;  %v2888_v35 = vpop.f32.mrb[156].mxu0 }
 0x2e7   : > { %v15531_v26 = vunpack.i.h.bf16 %v15529_v49  ;;  %v15530_v19 = vunpack.i.l.bf16 %v15529_v49  ;;  %v3961_v18 = vmax.f32 %v3478_v2, 0.0  ;;  %6128 = vmatmul.mubr.bf16.gmra.mrb[4].mxu1 %v19828_v54  ;;  %v15534_v57 = vpop.permute.xlu0 %15533  ;;  %v15642_v13 = vpack.i.bf16 %v4245_v28, %v4244_v48  ;;  %v3481_v3 = vpop.f32.mrb[156].mxu1  ;;  %v24235_v54 = vld [vmem:[#allocation39_spill] sm:$0xff] }
 0x2e8   : > { %24231 = vst [vmem:[#allocation35_spill] sm:$0xff] %v20242_v10  ;;  %v4248_v55 = vmax.f32 %v3944_v4, %v3960_v62  ;;  %v20252_v61 = vmax.f32 %v3943_v56, %v3959_v29  ;;  %13537 = vmatprep.mubr.msk.bf16.mxu1 %vm1913_vm2, %v20176_v41  ;;  %v15536_v44 = vunpack.i.h.bf16 %v15534_v57  ;;  %v15535_v27 = vunpack.i.l.bf16 %v15534_v57  ;;  %v2890_v33 = vpop.f32.mrb[157].mxu0  ;;  %v3483_v2 = vpop.f32.mrb[157].mxu1  ;;  %v24233_v62 = vld [vmem:[#allocation19_spill] sm:$0xff] }
 0x2e9   : > { %v4869_v60 = vsel %vm1631_vm0, %v15530_v19, %v15531_v26  ;;  %v24232_v12 = vmax.f32 %v20167_v24, 0.0  ;;  %v4867_v48 = vsel %vm1631_vm0, %v15525_v38, %v15526_v43  ;;  %v15539_v4 = vpop.permute.xlu1 %15538  ;;  %v2889_v29 = vadd.f32 %v2888_v35, %v17970_v45  ;;  %v2892_v28 = vpop.f32.mrb[158].mxu0  ;;  %15643 = vrot.lane.b32.xlu0 %v15642_v13, %s16763_s11  ;;  %v24234_v43 = vld [vmem:[#allocation22_spill] sm:$0xff]  ;;  %v24244_v49 = vld [vmem:[#allocation55_spill] sm:$0xff] }
 0x2ea   : > { %v3482_v56 = vadd.f32 %v3481_v3, %v17949_v11  ;;  %v5093_v26 = vmax.f32 %v24233_v62, %v4869_v60  ;;  %v4868_v57 = vsel %vm1631_vm0, %v15536_v44, %v15530_v19  ;;  %v4866_v24 = vsel %vm1631_vm0, %v15535_v27, %v15525_v38  ;;  %v2894_v37 = vpop.f32.mrb[159].mxu0 }
 0x2eb   : > { %v4249_v63 = vmax.f32 %v24232_v12, %v3961_v18  ;;  %v3485_v12 = vpop.f32.mrb[158].mxu1  ;;  %v5092_v41 = vmax.f32 %v24234_v43, %v4868_v57  ;;  %v5090_v35 = vmax.f32 %v24235_v54, %v4866_v24  ;;  %v15652_v3 = vpack.i.bf16 %v20252_v61, %v20239_v7  ;;  %v15544_v9 = vpop.permute.xlu0 %15543 }
 0x2ec   : > { %v3487_v13 = vpop.f32.mrb[159].mxu1  ;;  %v5091_v60 = vmax.f32 %v24236_v59, %v4867_v48  ;;  %v15546_v62 = vunpack.i.h.bf16 %v15544_v9  ;;  %v3962_v19 = vmax.f32 %v2889_v29, 0.0  ;;  %v3964_v44 = vmax.f32 %v3482_v56, 0.0 }
 0x2ed   : > { %v15647_v18 = vpack.i.bf16 %v4249_v63, %v4248_v55  ;;  %5825 = vmatmul.mubr.bf16.gmra.mrb[8].mxu0 %v20033_v25  ;;  %v20275_v38 = vpack.c.bf16 %v5092_v41, %v5090_v35  ;;  %v15545_v55 = vunpack.i.l.bf16 %v15544_v9  ;;  %v15549_v27 = vpop.permute.xlu1 %15548  ;;  %v2891_v54 = vadd.f32 %v2890_v33, %v17981_v47  ;;  %15653 = vrot.lane.b32.xlu0 %v15652_v3, %s16763_s11 }
 0x2ee   : > { %v3484_v63 = vadd.f32 %v3483_v2, %v17953_v16  ;;  %v20280_v57 = vpack.c.bf16 %v5093_v26, %v5091_v60  ;;  %v15541_v59 = vunpack.i.h.bf16 %v15539_v4  ;;  %v24239_v48 = vmax.f32 %v20170_v40, 0.0  ;;  %v2898_v9 = vpop.f32.mrb[160].mxu0  ;;  %13512 = vmatprep.mubr.msk.bf16.mxu0 %vm1913_vm2, %v20188_v32 }
 0x2ef   : > { %15648 = vrot.lane.b32.xlu1 %v15647_v18, %s16763_s11  ;;  %24237 = vst [vmem:[#allocation47_spill] sm:$0xff] %v20275_v38  ;;  %v24241_v56 = vmax.f32 %v20180_v5, 0.0  ;;  %6138 = vmatmul.mubr.bf16.gmra.mrb[8].mxu1 %v20033_v25  ;;  %v15540_v41 = vunpack.i.l.bf16 %v15539_v4  ;;  %v15551_v18 = vunpack.i.h.bf16 %v15549_v27  ;;  %v15550_v33 = vunpack.i.l.bf16 %v15549_v27  ;;  %v3491_v2 = vpop.f32.mrb[160].mxu1  ;;  %v2900_v40 = vpop.f32.mrb[161].mxu0 }
 0x2f0   : > { %24238 = vst [vmem:[#allocation43_spill] sm:$0xff] %v20280_v57  ;;  %v20284_v29 = vmax.f32 %v24239_v48, %v3962_v19  ;;  %v3963_v43 = vmax.f32 %v2891_v54, 0.0  ;;  %13538 = vmatprep.mubr.msk.bf16.mxu1 %vm1913_vm2, %v20188_v32  ;;  %v3965_v26 = vmax.f32 %v3484_v63, 0.0  ;;  %v2893_v35 = vadd.f32 %v2892_v28, %v17970_v45  ;;  %v3493_v60 = vpop.f32.mrb[161].mxu1  ;;  %v2902_v4 = vpop.f32.mrb[162].mxu0  ;;  %v24245_v32 = vld [vmem:[#allocation56_spill] sm:$0xff] }
 0x2f1   : > { %v4252_v24 = vmax.f32 %v24241_v56, %v3964_v44  ;;  %v3486_v5 = vadd.f32 %v3485_v12, %v17949_v11  ;;  %v2895_v3 = vadd.f32 %v2894_v37, %v17981_v47  ;;  %v4873_v19 = vsel %vm1631_vm0, %v15545_v55, %v15546_v62  ;;  %v3495_v56 = vpop.f32.mrb[162].mxu1  ;;  %v2904_v63 = vpop.f32.mrb[163].mxu0 }
 0x2f2   : > { %24240 = vst [vmem:[#allocation16_spill] sm:$0xff] %v20284_v29  ;;  %v4870_v44 = vsel %vm1631_vm0, %v15550_v33, %v15540_v41  ;;  %v4872_v27 = vsel %vm1631_vm0, %v15551_v18, %v15545_v55  ;;  %v24242_v54 = vmax.f32 %v20193_v31, 0.0  ;;  %v24246_v37 = vmax.f32 %v20203_v20, 0.0  ;;  %v3497_v29 = vpop.f32.mrb[163].mxu1  ;;  %v16254_v31 = vld [vmem:[%s23805_s3 + $0xe4] ss:$16 sps:$4 sm:$0xff]  }
 0x2f3   : > { %v5094_v28 = vmax.f32 %v24244_v49, %v4870_v44  ;;  %v5096_v12 = vmax.f32 %v24245_v32, %v4872_v27  ;;  %v3966_v50 = vmax.f32 %v2893_v35, 0.0  ;;  %v4871_v62 = vsel %vm1631_vm0, %v15540_v41, %v15541_v59  ;;  %v16252_v59 = vld [vmem:[%s23805_s3 + $0xe0] ss:$16 sps:$4 sm:$0xff]   ;;  %6612 = vmatprep.subr.bf16.mxu0 %v16254_v31 }
 0x2f4   : > { %v20301_v48 = vmax.f32 %v24242_v54, %v3963_v43  ;;  %v4253_v25 = vmax.f32 %v24246_v37, %v3965_v26  ;;  %v3968_v33 = vmax.f32 %v3486_v5, 0.0  ;;  %v3967_v17 = vmax.f32 %v2895_v3, 0.0  ;;  %v24250_v41 = vld [vmem:[#allocation52_spill] sm:$0xff]  ;;  %v24254_v5 = vld [vmem:[#allocation26_spill] sm:$0xff]  ;;  %6613 = vmatpush1.bf16.msra.mxu0 %v16252_v59 }
 0x2f5   : > { %v3488_v55 = vadd.f32 %v3487_v13, %v17953_v16  ;;  %v3953_v18 = vmax.f32 %v20248_v46, 0.0  ;;  %v20313_v49 = vpack.c.bf16 %v5096_v12, %v5094_v28  ;;  %v24248_v20 = vmax.f32 %v20217_v42, 0.0  ;;  %5835 = vmatmul.mubr.bf16.gmra.mrb[12].mxu0 %v20091_v8  ;;  %v16257_v13 = vld [vmem:[%s23805_s3 + $0xec] ss:$16 sps:$4 sm:$0xff]   ;;  %v16258_v59 = vld [vmem:[%s23805_s3 + $0x100] ss:$16 sps:$4 sm:$0xff]  }
 0x2f6   : > { %24243 = vst [vmem:[#allocation41_spill] sm:$0xff] %v20301_v48  ;;  %v15657_v32 = vpack.i.bf16 %v4253_v25, %v4252_v24  ;;  %v5097_v26 = vmax.f32 %v24250_v41, %v4873_v19  ;;  %v24251_v46 = vmax.f32 %v20220_v52, 0.0  ;;  %v24252_v25 = vmax.f32 %v20227_v21, 0.0  ;;  %13513 = vmatprep.mubr.msk.bf16.mxu0 %vm1913_vm2, %v20280_v57  ;;  %v16255_v24 = vld [vmem:[%s23805_s3 + $0xe8] ss:$16 sps:$4 sm:$0xff]   ;;  %6925 = vmatprep.subr.bf16.mxu1 %v16257_v13 }
 0x2f7   : > { %24247 = vst [vmem:[#allocation49_spill] sm:$0xff] %v20313_v49  ;;  %v20317_v43 = vmax.f32 %v24248_v20, %v3966_v50  ;;  %v3969_v50 = vmax.f32 %v3488_v55, 0.0  ;;  %v5095_v3 = vmax.f32 %v24254_v5, %v4871_v62  ;;  %v20340_v19 = vadd.f32 %v2898_v9, %v17970_v45  ;;  %6148 = vmatmul.mubr.bf16.gmra.mrb[12].mxu1 %v20091_v8  ;;  %v3501_v9 = vpop.f32.mrb[164].mxu1  ;;  %v16260_v13 = vld [vmem:[%s23805_s3 + $0x104] ss:$16 sps:$4 sm:$0xff]  }
 0x2f8   : > { %v4256_v35 = vmax.f32 %v24251_v46, %v3968_v33  ;;  %v20331_v42 = vmax.f32 %v24252_v25, %v3967_v17  ;;  %v20343_v52 = vadd.f32 %v3491_v2, %v17949_v11  ;;  %15658 = vrot.lane.b32.xlu1 %v15657_v32, %s16763_s11  ;;  %v2908_v17 = vpop.f32.mrb[164].mxu0  ;;  %v20348_v44 = vadd.f32 %v2900_v40, %v17981_v47  ;;  %v3503_v37 = vpop.f32.mrb[165].mxu1  ;;  %v16261_v25 = vld [vmem:[%s23805_s3 + $0x108] ss:$16 sps:$4 sm:$0xff]  }
 0x2f9   : > { %24249 = vst [vmem:[#allocation51_spill] sm:$0xff] %v20317_v43  ;;  %v4257_v21 = vmax.f32 %v3953_v18, %v3969_v50  ;;  %v20351_v27 = vadd.f32 %v3493_v60, %v17953_v16  ;;  %v20354_v54 = vadd.f32 %v2902_v4, %v17970_v45  ;;  %13539 = vmatprep.mubr.msk.bf16.mxu1 %vm1913_vm2, %v20280_v57  ;;  %v2910_v2 = vpop.f32.mrb[165].mxu0  ;;  %v3505_v31 = vpop.f32.mrb[166].mxu1  ;;  %v16263_v50 = vld [vmem:[%s23805_s3 + $0x10c] ss:$16 sps:$4 sm:$0xff]   ;;  %v24257_v57 = vld [vmem:[#allocation48_spill] sm:$0xff] }
 0x2fa   : > { %24253 = vst [vmem:[#allocation7_spill] sm:$0xff] %v20331_v42  ;;  %v15667_v28 = vpack.i.bf16 %v20331_v42, %v20301_v48  ;;  %v20361_v12 = vadd.f32 %v3495_v56, %v17949_v11  ;;  %v20364_v40 = vadd.f32 %v2904_v63, %v17981_v47  ;;  %v2912_v60 = vpop.f32.mrb[166].mxu0  ;;  %v20366_v4 = vpack.c.bf16 %v5097_v26, %v5095_v3 }
 0x2fb   : > { %v15662_v62 = vpack.i.bf16 %v4257_v21, %v4256_v35  ;;  %v20369_v33 = vadd.f32 %v3497_v29, %v17953_v16  ;;  %v20372_v55 = vadd.f32 %v2908_v17, %v17970_v45  ;;  %v2914_v18 = vpop.f32.mrb[167].mxu0  ;;  %6926 = vmatpush1.bf16.msra.mxu1 %v16255_v24  ;;  %v3970_v56 = vmax.f32 %v20340_v19, 0.0  ;;  %v3507_v29 = vpop.f32.mrb[167].mxu1  ;;  %6614 = vmatprep.subr.bf16.mxu0 %v16260_v13 }
 0x2fc   : > { %24255 = vst [vmem:[#allocation29_spill] sm:$0xff] %v20366_v4  ;;  %15668 = vrot.lane.b32.xlu1 %v15667_v28, %s16763_s11  ;;  %v20377_v63 = vadd.f32 %v3501_v9, %v17949_v11  ;;  %v20380_v32 = vadd.f32 %v2910_v2, %v17981_v47  ;;  %v20383_v20 = vadd.f32 %v3503_v37, %v17953_v16  ;;  %v3972_v41 = vmax.f32 %v20343_v52, 0.0  ;;  %v20410_v52 = vpop.permute.xlu0 %15553 }
 0x2fd   : > { %15663 = vrot.lane.b32.xlu0 %v15662_v62, %s16763_s11  ;;  %v20395_v46 = vadd.f32 %v2912_v60, %v17970_v45  ;;  %v20398_v35 = vadd.f32 %v3505_v31, %v17949_v11  ;;  %v3973_v24 = vmax.f32 %v20351_v27, 0.0  ;;  %v3974_v5 = vmax.f32 %v20354_v54, 0.0  ;;  %5845 = vmatmul.mubr.bf16.gmra.mrb[16].mxu0 %v20275_v38  ;;  %v24256_v62 = vld [vmem:[#allocation8_spill] sm:$0xff] }
 0x2fe   : > { %v3976_v3 = vmax.f32 %v20361_v12, 0.0  ;;  %v20416_v9 = vadd.f32 %v2914_v18, %v17981_v47  ;;  %v15556_v27 = vunpack.i.h.bf16 %v20410_v52  ;;  %13514 = vmatprep.mubr.msk.bf16.mxu0 %vm1913_vm2, %v20366_v4  ;;  %6615 = vmatpush1.bf16.msra.mxu0 %v16258_v59  ;;  %v15555_v12 = vunpack.i.l.bf16 %v20410_v52  ;;  %v2918_v37 = vpop.f32.mrb[168].mxu0 }
 0x2ff   : > { %6158 = vmatmul.mubr.bf16.gmra.mrb[16].mxu1 %v20275_v38  ;;  %6927 = vmatprep.subr.bf16.mxu1 %v16263_v50  ;;  %v20429_v31 = vadd.f32 %v3507_v29, %v17953_v16  ;;  %v2919_v59 = vadd.f32 %v2918_v37, %v17970_v45  ;;  %v3511_v13 = vpop.f32.mrb[168].mxu1  ;;  %v2920_v60 = vpop.f32.mrb[169].mxu0 }
 0x300   : > { %13540 = vmatprep.mubr.msk.bf16.mxu1 %vm1913_vm2, %v20366_v4  ;;  %6928 = vmatpush1.bf16.msra.mxu1 %v16261_v25  ;;  %v4875_v52 = vsel %vm1631_vm0, %v15555_v12, %v15556_v27  ;;  %v3512_v50 = vadd.f32 %v3511_v13, %v17949_v11  ;;  %v3513_v54 = vpop.f32.mrb[169].mxu1  ;;  %v2921_v17 = vadd.f32 %v2920_v60, %v17981_v47  ;;  %v2922_v26 = vpop.f32.mrb[170].mxu0 }
 0x301   : > { %v15559_v18 = vpop.permute.xlu1 %15558  ;;  %v5099_v21 = vmax.f32 %v24256_v62, %v4875_v52  ;;  %v3986_v29 = vmax.f32 %v2919_v59, 0.0  ;;  %v3514_v19 = vadd.f32 %v3513_v54, %v17953_v16  ;;  %v3515_v4 = vpop.f32.mrb[170].mxu1  ;;  %v2923_v27 = vadd.f32 %v2922_v26, %v17970_v45 }
 0x302   : > { %v15561_v28 = vunpack.i.h.bf16 %v15559_v18  ;;  %v15560_v2 = vunpack.i.l.bf16 %v15559_v18  ;;  %v3988_v25 = vmax.f32 %v3512_v50, 0.0  ;;  %v3516_v18 = vadd.f32 %v3515_v4, %v17949_v11  ;;  %v2924_v38 = vpop.f32.mrb[171].mxu0  ;;  %v3517_v13 = vpop.f32.mrb[171].mxu1 }
 0x303   : > { %v20443_v43 = vmax.f32 %v3970_v56, %v3986_v29  ;;  %v3987_v62 = vmax.f32 %v2921_v17, 0.0  ;;  %v3989_v59 = vmax.f32 %v3514_v19, 0.0  ;;  %v3990_v54 = vmax.f32 %v2923_v27, 0.0 }
 0x304   : > { %v4877_v37 = vsel %vm1631_vm0, %v15560_v2, %v15561_v28  ;;  %v4260_v60 = vmax.f32 %v3972_v41, %v3988_v25  ;;  %v3992_v42 = vmax.f32 %v3516_v18, 0.0  ;;  %v2925_v48 = vadd.f32 %v2924_v38, %v17981_v47 }
 0x305   : > { %v5101_v8 = vmax.f32 %v24257_v57, %v4877_v37  ;;  %24258 = vst [vmem:[#allocation12_spill] sm:$0xff] %v20443_v43  ;;  %v15564_v52 = vpop.permute.xlu0 %15563  ;;  %5855 = vmatmul.mubr.bf16.gmra.mrb[20].mxu0 %v20313_v49  ;;  %v24260_v50 = vmax.f32 %v20348_v44, 0.0  ;;  %v4261_v57 = vmax.f32 %v3973_v24, %v3989_v59  ;;  %v20453_v56 = vmax.f32 %v3974_v5, %v3990_v54  ;;  %v24262_v5 = vld [vmem:[#allocation27_spill] sm:$0xff] }
 0x306   : > { %v15566_v26 = vunpack.i.h.bf16 %v15564_v52  ;;  %v15565_v4 = vunpack.i.l.bf16 %v15564_v52  ;;  %v4264_v19 = vmax.f32 %v3976_v3, %v3992_v42  ;;  %v3991_v41 = vmax.f32 %v2925_v48, 0.0  ;;  %v2928_v29 = vpop.f32.mrb[172].mxu0  ;;  %v24261_v48 = vld [vmem:[#allocation46_spill] sm:$0xff] }
 0x307   : > { %v20447_v28 = vpack.c.bf16 %v5101_v8, %v5099_v21  ;;  %v20451_v10 = vmax.f32 %v24260_v50, %v3987_v62  ;;  %v15569_v17 = vpop.permute.xlu1 %15568  ;;  %6168 = vmatmul.mubr.bf16.gmra.mrb[20].mxu1 %v20313_v49  ;;  %v3518_v21 = vadd.f32 %v3517_v13, %v17953_v16  ;;  %v3521_v44 = vpop.f32.mrb[172].mxu1  ;;  %v15672_v25 = vpack.i.bf16 %v4261_v57, %v4260_v60 }
 0x308   : > { %v4876_v38 = vsel %vm1631_vm0, %v15566_v26, %v15560_v2  ;;  %v4874_v8 = vsel %vm1631_vm0, %v15565_v4, %v15555_v12  ;;  %v15571_v37 = vunpack.i.h.bf16 %v15569_v17  ;;  %v2930_v42 = vpop.f32.mrb[173].mxu0  ;;  %v24263_v2 = vmax.f32 %v20364_v40, 0.0  ;;  %v3523_v12 = vpop.f32.mrb[173].mxu1 }
 0x309   : > { %24259 = vst [vmem:[#allocation17_spill] sm:$0xff] %v20447_v28  ;;  %13515 = vmatprep.mubr.msk.bf16.mxu0 %vm1913_vm2, %v20447_v28  ;;  %13541 = vmatprep.mubr.msk.bf16.mxu1 %vm1913_vm2, %v20447_v28  ;;  %v5100_v24 = vmax.f32 %v24261_v48, %v4876_v38  ;;  %v5098_v3 = vmax.f32 %v24262_v5, %v4874_v8  ;;  %v2932_v18 = vpop.f32.mrb[174].mxu0  ;;  %v3993_v13 = vmax.f32 %v3518_v21, 0.0  ;;  %v15570_v62 = vunpack.i.l.bf16 %v15569_v17  ;;  %v3525_v26 = vpop.f32.mrb[174].mxu1  ;;  %v24266_v48 = vld [vmem:[#allocation30_spill] sm:$0xff]  ;;  %v24267_v28 = vld [vmem:[#allocation13_spill] sm:$0xff] }
 0x30a   : > { %v20467_v27 = vmax.f32 %v24263_v2, %v3991_v41  ;;  %v2929_v52 = vadd.f32 %v2928_v29, %v17970_v45  ;;  %v3522_v54 = vadd.f32 %v3521_v44, %v17949_v11  ;;  %15673 = vrot.lane.b32.xlu0 %v15672_v25, %s16763_s11  ;;  %v2934_v41 = vpop.f32.mrb[175].mxu0  ;;  %v24265_v38 = vmax.f32 %v20369_v33, 0.0  ;;  %v3527_v44 = vpop.f32.mrb[175].mxu1 }
 0x30b   : > { %v15574_v59 = vpop.permute.xlu0 %15573  ;;  %v20471_v4 = vpack.c.bf16 %v5100_v24, %v5098_v3  ;;  %v4879_v8 = vsel %vm1631_vm0, %v15570_v62, %v15571_v37  ;;  %v24268_v49 = vmax.f32 %v20372_v55, 0.0  ;;  %v24270_v37 = vmax.f32 %v20377_v63, 0.0 }
 0x30c   : > { %v15682_v50 = vpack.i.bf16 %v20467_v27, %v20451_v10  ;;  %v15576_v60 = vunpack.i.h.bf16 %v15574_v59  ;;  %v15575_v57 = vunpack.i.l.bf16 %v15574_v59  ;;  %v15579_v40 = vpop.permute.xlu1 %15578  ;;  %v4265_v17 = vmax.f32 %v24265_v38, %v3993_v13 }
 0x30d   : > { %24264 = vst [vmem:[#allocation19_spill] sm:$0xff] %v20471_v4  ;;  %v3994_v29 = vmax.f32 %v2929_v52, 0.0  ;;  %v3996_v21 = vmax.f32 %v3522_v54, 0.0  ;;  %v5103_v24 = vmax.f32 %v24266_v48, %v4879_v8  ;;  %v15581_v3 = vunpack.i.h.bf16 %v15579_v40  ;;  %5865 = vmatmul.mubr.bf16.gmra.mrb[24].mxu0 %v20471_v4 }
 0x30e   : > { %v4881_v5 = vsel %vm1631_vm0, %v15575_v57, %v15576_v60  ;;  %v15580_v2 = vunpack.i.l.bf16 %v15579_v40  ;;  %v15677_v59 = vpack.i.bf16 %v4265_v17, %v4264_v19  ;;  %v2931_v60 = vadd.f32 %v2930_v42, %v17981_v47  ;;  %v2938_v19 = vpop.f32.mrb[176].mxu0  ;;  %15683 = vrot.lane.b32.xlu0 %v15682_v50, %s16763_s11  ;;  %v16264_v50 = vld [vmem:[%s23805_s3 + $0x120] ss:$16 sps:$4 sm:$0xff]  }
 0x30f   : > { %v5105_v25 = vmax.f32 %v24267_v28, %v4881_v5  ;;  %v20485_v33 = vmax.f32 %v24268_v49, %v3994_v29  ;;  %v4268_v13 = vmax.f32 %v24270_v37, %v3996_v21  ;;  %v4880_v54 = vsel %vm1631_vm0, %v15581_v3, %v15575_v57  ;;  %6178 = vmatmul.mubr.bf16.gmra.mrb[24].mxu1 %v20471_v4  ;;  %v24272_v28 = vld [vmem:[#allocation54_spill] sm:$0xff]  ;;  %v24273_v49 = vld [vmem:[#allocation11_spill] sm:$0xff]  ;;  %v2940_v8 = vpop.f32.mrb[177].mxu0 }
 0x310   : > { %v4878_v52 = vsel %vm1631_vm0, %v15580_v2, %v15570_v62  ;;  %v3524_v40 = vadd.f32 %v3523_v12, %v17953_v16  ;;  %v5104_v17 = vmax.f32 %v24273_v49, %v4880_v54  ;;  %v2933_v63 = vadd.f32 %v2932_v18, %v17970_v45  ;;  %15678 = vrot.lane.b32.xlu1 %v15677_v59, %s16763_s11  ;;  %v3531_v62 = vpop.f32.mrb[176].mxu1  ;;  %v2942_v48 = vpop.f32.mrb[178].mxu0  ;;  %v16266_v54 = vld [vmem:[%s23805_s3 + $0x124] ss:$16 sps:$4 sm:$0xff]  }
 0x311   : > { %24269 = vst [vmem:[#allocation22_spill] sm:$0xff] %v20485_v33  ;;  %v20494_v38 = vpack.c.bf16 %v5105_v25, %v5103_v24  ;;  %v5102_v55 = vmax.f32 %v24272_v28, %v4878_v52  ;;  %v3995_v57 = vmax.f32 %v2931_v60, 0.0  ;;  %v3526_v42 = vadd.f32 %v3525_v26, %v17949_v11  ;;  %v3533_v21 = vpop.f32.mrb[177].mxu1  ;;  %v2944_v2 = vpop.f32.mrb[179].mxu0  ;;  %6616 = vmatprep.subr.bf16.mxu0 %v16266_v54 }
 0x312   : > { %v3997_v29 = vmax.f32 %v3524_v40, 0.0  ;;  %v2935_v12 = vadd.f32 %v2934_v41, %v17981_v47  ;;  %v3983_v24 = vmax.f32 %v20416_v9, 0.0  ;;  %v3998_v3 = vmax.f32 %v2933_v63, 0.0  ;;  %v3535_v26 = vpop.f32.mrb[178].mxu1  ;;  %6617 = vmatpush1.bf16.msra.mxu0 %v16264_v50 }
 0x313   : > { %24271 = vst [vmem:[#allocation39_spill] sm:$0xff] %v20494_v38  ;;  %v20504_v5 = vpack.c.bf16 %v5104_v17, %v5102_v55  ;;  %v3528_v18 = vadd.f32 %v3527_v44, %v17953_v16  ;;  %13516 = vmatprep.mubr.msk.bf16.mxu0 %vm1913_vm2, %v20494_v38  ;;  %13542 = vmatprep.mubr.msk.bf16.mxu1 %vm1913_vm2, %v20494_v38  ;;  %v24275_v41 = vmax.f32 %v20380_v32, 0.0  ;;  %v24277_v59 = vmax.f32 %v20383_v20, 0.0  ;;  %v3537_v52 = vpop.f32.mrb[179].mxu1  ;;  %v16267_v32 = vld [vmem:[%s23805_s3 + $0x128] ss:$16 sps:$4 sm:$0xff]  }
 0x314   : > { %v4000_v44 = vmax.f32 %v3526_v42, 0.0  ;;  %v3999_v37 = vmax.f32 %v2935_v12, 0.0  ;;  %v3985_v60 = vmax.f32 %v20429_v31, 0.0  ;;  %v24278_v40 = vmax.f32 %v20395_v46, 0.0  ;;  %v16269_v20 = vld [vmem:[%s23805_s3 + $0x12c] ss:$16 sps:$4 sm:$0xff]  }
 0x315   : > { %24274 = vst [vmem:[#allocation40_spill] sm:$0xff] %v20504_v5  ;;  %v20516_v9 = vmax.f32 %v24275_v41, %v3995_v57  ;;  %v4269_v25 = vmax.f32 %v24277_v59, %v3997_v29  ;;  %v4001_v55 = vmax.f32 %v3528_v18, 0.0  ;;  %v24280_v17 = vmax.f32 %v20398_v35, 0.0  ;;  %5875 = vmatmul.mubr.bf16.gmra.mrb[28].mxu0 %v20504_v5  ;;  %v16272_v46 = vld [vmem:[%s23805_s3 + $0x144] ss:$16 sps:$4 sm:$0xff]   ;;  %6929 = vmatprep.subr.bf16.mxu1 %v16269_v20 }
 0x316   : > { %v20526_v28 = vmax.f32 %v24278_v40, %v3998_v3  ;;  %v20536_v57 = vmax.f32 %v3983_v24, %v3999_v37  ;;  %v20543_v29 = vadd.f32 %v2938_v19, %v17970_v45  ;;  %v20549_v35 = vadd.f32 %v3531_v62, %v17949_v11  ;;  %v2948_v19 = vpop.f32.mrb[180].mxu0  ;;  %6930 = vmatpush1.bf16.msra.mxu1 %v16267_v32 }
 0x317   : > { %24276 = vst [vmem:[#allocation55_spill] sm:$0xff] %v20516_v9  ;;  %v15687_v49 = vpack.i.bf16 %v4269_v25, %v4268_v13  ;;  %v4272_v63 = vmax.f32 %v24280_v17, %v4000_v44  ;;  %v4273_v31 = vmax.f32 %v3985_v60, %v4001_v55  ;;  %v16275_v13 = vld [vmem:[%s23805_s3 + $0x14c] ss:$16 sps:$4 sm:$0xff]   ;;  %v20552_v42 = vadd.f32 %v2940_v8, %v17981_v47  ;;  %v3541_v62 = vpop.f32.mrb[180].mxu1  ;;  %v2950_v41 = vpop.f32.mrb[181].mxu0 }
 0x318   : > { %24279 = vst [vmem:[#allocation56_spill] sm:$0xff] %v20526_v28  ;;  %24281 = vst [vmem:[#allocation52_spill] sm:$0xff] %v20536_v57  ;;  %v20555_v12 = vadd.f32 %v3533_v21, %v17953_v16  ;;  %6188 = vmatmul.mubr.bf16.gmra.mrb[28].mxu1 %v20504_v5  ;;  %v15697_v24 = vpack.i.bf16 %v20536_v57, %v20516_v9  ;;  %v20562_v18 = vadd.f32 %v2942_v48, %v17970_v45  ;;  %v16270_v8 = vld [vmem:[%s23805_s3 + $0x140] ss:$16 sps:$4 sm:$0xff]   ;;  %v16273_v21 = vld [vmem:[%s23805_s3 + $0x148] ss:$16 sps:$4 sm:$0xff]  }
 0x319   : > { %15688 = vrot.lane.b32.xlu1 %v15687_v49, %s16763_s11  ;;  %v15692_v3 = vpack.i.bf16 %v4273_v31, %v4272_v63  ;;  %v20571_v59 = vadd.f32 %v3535_v26, %v17949_v11  ;;  %v20574_v25 = vadd.f32 %v2944_v2, %v17981_v47  ;;  %v20577_v48 = vadd.f32 %v3537_v52, %v17953_v16  ;;  %v3543_v44 = vpop.f32.mrb[181].mxu1  ;;  %v2952_v50 = vpop.f32.mrb[182].mxu0 }
 0x31a   : > { %6618 = vmatprep.subr.bf16.mxu0 %v16272_v46  ;;  %6931 = vmatprep.subr.bf16.mxu1 %v16275_v13  ;;  %v20581_v37 = vadd.f32 %v2948_v19, %v17970_v45  ;;  %v20584_v54 = vadd.f32 %v3541_v62, %v17949_v11  ;;  %v3545_v26 = vpop.f32.mrb[182].mxu1  ;;  %v2954_v60 = vpop.f32.mrb[183].mxu0  ;;  %v4002_v2 = vmax.f32 %v20543_v29, 0.0  ;;  %v20589_v52 = vadd.f32 %v2950_v41, %v17981_v47 }
 0x31b   : > { %15693 = vrot.lane.b32.xlu0 %v15692_v3, %s16763_s11  ;;  %v20592_v40 = vadd.f32 %v3543_v44, %v17953_v16  ;;  %v20595_v55 = vadd.f32 %v2952_v50, %v17970_v45  ;;  %v3547_v32 = vpop.f32.mrb[183].mxu1  ;;  %v4004_v20 = vmax.f32 %v20549_v35, 0.0  ;;  %v4003_v49 = vmax.f32 %v20552_v42, 0.0  ;;  %6619 = vmatpush1.bf16.msra.mxu0 %v16270_v8 }
 0x31c   : > { %v4005_v17 = vmax.f32 %v20555_v12, 0.0  ;;  %v20601_v63 = vadd.f32 %v3545_v26, %v17949_v11  ;;  %6932 = vmatpush1.bf16.msra.mxu1 %v16273_v21  ;;  %v4006_v46 = vmax.f32 %v20562_v18, 0.0  ;;  %v20613_v18 = vadd.f32 %v2954_v60, %v17981_v47 }
 0x31d   : > { %15698 = vrot.lane.b32.xlu1 %v15697_v24, %s16763_s11  ;;  %v15584_v19 = vpop.permute.xlu0 %15583  ;;  %v20617_v44 = vadd.f32 %v3547_v32, %v17953_v16 }
 0x31e   : > { %v15586_v24 = vunpack.i.h.bf16 %v15584_v19  ;;  %v15585_v12 = vunpack.i.l.bf16 %v15584_v19  ;;  %v2958_v8 = vpop.f32.mrb[184].mxu0 }
 0x31f   : > { %v2959_v19 = vadd.f32 %v2958_v8, %v17970_v45  ;;  %v3551_v42 = vpop.f32.mrb[184].mxu1  ;;  %v2960_v13 = vpop.f32.mrb[185].mxu0 }
 0x320   : > { %v4883_v50 = vsel %vm1631_vm0, %v15585_v12, %v15586_v24  ;;  %v15589_v26 = vpop.permute.xlu1 %15588  ;;  %v3552_v41 = vadd.f32 %v3551_v42, %v17949_v11  ;;  %v2961_v32 = vadd.f32 %v2960_v13, %v17981_v47  ;;  %v3553_v5 = vpop.f32.mrb[185].mxu1 }
 0x321   : > { %v5107_v3 = vmax.f32 %v19751_v58, %v4883_v50  ;;  %v15591_v62 = vunpack.i.h.bf16 %v15589_v26  ;;  %v15590_v35 = vunpack.i.l.bf16 %v15589_v26  ;;  %v15594_v60 = vpop.permute.xlu0 %15593  ;;  %v4018_v29 = vmax.f32 %v2959_v19, 0.0  ;;  %v2962_v38 = vpop.f32.mrb[186].mxu0 }
 0x322   : > { %v15596_v31 = vunpack.i.h.bf16 %v15594_v60  ;;  %v15595_v21 = vunpack.i.l.bf16 %v15594_v60  ;;  %v4020_v4 = vmax.f32 %v3552_v41, 0.0  ;;  %v3554_v8 = vadd.f32 %v3553_v5, %v17953_v16  ;;  %v3555_v50 = vpop.f32.mrb[186].mxu1  ;;  %v2964_v26 = vpop.f32.mrb[187].mxu0 }
 0x323   : > { %v4885_v24 = vsel %vm1631_vm0, %v15590_v35, %v15591_v62  ;;  %v2963_v58 = vadd.f32 %v2962_v38, %v17970_v45  ;;  %v20628_v28 = vmax.f32 %v4002_v2, %v4018_v29  ;;  %v3557_v13 = vpop.f32.mrb[187].mxu1  ;;  %v4019_v41 = vmax.f32 %v2961_v32, 0.0 }
 0x324   : > { %v5109_v42 = vmax.f32 %v19786_v22, %v4885_v24  ;;  %v4884_v19 = vsel %vm1631_vm0, %v15596_v31, %v15590_v35  ;;  %v4882_v60 = vsel %vm1631_vm0, %v15595_v21, %v15585_v12  ;;  %v4276_v33 = vmax.f32 %v4004_v20, %v4020_v4 }
 0x325   : > { %v5108_v57 = vmax.f32 %v19773_v36, %v4884_v19  ;;  %v5106_v62 = vmax.f32 %v19742_v1, %v4882_v60  ;;  %v4021_v38 = vmax.f32 %v3554_v8, 0.0  ;;  %v4022_v9 = vmax.f32 %v2963_v58, 0.0 }
 0x326   : > { %v20634_v5 = vpack.c.bf16 %v5109_v42, %v5107_v3  ;;  %v3556_v43 = vadd.f32 %v3555_v50, %v17949_v11  ;;  %v20639_v2 = vmax.f32 %v4003_v49, %v4019_v41  ;;  %v2965_v31 = vadd.f32 %v2964_v26, %v17981_v47  ;;  %v2968_v4 = vpop.f32.mrb[188].mxu0 }
 0x327   : > { %v20637_v22 = vpack.c.bf16 %v5108_v57, %v5106_v62  ;;  %v3558_v29 = vadd.f32 %v3557_v13, %v17953_v16  ;;  %v4277_v20 = vmax.f32 %v4005_v17, %v4021_v38  ;;  %v20643_v36 = vmax.f32 %v4006_v46, %v4022_v9  ;;  %v3561_v49 = vpop.f32.mrb[188].mxu1  ;;  %v2970_v9 = vpop.f32.mrb[189].mxu0 }
 0x328   : > { %24282 = vst [vmem:[#allocation26_spill] sm:$0xff] %v20634_v5  ;;  %v4024_v1 = vmax.f32 %v3556_v43, 0.0  ;;  %13517 = vmatprep.mubr.msk.bf16.mxu0 %vm1913_vm2, %v20634_v5  ;;  %13543 = vmatprep.mubr.msk.bf16.mxu1 %vm1913_vm2, %v20634_v5  ;;  %v2969_v57 = vadd.f32 %v2968_v4, %v17970_v45  ;;  %v4023_v12 = vmax.f32 %v2965_v31, 0.0  ;;  %v3563_v43 = vpop.f32.mrb[189].mxu1  ;;  %v24284_v46 = vmax.f32 %v20571_v59, 0.0  ;;  %v2972_v26 = vpop.f32.mrb[190].mxu0 }
 0x329   : > { %24283 = vst [vmem:[#allocation8_spill] sm:$0xff] %v20637_v22  ;;  %v15599_v35 = vpop.permute.xlu1 %15598  ;;  %v4025_v3 = vmax.f32 %v3558_v29, 0.0  ;;  %5885 = vmatmul.mubr.bf16.gmra.mrb[32].mxu0 %v20637_v22  ;;  %6198 = vmatmul.mubr.bf16.gmra.mrb[32].mxu1 %v20637_v22  ;;  %v15702_v17 = vpack.i.bf16 %v4277_v20, %v4276_v33  ;;  %v3562_v50 = vadd.f32 %v3561_v49, %v17949_v11  ;;  %v24285_v42 = vmax.f32 %v20574_v25, 0.0  ;;  %v3565_v38 = vpop.f32.mrb[190].mxu1 }
 0x32a   : > { %v15601_v21 = vunpack.i.h.bf16 %v15599_v35  ;;  %v15600_v32 = vunpack.i.l.bf16 %v15599_v35  ;;  %v4280_v24 = vmax.f32 %v24284_v46, %v4024_v1  ;;  %v4026_v58 = vmax.f32 %v2969_v57, 0.0  ;;  %v2974_v33 = vpop.f32.mrb[191].mxu0  ;;  %v3567_v25 = vpop.f32.mrb[191].mxu1 }
 0x32b   : > { %v20657_v19 = vmax.f32 %v24285_v42, %v4023_v12  ;;  %v24286_v60 = vmax.f32 %v20577_v48, 0.0  ;;  %v24287_v29 = vmax.f32 %v20581_v37, 0.0  ;;  %v4028_v20 = vmax.f32 %v3562_v50, 0.0  ;;  %15703 = vrot.lane.b32.xlu0 %v15702_v17, %s16763_s11 }
 0x32c   : > { %v15604_v8 = vpop.permute.xlu0 %15603  ;;  %v4887_v62 = vsel %vm1631_vm0, %v15600_v32, %v15601_v21  ;;  %v2971_v37 = vadd.f32 %v2970_v9, %v17981_v47  ;;  %v3564_v21 = vadd.f32 %v3563_v43, %v17953_v16 }
 0x32d   : > { %v4281_v13 = vmax.f32 %v24286_v60, %v4025_v3  ;;  %v15606_v41 = vunpack.i.h.bf16 %v15604_v8  ;;  %v5111_v59 = vmax.f32 %v19832_v30, %v4887_v62  ;;  %v15605_v31 = vunpack.i.l.bf16 %v15604_v8  ;;  %v15609_v1 = vpop.permute.xlu1 %15608 }
 0x32e   : > { %v20665_v4 = vmax.f32 %v24287_v29, %v4026_v58  ;;  %v15712_v48 = vpack.i.bf16 %v20657_v19, %v20639_v2  ;;  %v15611_v57 = vunpack.i.h.bf16 %v15609_v1  ;;  %v15610_v49 = vunpack.i.l.bf16 %v15609_v1 }
 0x32f   : > { %v15707_v35 = vpack.i.bf16 %v4281_v13, %v4280_v24  ;;  %v4889_v12 = vsel %vm1631_vm0, %v15605_v31, %v15606_v41  ;;  %v24288_v30 = vmax.f32 %v20584_v54, 0.0  ;;  %v2973_v58 = vadd.f32 %v2972_v26, %v17970_v45  ;;  %v2978_v24 = vpop.f32.mrb[192].mxu0  ;;  %v3571_v9 = vpop.f32.mrb[192].mxu1 }
 0x330   : > { %v5113_v46 = vmax.f32 %v19859_v6, %v4889_v12  ;;  %v4886_v17 = vsel %vm1631_vm0, %v15610_v49, %v15600_v32  ;;  %v4888_v8 = vsel %vm1631_vm0, %v15611_v57, %v15605_v31  ;;  %v4027_v42 = vmax.f32 %v2971_v37, 0.0  ;;  %15713 = vrot.lane.b32.xlu0 %v15712_v48, %s16763_s11  ;;  %v2980_v43 = vpop.f32.mrb[193].mxu0  ;;  %v3573_v62 = vpop.f32.mrb[193].mxu1 }
 0x331   : > { %v4284_v3 = vmax.f32 %v24288_v30, %v4028_v20  ;;  %15708 = vrot.lane.b32.xlu1 %v15707_v35, %s16763_s11  ;;  %v5110_v50 = vmax.f32 %v19798_v15, %v4886_v17  ;;  %v5112_v54 = vmax.f32 %v19850_v34, %v4888_v8  ;;  %v4029_v60 = vmax.f32 %v3564_v21, 0.0  ;;  %v2982_v41 = vpop.f32.mrb[194].mxu0  ;;  %v16287_v8 = vld [vmem:[%s23805_s3 + $0x18c] ss:$16 sps:$4 sm:$0xff]  }
 0x332   : > { %v20683_v6 = vpack.c.bf16 %v5113_v46, %v5111_v59  ;;  %v4030_v32 = vmax.f32 %v2973_v58, 0.0  ;;  %v3566_v13 = vadd.f32 %v3565_v38, %v17949_v11  ;;  %v2975_v26 = vadd.f32 %v2974_v33, %v17981_v47  ;;  %v3575_v59 = vpop.f32.mrb[194].mxu1  ;;  %v2984_v48 = vpop.f32.mrb[195].mxu0  ;;  %v16276_v38 = vld [vmem:[%s23805_s3 + $0x160] ss:$16 sps:$4 sm:$0xff]  }
 0x333   : > { %v20687_v31 = vpack.c.bf16 %v5112_v54, %v5110_v50  ;;  %v24291_v15 = vmax.f32 %v20589_v52, 0.0  ;;  %v24292_v29 = vmax.f32 %v20592_v40, 0.0  ;;  %v3568_v1 = vadd.f32 %v3567_v25, %v17953_v16  ;;  %v16278_v33 = vld [vmem:[%s23805_s3 + $0x164] ss:$16 sps:$4 sm:$0xff]   ;;  %v3577_v25 = vpop.f32.mrb[195].mxu1 }
 0x334   : > { %24289 = vst [vmem:[#allocation48_spill] sm:$0xff] %v20683_v6  ;;  %v4015_v35 = vmax.f32 %v20613_v18, 0.0  ;;  %v24293_v52 = vmax.f32 %v20595_v55, 0.0  ;;  %v4032_v40 = vmax.f32 %v3566_v13, 0.0  ;;  %v4031_v49 = vmax.f32 %v2975_v26, 0.0  ;;  %13518 = vmatprep.mubr.msk.bf16.mxu0 %vm1913_vm2, %v20683_v6  ;;  %13544 = vmatprep.mubr.msk.bf16.mxu1 %vm1913_vm2, %v20683_v6 }
 0x335   : > { %24290 = vst [vmem:[#allocation46_spill] sm:$0xff] %v20687_v31  ;;  %v20691_v34 = vmax.f32 %v24291_v15, %v4027_v42  ;;  %v4285_v20 = vmax.f32 %v24292_v29, %v4029_v60  ;;  %v4017_v12 = vmax.f32 %v20617_v44, 0.0  ;;  %v4033_v37 = vmax.f32 %v3568_v1, 0.0  ;;  %5895 = vmatmul.mubr.bf16.gmra.mrb[36].mxu0 %v20687_v31  ;;  %6208 = vmatmul.mubr.bf16.gmra.mrb[36].mxu1 %v20687_v31  ;;  %v16279_v55 = vld [vmem:[%s23805_s3 + $0x168] ss:$16 sps:$4 sm:$0xff]  }
 0x336   : > { %v20705_v57 = vmax.f32 %v24293_v52, %v4030_v32  ;;  %v16281_v18 = vld [vmem:[%s23805_s3 + $0x16c] ss:$16 sps:$4 sm:$0xff]   ;;  %v24294_v21 = vmax.f32 %v20601_v63, 0.0  ;;  %v20722_v17 = vmax.f32 %v4015_v35, %v4031_v49  ;;  %6620 = vmatprep.subr.bf16.mxu0 %v16278_v33  ;;  %v16284_v44 = vld [vmem:[%s23805_s3 + $0x184] ss:$16 sps:$4 sm:$0xff]   ;;  %v20732_v58 = vadd.f32 %v2978_v24, %v17970_v45  ;;  %v2988_v50 = vpop.f32.mrb[196].mxu0 }
 0x337   : > { %v15717_v30 = vpack.i.bf16 %v4285_v20, %v4284_v3  ;;  %v4289_v3 = vmax.f32 %v4017_v12, %v4033_v37  ;;  %6621 = vmatpush1.bf16.msra.mxu0 %v16276_v38  ;;  %v20735_v63 = vadd.f32 %v3571_v9, %v17949_v11  ;;  %6933 = vmatprep.subr.bf16.mxu1 %v16281_v18  ;;  %v16282_v54 = vld [vmem:[%s23805_s3 + $0x180] ss:$16 sps:$4 sm:$0xff]   ;;  %v3581_v13 = vpop.f32.mrb[196].mxu1  ;;  %v2990_v9 = vpop.f32.mrb[197].mxu0  ;;  %v16285_v26 = vld [vmem:[%s23805_s3 + $0x188] ss:$16 sps:$4 sm:$0xff]  }
 0x338   : > { %v4288_v46 = vmax.f32 %v24294_v21, %v4032_v40  ;;  %6622 = vmatprep.subr.bf16.mxu0 %v16284_v44  ;;  %v15727_v42 = vpack.i.bf16 %v20722_v17, %v20691_v34  ;;  %v20743_v32 = vadd.f32 %v2980_v43, %v17981_v47  ;;  %v20746_v24 = vadd.f32 %v3573_v62, %v17953_v16  ;;  %v3583_v43 = vpop.f32.mrb[197].mxu1  ;;  %v2992_v1 = vpop.f32.mrb[198].mxu0 }
 0x339   : > { %15718 = vrot.lane.b32.xlu1 %v15717_v30, %s16763_s11  ;;  %6934 = vmatpush1.bf16.msra.mxu1 %v16279_v55  ;;  %v20752_v15 = vadd.f32 %v2982_v41, %v17970_v45  ;;  %v20755_v29 = vadd.f32 %v3575_v59, %v17949_v11  ;;  %v20758_v20 = vadd.f32 %v2984_v48, %v17981_v47  ;;  %v3585_v41 = vpop.f32.mrb[198].mxu1  ;;  %v2994_v33 = vpop.f32.mrb[199].mxu0  ;;  %v4034_v59 = vmax.f32 %v20732_v58, 0.0 }
 0x33a   : > { %v15722_v60 = vpack.i.bf16 %v4289_v3, %v4288_v46  ;;  %6935 = vmatprep.subr.bf16.mxu1 %v16287_v8  ;;  %v20761_v62 = vadd.f32 %v3577_v25, %v17953_v16  ;;  %v20766_v38 = vadd.f32 %v2988_v50, %v17970_v45  ;;  %v20770_v48 = vadd.f32 %v3581_v13, %v17949_v11  ;;  %v3587_v40 = vpop.f32.mrb[199].mxu1 }
 0x33b   : > { %v20773_v35 = vadd.f32 %v2990_v9, %v17981_v47  ;;  %v20776_v52 = vadd.f32 %v3583_v43, %v17953_v16  ;;  %6623 = vmatpush1.bf16.msra.mxu0 %v16282_v54  ;;  %v4036_v49 = vmax.f32 %v20735_v63, 0.0  ;;  %v4035_v25 = vmax.f32 %v20743_v32, 0.0 }
 0x33c   : > { %15723 = vrot.lane.b32.xlu0 %v15722_v60, %s16763_s11  ;;  %v4037_v12 = vmax.f32 %v20746_v24, 0.0  ;;  %v20782_v30 = vadd.f32 %v2992_v1, %v17970_v45  ;;  %v4038_v37 = vmax.f32 %v20752_v15, 0.0  ;;  %v20788_v21 = vadd.f32 %v3585_v41, %v17949_v11  ;;  %v15614_v46 = vpop.permute.xlu0 %15613 }
 0x33d   : > { %15728 = vrot.lane.b32.xlu1 %v15727_v42, %s16763_s11  ;;  %6936 = vmatpush1.bf16.msra.mxu1 %v16285_v26  ;;  %v15616_v8 = vunpack.i.h.bf16 %v15614_v46  ;;  %v15615_v58 = vunpack.i.l.bf16 %v15614_v46  ;;  %v20796_v42 = vadd.f32 %v2994_v33, %v17981_v47  ;;  %v20800_v24 = vadd.f32 %v3587_v40, %v17953_v16 }
 0x33e   : > { %v2998_v60 = vpop.f32.mrb[200].mxu0 }
 0x33f   : > { %v4891_v13 = vsel %vm1631_vm0, %v15615_v58, %v15616_v8  ;;  %v2999_v9 = vadd.f32 %v2998_v60, %v17970_v45  ;;  %v3591_v26 = vpop.f32.mrb[200].mxu1  ;;  %v3000_v15 = vpop.f32.mrb[201].mxu0 }
 0x340   : > { %v5115_v1 = vmax.f32 %v20022_v0, %v4891_v13  ;;  %v3592_v41 = vadd.f32 %v3591_v26, %v17949_v11  ;;  %v3001_v46 = vadd.f32 %v3000_v15, %v17981_v47  ;;  %v3593_v54 = vpop.f32.mrb[201].mxu1  ;;  %v3002_v3 = vpop.f32.mrb[202].mxu0 }
 0x341   : > { %v4050_v50 = vmax.f32 %v2999_v9, 0.0  ;;  %v3594_v8 = vadd.f32 %v3593_v54, %v17953_v16  ;;  %v3595_v43 = vpop.f32.mrb[202].mxu1  ;;  %v3004_v31 = vpop.f32.mrb[203].mxu0  ;;  %v3003_v15 = vadd.f32 %v3002_v3, %v17970_v45 }
 0x342   : > { %v15624_v33 = vpop.permute.xlu0 %15623  ;;  %v4052_v18 = vmax.f32 %v3592_v41, 0.0  ;;  %v4051_v55 = vmax.f32 %v3001_v46, 0.0  ;;  %v3597_v6 = vpop.f32.mrb[203].mxu1  ;;  %v24295_v41 = vld [vmem:[#allocation44_spill] sm:$0xff]  ;;  %v3005_v3 = vadd.f32 %v3004_v31, %v17981_v47  ;;  %v4049_v31 = vmax.f32 %v20800_v24, 0.0 }
 0x343   : > { %v15619_v32 = vpop.permute.xlu1 %15618  ;;  %v15626_v40 = vunpack.i.h.bf16 %v15624_v33  ;;  %v15625_v63 = vunpack.i.l.bf16 %v15624_v33  ;;  %v20809_v0 = vmax.f32 %v4034_v59, %v4050_v50  ;;  %v4053_v26 = vmax.f32 %v3594_v8, 0.0 }
 0x344   : > { %v15621_v60 = vunpack.i.h.bf16 %v15619_v32  ;;  %v15620_v44 = vunpack.i.l.bf16 %v15619_v32  ;;  %v4292_v33 = vmax.f32 %v4036_v49, %v4052_v18  ;;  %v20818_v5 = vmax.f32 %v4035_v25, %v4051_v55 }
 0x345   : > { %v4890_v13 = vsel %vm1631_vm0, %v15625_v63, %v15615_v58  ;;  %v4293_v59 = vmax.f32 %v4037_v12, %v4053_v26  ;;  %v4054_v50 = vmax.f32 %v3003_v15, 0.0  ;;  %v3596_v58 = vadd.f32 %v3595_v43, %v17949_v11 }
 0x346   : > { %v4893_v9 = vsel %vm1631_vm0, %v15620_v44, %v15621_v60  ;;  %v4892_v54 = vsel %vm1631_vm0, %v15626_v40, %v15620_v44  ;;  %v5114_v22 = vmax.f32 %v20006_v14, %v4890_v13  ;;  %v3598_v63 = vadd.f32 %v3597_v6, %v17953_v16 }
 0x347   : > { %v5117_v32 = vmax.f32 %v20052_v53, %v4893_v9  ;;  %v5116_v46 = vmax.f32 %v24295_v41, %v4892_v54  ;;  %v4047_v49 = vmax.f32 %v20796_v42, 0.0  ;;  %v15732_v14 = vpack.i.bf16 %v4293_v59, %v4292_v33  ;;  %v3008_v53 = vpop.f32.mrb[204].mxu0  ;;  %v3601_v40 = vpop.f32.mrb[204].mxu1 }
 0x348   : > { %v20828_v8 = vmax.f32 %v4038_v37, %v4054_v50  ;;  %v4056_v25 = vmax.f32 %v3596_v58, 0.0  ;;  %v4055_v12 = vmax.f32 %v3005_v3, 0.0  ;;  %v4057_v55 = vmax.f32 %v3598_v63, 0.0  ;;  %v3010_v60 = vpop.f32.mrb[205].mxu0  ;;  %v3603_v43 = vpop.f32.mrb[205].mxu1 }
 0x349   : > { %v20824_v18 = vpack.c.bf16 %v5117_v32, %v5115_v1  ;;  %v20826_v44 = vpack.c.bf16 %v5116_v46, %v5114_v22  ;;  %v3009_v22 = vadd.f32 %v3008_v53, %v17970_v45  ;;  %v3602_v6 = vadd.f32 %v3601_v40, %v17949_v11  ;;  %v3012_v1 = vpop.f32.mrb[206].mxu0  ;;  %v3605_v46 = vpop.f32.mrb[206].mxu1  ;;  %15733 = vrot.lane.b32.xlu0 %v15732_v14, %s16763_s11 }
 0x34a   : > { %v3011_v37 = vadd.f32 %v3010_v60, %v17981_v47  ;;  %v24298_v26 = vmax.f32 %v20755_v29, 0.0  ;;  %v24299_v9 = vmax.f32 %v20758_v20, 0.0  ;;  %v24300_v54 = vmax.f32 %v20761_v62, 0.0  ;;  %v3014_v59 = vpop.f32.mrb[207].mxu0  ;;  %v3607_v20 = vpop.f32.mrb[207].mxu1 }
 0x34b   : > { %24296 = vst [vmem:[#allocation27_spill] sm:$0xff] %v20824_v18  ;;  %24297 = vst [vmem:[#allocation30_spill] sm:$0xff] %v20826_v44  ;;  %13519 = vmatprep.mubr.msk.bf16.mxu0 %vm1913_vm2, %v20824_v18  ;;  %13545 = vmatprep.mubr.msk.bf16.mxu1 %vm1913_vm2, %v20824_v18  ;;  %v4058_v3 = vmax.f32 %v3009_v22, 0.0  ;;  %v4060_v63 = vmax.f32 %v3602_v6, 0.0 }
 0x34c   : > { %v15629_v13 = vpop.permute.xlu1 %15628  ;;  %v4296_v15 = vmax.f32 %v24298_v26, %v4056_v25  ;;  %v20842_v33 = vmax.f32 %v24299_v9, %v4055_v12  ;;  %v4297_v32 = vmax.f32 %v24300_v54, %v4057_v55  ;;  %5905 = vmatmul.mubr.bf16.gmra.mrb[40].mxu0 %v20826_v44  ;;  %6218 = vmatmul.mubr.bf16.gmra.mrb[40].mxu1 %v20826_v44  ;;  %v4059_v29 = vmax.f32 %v3011_v37, 0.0 }
 0x34d   : > { %v15631_v41 = vunpack.i.h.bf16 %v15629_v13  ;;  %v15630_v50 = vunpack.i.l.bf16 %v15629_v13  ;;  %v24301_v55 = vmax.f32 %v20766_v38, 0.0  ;;  %v24303_v13 = vmax.f32 %v20770_v48, 0.0 }
 0x34e   : > { %v15634_v58 = vpop.permute.xlu0 %15633  ;;  %v15742_v53 = vpack.i.bf16 %v20842_v33, %v20818_v5  ;;  %v15737_v62 = vpack.i.bf16 %v4297_v32, %v4296_v15  ;;  %v24304_v37 = vmax.f32 %v20773_v35, 0.0  ;;  %v3604_v32 = vadd.f32 %v3603_v43, %v17953_v16  ;;  %v16288_v43 = vld [vmem:[%s23805_s3 + $0x1a0] ss:$16 sps:$4 sm:$0xff]  }
 0x34f   : > { %v15636_v40 = vunpack.i.h.bf16 %v15634_v58  ;;  %v15635_v25 = vunpack.i.l.bf16 %v15634_v58  ;;  %v4895_v12 = vsel %vm1631_vm0, %v15630_v50, %v15631_v41  ;;  %v20854_v60 = vmax.f32 %v24301_v55, %v4058_v3  ;;  %v3611_v35 = vpop.f32.mrb[208].mxu1  ;;  %v3018_v58 = vpop.f32.mrb[208].mxu0 }
 0x350   : > { %v4300_v22 = vmax.f32 %v24303_v13, %v4060_v63  ;;  %v15639_v6 = vpop.permute.xlu1 %15638  ;;  %v20860_v14 = vmax.f32 %v24304_v37, %v4059_v29  ;;  %v5119_v26 = vmax.f32 %v20085_v23, %v4895_v12  ;;  %15738 = vrot.lane.b32.xlu1 %v15737_v62, %s16763_s11  ;;  %v3013_v48 = vadd.f32 %v3012_v1, %v17970_v45  ;;  %v3613_v62 = vpop.f32.mrb[209].mxu1  ;;  %v16290_v1 = vld [vmem:[%s23805_s3 + $0x1a4] ss:$16 sps:$4 sm:$0xff]  }
 0x351   : > { %24302 = vst [vmem:[#allocation13_spill] sm:$0xff] %v20854_v60  ;;  %v4897_v15 = vsel %vm1631_vm0, %v15635_v25, %v15636_v40  ;;  %v15641_v9 = vunpack.i.h.bf16 %v15639_v6  ;;  %v15640_v54 = vunpack.i.l.bf16 %v15639_v6  ;;  %v3606_v41 = vadd.f32 %v3605_v46, %v17949_v11  ;;  %15743 = vrot.lane.b32.xlu0 %v15742_v53, %s16763_s11  ;;  %v24306_v53 = vld [vmem:[#allocation53_spill] sm:$0xff]  ;;  %6624 = vmatprep.subr.bf16.mxu0 %v16290_v1 }
 0x352   : > { %v5121_v38 = vmax.f32 %v20118_v51, %v4897_v15  ;;  %v3015_v63 = vadd.f32 %v3014_v59, %v17981_v47  ;;  %v3608_v29 = vadd.f32 %v3607_v20, %v17953_v16  ;;  %v3020_v51 = vpop.f32.mrb[209].mxu0  ;;  %v3615_v59 = vpop.f32.mrb[210].mxu1  ;;  %v4062_v20 = vmax.f32 %v3013_v48, 0.0  ;;  %6625 = vmatpush1.bf16.msra.mxu0 %v16288_v43 }
 0x353   : > { %v4894_v23 = vsel %vm1631_vm0, %v15640_v54, %v15630_v50  ;;  %v4896_v3 = vsel %vm1631_vm0, %v15641_v9, %v15635_v25  ;;  %v4061_v25 = vmax.f32 %v3604_v32, 0.0  ;;  %v3022_v12 = vpop.f32.mrb[210].mxu0  ;;  %v4064_v55 = vmax.f32 %v3606_v41, 0.0  ;;  %v3617_v37 = vpop.f32.mrb[211].mxu1 }
 0x354   : > { %v20880_v46 = vpack.c.bf16 %v5121_v38, %v5119_v26  ;;  %v5118_v50 = vmax.f32 %v24306_v53, %v4894_v23  ;;  %v5120_v40 = vmax.f32 %v20111_v39, %v4896_v3  ;;  %v4063_v13 = vmax.f32 %v3015_v63, 0.0  ;;  %v3024_v15 = vpop.f32.mrb[211].mxu0  ;;  %v16291_v39 = vld [vmem:[%s23805_s3 + $0x1a8] ss:$16 sps:$4 sm:$0xff]   ;;  %v16293_v38 = vld [vmem:[%s23805_s3 + $0x1ac] ss:$16 sps:$4 sm:$0xff]  }
 0x355   : > { %v4065_v6 = vmax.f32 %v3608_v29, 0.0  ;;  %v24308_v54 = vmax.f32 %v20776_v52, 0.0  ;;  %v24309_v32 = vmax.f32 %v20782_v30, 0.0  ;;  %v24311_v52 = vmax.f32 %v20788_v21, 0.0  ;;  %6937 = vmatprep.subr.bf16.mxu1 %v16293_v38  ;;  %v16296_v21 = vld [vmem:[%s23805_s3 + $0x384] ss:$16 sps:$4 sm:$0xff]  }
 0x356   : > { %24305 = vst [vmem:[#allocation54_spill] sm:$0xff] %v20880_v46  ;;  %v20884_v9 = vpack.c.bf16 %v5120_v40, %v5118_v50  ;;  %13520 = vmatprep.mubr.msk.bf16.mxu0 %vm1913_vm2, %v20880_v46  ;;  %13546 = vmatprep.mubr.msk.bf16.mxu1 %vm1913_vm2, %v20880_v46  ;;  %v20906_v23 = vmax.f32 %v4047_v49, %v4063_v13 }
 0x357   : > { %v4301_v26 = vmax.f32 %v24308_v54, %v4061_v25  ;;  %v20900_v48 = vmax.f32 %v24309_v32, %v4062_v20  ;;  %v4304_v41 = vmax.f32 %v24311_v52, %v4064_v55  ;;  %v4305_v3 = vmax.f32 %v4049_v31, %v4065_v6  ;;  %v3621_v31 = vpop.f32.mrb[212].mxu1  ;;  %6938 = vmatpush1.bf16.msra.mxu1 %v16291_v39 }
 0x358   : > { %24307 = vst [vmem:[#allocation11_spill] sm:$0xff] %v20884_v9  ;;  %24312 = vst [vmem:[#allocation53_spill] sm:$0xff] %v20906_v23  ;;  %5915 = vmatmul.mubr.bf16.gmra.mrb[44].mxu0 %v20884_v9  ;;  %6228 = vmatmul.mubr.bf16.gmra.mrb[44].mxu1 %v20884_v9  ;;  %v20913_v30 = vadd.f32 %v3611_v35, %v17949_v11  ;;  %v20920_v42 = vadd.f32 %v3613_v62, %v17953_v16  ;;  %v3623_v1 = vpop.f32.mrb[213].mxu1 }
 0x359   : > { %24310 = vst [vmem:[#allocation44_spill] sm:$0xff] %v20900_v48  ;;  %v15747_v63 = vpack.i.bf16 %v4301_v26, %v4300_v22  ;;  %v15752_v29 = vpack.i.bf16 %v4305_v3, %v4304_v41  ;;  %v20923_v24 = vadd.f32 %v3018_v58, %v17970_v45  ;;  %v20926_v49 = vadd.f32 %v3615_v59, %v17949_v11  ;;  %v3028_v22 = vpop.f32.mrb[212].mxu0  ;;  %v3625_v25 = vpop.f32.mrb[214].mxu1 }
 0x35a   : > { %v15757_v35 = vpack.i.bf16 %v20906_v23, %v20860_v14  ;;  %v20932_v43 = vadd.f32 %v3020_v51, %v17981_v47  ;;  %v3030_v62 = vpop.f32.mrb[213].mxu0  ;;  %7567 = vmatprep.subr.bf16.mxu0 %v16296_v21  ;;  %v20935_v58 = vadd.f32 %v3617_v37, %v17953_v16  ;;  %v20938_v53 = vadd.f32 %v3022_v12, %v17970_v45  ;;  %v3627_v13 = vpop.f32.mrb[215].mxu1 }
 0x35b   : > { %15748 = vrot.lane.b32.xlu1 %v15747_v63, %s16763_s11  ;;  %15753 = vrot.lane.b32.xlu0 %v15752_v29, %s16763_s11  ;;  %v20941_v50 = vadd.f32 %v3621_v31, %v17949_v11  ;;  %v20944_v40 = vadd.f32 %v3024_v15, %v17981_v47  ;;  %v3032_v59 = vpop.f32.mrb[214].mxu0  ;;  %v4068_v51 = vmax.f32 %v20913_v30, 0.0  ;;  %v20948_v20 = vadd.f32 %v3623_v1, %v17953_v16  ;;  %v15644_v54 = vpop.permute.xlu0 %15643 }
 0x35c   : > { %v20951_v55 = vadd.f32 %v3028_v22, %v17970_v45  ;;  %v20953_v6 = vpop.f32.mrb[215].mxu0  ;;  %v4069_v12 = vmax.f32 %v20920_v42, 0.0  ;;  %v4066_v37 = vmax.f32 %v20923_v24, 0.0  ;;  %v20960_v26 = vadd.f32 %v3625_v25, %v17949_v11  ;;  %v16299_v22 = vld [vmem:[%s23805_s3 + $0x38c] ss:$16 sps:$4 sm:$0xff]  }
 0x35d   : > { %v15646_v38 = vunpack.i.h.bf16 %v15644_v54  ;;  %v15645_v32 = vunpack.i.l.bf16 %v15644_v54  ;;  %v20964_v52 = vadd.f32 %v3030_v62, %v17981_v47  ;;  %v20974_v31 = vadd.f32 %v3627_v13, %v17953_v16  ;;  %7880 = vmatprep.subr.bf16.mxu1 %v16299_v22  ;;  %v24313_v22 = vld [vmem:[#allocation35_spill] sm:$0xff] }
 0x35e   : > { %v20981_v25 = vadd.f32 %v3032_v59, %v17970_v45 }
 0x35f   : > { %15758 = vrot.lane.b32.xlu1 %v15757_v35, %s16763_s11  ;;  %v4899_v30 = vsel %vm1631_vm0, %v15645_v32, %v15646_v38  ;;  %v3631_v54 = vpop.f32.mrb[216].mxu1  ;;  %v15654_v38 = vpop.permute.xlu0 %15653 }
 0x360   : > { %v3632_v42 = vadd.f32 %v3631_v54, %v17949_v11  ;;  %v15656_v63 = vunpack.i.h.bf16 %v15654_v38  ;;  %v15655_v13 = vunpack.i.l.bf16 %v15654_v38  ;;  %v3633_v29 = vpop.f32.mrb[217].mxu1  ;;  %v3038_v3 = vpop.f32.mrb[216].mxu0  ;;  %v5123_v41 = vmax.f32 %v20239_v7, %v4899_v30  ;;  %v24314_v7 = vld [vmem:[#allocation31_spill] sm:$0xff] }
 0x361   : > { %v15649_v24 = vpop.permute.xlu1 %15648  ;;  %v3039_v59 = vadd.f32 %v3038_v3, %v17970_v45  ;;  %v3635_v39 = vpop.f32.mrb[218].mxu1 }
 0x362   : > { %v15651_v1 = vunpack.i.h.bf16 %v15649_v24  ;;  %v15650_v62 = vunpack.i.l.bf16 %v15649_v24  ;;  %v3634_v24 = vadd.f32 %v3633_v29, %v17953_v16  ;;  %v3040_v15 = vpop.f32.mrb[217].mxu0  ;;  %v4084_v21 = vmax.f32 %v3632_v42, 0.0  ;;  %v3637_v46 = vpop.f32.mrb[219].mxu1 }
 0x363   : > { %v4898_v38 = vsel %vm1631_vm0, %v15655_v13, %v15645_v32  ;;  %v3042_v44 = vpop.f32.mrb[218].mxu0  ;;  %v4082_v48 = vmax.f32 %v3039_v59, 0.0  ;;  %v3636_v23 = vadd.f32 %v3635_v39, %v17949_v11 }
 0x364   : > { %v4901_v35 = vsel %vm1631_vm0, %v15650_v62, %v15651_v1  ;;  %v4900_v54 = vsel %vm1631_vm0, %v15656_v63, %v15650_v62  ;;  %v5122_v30 = vmax.f32 %v24314_v7, %v4898_v38  ;;  %v4085_v1 = vmax.f32 %v3634_v24, 0.0  ;;  %v3044_v29 = vpop.f32.mrb[219].mxu0 }
 0x365   : > { %v5125_v9 = vmax.f32 %v20252_v61, %v4901_v35  ;;  %v5124_v18 = vmax.f32 %v24313_v22, %v4900_v54  ;;  %v4308_v3 = vmax.f32 %v4068_v51, %v4084_v21  ;;  %v3041_v61 = vadd.f32 %v3040_v15, %v17981_v47 }
 0x366   : > { %v4309_v63 = vmax.f32 %v4069_v12, %v4085_v1  ;;  %v21000_v32 = vmax.f32 %v4066_v37, %v4082_v48  ;;  %v3638_v35 = vadd.f32 %v3637_v46, %v17953_v16  ;;  %v4088_v62 = vmax.f32 %v3636_v23, 0.0 }
 0x367   : > { %v20994_v60 = vpack.c.bf16 %v5125_v9, %v5123_v41  ;;  %v20998_v42 = vpack.c.bf16 %v5124_v18, %v5122_v30  ;;  %v4083_v13 = vmax.f32 %v3041_v61, 0.0  ;;  %v3043_v24 = vadd.f32 %v3042_v44, %v17970_v45  ;;  %v3048_v44 = vpop.f32.mrb[220].mxu0 }
 0x368   : > { %v3045_v59 = vadd.f32 %v3044_v29, %v17981_v47  ;;  %v4081_v18 = vmax.f32 %v20974_v31, 0.0  ;;  %v21012_v9 = vadd.f32 %v20953_v6, %v17981_v47  ;;  %v15762_v48 = vpack.i.bf16 %v4309_v63, %v4308_v3 }
 0x369   : > { %13521 = vmatprep.mubr.msk.bf16.mxu0 %vm1913_vm2, %v20994_v60  ;;  %13547 = vmatprep.mubr.msk.bf16.mxu1 %vm1913_vm2, %v20994_v60  ;;  %v4089_v46 = vmax.f32 %v3638_v35, 0.0  ;;  %v24315_v23 = vmax.f32 %v20926_v49, 0.0  ;;  %v24316_v12 = vmax.f32 %v20932_v43, 0.0  ;;  %v4086_v15 = vmax.f32 %v3043_v24, 0.0  ;;  %v3641_v21 = vpop.f32.mrb[220].mxu1  ;;  %v3050_v49 = vpop.f32.mrb[221].mxu0 }
 0x36a   : > { %5925 = vmatmul.mubr.bf16.gmra.mrb[48].mxu0 %v20998_v42  ;;  %6238 = vmatmul.mubr.bf16.gmra.mrb[48].mxu1 %v20998_v42  ;;  %v15659_v39 = vpop.permute.xlu1 %15658  ;;  %v4087_v41 = vmax.f32 %v3045_v59, 0.0  ;;  %v24317_v6 = vmax.f32 %v20935_v58, 0.0  ;;  %v3642_v7 = vadd.f32 %v3641_v21, %v17949_v11  ;;  %v3643_v30 = vpop.f32.mrb[221].mxu1  ;;  %v24318_v1 = vmax.f32 %v20938_v53, 0.0 }
 0x36b   : > { %v4312_v51 = vmax.f32 %v24315_v23, %v4088_v62  ;;  %v21020_v37 = vmax.f32 %v24316_v12, %v4083_v13  ;;  %v15661_v38 = vunpack.i.h.bf16 %v15659_v39  ;;  %v15660_v22 = vunpack.i.l.bf16 %v15659_v39  ;;  %15763 = vrot.lane.b32.xlu0 %v15762_v48, %s16763_s11  ;;  %v3645_v63 = vpop.f32.mrb[222].mxu1  ;;  %v3052_v35 = vpop.f32.mrb[222].mxu0 }
 0x36c   : > { %v4313_v54 = vmax.f32 %v24317_v6, %v4089_v46  ;;  %v21028_v43 = vmax.f32 %v24318_v1, %v4086_v15  ;;  %v24319_v29 = vmax.f32 %v20944_v40, 0.0  ;;  %v3644_v61 = vadd.f32 %v3643_v30, %v17953_v16  ;;  %v3647_v48 = vpop.f32.mrb[223].mxu1  ;;  %v3054_v53 = vpop.f32.mrb[223].mxu0  ;;  %v24320_v46 = vld [vmem:[#allocation41_spill] sm:$0xff] }
 0x36d   : > { %v3049_v58 = vadd.f32 %v3048_v44, %v17970_v45  ;;  %v4903_v13 = vsel %vm1631_vm0, %v15660_v22, %v15661_v38  ;;  %v4092_v24 = vmax.f32 %v3642_v7, 0.0  ;;  %v3646_v59 = vadd.f32 %v3645_v63, %v17949_v11 }
 0x36e   : > { %v21032_v3 = vmax.f32 %v24319_v29, %v4087_v41  ;;  %v15767_v62 = vpack.i.bf16 %v4313_v54, %v4312_v51  ;;  %v5127_v23 = vmax.f32 %v24320_v46, %v4903_v13  ;;  %v15669_v12 = vpop.permute.xlu1 %15668  ;;  %v4093_v15 = vmax.f32 %v3644_v61, 0.0  ;;  %v24326_v46 = vld [vmem:[#allocation7_spill] sm:$0xff] }
 0x36f   : > { %v4090_v39 = vmax.f32 %v3049_v58, 0.0  ;;  %v15664_v41 = vpop.permute.xlu0 %15663  ;;  %v24321_v44 = vmax.f32 %v20941_v50, 0.0  ;;  %v15671_v51 = vunpack.i.h.bf16 %v15669_v12  ;;  %v15670_v6 = vunpack.i.l.bf16 %v15669_v12 }
 0x370   : > { %v15772_v40 = vpack.i.bf16 %v21032_v3, %v21020_v37  ;;  %v4096_v54 = vmax.f32 %v3646_v59, 0.0  ;;  %15768 = vrot.lane.b32.xlu1 %v15767_v62, %s16763_s11  ;;  %v15666_v11 = vunpack.i.h.bf16 %v15664_v41  ;;  %v15665_v38 = vunpack.i.l.bf16 %v15664_v41 }
 0x371   : > { %v4316_v21 = vmax.f32 %v24321_v44, %v4092_v24  ;;  %v24322_v7 = vmax.f32 %v20948_v20, 0.0  ;;  %v24323_v1 = vmax.f32 %v20951_v55, 0.0  ;;  %v4902_v61 = vsel %vm1631_vm0, %v15670_v6, %v15660_v22  ;;  %v24325_v24 = vld [vmem:[#allocation16_spill] sm:$0xff] }
 0x372   : > { %15773 = vrot.lane.b32.xlu0 %v15772_v40, %s16763_s11  ;;  %v24324_v50 = vmax.f32 %v20960_v26, 0.0  ;;  %v3051_v63 = vadd.f32 %v3050_v49, %v17981_v47  ;;  %v3648_v62 = vadd.f32 %v3647_v48, %v17953_v16  ;;  %v4905_v13 = vsel %vm1631_vm0, %v15665_v38, %v15666_v11 }
 0x373   : > { %v4317_v30 = vmax.f32 %v24322_v7, %v4093_v15  ;;  %v21048_v29 = vmax.f32 %v24323_v1, %v4090_v39  ;;  %v4904_v20 = vsel %vm1631_vm0, %v15671_v51, %v15665_v38  ;;  %v5126_v59 = vmax.f32 %v24325_v24, %v4902_v61  ;;  %v24327_v15 = vld [vmem:[#allocation51_spill] sm:$0xff] }
 0x374   : > { %v4320_v58 = vmax.f32 %v24324_v50, %v4096_v54  ;;  %v5129_v12 = vmax.f32 %v24326_v46, %v4905_v13  ;;  %v5128_v40 = vmax.f32 %v24327_v15, %v4904_v20  ;;  %v4091_v39 = vmax.f32 %v3051_v63, 0.0  ;;  %v24330_v20 = vld [vmem:[#allocation12_spill] sm:$0xff] }
 0x375   : > { %v15777_v55 = vpack.i.bf16 %v4317_v30, %v4316_v21  ;;  %v4097_v22 = vmax.f32 %v3648_v62, 0.0  ;;  %v4078_v26 = vmax.f32 %v20981_v25, 0.0  ;;  %v4079_v41 = vmax.f32 %v21012_v9, 0.0 }
 0x376   : > { %v3053_v49 = vadd.f32 %v3052_v35, %v17970_v45  ;;  %v3055_v16 = vadd.f32 %v3054_v53, %v17981_v47  ;;  %v21066_v48 = vpack.c.bf16 %v5129_v12, %v5127_v23  ;;  %v21068_v44 = vpack.c.bf16 %v5128_v40, %v5126_v59 }
 0x377   : > { %15778 = vrot.lane.b32.xlu1 %v15777_v55, %s16763_s11  ;;  %v24328_v21 = vmax.f32 %v20964_v52, 0.0  ;;  %v4321_v6 = vmax.f32 %v4081_v18, %v4097_v22 }
 0x378   : > { %v4094_v25 = vmax.f32 %v3053_v49, 0.0  ;;  %v4095_v54 = vmax.f32 %v3055_v16, 0.0  ;;  %13522 = vmatprep.mubr.msk.bf16.mxu0 %vm1913_vm2, %v21066_v48  ;;  %13548 = vmatprep.mubr.msk.bf16.mxu1 %vm1913_vm2, %v21066_v48  ;;  %v24331_v49 = vld [vmem:[#allocation55_spill] sm:$0xff] }
 0x379   : > { %v21072_v51 = vmax.f32 %v24328_v21, %v4091_v39  ;;  %v15782_v9 = vpack.i.bf16 %v4321_v6, %v4320_v58  ;;  %5935 = vmatmul.mubr.bf16.gmra.mrb[52].mxu0 %v21068_v44  ;;  %6248 = vmatmul.mubr.bf16.gmra.mrb[52].mxu1 %v21068_v44  ;;  %v24332_v21 = vld [vmem:[#allocation52_spill] sm:$0xff] }
 0x37a   : > { %v21080_v45 = vmax.f32 %v4078_v26, %v4094_v25  ;;  %v21082_v47 = vmax.f32 %v4079_v41, %v4095_v54 }
 0x37b   : > { %24329 = vst [vmem:[#allocation35_spill] sm:$0xff] %v21072_v51  ;;  %15783 = vrot.lane.b32.xlu0 %v15782_v9, %s16763_s11  ;;  %v24333_v9 = vld [vmem:[#allocation22_spill] sm:$0xff] }
 0x37c   : > { %v15787_v52 = vpack.i.bf16 %v21082_v47, %v21072_v51  ;;  %v15674_v31 = vpop.permute.xlu0 %15673  ;;  %v16387_v51 = vld [vmem:[%s23805_s3 + $0x568] ss:$16 sps:$4 sm:$0xff]  }
 0x37d   : > { %v15676_v18 = vunpack.i.h.bf16 %v15674_v31  ;;  %v15675_v35 = vunpack.i.l.bf16 %v15674_v31  ;;  %v24334_v31 = vld [vmem:[#allocation56_spill] sm:$0xff] }
 0x37e   : > { %15788 = vrot.lane.b32.xlu1 %v15787_v52, %s16763_s11 }
 0x37f   : > { %v4907_v23 = vsel %vm1631_vm0, %v15675_v35, %v15676_v18 }
 0x380   : > { %v15684_v7 = vpop.permute.xlu0 %15683  ;;  %v5131_v50 = vmax.f32 %v20451_v10, %v4907_v23 }
 0x381   : > { %v15686_v30 = vunpack.i.h.bf16 %v15684_v7  ;;  %v15685_v1 = vunpack.i.l.bf16 %v15684_v7 }
 0x382   : > { %v15679_v53 = vpop.permute.xlu1 %15678 }
 0x383   : > { %v15681_v11 = vunpack.i.h.bf16 %v15679_v53  ;;  %v15680_v38 = vunpack.i.l.bf16 %v15679_v53  ;;  %v4906_v62 = vsel %vm1631_vm0, %v15685_v1, %v15675_v35 }
 0x384   : > { %v5130_v24 = vmax.f32 %v24330_v20, %v4906_v62 }
 0x385   : > { %v4909_v61 = vsel %vm1631_vm0, %v15680_v38, %v15681_v11  ;;  %v4908_v63 = vsel %vm1631_vm0, %v15686_v30, %v15680_v38 }
 0x386   : > { %v5133_v58 = vmax.f32 %v20467_v27, %v4909_v61  ;;  %v5132_v13 = vmax.f32 %v20453_v56, %v4908_v63 }
 0x388   : > { %v21098_v59 = vpack.c.bf16 %v5133_v58, %v5131_v50  ;;  %v21100_v55 = vpack.c.bf16 %v5132_v13, %v5130_v24 }
 0x38a   : > { %13523 = vmatprep.mubr.msk.bf16.mxu0 %vm1913_vm2, %v21098_v59  ;;  %13549 = vmatprep.mubr.msk.bf16.mxu1 %vm1913_vm2, %v21098_v59 }
 0x38b   : > { %v15689_v46 = vpop.permute.xlu1 %15688  ;;  %5945 = vmatmul.mubr.bf16.gmra.mrb[56].mxu0 %v21100_v55  ;;  %6258 = vmatmul.mubr.bf16.gmra.mrb[56].mxu1 %v21100_v55 }
 0x38c   : > { %v15691_v12 = vunpack.i.h.bf16 %v15689_v46  ;;  %v15690_v15 = vunpack.i.l.bf16 %v15689_v46 }
 0x38d   : > { %v15694_v10 = vpop.permute.xlu0 %15693 }
 0x38e   : > { %v4911_v56 = vsel %vm1631_vm0, %v15690_v15, %v15691_v12  ;;  %v15696_v27 = vunpack.i.h.bf16 %v15694_v10  ;;  %v15695_v40 = vunpack.i.l.bf16 %v15694_v10 }
 0x38f   : > { %v15699_v39 = vpop.permute.xlu1 %15698  ;;  %v5135_v16 = vmax.f32 %v24331_v49, %v4911_v56 }
 0x390   : > { %v15701_v22 = vunpack.i.h.bf16 %v15699_v39  ;;  %v15700_v26 = vunpack.i.l.bf16 %v15699_v39  ;;  %v4913_v41 = vsel %vm1631_vm0, %v15695_v40, %v15696_v27 }
 0x391   : > { %v5137_v6 = vmax.f32 %v24332_v21, %v4913_v41 }
 0x392   : > { %v4910_v25 = vsel %vm1631_vm0, %v15700_v26, %v15690_v15  ;;  %v4912_v54 = vsel %vm1631_vm0, %v15701_v22, %v15695_v40 }
 0x393   : > { %v5134_v52 = vmax.f32 %v24333_v9, %v4910_v25  ;;  %v5136_v18 = vmax.f32 %v24334_v31, %v4912_v54  ;;  %v21116_v35 = vpack.c.bf16 %v5137_v6, %v5135_v16 }
 0x395   : > { %v21118_v53 = vpack.c.bf16 %v5136_v18, %v5134_v52  ;;  %13524 = vmatprep.mubr.msk.bf16.mxu0 %vm1913_vm2, %v21116_v35  ;;  %13550 = vmatprep.mubr.msk.bf16.mxu1 %vm1913_vm2, %v21116_v35 }
 0x397   : > { %5955 = vmatmul.mubr.bf16.gmra.mrb[60].mxu0 %v21118_v53  ;;  %6268 = vmatmul.mubr.bf16.gmra.mrb[60].mxu1 %v21118_v53 }
 0x39d   : > { %v15704_v23 = vpop.permute.xlu0 %15703 }
 0x39e   : > { %v15706_v11 = vunpack.i.h.bf16 %v15704_v23  ;;  %v15705_v38 = vunpack.i.l.bf16 %v15704_v23 }
 0x3a0   : > { %v4915_v30 = vsel %vm1631_vm0, %v15705_v38, %v15706_v11 }
 0x3a1   : > { %v5139_v13 = vmax.f32 %v20639_v2, %v4915_v30 }
 0x3a2   : > { %v15714_v50 = vpop.permute.xlu0 %15713 }
 0x3a3   : > { %v15709_v7 = vpop.permute.xlu1 %15708  ;;  %v15716_v58 = vunpack.i.h.bf16 %v15714_v50  ;;  %v15715_v63 = vunpack.i.l.bf16 %v15714_v50 }
 0x3a4   : > { %v15711_v1 = vunpack.i.h.bf16 %v15709_v7  ;;  %v15710_v61 = vunpack.i.l.bf16 %v15709_v7 }
 0x3a5   : > { %v4914_v46 = vsel %vm1631_vm0, %v15715_v63, %v15705_v38 }
 0x3a6   : > { %v4917_v62 = vsel %vm1631_vm0, %v15710_v61, %v15711_v1  ;;  %v4916_v24 = vsel %vm1631_vm0, %v15716_v58, %v15710_v61  ;;  %v5138_v15 = vmax.f32 %v20628_v28, %v4914_v46 }
 0x3a7   : > { %v5141_v20 = vmax.f32 %v20657_v19, %v4917_v62  ;;  %v5140_v12 = vmax.f32 %v20643_v36, %v4916_v24 }
 0x3a9   : > { %v21134_v10 = vpack.c.bf16 %v5141_v20, %v5139_v13  ;;  %v21136_v56 = vpack.c.bf16 %v5140_v12, %v5138_v15 }
 0x3ab   : > { %v15719_v27 = vpop.permute.xlu1 %15718  ;;  %13525 = vmatprep.mubr.msk.bf16.mxu0 %vm1913_vm2, %v21134_v10  ;;  %13551 = vmatprep.mubr.msk.bf16.mxu1 %vm1913_vm2, %v21134_v10 }
 0x3ac   : > { %v15721_v40 = vunpack.i.h.bf16 %v15719_v27  ;;  %v15720_v39 = vunpack.i.l.bf16 %v15719_v27  ;;  %5965 = vmatmul.mubr.bf16.gmra.mrb[64].mxu0 %v21136_v56  ;;  %6278 = vmatmul.mubr.bf16.gmra.mrb[64].mxu1 %v21136_v56 }
 0x3ae   : > { %v4919_v2 = vsel %vm1631_vm0, %v15720_v39, %v15721_v40  ;;  %v15724_v28 = vpop.permute.xlu0 %15723 }
 0x3af   : > { %v15729_v36 = vpop.permute.xlu1 %15728  ;;  %v15726_v19 = vunpack.i.h.bf16 %v15724_v28  ;;  %v15725_v22 = vunpack.i.l.bf16 %v15724_v28  ;;  %v5143_v6 = vmax.f32 %v20691_v34, %v4919_v2  ;;  %v24336_v2 = vld [vmem:[#allocation53_spill] sm:$0xff] }
 0x3b0   : > { %v15731_v26 = vunpack.i.h.bf16 %v15729_v36  ;;  %v15730_v41 = vunpack.i.l.bf16 %v15729_v36 }
 0x3b1   : > { %v4921_v49 = vsel %vm1631_vm0, %v15725_v22, %v15726_v19 }
 0x3b2   : > { %v4918_v16 = vsel %vm1631_vm0, %v15730_v41, %v15720_v39  ;;  %v4920_v21 = vsel %vm1631_vm0, %v15731_v26, %v15725_v22  ;;  %v5145_v25 = vmax.f32 %v20722_v17, %v4921_v49  ;;  %v24337_v49 = vld [vmem:[#allocation13_spill] sm:$0xff] }
 0x3b3   : > { %v5142_v54 = vmax.f32 %v20665_v4, %v4918_v16  ;;  %v5144_v9 = vmax.f32 %v20705_v57, %v4920_v21  ;;  %v24338_v21 = vld [vmem:[#allocation44_spill] sm:$0xff] }
 0x3b4   : > { %v21152_v52 = vpack.c.bf16 %v5145_v25, %v5143_v6  ;;  %v24339_v25 = vmov 0  }
 0x3b5   : > { %v21154_v31 = vpack.c.bf16 %v5144_v9, %v5142_v54  ;;  %v16294_v54 = vld [vmem:[%s23805_s3 + $0x380] ss:$16 sps:$4 sm:$0xff]   ;;  %v16297_v9 = vld [vmem:[%s23805_s3 + $0x388] ss:$16 sps:$4 sm:$0xff]  }
 0x3b6   : > { %13526 = vmatprep.mubr.msk.bf16.mxu0 %vm1913_vm2, %v21152_v52  ;;  %13552 = vmatprep.mubr.msk.bf16.mxu1 %vm1913_vm2, %v21152_v52 }
 0x3b7   : > { %5975 = vmatmul.mubr.bf16.gmra.mrb[68].mxu0 %v21154_v31  ;;  %6288 = vmatmul.mubr.bf16.gmra.mrb[68].mxu1 %v21154_v31 }
 0x3bb   : > { %v15734_v34 = vpop.permute.xlu0 %15733 }
 0x3bc   : > { %v15736_v17 = vunpack.i.h.bf16 %v15734_v34  ;;  %v15735_v18 = vunpack.i.l.bf16 %v15734_v34 }
 0x3be   : > { %v4923_v57 = vsel %vm1631_vm0, %v15735_v18, %v15736_v17  ;;  %v16302_v17 = vld [vmem:[%s23805_s3 + $0x3a4] ss:$16 sps:$4 sm:$0xff]  }
 0x3bf   : > { %v5147_v61 = vmax.f32 %v20818_v5, %v4923_v57  ;;  %v16303_v57 = vld [vmem:[%s23805_s3 + $0x3a8] ss:$16 sps:$4 sm:$0xff]  }
 0x3c2   : > { %v15739_v4 = vpop.permute.xlu1 %15738 }
 0x3c3   : > { %v15741_v23 = vunpack.i.h.bf16 %v15739_v4  ;;  %v15740_v11 = vunpack.i.l.bf16 %v15739_v4  ;;  %v15744_v38 = vpop.permute.xlu0 %15743  ;;  %v16300_v4 = vld [vmem:[%s23805_s3 + $0x3a0] ss:$16 sps:$4 sm:$0xff]  }
 0x3c4   : > { %v15746_v7 = vunpack.i.h.bf16 %v15744_v38  ;;  %v15745_v30 = vunpack.i.l.bf16 %v15744_v38  ;;  %v16311_v38 = vld [vmem:[%s23805_s3 + $0x3cc] ss:$16 sps:$4 sm:$0xff]  }
 0x3c5   : > { %v4925_v1 = vsel %vm1631_vm0, %v15740_v11, %v15741_v23 }
 0x3c6   : > { %v5149_v50 = vmax.f32 %v20842_v33, %v4925_v1  ;;  %v4924_v58 = vsel %vm1631_vm0, %v15746_v7, %v15740_v11  ;;  %v4922_v63 = vsel %vm1631_vm0, %v15745_v30, %v15735_v18  ;;  %v16305_v18 = vld [vmem:[%s23805_s3 + $0x3ac] ss:$16 sps:$4 sm:$0xff]   ;;  %v16308_v11 = vld [vmem:[%s23805_s3 + $0x3c4] ss:$16 sps:$4 sm:$0xff]  }
 0x3c7   : > { %v5148_v62 = vmax.f32 %v20828_v8, %v4924_v58  ;;  %v5146_v13 = vmax.f32 %v20809_v0, %v4922_v63 }
 0x3c8   : > { %v21170_v20 = vpack.c.bf16 %v5149_v50, %v5147_v61 }
 0x3c9   : > { %v21172_v24 = vpack.c.bf16 %v5148_v62, %v5146_v13  ;;  %v16306_v62 = vld [vmem:[%s23805_s3 + $0x3c0] ss:$16 sps:$4 sm:$0xff]   ;;  %v16309_v13 = vld [vmem:[%s23805_s3 + $0x3c8] ss:$16 sps:$4 sm:$0xff]  }
 0x3ca   : > { %13527 = vmatprep.mubr.msk.bf16.mxu0 %vm1913_vm2, %v21170_v20  ;;  %13553 = vmatprep.mubr.msk.bf16.mxu1 %vm1913_vm2, %v21170_v20 }
 0x3cb   : > { %24335 = vst [vmem:[#allocation31_spill] sm:$0xff] %v21172_v24  ;;  %5985 = vmatmul.mubr.bf16.gmra.mrb[72].mxu0 %v21172_v24  ;;  %6298 = vmatmul.mubr.bf16.gmra.mrb[72].mxu1 %v21172_v24 }
 0x3cd   : > { %v15749_v5 = vpop.permute.xlu1 %15748  ;;  %v15754_v8 = vpop.permute.xlu0 %15753 }
 0x3ce   : > { %v15751_v33 = vunpack.i.h.bf16 %v15749_v5  ;;  %v15750_v46 = vunpack.i.l.bf16 %v15749_v5  ;;  %v15756_v12 = vunpack.i.h.bf16 %v15754_v8  ;;  %v15755_v0 = vunpack.i.l.bf16 %v15754_v8  ;;  %v16317_v8 = vld [vmem:[%s23805_s3 + $0x3ec] ss:$16 sps:$4 sm:$0xff]  }
 0x3d0   : > { %v4927_v15 = vsel %vm1631_vm0, %v15750_v46, %v15751_v33  ;;  %v4929_v27 = vsel %vm1631_vm0, %v15755_v0, %v15756_v12 }
 0x3d1   : > { %v15759_v40 = vpop.permute.xlu1 %15758  ;;  %v5151_v39 = vmax.f32 %v20860_v14, %v4927_v15  ;;  %v5153_v28 = vmax.f32 %v24336_v2, %v4929_v27  ;;  %v16320_v15 = vld [vmem:[%s23805_s3 + $0x404] ss:$16 sps:$4 sm:$0xff]   ;;  %v16323_v27 = vld [vmem:[%s23805_s3 + $0x40c] ss:$16 sps:$4 sm:$0xff]   ;;  %v16321_v2 = vld [vmem:[%s23805_s3 + $0x408] ss:$16 sps:$4 sm:$0xff]  }
 0x3d2   : > { %v15761_v36 = vunpack.i.h.bf16 %v15759_v40  ;;  %v15760_v19 = vunpack.i.l.bf16 %v15759_v40 }
 0x3d3   : > { %v21184_v22 = vpack.c.bf16 %v5153_v28, %v5151_v39  ;;  %v16318_v39 = vld [vmem:[%s23805_s3 + $0x400] ss:$16 sps:$4 sm:$0xff]  }
 0x3d4   : > { %v4926_v26 = vsel %vm1631_vm0, %v15760_v19, %v15750_v46  ;;  %v4928_v41 = vsel %vm1631_vm0, %v15761_v36, %v15755_v0  ;;  %v16314_v46 = vld [vmem:[%s23805_s3 + $0x3e4] ss:$16 sps:$4 sm:$0xff]   ;;  %v16329_v19 = vld [vmem:[%s23805_s3 + $0x42c] ss:$16 sps:$4 sm:$0xff]  }
 0x3d5   : > { %v5150_v16 = vmax.f32 %v24337_v49, %v4926_v26  ;;  %v5152_v6 = vmax.f32 %v24338_v21, %v4928_v41  ;;  %13528 = vmatprep.mubr.msk.bf16.mxu0 %vm1913_vm2, %v21184_v22  ;;  %13554 = vmatprep.mubr.msk.bf16.mxu1 %vm1913_vm2, %v21184_v22  ;;  %v16326_v36 = vld [vmem:[%s23805_s3 + $0x424] ss:$16 sps:$4 sm:$0xff]  }
 0x3d7   : > { %v21194_v14 = vpack.c.bf16 %v5152_v6, %v5150_v16 }
 0x3d9   : > { %5995 = vmatmul.mubr.bf16.gmra.mrb[76].mxu0 %v21194_v14  ;;  %6308 = vmatmul.mubr.bf16.gmra.mrb[76].mxu1 %v21194_v14 }
 0x3da   : > { %6630 = vmatprep.mubr.bf16.mxu0 %v24339_v25  ;;  %6943 = vmatprep.mubr.bf16.mxu1 %v24339_v25 }
 0x3dd   : > { %v21206_v34 = vpop.permute.xlu0 %15763 }
 0x3de   : > { %v23952_v30 = vunpack.i.l.bf16 %v21206_v34 }
 0x3e1   : > { %6631 = vmatmul.mubr.bf16.vlgmr.msra.gmra.mrb[224].mxu0 %v24339_v25  ;;  %6944 = vmatmul.mubr.bf16.vlgmr.msra.gmra.mrb[224].mxu1 %v24339_v25 }
 0x3e2   : > { %7568 = vmatpush1.bf16.msra.mxu0 %v16294_v54  ;;  %7881 = vmatpush1.bf16.msra.mxu1 %v16297_v9  ;;  %v21222_v23 = vpop.permute.xlu1 %15768  ;;  %v16324_v54 = vld [vmem:[%s23805_s3 + $0x420] ss:$16 sps:$4 sm:$0xff]   ;;  %v16327_v9 = vld [vmem:[%s23805_s3 + $0x428] ss:$16 sps:$4 sm:$0xff]  }
 0x3e3   : > { %6640 = vmatprep.mubr.bf16.mxu0 %v24339_v25  ;;  %6953 = vmatprep.mubr.bf16.mxu1 %v24339_v25  ;;  %v23953_v1 = vunpack.i.l.bf16 %v21222_v23 }
 0x3e4   : > { %v15774_v7 = vpop.permute.xlu0 %15773  ;;  %7569 = vmatprep.subr.bf16.mxu0 %v16302_v17  ;;  %7882 = vmatprep.subr.bf16.mxu1 %v16305_v18 }
 0x3e5   : > { %v15776_v61 = vunpack.i.h.bf16 %v15774_v7  ;;  %v15775_v50 = vunpack.i.l.bf16 %v15774_v7  ;;  %v16341_v7 = vld [vmem:[%s23805_s3 + $0x46c] ss:$16 sps:$4 sm:$0xff]  }
 0x3e6   : > { %7570 = vmatpush1.bf16.msra.mxu0 %v16300_v4  ;;  %7883 = vmatpush1.bf16.msra.mxu1 %v16303_v57  ;;  %v16332_v4 = vld [vmem:[%s23805_s3 + $0x444] ss:$16 sps:$4 sm:$0xff]   ;;  %v16335_v57 = vld [vmem:[%s23805_s3 + $0x44c] ss:$16 sps:$4 sm:$0xff]  }
 0x3e7   : > { %v4932_v58 = vsel %vm1631_vm0, %v15776_v61, %v23953_v1  ;;  %v4930_v63 = vsel %vm1631_vm0, %v15775_v50, %v23952_v30  ;;  %7571 = vmatprep.subr.bf16.mxu0 %v16308_v11  ;;  %7884 = vmatprep.subr.bf16.mxu1 %v16311_v38  ;;  %v16338_v38 = vld [vmem:[%s23805_s3 + $0x464] ss:$16 sps:$4 sm:$0xff]   ;;  %v24342_v61 = vld [vmem:[#allocation33_spill] sm:$0xff]  ;;  %v16336_v50 = vld [vmem:[%s23805_s3 + $0x460] ss:$16 sps:$4 sm:$0xff]  }
 0x3e8   : > { %v5156_v5 = vmax.f32 %v21028_v43, %v4932_v58  ;;  %v5154_v33 = vmax.f32 %v21000_v32, %v4930_v63  ;;  %v16312_v32 = vld [vmem:[%s23805_s3 + $0x3e0] ss:$16 sps:$4 sm:$0xff]   ;;  %v16315_v43 = vld [vmem:[%s23805_s3 + $0x3e8] ss:$16 sps:$4 sm:$0xff]   ;;  %v16344_v63 = vld [vmem:[%s23805_s3 + $0x484] ss:$16 sps:$4 sm:$0xff]  }
 0x3e9   : > { %6641 = vmatmul.mubr.bf16.gmra.mrb[228].mxu0 %v24339_v25  ;;  %6954 = vmatmul.mubr.bf16.gmra.mrb[228].mxu1 %v24339_v25  ;;  %v21258_v0 = vpop.permute.xlu1 %15778  ;;  %v16339_v58 = vld [vmem:[%s23805_s3 + $0x468] ss:$16 sps:$4 sm:$0xff]   ;;  %v16378_v1 = vld [vmem:[%s23805_s3 + $0x540] ss:$16 sps:$4 sm:$0xff]  }
 0x3ea   : > { %v21256_v12 = vpack.c.bf16 %v5156_v5, %v5154_v33  ;;  %6650 = vmatprep.mubr.bf16.mxu0 %v24339_v25  ;;  %6963 = vmatprep.mubr.bf16.mxu1 %v24339_v25  ;;  %v23950_v26 = vunpack.i.l.bf16 %v21258_v0  ;;  %v16345_v5 = vld [vmem:[%s23805_s3 + $0x488] ss:$16 sps:$4 sm:$0xff]   ;;  %v16350_v33 = vld [vmem:[%s23805_s3 + $0x4a4] ss:$16 sps:$4 sm:$0xff]  }
 0x3eb   : > { %7572 = vmatpush1.bf16.msra.mxu0 %v16306_v62  ;;  %7885 = vmatpush1.bf16.msra.mxu1 %v16309_v13  ;;  %v16347_v62 = vld [vmem:[%s23805_s3 + $0x48c] ss:$16 sps:$4 sm:$0xff]   ;;  %v16342_v13 = vld [vmem:[%s23805_s3 + $0x480] ss:$16 sps:$4 sm:$0xff]  }
 0x3ec   : > { %24340 = vst [vmem:[#allocation41_spill] sm:$0xff] %v21256_v12  ;;  %7573 = vmatprep.subr.bf16.mxu0 %v16314_v46  ;;  %7886 = vmatprep.subr.bf16.mxu1 %v16317_v8  ;;  %v16353_v46 = vld [vmem:[%s23805_s3 + $0x4ac] ss:$16 sps:$4 sm:$0xff]   ;;  %v24343_v8 = vld [vmem:[#allocation28_spill] sm:$0xff] }
 0x3ed   : > { %v21274_v40 = vpop.permute.xlu0 %15783  ;;  %v24377_v30 = vld [vmem:[#allocation11_spill] sm:$0xff] }
 0x3ee   : > { %v23951_v41 = vunpack.i.l.bf16 %v21274_v40  ;;  %v16389_v12 = vld [vmem:[%s23805_s3 + $0x56c] ss:$16 sps:$4 sm:$0xff]  }
 0x3ef   : > { %7574 = vmatpush1.bf16.msra.mxu0 %v16312_v32  ;;  %7887 = vmatpush1.bf16.msra.mxu1 %v16315_v43  ;;  %v24344_v32 = vld [vmem:[#allocation32_spill] sm:$0xff] }
 0x3f0   : > { %v15789_v28 = vpop.permute.xlu1 %15788  ;;  %7575 = vmatprep.subr.bf16.mxu0 %v16320_v15  ;;  %7888 = vmatprep.subr.bf16.mxu1 %v16323_v27  ;;  %v16348_v43 = vld [vmem:[%s23805_s3 + $0x4a0] ss:$16 sps:$4 sm:$0xff]   ;;  %v16351_v15 = vld [vmem:[%s23805_s3 + $0x4a8] ss:$16 sps:$4 sm:$0xff]   ;;  %v16356_v27 = vld [vmem:[%s23805_s3 + $0x4c4] ss:$16 sps:$4 sm:$0xff]  }
 0x3f1   : > { %v15791_v49 = vunpack.i.h.bf16 %v15789_v28  ;;  %v15790_v16 = vunpack.i.l.bf16 %v15789_v28  ;;  %6651 = vmatmul.mubr.bf16.gmra.mrb[232].mxu0 %v24339_v25  ;;  %6964 = vmatmul.mubr.bf16.gmra.mrb[232].mxu1 %v24339_v25  ;;  %v16357_v28 = vld [vmem:[%s23805_s3 + $0x4c8] ss:$16 sps:$4 sm:$0xff]  }
 0x3f2   : > { %6660 = vmatprep.mubr.bf16.mxu0 %v24339_v25  ;;  %6973 = vmatprep.mubr.bf16.mxu1 %v24339_v25 }
 0x3f3   : > { %v4934_v21 = vsel %vm1631_vm0, %v15790_v16, %v23950_v26  ;;  %v4936_v6 = vsel %vm1631_vm0, %v15791_v49, %v23951_v41  ;;  %7576 = vmatpush1.bf16.msra.mxu0 %v16318_v39  ;;  %7889 = vmatpush1.bf16.msra.mxu1 %v16321_v2  ;;  %v16359_v39 = vld [vmem:[%s23805_s3 + $0x4cc] ss:$16 sps:$4 sm:$0xff]   ;;  %v16354_v2 = vld [vmem:[%s23805_s3 + $0x4c0] ss:$16 sps:$4 sm:$0xff]   ;;  %v16362_v49 = vld [vmem:[%s23805_s3 + $0x4e4] ss:$16 sps:$4 sm:$0xff]  }
 0x3f4   : > { %v5158_v17 = vmax.f32 %v21048_v29, %v4934_v21  ;;  %v5160_v18 = vmax.f32 %v21080_v45, %v4936_v6  ;;  %7577 = vmatprep.subr.bf16.mxu0 %v16326_v36  ;;  %7890 = vmatprep.subr.bf16.mxu1 %v16329_v19  ;;  %v16330_v29 = vld [vmem:[%s23805_s3 + $0x440] ss:$16 sps:$4 sm:$0xff]   ;;  %v16333_v45 = vld [vmem:[%s23805_s3 + $0x448] ss:$16 sps:$4 sm:$0xff]  }
 0x3f5   : > { %v24345_v36 = vld [vmem:[#allocation14_spill] sm:$0xff]  ;;  %v16363_v6 = vld [vmem:[%s23805_s3 + $0x4e8] ss:$16 sps:$4 sm:$0xff]  }
 0x3f6   : > { %v21314_v11 = vpack.c.bf16 %v5160_v18, %v5158_v17  ;;  %v24346_v19 = vld [vmem:[#allocation38_spill] sm:$0xff]  ;;  %v24349_v17 = vld [vmem:[#allocation24_spill] sm:$0xff]  ;;  %v24350_v18 = vld [vmem:[#allocation15_spill] sm:$0xff] }
 0x3f7   : > { %7578 = vmatpush1.bf16.msra.mxu0 %v16324_v54  ;;  %7891 = vmatpush1.bf16.msra.mxu1 %v16327_v9  ;;  %v16360_v16 = vld [vmem:[%s23805_s3 + $0x4e0] ss:$16 sps:$4 sm:$0xff]   ;;  %v16365_v54 = vld [vmem:[%s23805_s3 + $0x4ec] ss:$16 sps:$4 sm:$0xff]  }
 0x3f8   : > { %24341 = vst [vmem:[#allocation16_spill] sm:$0xff] %v21314_v11  ;;  %7579 = vmatprep.subr.bf16.mxu0 %v16332_v4  ;;  %7892 = vmatprep.subr.bf16.mxu1 %v16335_v57  ;;  %v24347_v21 = vld [vmem:[#allocation42_spill] sm:$0xff]  ;;  %v24348_v9 = vld [vmem:[#allocation21_spill] sm:$0xff] }
 0x3f9   : > { %6661 = vmatmul.mubr.bf16.gmra.mrb[236].mxu0 %v24339_v25  ;;  %6974 = vmatmul.mubr.bf16.gmra.mrb[236].mxu1 %v24339_v25  ;;  %v16366_v4 = vld [vmem:[%s23805_s3 + $0x500] ss:$16 sps:$4 sm:$0xff]   ;;  %v16368_v57 = vld [vmem:[%s23805_s3 + $0x504] ss:$16 sps:$4 sm:$0xff]   ;;  %v16381_v25 = vld [vmem:[%s23805_s3 + $0x548] ss:$16 sps:$4 sm:$0xff]  }
 0x3fa   : > { %13611 = vmatprep.mubr.msk.bf16.mxu0 %vm1913_vm2, %v24342_v61  ;;  %13635 = vmatprep.mubr.msk.bf16.mxu1 %vm1913_vm2, %v24342_v61  ;;  %v24375_v26 = vld [vmem:[#allocation30_spill] sm:$0xff] }
 0x3fb   : > { %7580 = vmatpush1.bf16.msra.mxu0 %v16330_v29  ;;  %7893 = vmatpush1.bf16.msra.mxu1 %v16333_v45  ;;  %v24351_v29 = vld [vmem:[#allocation10_spill] sm:$0xff]  ;;  %v16369_v45 = vld [vmem:[%s23805_s3 + $0x508] ss:$16 sps:$4 sm:$0xff]  }
 0x3fc   : > { %7581 = vmatprep.subr.bf16.mxu0 %v16338_v38  ;;  %7894 = vmatprep.subr.bf16.mxu1 %v16341_v7  ;;  %v16371_v38 = vld [vmem:[%s23805_s3 + $0x50c] ss:$16 sps:$4 sm:$0xff]   ;;  %v24352_v7 = vld [vmem:[#allocation20_spill] sm:$0xff]  ;;  %v24376_v41 = vld [vmem:[#allocation54_spill] sm:$0xff] }
 0x3fd   : > { %v16386_v11 = vld [vmem:[%s23805_s3 + $0x564] ss:$16 sps:$4 sm:$0xff]  }
 0x3ff   : > { %7582 = vmatpush1.bf16.msra.mxu0 %v16336_v50  ;;  %7895 = vmatpush1.bf16.msra.mxu1 %v16339_v58  ;;  %v24353_v50 = vld [vmem:[#allocation9_spill] sm:$0xff] }
 0x400   : > { %7583 = vmatprep.subr.bf16.mxu0 %v16344_v63  ;;  %7896 = vmatprep.subr.bf16.mxu1 %v16347_v62  ;;  %v24354_v58 = vld [vmem:[#allocation25_spill] sm:$0xff]  ;;  %v16372_v63 = vld [vmem:[%s23805_s3 + $0x520] ss:$16 sps:$4 sm:$0xff]   ;;  %v16374_v62 = vld [vmem:[%s23805_s3 + $0x524] ss:$16 sps:$4 sm:$0xff]  }
 0x401   : > { %6671 = vmatmul.mubr.bf16.gmra.mrb[240].mxu0 %v24343_v8  ;;  %6984 = vmatmul.mubr.bf16.gmra.mrb[240].mxu1 %v24343_v8 }
 0x402   : > { %13612 = vmatprep.mubr.msk.bf16.mxu0 %vm1913_vm2, %v24344_v32  ;;  %13636 = vmatprep.mubr.msk.bf16.mxu1 %vm1913_vm2, %v24344_v32 }
 0x403   : > { %7584 = vmatpush1.bf16.msra.mxu0 %v16342_v13  ;;  %7897 = vmatpush1.bf16.msra.mxu1 %v16345_v5  ;;  %v24355_v13 = vld [vmem:[#allocation36_spill] sm:$0xff]  ;;  %v16375_v5 = vld [vmem:[%s23805_s3 + $0x528] ss:$16 sps:$4 sm:$0xff]  }
 0x404   : > { %7585 = vmatprep.subr.bf16.mxu0 %v16350_v33  ;;  %7898 = vmatprep.subr.bf16.mxu1 %v16353_v46  ;;  %v16377_v33 = vld [vmem:[%s23805_s3 + $0x52c] ss:$16 sps:$4 sm:$0xff]   ;;  %v24356_v46 = vld [vmem:[#allocation34_spill] sm:$0xff] }
 0x407   : > { %7586 = vmatpush1.bf16.msra.mxu0 %v16348_v43  ;;  %7899 = vmatpush1.bf16.msra.mxu1 %v16351_v15  ;;  %v24357_v43 = vld [vmem:[#allocation18_spill] sm:$0xff]  ;;  %v24358_v15 = vld [vmem:[#allocation23_spill] sm:$0xff] }
 0x408   : > { %7587 = vmatprep.subr.bf16.mxu0 %v16356_v27  ;;  %7900 = vmatprep.subr.bf16.mxu1 %v16359_v39  ;;  %v16380_v27 = vld [vmem:[%s23805_s3 + $0x544] ss:$16 sps:$4 sm:$0xff]   ;;  %v24359_v39 = vld [vmem:[#allocation45_spill] sm:$0xff] }
 0x409   : > { %6681 = vmatmul.mubr.bf16.gmra.mrb[244].mxu0 %v24345_v36  ;;  %6994 = vmatmul.mubr.bf16.gmra.mrb[244].mxu1 %v24345_v36 }
 0x40a   : > { %13613 = vmatprep.mubr.msk.bf16.mxu0 %vm1913_vm2, %v24346_v19  ;;  %13637 = vmatprep.mubr.msk.bf16.mxu1 %vm1913_vm2, %v24346_v19 }
 0x40b   : > { %7588 = vmatpush1.bf16.msra.mxu0 %v16354_v2  ;;  %7901 = vmatpush1.bf16.msra.mxu1 %v16357_v28  ;;  %v24360_v2 = vld [vmem:[#allocation37_spill] sm:$0xff] }
 0x40c   : > { %7589 = vmatprep.subr.bf16.mxu0 %v16362_v49  ;;  %7902 = vmatprep.subr.bf16.mxu1 %v16365_v54  ;;  %v16383_v28 = vld [vmem:[%s23805_s3 + $0x54c] ss:$16 sps:$4 sm:$0xff]   ;;  %v24361_v49 = vld [vmem:[#allocation50_spill] sm:$0xff] }
 0x40d   : > { %v24364_v54 = vld [vmem:[#allocation29_spill] sm:$0xff] }
 0x40f   : > { %7590 = vmatpush1.bf16.msra.mxu0 %v16360_v16  ;;  %7903 = vmatpush1.bf16.msra.mxu1 %v16363_v6  ;;  %v24362_v16 = vld [vmem:[#allocation43_spill] sm:$0xff] }
 0x410   : > { %7591 = vmatprep.subr.bf16.mxu0 %v16368_v57  ;;  %7904 = vmatprep.subr.bf16.mxu1 %v16371_v38  ;;  %v24363_v6 = vld [vmem:[#allocation47_spill] sm:$0xff]  ;;  %v24366_v57 = vld [vmem:[#allocation17_spill] sm:$0xff] }
 0x411   : > { %6691 = vmatmul.mubr.bf16.gmra.mrb[248].mxu0 %v24347_v21  ;;  %7004 = vmatmul.mubr.bf16.gmra.mrb[248].mxu1 %v24347_v21  ;;  %v24368_v38 = vld [vmem:[#allocation39_spill] sm:$0xff] }
 0x412   : > { %13614 = vmatprep.mubr.msk.bf16.mxu0 %vm1913_vm2, %v24348_v9  ;;  %13638 = vmatprep.mubr.msk.bf16.mxu1 %vm1913_vm2, %v24348_v9 }
 0x413   : > { %7592 = vmatpush1.bf16.msra.mxu0 %v16366_v4  ;;  %7905 = vmatpush1.bf16.msra.mxu1 %v16369_v45  ;;  %v24365_v4 = vld [vmem:[#allocation49_spill] sm:$0xff]  ;;  %v24367_v45 = vld [vmem:[#allocation19_spill] sm:$0xff] }
 0x414   : > { %7593 = vmatprep.subr.bf16.mxu0 %v16374_v62  ;;  %7906 = vmatprep.subr.bf16.mxu1 %v16377_v33  ;;  %v24370_v62 = vld [vmem:[#allocation26_spill] sm:$0xff]  ;;  %v24372_v33 = vld [vmem:[#allocation48_spill] sm:$0xff] }
 0x417   : > { %7594 = vmatpush1.bf16.msra.mxu0 %v16372_v63  ;;  %7907 = vmatpush1.bf16.msra.mxu1 %v16375_v5  ;;  %v24369_v63 = vld [vmem:[#allocation40_spill] sm:$0xff] }
 0x418   : > { %8754 = vmatprep.subr.bf16.mxu0 %v16380_v27  ;;  %9067 = vmatprep.subr.bf16.mxu1 %v16383_v28  ;;  %v24371_v5 = vld [vmem:[#allocation8_spill] sm:$0xff]  ;;  %v24373_v27 = vld [vmem:[#allocation46_spill] sm:$0xff]  ;;  %v24374_v28 = vld [vmem:[#allocation27_spill] sm:$0xff] }
 0x419   : > { %6701 = vmatmul.mubr.bf16.gmra.mrb[252].mxu0 %v24349_v17  ;;  %7014 = vmatmul.mubr.bf16.gmra.mrb[252].mxu1 %v24349_v17 }
 0x41a   : > { %13615 = vmatprep.mubr.msk.bf16.mxu0 %vm1913_vm2, %v24350_v18  ;;  %13639 = vmatprep.mubr.msk.bf16.mxu1 %vm1913_vm2, %v24350_v18 }
 0x421   : > { %6711 = vmatmul.mubr.bf16.gmra.mrb[0].mxu0 %v24351_v29  ;;  %7024 = vmatmul.mubr.bf16.gmra.mrb[0].mxu1 %v24351_v29 }
 0x422   : > { %13616 = vmatprep.mubr.msk.bf16.mxu0 %vm1913_vm2, %v24352_v7  ;;  %13640 = vmatprep.mubr.msk.bf16.mxu1 %vm1913_vm2, %v24352_v7 }
 0x429   : > { %6721 = vmatmul.mubr.bf16.gmra.mrb[4].mxu0 %v24353_v50  ;;  %7034 = vmatmul.mubr.bf16.gmra.mrb[4].mxu1 %v24353_v50 }
 0x42a   : > { %13617 = vmatprep.mubr.msk.bf16.mxu0 %vm1913_vm2, %v24354_v58  ;;  %13641 = vmatprep.mubr.msk.bf16.mxu1 %vm1913_vm2, %v24354_v58 }
 0x431   : > { %6731 = vmatmul.mubr.bf16.gmra.mrb[8].mxu0 %v24355_v13  ;;  %7044 = vmatmul.mubr.bf16.gmra.mrb[8].mxu1 %v24355_v13 }
 0x432   : > { %13618 = vmatprep.mubr.msk.bf16.mxu0 %vm1913_vm2, %v24356_v46  ;;  %13642 = vmatprep.mubr.msk.bf16.mxu1 %vm1913_vm2, %v24356_v46 }
 0x439   : > { %6741 = vmatmul.mubr.bf16.gmra.mrb[12].mxu0 %v24357_v43  ;;  %7054 = vmatmul.mubr.bf16.gmra.mrb[12].mxu1 %v24357_v43 }
 0x43a   : > { %13619 = vmatprep.mubr.msk.bf16.mxu0 %vm1913_vm2, %v24358_v15  ;;  %13643 = vmatprep.mubr.msk.bf16.mxu1 %vm1913_vm2, %v24358_v15 }
 0x441   : > { %6751 = vmatmul.mubr.bf16.gmra.mrb[16].mxu0 %v24359_v39  ;;  %7064 = vmatmul.mubr.bf16.gmra.mrb[16].mxu1 %v24359_v39 }
 0x442   : > { %13620 = vmatprep.mubr.msk.bf16.mxu0 %vm1913_vm2, %v24360_v2  ;;  %13644 = vmatprep.mubr.msk.bf16.mxu1 %vm1913_vm2, %v24360_v2 }
 0x449   : > { %6761 = vmatmul.mubr.bf16.gmra.mrb[20].mxu0 %v24361_v49  ;;  %7074 = vmatmul.mubr.bf16.gmra.mrb[20].mxu1 %v24361_v49 }
 0x44a   : > { %13621 = vmatprep.mubr.msk.bf16.mxu0 %vm1913_vm2, %v24362_v16  ;;  %13645 = vmatprep.mubr.msk.bf16.mxu1 %vm1913_vm2, %v24362_v16 }
 0x451   : > { %6771 = vmatmul.mubr.bf16.gmra.mrb[24].mxu0 %v24363_v6  ;;  %7084 = vmatmul.mubr.bf16.gmra.mrb[24].mxu1 %v24363_v6 }
 0x452   : > { %13622 = vmatprep.mubr.msk.bf16.mxu0 %vm1913_vm2, %v24364_v54  ;;  %13646 = vmatprep.mubr.msk.bf16.mxu1 %vm1913_vm2, %v24364_v54 }
 0x459   : > { %6781 = vmatmul.mubr.bf16.gmra.mrb[28].mxu0 %v24365_v4  ;;  %7094 = vmatmul.mubr.bf16.gmra.mrb[28].mxu1 %v24365_v4 }
 0x45a   : > { %13623 = vmatprep.mubr.msk.bf16.mxu0 %vm1913_vm2, %v24366_v57  ;;  %13647 = vmatprep.mubr.msk.bf16.mxu1 %vm1913_vm2, %v24366_v57 }
 0x461   : > { %6791 = vmatmul.mubr.bf16.gmra.mrb[32].mxu0 %v24367_v45  ;;  %7104 = vmatmul.mubr.bf16.gmra.mrb[32].mxu1 %v24367_v45 }
 0x462   : > { %13624 = vmatprep.mubr.msk.bf16.mxu0 %vm1913_vm2, %v24368_v38  ;;  %13648 = vmatprep.mubr.msk.bf16.mxu1 %vm1913_vm2, %v24368_v38 }
 0x469   : > { %6801 = vmatmul.mubr.bf16.gmra.mrb[36].mxu0 %v24369_v63  ;;  %7114 = vmatmul.mubr.bf16.gmra.mrb[36].mxu1 %v24369_v63 }
 0x46a   : > { %13625 = vmatprep.mubr.msk.bf16.mxu0 %vm1913_vm2, %v24370_v62  ;;  %13649 = vmatprep.mubr.msk.bf16.mxu1 %vm1913_vm2, %v24370_v62 }
 0x471   : > { %6811 = vmatmul.mubr.bf16.gmra.mrb[40].mxu0 %v24371_v5  ;;  %7124 = vmatmul.mubr.bf16.gmra.mrb[40].mxu1 %v24371_v5 }
 0x472   : > { %13626 = vmatprep.mubr.msk.bf16.mxu0 %vm1913_vm2, %v24372_v33  ;;  %13650 = vmatprep.mubr.msk.bf16.mxu1 %vm1913_vm2, %v24372_v33 }
 0x479   : > { %6821 = vmatmul.mubr.bf16.gmra.mrb[44].mxu0 %v24373_v27  ;;  %7134 = vmatmul.mubr.bf16.gmra.mrb[44].mxu1 %v24373_v27 }
 0x47a   : > { %13627 = vmatprep.mubr.msk.bf16.mxu0 %vm1913_vm2, %v24374_v28  ;;  %13651 = vmatprep.mubr.msk.bf16.mxu1 %vm1913_vm2, %v24374_v28 }
 0x481   : > { %6831 = vmatmul.mubr.bf16.gmra.mrb[48].mxu0 %v24375_v26  ;;  %7144 = vmatmul.mubr.bf16.gmra.mrb[48].mxu1 %v24375_v26 }
 0x482   : > { %13628 = vmatprep.mubr.msk.bf16.mxu0 %vm1913_vm2, %v24376_v41  ;;  %13652 = vmatprep.mubr.msk.bf16.mxu1 %vm1913_vm2, %v24376_v41 }
 0x489   : > { %6841 = vmatmul.mubr.bf16.gmra.mrb[52].mxu0 %v24377_v30  ;;  %7154 = vmatmul.mubr.bf16.gmra.mrb[52].mxu1 %v24377_v30 }
 0x48a   : > { %13629 = vmatprep.mubr.msk.bf16.mxu0 %vm1913_vm2, %v20994_v60  ;;  %13653 = vmatprep.mubr.msk.bf16.mxu1 %vm1913_vm2, %v20994_v60 }
 0x491   : > { %6851 = vmatmul.mubr.bf16.gmra.mrb[56].mxu0 %v20998_v42  ;;  %7164 = vmatmul.mubr.bf16.gmra.mrb[56].mxu1 %v20998_v42 }
 0x492   : > { %13630 = vmatprep.mubr.msk.bf16.mxu0 %vm1913_vm2, %v21066_v48  ;;  %13654 = vmatprep.mubr.msk.bf16.mxu1 %vm1913_vm2, %v21066_v48 }
 0x499   : > { %6861 = vmatmul.mubr.bf16.gmra.mrb[60].mxu0 %v21068_v44  ;;  %7174 = vmatmul.mubr.bf16.gmra.mrb[60].mxu1 %v21068_v44 }
 0x49a   : > { %13631 = vmatprep.mubr.msk.bf16.mxu0 %vm1913_vm2, %v21098_v59  ;;  %13655 = vmatprep.mubr.msk.bf16.mxu1 %vm1913_vm2, %v21098_v59 }
 0x4a1   : > { %6871 = vmatmul.mubr.bf16.gmra.mrb[64].mxu0 %v21100_v55  ;;  %7184 = vmatmul.mubr.bf16.gmra.mrb[64].mxu1 %v21100_v55 }
 0x4a2   : > { %13632 = vmatprep.mubr.msk.bf16.mxu0 %vm1913_vm2, %v21116_v35  ;;  %13656 = vmatprep.mubr.msk.bf16.mxu1 %vm1913_vm2, %v21116_v35 }
 0x4a9   : > { %6881 = vmatmul.mubr.bf16.gmra.mrb[68].mxu0 %v21118_v53  ;;  %7194 = vmatmul.mubr.bf16.gmra.mrb[68].mxu1 %v21118_v53 }
 0x4aa   : > { %13633 = vmatprep.mubr.msk.bf16.mxu0 %vm1913_vm2, %v21134_v10  ;;  %13657 = vmatprep.mubr.msk.bf16.mxu1 %vm1913_vm2, %v21134_v10 }
 0x4b1   : > { %6891 = vmatmul.mubr.bf16.gmra.mrb[72].mxu0 %v21136_v56  ;;  %7204 = vmatmul.mubr.bf16.gmra.mrb[72].mxu1 %v21136_v56 }
 0x4b2   : > { %13634 = vmatprep.mubr.msk.bf16.mxu0 %vm1913_vm2, %v21152_v52  ;;  %13658 = vmatprep.mubr.msk.bf16.mxu1 %vm1913_vm2, %v21152_v52 }
 0x4b9   : > { %6901 = vmatmul.mubr.bf16.gmra.mrb[76].mxu0 %v21154_v31  ;;  %7214 = vmatmul.mubr.bf16.gmra.mrb[76].mxu1 %v21154_v31 }
 0x4ba   : > { %13771 = vmatprep.mubr.msk.bf16.mxu0 %vm1913_vm2, %v24342_v61  ;;  %13799 = vmatprep.mubr.msk.bf16.mxu1 %vm1913_vm2, %v24342_v61  ;;  %v16384_v61 = vld [vmem:[%s23805_s3 + $0x560] ss:$16 sps:$4 sm:$0xff]  }
 0x4c1   : > { %7600 = vmatmul.mubr.bf16.vlgmr.msra.gmra.mrb[224].mxu0 %v24343_v8  ;;  %7913 = vmatmul.mubr.bf16.vlgmr.msra.gmra.mrb[224].mxu1 %v24343_v8  ;;  %v16392_v8 = vld [vmem:[%s23805_s3 + $0x584] ss:$16 sps:$4 sm:$0xff]  }
 0x4c2   : > { %8755 = vmatpush1.bf16.msra.mxu0 %v16378_v1  ;;  %13772 = vmatprep.mubr.msk.bf16.mxu0 %vm1913_vm2, %v24344_v32  ;;  %v16395_v1 = vld [vmem:[%s23805_s3 + $0x58c] ss:$16 sps:$4 sm:$0xff]  }
 0x4c3   : > { %13800 = vmatprep.mubr.msk.bf16.mxu1 %vm1913_vm2, %v24344_v32  ;;  %9068 = vmatpush1.bf16.msra.mxu1 %v16381_v25  ;;  %v16390_v25 = vld [vmem:[%s23805_s3 + $0x580] ss:$16 sps:$4 sm:$0xff]   ;;  %v16393_v32 = vld [vmem:[%s23805_s3 + $0x588] ss:$16 sps:$4 sm:$0xff]  }
 0x4c4   : > { %8756 = vmatprep.subr.bf16.mxu0 %v16386_v11  ;;  %9069 = vmatprep.subr.bf16.mxu1 %v16389_v12  ;;  %v16398_v12 = vld [vmem:[%s23805_s3 + $0x5a4] ss:$16 sps:$4 sm:$0xff]   ;;  %v16401_v11 = vld [vmem:[%s23805_s3 + $0x5ac] ss:$16 sps:$4 sm:$0xff]  }
 0x4c6   : > { %8757 = vmatpush1.bf16.msra.mxu0 %v16384_v61  ;;  %v16399_v61 = vld [vmem:[%s23805_s3 + $0x5a8] ss:$16 sps:$4 sm:$0xff]  }
 0x4c7   : > { %9070 = vmatpush1.bf16.msra.mxu1 %v16387_v51  ;;  %8758 = vmatprep.subr.bf16.mxu0 %v16392_v8  ;;  %v16396_v51 = vld [vmem:[%s23805_s3 + $0x5a0] ss:$16 sps:$4 sm:$0xff]   ;;  %v16407_v8 = vld [vmem:[%s23805_s3 + $0x5cc] ss:$16 sps:$4 sm:$0xff]  }
 0x4c8   : > { %9071 = vmatprep.subr.bf16.mxu1 %v16395_v1  ;;  %v16402_v1 = vld [vmem:[%s23805_s3 + $0x5c0] ss:$16 sps:$4 sm:$0xff]  }
 0x4c9   : > { %7610 = vmatmul.mubr.bf16.gmra.mrb[228].mxu0 %v24345_v36  ;;  %7923 = vmatmul.mubr.bf16.gmra.mrb[228].mxu1 %v24345_v36  ;;  %v16404_v36 = vld [vmem:[%s23805_s3 + $0x5c4] ss:$16 sps:$4 sm:$0xff]  }
 0x4ca   : > { %13773 = vmatprep.mubr.msk.bf16.mxu0 %vm1913_vm2, %v24346_v19  ;;  %13801 = vmatprep.mubr.msk.bf16.mxu1 %vm1913_vm2, %v24346_v19 }
 0x4cb   : > { %8759 = vmatpush1.bf16.msra.mxu0 %v16390_v25  ;;  %9072 = vmatpush1.bf16.msra.mxu1 %v16393_v32  ;;  %v16405_v25 = vld [vmem:[%s23805_s3 + $0x5c8] ss:$16 sps:$4 sm:$0xff]   ;;  %v16410_v32 = vld [vmem:[%s23805_s3 + $0x5e4] ss:$16 sps:$4 sm:$0xff]  }
 0x4cc   : > { %8760 = vmatprep.subr.bf16.mxu0 %v16398_v12  ;;  %9073 = vmatprep.subr.bf16.mxu1 %v16401_v11  ;;  %v16413_v12 = vld [vmem:[%s23805_s3 + $0x5ec] ss:$16 sps:$4 sm:$0xff]   ;;  %v16408_v11 = vld [vmem:[%s23805_s3 + $0x5e0] ss:$16 sps:$4 sm:$0xff]  }
 0x4cf   : > { %8761 = vmatpush1.bf16.msra.mxu0 %v16396_v51  ;;  %9074 = vmatpush1.bf16.msra.mxu1 %v16399_v61  ;;  %v16411_v51 = vld [vmem:[%s23805_s3 + $0x5e8] ss:$16 sps:$4 sm:$0xff]   ;;  %v16416_v61 = vld [vmem:[%s23805_s3 + $0x604] ss:$16 sps:$4 sm:$0xff]  }
 0x4d0   : > { %8762 = vmatprep.subr.bf16.mxu0 %v16404_v36  ;;  %9075 = vmatprep.subr.bf16.mxu1 %v16407_v8  ;;  %v16419_v36 = vld [vmem:[%s23805_s3 + $0x60c] ss:$16 sps:$4 sm:$0xff]   ;;  %v16414_v8 = vld [vmem:[%s23805_s3 + $0x600] ss:$16 sps:$4 sm:$0xff]  }
 0x4d1   : > { %7620 = vmatmul.mubr.bf16.gmra.mrb[232].mxu0 %v24347_v21  ;;  %7933 = vmatmul.mubr.bf16.gmra.mrb[232].mxu1 %v24347_v21 }
 0x4d2   : > { %13774 = vmatprep.mubr.msk.bf16.mxu0 %vm1913_vm2, %v24348_v9  ;;  %13802 = vmatprep.mubr.msk.bf16.mxu1 %vm1913_vm2, %v24348_v9 }
 0x4d3   : > { %8763 = vmatpush1.bf16.msra.mxu0 %v16402_v1  ;;  %9076 = vmatpush1.bf16.msra.mxu1 %v16405_v25  ;;  %v16417_v1 = vld [vmem:[%s23805_s3 + $0x608] ss:$16 sps:$4 sm:$0xff]   ;;  %v16422_v25 = vld [vmem:[%s23805_s3 + $0x624] ss:$16 sps:$4 sm:$0xff]  }
 0x4d4   : > { %8764 = vmatprep.subr.bf16.mxu0 %v16410_v32  ;;  %9077 = vmatprep.subr.bf16.mxu1 %v16413_v12  ;;  %v16425_v32 = vld [vmem:[%s23805_s3 + $0x62c] ss:$16 sps:$4 sm:$0xff]   ;;  %v16420_v12 = vld [vmem:[%s23805_s3 + $0x620] ss:$16 sps:$4 sm:$0xff]  }
 0x4d7   : > { %8765 = vmatpush1.bf16.msra.mxu0 %v16408_v11  ;;  %9078 = vmatpush1.bf16.msra.mxu1 %v16411_v51  ;;  %v16423_v11 = vld [vmem:[%s23805_s3 + $0x628] ss:$16 sps:$4 sm:$0xff]   ;;  %v16428_v51 = vld [vmem:[%s23805_s3 + $0x644] ss:$16 sps:$4 sm:$0xff]  }
 0x4d8   : > { %8766 = vmatprep.subr.bf16.mxu0 %v16416_v61  ;;  %9079 = vmatprep.subr.bf16.mxu1 %v16419_v36  ;;  %v16431_v61 = vld [vmem:[%s23805_s3 + $0x64c] ss:$16 sps:$4 sm:$0xff]   ;;  %v16426_v36 = vld [vmem:[%s23805_s3 + $0x640] ss:$16 sps:$4 sm:$0xff]  }
 0x4d9   : > { %7630 = vmatmul.mubr.bf16.gmra.mrb[236].mxu0 %v24349_v17  ;;  %7943 = vmatmul.mubr.bf16.gmra.mrb[236].mxu1 %v24349_v17 }
 0x4da   : > { %13775 = vmatprep.mubr.msk.bf16.mxu0 %vm1913_vm2, %v24350_v18  ;;  %13803 = vmatprep.mubr.msk.bf16.mxu1 %vm1913_vm2, %v24350_v18 }
 0x4db   : > { %8767 = vmatpush1.bf16.msra.mxu0 %v16414_v8  ;;  %9080 = vmatpush1.bf16.msra.mxu1 %v16417_v1  ;;  %v16429_v8 = vld [vmem:[%s23805_s3 + $0x648] ss:$16 sps:$4 sm:$0xff]   ;;  %v16434_v1 = vld [vmem:[%s23805_s3 + $0x664] ss:$16 sps:$4 sm:$0xff]  }
 0x4dc   : > { %8768 = vmatprep.subr.bf16.mxu0 %v16422_v25  ;;  %9081 = vmatprep.subr.bf16.mxu1 %v16425_v32  ;;  %v16437_v25 = vld [vmem:[%s23805_s3 + $0x66c] ss:$16 sps:$4 sm:$0xff]   ;;  %v16432_v32 = vld [vmem:[%s23805_s3 + $0x660] ss:$16 sps:$4 sm:$0xff]  }
 0x4df   : > { %8769 = vmatpush1.bf16.msra.mxu0 %v16420_v12  ;;  %9082 = vmatpush1.bf16.msra.mxu1 %v16423_v11  ;;  %v16435_v12 = vld [vmem:[%s23805_s3 + $0x668] ss:$16 sps:$4 sm:$0xff]   ;;  %v16440_v11 = vld [vmem:[%s23805_s3 + $0x684] ss:$16 sps:$4 sm:$0xff]  }
 0x4e0   : > { %8770 = vmatprep.subr.bf16.mxu0 %v16428_v51  ;;  %9083 = vmatprep.subr.bf16.mxu1 %v16431_v61  ;;  %v16443_v51 = vld [vmem:[%s23805_s3 + $0x68c] ss:$16 sps:$4 sm:$0xff]   ;;  %v16438_v61 = vld [vmem:[%s23805_s3 + $0x680] ss:$16 sps:$4 sm:$0xff]  }
 0x4e1   : > { %7640 = vmatmul.mubr.bf16.gmra.mrb[240].mxu0 %v24351_v29  ;;  %7953 = vmatmul.mubr.bf16.gmra.mrb[240].mxu1 %v24351_v29 }
 0x4e2   : > { %13776 = vmatprep.mubr.msk.bf16.mxu0 %vm1913_vm2, %v24352_v7  ;;  %13804 = vmatprep.mubr.msk.bf16.mxu1 %vm1913_vm2, %v24352_v7 }
 0x4e3   : > { %8771 = vmatpush1.bf16.msra.mxu0 %v16426_v36  ;;  %9084 = vmatpush1.bf16.msra.mxu1 %v16429_v8  ;;  %v16441_v36 = vld [vmem:[%s23805_s3 + $0x688] ss:$16 sps:$4 sm:$0xff]   ;;  %v16446_v8 = vld [vmem:[%s23805_s3 + $0x6a4] ss:$16 sps:$4 sm:$0xff]  }
 0x4e4   : > { %8772 = vmatprep.subr.bf16.mxu0 %v16434_v1  ;;  %9085 = vmatprep.subr.bf16.mxu1 %v16437_v25  ;;  %v16444_v1 = vld [vmem:[%s23805_s3 + $0x6a0] ss:$16 sps:$4 sm:$0xff]   ;;  %v16447_v25 = vld [vmem:[%s23805_s3 + $0x6a8] ss:$16 sps:$4 sm:$0xff]  }
 0x4e7   : > { %8773 = vmatpush1.bf16.msra.mxu0 %v16432_v32  ;;  %9086 = vmatpush1.bf16.msra.mxu1 %v16435_v12  ;;  %v16449_v32 = vld [vmem:[%s23805_s3 + $0x6ac] ss:$16 sps:$4 sm:$0xff]   ;;  %v16450_v12 = vld [vmem:[%s23805_s3 + $0x6c0] ss:$16 sps:$4 sm:$0xff]  }
 0x4e8   : > { %8774 = vmatprep.subr.bf16.mxu0 %v16440_v11  ;;  %9087 = vmatprep.subr.bf16.mxu1 %v16443_v51  ;;  %v16452_v11 = vld [vmem:[%s23805_s3 + $0x6c4] ss:$16 sps:$4 sm:$0xff]   ;;  %v16453_v51 = vld [vmem:[%s23805_s3 + $0x6c8] ss:$16 sps:$4 sm:$0xff]  }
 0x4e9   : > { %7650 = vmatmul.mubr.bf16.gmra.mrb[244].mxu0 %v24353_v50  ;;  %7963 = vmatmul.mubr.bf16.gmra.mrb[244].mxu1 %v24353_v50 }
 0x4ea   : > { %13777 = vmatprep.mubr.msk.bf16.mxu0 %vm1913_vm2, %v24354_v58  ;;  %13805 = vmatprep.mubr.msk.bf16.mxu1 %vm1913_vm2, %v24354_v58 }
 0x4eb   : > { %8775 = vmatpush1.bf16.msra.mxu0 %v16438_v61  ;;  %9088 = vmatpush1.bf16.msra.mxu1 %v16441_v36  ;;  %v16455_v61 = vld [vmem:[%s23805_s3 + $0x6cc] ss:$16 sps:$4 sm:$0xff]   ;;  %v16456_v36 = vld [vmem:[%s23805_s3 + $0x6e0] ss:$16 sps:$4 sm:$0xff]  }
 0x4ec   : > { %8776 = vmatprep.subr.bf16.mxu0 %v16446_v8  ;;  %9089 = vmatprep.subr.bf16.mxu1 %v16449_v32  ;;  %v16458_v8 = vld [vmem:[%s23805_s3 + $0x6e4] ss:$16 sps:$4 sm:$0xff]  }
 0x4ed   : > { %v16464_v32 = vld [vmem:[%s23805_s3 + $0x704] ss:$16 sps:$4 sm:$0xff]  }
 0x4ef   : > { %8777 = vmatpush1.bf16.msra.mxu0 %v16444_v1  ;;  %9090 = vmatpush1.bf16.msra.mxu1 %v16447_v25  ;;  %v16459_v1 = vld [vmem:[%s23805_s3 + $0x6e8] ss:$16 sps:$4 sm:$0xff]   ;;  %v16461_v25 = vld [vmem:[%s23805_s3 + $0x6ec] ss:$16 sps:$4 sm:$0xff]  }
 0x4f0   : > { %8778 = vmatprep.subr.bf16.mxu0 %v16452_v11  ;;  %9091 = vmatprep.subr.bf16.mxu1 %v16455_v61  ;;  %v15771_v11 = vunpack.i.h.bf16 %v21222_v23  ;;  %v24378_v61 = vunpack.i.l.bf16 %v21222_v23  ;;  %v15786_v23 = vunpack.i.h.bf16 %v21274_v40 }
 0x4f1   : > { %7660 = vmatmul.mubr.bf16.gmra.mrb[248].mxu0 %v24355_v13  ;;  %7973 = vmatmul.mubr.bf16.gmra.mrb[248].mxu1 %v24355_v13 }
 0x4f2   : > { %13778 = vmatprep.mubr.msk.bf16.mxu0 %vm1913_vm2, %v24356_v46  ;;  %13806 = vmatprep.mubr.msk.bf16.mxu1 %vm1913_vm2, %v24356_v46 }
 0x4f3   : > { %8779 = vmatpush1.bf16.msra.mxu0 %v16450_v12  ;;  %9092 = vmatpush1.bf16.msra.mxu1 %v16453_v51  ;;  %v16467_v12 = vld [vmem:[%s23805_s3 + $0x70c] ss:$16 sps:$4 sm:$0xff]   ;;  %v15766_v51 = vunpack.i.h.bf16 %v21206_v34 }
 0x4f4   : > { %8780 = vmatprep.subr.bf16.mxu0 %v16458_v8  ;;  %9093 = vmatprep.subr.bf16.mxu1 %v16461_v25  ;;  %v24379_v8 = vunpack.i.l.bf16 %v21206_v34 }
 0x4f7   : > { %8781 = vmatpush1.bf16.msra.mxu0 %v16456_v36  ;;  %9094 = vmatpush1.bf16.msra.mxu1 %v16459_v1  ;;  %v4933_v36 = vsel %vm1631_vm0, %v24378_v61, %v15771_v11  ;;  %v4931_v1 = vsel %vm1631_vm0, %v24379_v8, %v15766_v51  ;;  %v24380_v61 = vunpack.i.l.bf16 %v21274_v40  ;;  %v24382_v51 = vld [vmem:[#allocation35_spill] sm:$0xff]  ;;  %v24383_v8 = vld [vmem:[#allocation41_spill] sm:$0xff] }
 0x4f8   : > { %9941 = vmatprep.subr.bf16.mxu0 %v16464_v32  ;;  %10254 = vmatprep.subr.bf16.mxu1 %v16467_v12  ;;  %v5157_v25 = vmax.f32 %v21032_v3, %v4933_v36  ;;  %v5155_v32 = vmax.f32 %v21020_v37, %v4931_v1  ;;  %v15781_v12 = vunpack.i.h.bf16 %v21258_v0  ;;  %v24381_v37 = vunpack.i.l.bf16 %v21258_v0  ;;  %v24384_v1 = vld [vmem:[#allocation16_spill] sm:$0xff] }
 0x4f9   : > { %7670 = vmatmul.mubr.bf16.gmra.mrb[252].mxu0 %v24357_v43  ;;  %7983 = vmatmul.mubr.bf16.gmra.mrb[252].mxu1 %v24357_v43  ;;  %v16470_v0 = vld [vmem:[%s23805_s3 + $0x724] ss:$16 sps:$4 sm:$0xff]  }
 0x4fa   : > { %13779 = vmatprep.mubr.msk.bf16.mxu0 %vm1913_vm2, %v24358_v15  ;;  %13807 = vmatprep.mubr.msk.bf16.mxu1 %vm1913_vm2, %v24358_v15  ;;  %v21892_v11 = vpack.c.bf16 %v5157_v25, %v5155_v32  ;;  %v4935_v3 = vsel %vm1631_vm0, %v24381_v37, %v15781_v12  ;;  %v16473_v25 = vld [vmem:[%s23805_s3 + $0x72c] ss:$16 sps:$4 sm:$0xff]   ;;  %v16477_v12 = vld [vmem:[%s23805_s3 + $0x748] ss:$16 sps:$4 sm:$0xff]  }
 0x4fb   : > { %v5159_v40 = vmax.f32 %v24382_v51, %v4935_v3  ;;  %v16479_v32 = vld [vmem:[%s23805_s3 + $0x74c] ss:$16 sps:$4 sm:$0xff]   ;;  %v16480_v3 = vld [vmem:[%s23805_s3 + $0x760] ss:$16 sps:$4 sm:$0xff]  }
 0x4fc   : > { %v16485_v37 = vld [vmem:[%s23805_s3 + $0x76c] ss:$16 sps:$4 sm:$0xff]  }
 0x4fd   : > { %v16491_v51 = vld [vmem:[%s23805_s3 + $0x78c] ss:$16 sps:$4 sm:$0xff]  }
 0x501   : > { %7680 = vmatmul.mubr.bf16.gmra.mrb[0].mxu0 %v24359_v39  ;;  %7993 = vmatmul.mubr.bf16.gmra.mrb[0].mxu1 %v24359_v39 }
 0x502   : > { %13780 = vmatprep.mubr.msk.bf16.mxu0 %vm1913_vm2, %v24360_v2  ;;  %13808 = vmatprep.mubr.msk.bf16.mxu1 %vm1913_vm2, %v24360_v2 }
 0x509   : > { %7690 = vmatmul.mubr.bf16.gmra.mrb[4].mxu0 %v24361_v49  ;;  %8003 = vmatmul.mubr.bf16.gmra.mrb[4].mxu1 %v24361_v49 }
 0x50a   : > { %13781 = vmatprep.mubr.msk.bf16.mxu0 %vm1913_vm2, %v24362_v16  ;;  %13809 = vmatprep.mubr.msk.bf16.mxu1 %vm1913_vm2, %v24362_v16 }
 0x511   : > { %7700 = vmatmul.mubr.bf16.gmra.mrb[8].mxu0 %v24363_v6  ;;  %8013 = vmatmul.mubr.bf16.gmra.mrb[8].mxu1 %v24363_v6 }
 0x512   : > { %13782 = vmatprep.mubr.msk.bf16.mxu0 %vm1913_vm2, %v24364_v54  ;;  %13810 = vmatprep.mubr.msk.bf16.mxu1 %vm1913_vm2, %v24364_v54 }
 0x519   : > { %7710 = vmatmul.mubr.bf16.gmra.mrb[12].mxu0 %v24365_v4  ;;  %8023 = vmatmul.mubr.bf16.gmra.mrb[12].mxu1 %v24365_v4 }
 0x51a   : > { %13783 = vmatprep.mubr.msk.bf16.mxu0 %vm1913_vm2, %v24366_v57  ;;  %13811 = vmatprep.mubr.msk.bf16.mxu1 %vm1913_vm2, %v24366_v57 }
 0x521   : > { %7720 = vmatmul.mubr.bf16.gmra.mrb[16].mxu0 %v24367_v45  ;;  %8033 = vmatmul.mubr.bf16.gmra.mrb[16].mxu1 %v24367_v45 }
 0x522   : > { %13784 = vmatprep.mubr.msk.bf16.mxu0 %vm1913_vm2, %v24368_v38  ;;  %13812 = vmatprep.mubr.msk.bf16.mxu1 %vm1913_vm2, %v24368_v38 }
 0x529   : > { %7730 = vmatmul.mubr.bf16.gmra.mrb[20].mxu0 %v24369_v63  ;;  %8043 = vmatmul.mubr.bf16.gmra.mrb[20].mxu1 %v24369_v63 }
 0x52a   : > { %13785 = vmatprep.mubr.msk.bf16.mxu0 %vm1913_vm2, %v24370_v62  ;;  %13813 = vmatprep.mubr.msk.bf16.mxu1 %vm1913_vm2, %v24370_v62 }
 0x531   : > { %7740 = vmatmul.mubr.bf16.gmra.mrb[24].mxu0 %v24371_v5  ;;  %8053 = vmatmul.mubr.bf16.gmra.mrb[24].mxu1 %v24371_v5 }
 0x532   : > { %13786 = vmatprep.mubr.msk.bf16.mxu0 %vm1913_vm2, %v24372_v33  ;;  %13814 = vmatprep.mubr.msk.bf16.mxu1 %vm1913_vm2, %v24372_v33 }
 0x539   : > { %7750 = vmatmul.mubr.bf16.gmra.mrb[28].mxu0 %v24373_v27  ;;  %8063 = vmatmul.mubr.bf16.gmra.mrb[28].mxu1 %v24373_v27 }
 0x53a   : > { %13787 = vmatprep.mubr.msk.bf16.mxu0 %vm1913_vm2, %v24374_v28  ;;  %13815 = vmatprep.mubr.msk.bf16.mxu1 %vm1913_vm2, %v24374_v28 }
 0x541   : > { %7760 = vmatmul.mubr.bf16.gmra.mrb[32].mxu0 %v24375_v26  ;;  %8073 = vmatmul.mubr.bf16.gmra.mrb[32].mxu1 %v24375_v26 }
 0x542   : > { %13788 = vmatprep.mubr.msk.bf16.mxu0 %vm1913_vm2, %v24376_v41  ;;  %13816 = vmatprep.mubr.msk.bf16.mxu1 %vm1913_vm2, %v24376_v41 }
 0x549   : > { %7770 = vmatmul.mubr.bf16.gmra.mrb[36].mxu0 %v24377_v30  ;;  %8083 = vmatmul.mubr.bf16.gmra.mrb[36].mxu1 %v24377_v30 }
 0x54a   : > { %13789 = vmatprep.mubr.msk.bf16.mxu0 %vm1913_vm2, %v20994_v60  ;;  %13817 = vmatprep.mubr.msk.bf16.mxu1 %vm1913_vm2, %v20994_v60 }
 0x551   : > { %7780 = vmatmul.mubr.bf16.gmra.mrb[40].mxu0 %v20998_v42  ;;  %8093 = vmatmul.mubr.bf16.gmra.mrb[40].mxu1 %v20998_v42 }
 0x552   : > { %13790 = vmatprep.mubr.msk.bf16.mxu0 %vm1913_vm2, %v21066_v48  ;;  %13818 = vmatprep.mubr.msk.bf16.mxu1 %vm1913_vm2, %v21066_v48 }
 0x559   : > { %7790 = vmatmul.mubr.bf16.gmra.mrb[44].mxu0 %v21068_v44  ;;  %8103 = vmatmul.mubr.bf16.gmra.mrb[44].mxu1 %v21068_v44 }
 0x55a   : > { %13791 = vmatprep.mubr.msk.bf16.mxu0 %vm1913_vm2, %v21098_v59  ;;  %13819 = vmatprep.mubr.msk.bf16.mxu1 %vm1913_vm2, %v21098_v59 }
 0x561   : > { %7800 = vmatmul.mubr.bf16.gmra.mrb[48].mxu0 %v21100_v55  ;;  %8113 = vmatmul.mubr.bf16.gmra.mrb[48].mxu1 %v21100_v55 }
 0x562   : > { %13792 = vmatprep.mubr.msk.bf16.mxu0 %vm1913_vm2, %v21116_v35  ;;  %13820 = vmatprep.mubr.msk.bf16.mxu1 %vm1913_vm2, %v21116_v35 }
 0x569   : > { %7810 = vmatmul.mubr.bf16.gmra.mrb[52].mxu0 %v21118_v53  ;;  %8123 = vmatmul.mubr.bf16.gmra.mrb[52].mxu1 %v21118_v53 }
 0x56a   : > { %13793 = vmatprep.mubr.msk.bf16.mxu0 %vm1913_vm2, %v21134_v10  ;;  %13821 = vmatprep.mubr.msk.bf16.mxu1 %vm1913_vm2, %v21134_v10 }
 0x571   : > { %7820 = vmatmul.mubr.bf16.gmra.mrb[56].mxu0 %v21136_v56  ;;  %8133 = vmatmul.mubr.bf16.gmra.mrb[56].mxu1 %v21136_v56 }
 0x572   : > { %13794 = vmatprep.mubr.msk.bf16.mxu0 %vm1913_vm2, %v21152_v52  ;;  %13822 = vmatprep.mubr.msk.bf16.mxu1 %vm1913_vm2, %v21152_v52 }
 0x579   : > { %7830 = vmatmul.mubr.bf16.gmra.mrb[60].mxu0 %v21154_v31  ;;  %8143 = vmatmul.mubr.bf16.gmra.mrb[60].mxu1 %v21154_v31 }
 0x57a   : > { %13795 = vmatprep.mubr.msk.bf16.mxu0 %vm1913_vm2, %v21170_v20  ;;  %13823 = vmatprep.mubr.msk.bf16.mxu1 %vm1913_vm2, %v21170_v20 }
 0x581   : > { %7840 = vmatmul.mubr.bf16.gmra.mrb[64].mxu0 %v21172_v24  ;;  %8153 = vmatmul.mubr.bf16.gmra.mrb[64].mxu1 %v21172_v24  ;;  %v4937_v24 = vsel %vm1631_vm0, %v24380_v61, %v15786_v23  ;;  %v16471_v23 = vld [vmem:[%s23805_s3 + $0x728] ss:$16 sps:$4 sm:$0xff]   ;;  %v16482_v61 = vld [vmem:[%s23805_s3 + $0x764] ss:$16 sps:$4 sm:$0xff]  }
 0x582   : > { %13796 = vmatprep.mubr.msk.bf16.mxu0 %vm1913_vm2, %v21184_v22  ;;  %13824 = vmatprep.mubr.msk.bf16.mxu1 %vm1913_vm2, %v21184_v22  ;;  %v5161_v34 = vmax.f32 %v21082_v47, %v4937_v24  ;;  %v16462_v47 = vld [vmem:[%s23805_s3 + $0x700] ss:$16 sps:$4 sm:$0xff]   ;;  %v16465_v24 = vld [vmem:[%s23805_s3 + $0x708] ss:$16 sps:$4 sm:$0xff]  }
 0x584   : > { %v21908_v36 = vpack.c.bf16 %v5161_v34, %v5159_v40  ;;  %v16483_v34 = vld [vmem:[%s23805_s3 + $0x768] ss:$16 sps:$4 sm:$0xff]   ;;  %v16486_v40 = vld [vmem:[%s23805_s3 + $0x780] ss:$16 sps:$4 sm:$0xff]  }
 0x589   : > { %7850 = vmatmul.mubr.bf16.gmra.mrb[68].mxu0 %v21194_v14  ;;  %8163 = vmatmul.mubr.bf16.gmra.mrb[68].mxu1 %v21194_v14 }
 0x58a   : > { %13797 = vmatprep.mubr.msk.bf16.mxu0 %vm1913_vm2, %v21892_v11  ;;  %13825 = vmatprep.mubr.msk.bf16.mxu1 %vm1913_vm2, %v21892_v11 }
 0x591   : > { %7860 = vmatmul.mubr.bf16.gmra.mrb[72].mxu0 %v24383_v8  ;;  %8173 = vmatmul.mubr.bf16.gmra.mrb[72].mxu1 %v24383_v8 }
 0x592   : > { %13798 = vmatprep.mubr.msk.bf16.mxu0 %vm1913_vm2, %v21908_v36  ;;  %13826 = vmatprep.mubr.msk.bf16.mxu1 %vm1913_vm2, %v21908_v36 }
 0x599   : > { %7870 = vmatmul.mubr.bf16.gmra.mrb[76].mxu0 %v24384_v1  ;;  %8183 = vmatmul.mubr.bf16.gmra.mrb[76].mxu1 %v24384_v1 }
 0x59a   : > { %13939 = vmatprep.mubr.msk.bf16.mxu0 %vm1913_vm2, %v24346_v19  ;;  %13965 = vmatprep.mubr.msk.bf16.mxu1 %vm1913_vm2, %v24346_v19  ;;  %v16468_v19 = vld [vmem:[%s23805_s3 + $0x720] ss:$16 sps:$4 sm:$0xff]  }
 0x5a1   : > { %8787 = vmatmul.mubr.bf16.vlgmr.msra.gmra.mrb[224].mxu0 %v24347_v21  ;;  %9100 = vmatmul.mubr.bf16.vlgmr.msra.gmra.mrb[224].mxu1 %v24347_v21  ;;  %v16476_v21 = vld [vmem:[%s23805_s3 + $0x744] ss:$16 sps:$4 sm:$0xff]  }
 0x5a2   : > { %9942 = vmatpush1.bf16.msra.mxu0 %v16462_v47  ;;  %13940 = vmatprep.mubr.msk.bf16.mxu0 %vm1913_vm2, %v24348_v9  ;;  %v16489_v47 = vld [vmem:[%s23805_s3 + $0x788] ss:$16 sps:$4 sm:$0xff]  }
 0x5a3   : > { %13966 = vmatprep.mubr.msk.bf16.mxu1 %vm1913_vm2, %v24348_v9  ;;  %10255 = vmatpush1.bf16.msra.mxu1 %v16465_v24  ;;  %v16474_v9 = vld [vmem:[%s23805_s3 + $0x740] ss:$16 sps:$4 sm:$0xff]   ;;  %v16494_v24 = vld [vmem:[%s23805_s3 + $0x7a4] ss:$16 sps:$4 sm:$0xff]  }
 0x5a4   : > { %9943 = vmatprep.subr.bf16.mxu0 %v16470_v0  ;;  %10256 = vmatprep.subr.bf16.mxu1 %v16473_v25  ;;  %v16497_v0 = vld [vmem:[%s23805_s3 + $0x7ac] ss:$16 sps:$4 sm:$0xff]   ;;  %v16492_v25 = vld [vmem:[%s23805_s3 + $0x7a0] ss:$16 sps:$4 sm:$0xff]  }
 0x5a6   : > { %9944 = vmatpush1.bf16.msra.mxu0 %v16468_v19  ;;  %v16495_v19 = vld [vmem:[%s23805_s3 + $0x7a8] ss:$16 sps:$4 sm:$0xff]  }
 0x5a7   : > { %10257 = vmatpush1.bf16.msra.mxu1 %v16471_v23  ;;  %9945 = vmatprep.subr.bf16.mxu0 %v16476_v21  ;;  %v16500_v23 = vld [vmem:[%s23805_s3 + $0x7c4] ss:$16 sps:$4 sm:$0xff]   ;;  %v16503_v21 = vld [vmem:[%s23805_s3 + $0x7cc] ss:$16 sps:$4 sm:$0xff]  }
 0x5a8   : > { %10258 = vmatprep.subr.bf16.mxu1 %v16479_v32  ;;  %v16498_v32 = vld [vmem:[%s23805_s3 + $0x7c0] ss:$16 sps:$4 sm:$0xff]  }
 0x5a9   : > { %8797 = vmatmul.mubr.bf16.gmra.mrb[228].mxu0 %v24349_v17  ;;  %9110 = vmatmul.mubr.bf16.gmra.mrb[228].mxu1 %v24349_v17  ;;  %v16488_v17 = vld [vmem:[%s23805_s3 + $0x784] ss:$16 sps:$4 sm:$0xff]  }
 0x5aa   : > { %13941 = vmatprep.mubr.msk.bf16.mxu0 %vm1913_vm2, %v24350_v18  ;;  %13967 = vmatprep.mubr.msk.bf16.mxu1 %vm1913_vm2, %v24350_v18 }
 0x5ab   : > { %9946 = vmatpush1.bf16.msra.mxu0 %v16474_v9  ;;  %10259 = vmatpush1.bf16.msra.mxu1 %v16477_v12  ;;  %v16501_v9 = vld [vmem:[%s23805_s3 + $0x7c8] ss:$16 sps:$4 sm:$0xff]   ;;  %v16506_v12 = vld [vmem:[%s23805_s3 + $0x7e4] ss:$16 sps:$4 sm:$0xff]  }
 0x5ac   : > { %9947 = vmatprep.subr.bf16.mxu0 %v16482_v61  ;;  %10260 = vmatprep.subr.bf16.mxu1 %v16485_v37  ;;  %v16509_v61 = vld [vmem:[%s23805_s3 + $0x7ec] ss:$16 sps:$4 sm:$0xff]   ;;  %v16504_v37 = vld [vmem:[%s23805_s3 + $0x7e0] ss:$16 sps:$4 sm:$0xff]  }
 0x5af   : > { %9948 = vmatpush1.bf16.msra.mxu0 %v16480_v3  ;;  %10261 = vmatpush1.bf16.msra.mxu1 %v16483_v34  ;;  %v16507_v3 = vld [vmem:[%s23805_s3 + $0x7e8] ss:$16 sps:$4 sm:$0xff]   ;;  %v16512_v34 = vld [vmem:[%s23805_s3 + $0x804] ss:$16 sps:$4 sm:$0xff]  }
 0x5b0   : > { %9949 = vmatprep.subr.bf16.mxu0 %v16488_v17  ;;  %10262 = vmatprep.subr.bf16.mxu1 %v16491_v51  ;;  %v16515_v17 = vld [vmem:[%s23805_s3 + $0x80c] ss:$16 sps:$4 sm:$0xff]   ;;  %v16510_v51 = vld [vmem:[%s23805_s3 + $0x800] ss:$16 sps:$4 sm:$0xff]  }
 0x5b1   : > { %8807 = vmatmul.mubr.bf16.gmra.mrb[232].mxu0 %v24351_v29  ;;  %9120 = vmatmul.mubr.bf16.gmra.mrb[232].mxu1 %v24351_v29 }
 0x5b2   : > { %13942 = vmatprep.mubr.msk.bf16.mxu0 %vm1913_vm2, %v24352_v7  ;;  %13968 = vmatprep.mubr.msk.bf16.mxu1 %vm1913_vm2, %v24352_v7 }
 0x5b3   : > { %9950 = vmatpush1.bf16.msra.mxu0 %v16486_v40  ;;  %10263 = vmatpush1.bf16.msra.mxu1 %v16489_v47  ;;  %v16513_v40 = vld [vmem:[%s23805_s3 + $0x808] ss:$16 sps:$4 sm:$0xff]   ;;  %v16518_v47 = vld [vmem:[%s23805_s3 + $0x824] ss:$16 sps:$4 sm:$0xff]  }
 0x5b4   : > { %9951 = vmatprep.subr.bf16.mxu0 %v16494_v24  ;;  %10264 = vmatprep.subr.bf16.mxu1 %v16497_v0  ;;  %v16521_v24 = vld [vmem:[%s23805_s3 + $0x82c] ss:$16 sps:$4 sm:$0xff]   ;;  %v16516_v0 = vld [vmem:[%s23805_s3 + $0x820] ss:$16 sps:$4 sm:$0xff]  }
 0x5b7   : > { %9952 = vmatpush1.bf16.msra.mxu0 %v16492_v25  ;;  %10265 = vmatpush1.bf16.msra.mxu1 %v16495_v19  ;;  %v16519_v25 = vld [vmem:[%s23805_s3 + $0x828] ss:$16 sps:$4 sm:$0xff]   ;;  %v16524_v19 = vld [vmem:[%s23805_s3 + $0x844] ss:$16 sps:$4 sm:$0xff]  }
 0x5b8   : > { %9953 = vmatprep.subr.bf16.mxu0 %v16500_v23  ;;  %10266 = vmatprep.subr.bf16.mxu1 %v16503_v21  ;;  %v16527_v23 = vld [vmem:[%s23805_s3 + $0x84c] ss:$16 sps:$4 sm:$0xff]   ;;  %v16522_v21 = vld [vmem:[%s23805_s3 + $0x840] ss:$16 sps:$4 sm:$0xff]  }
 0x5b9   : > { %8817 = vmatmul.mubr.bf16.gmra.mrb[236].mxu0 %v24353_v50  ;;  %9130 = vmatmul.mubr.bf16.gmra.mrb[236].mxu1 %v24353_v50 }
 0x5ba   : > { %13943 = vmatprep.mubr.msk.bf16.mxu0 %vm1913_vm2, %v24354_v58  ;;  %13969 = vmatprep.mubr.msk.bf16.mxu1 %vm1913_vm2, %v24354_v58 }
 0x5bb   : > { %9954 = vmatpush1.bf16.msra.mxu0 %v16498_v32  ;;  %10267 = vmatpush1.bf16.msra.mxu1 %v16501_v9  ;;  %v16525_v32 = vld [vmem:[%s23805_s3 + $0x848] ss:$16 sps:$4 sm:$0xff]   ;;  %v16530_v9 = vld [vmem:[%s23805_s3 + $0x864] ss:$16 sps:$4 sm:$0xff]  }
 0x5bc   : > { %9955 = vmatprep.subr.bf16.mxu0 %v16506_v12  ;;  %10268 = vmatprep.subr.bf16.mxu1 %v16509_v61  ;;  %v16528_v12 = vld [vmem:[%s23805_s3 + $0x860] ss:$16 sps:$4 sm:$0xff]   ;;  %v16531_v61 = vld [vmem:[%s23805_s3 + $0x868] ss:$16 sps:$4 sm:$0xff]  }
 0x5bf   : > { %9956 = vmatpush1.bf16.msra.mxu0 %v16504_v37  ;;  %10269 = vmatpush1.bf16.msra.mxu1 %v16507_v3  ;;  %v16533_v37 = vld [vmem:[%s23805_s3 + $0x86c] ss:$16 sps:$4 sm:$0xff]   ;;  %v16534_v3 = vld [vmem:[%s23805_s3 + $0x880] ss:$16 sps:$4 sm:$0xff]  }
 0x5c0   : > { %9957 = vmatprep.subr.bf16.mxu0 %v16512_v34  ;;  %10270 = vmatprep.subr.bf16.mxu1 %v16515_v17  ;;  %v16536_v34 = vld [vmem:[%s23805_s3 + $0x884] ss:$16 sps:$4 sm:$0xff]   ;;  %v16537_v17 = vld [vmem:[%s23805_s3 + $0x888] ss:$16 sps:$4 sm:$0xff]  }
 0x5c1   : > { %8827 = vmatmul.mubr.bf16.gmra.mrb[240].mxu0 %v24355_v13  ;;  %9140 = vmatmul.mubr.bf16.gmra.mrb[240].mxu1 %v24355_v13 }
 0x5c2   : > { %13944 = vmatprep.mubr.msk.bf16.mxu0 %vm1913_vm2, %v24356_v46  ;;  %13970 = vmatprep.mubr.msk.bf16.mxu1 %vm1913_vm2, %v24356_v46 }
 0x5c3   : > { %9958 = vmatpush1.bf16.msra.mxu0 %v16510_v51  ;;  %10271 = vmatpush1.bf16.msra.mxu1 %v16513_v40  ;;  %v16539_v51 = vld [vmem:[%s23805_s3 + $0x88c] ss:$16 sps:$4 sm:$0xff]   ;;  %v16540_v40 = vld [vmem:[%s23805_s3 + $0x8a0] ss:$16 sps:$4 sm:$0xff]  }
 0x5c4   : > { %9959 = vmatprep.subr.bf16.mxu0 %v16518_v47  ;;  %10272 = vmatprep.subr.bf16.mxu1 %v16521_v24  ;;  %v16542_v47 = vld [vmem:[%s23805_s3 + $0x8a4] ss:$16 sps:$4 sm:$0xff]   ;;  %v16543_v24 = vld [vmem:[%s23805_s3 + $0x8a8] ss:$16 sps:$4 sm:$0xff]  }
 0x5c7   : > { %9960 = vmatpush1.bf16.msra.mxu0 %v16516_v0  ;;  %10273 = vmatpush1.bf16.msra.mxu1 %v16519_v25  ;;  %v16545_v0 = vld [vmem:[%s23805_s3 + $0x8ac] ss:$16 sps:$4 sm:$0xff]  }
 0x5c8   : > { %9961 = vmatprep.subr.bf16.mxu0 %v16524_v19  ;;  %10274 = vmatprep.subr.bf16.mxu1 %v16527_v23  ;;  %v24385_v25 = vld [vmem:[#allocation31_spill] sm:$0xff]  ;;  %v24386_v19 = vmov 0  }
 0x5c9   : > { %8837 = vmatmul.mubr.bf16.gmra.mrb[244].mxu0 %v24357_v43  ;;  %9150 = vmatmul.mubr.bf16.gmra.mrb[244].mxu1 %v24357_v43 }
 0x5ca   : > { %13945 = vmatprep.mubr.msk.bf16.mxu0 %vm1913_vm2, %v24358_v15  ;;  %13971 = vmatprep.mubr.msk.bf16.mxu1 %vm1913_vm2, %v24358_v15 }
 0x5cb   : > { %9962 = vmatpush1.bf16.msra.mxu0 %v16522_v21  ;;  %10275 = vmatpush1.bf16.msra.mxu1 %v16525_v32 }
 0x5cc   : > { %9963 = vmatprep.subr.bf16.mxu0 %v16530_v9  ;;  %10276 = vmatprep.subr.bf16.mxu1 %v16533_v37 }
 0x5cf   : > { %9964 = vmatpush1.bf16.msra.mxu0 %v16528_v12  ;;  %10277 = vmatpush1.bf16.msra.mxu1 %v16531_v61 }
 0x5d0   : > { %9965 = vmatprep.subr.bf16.mxu0 %v16536_v34  ;;  %10278 = vmatprep.subr.bf16.mxu1 %v16539_v51 }
 0x5d1   : > { %8847 = vmatmul.mubr.bf16.gmra.mrb[248].mxu0 %v24359_v39  ;;  %9160 = vmatmul.mubr.bf16.gmra.mrb[248].mxu1 %v24359_v39 }
 0x5d2   : > { %13946 = vmatprep.mubr.msk.bf16.mxu0 %vm1913_vm2, %v24360_v2  ;;  %13972 = vmatprep.mubr.msk.bf16.mxu1 %vm1913_vm2, %v24360_v2 }
 0x5d3   : > { %9966 = vmatpush1.bf16.msra.mxu0 %v16534_v3  ;;  %10279 = vmatpush1.bf16.msra.mxu1 %v16537_v17 }
 0x5d4   : > { %9967 = vmatprep.subr.bf16.mxu0 %v16542_v47  ;;  %10280 = vmatprep.subr.bf16.mxu1 %v16545_v0 }
 0x5d7   : > { %9968 = vmatpush1.bf16.msra.mxu0 %v16540_v40  ;;  %10281 = vmatpush1.bf16.msra.mxu1 %v16543_v24 }
 0x5d9   : > { %8857 = vmatmul.mubr.bf16.gmra.mrb[252].mxu0 %v24361_v49  ;;  %9170 = vmatmul.mubr.bf16.gmra.mrb[252].mxu1 %v24361_v49 }
 0x5da   : > { %13947 = vmatprep.mubr.msk.bf16.mxu0 %vm1913_vm2, %v24362_v16  ;;  %13973 = vmatprep.mubr.msk.bf16.mxu1 %vm1913_vm2, %v24362_v16 }
 0x5e1   : > { %8867 = vmatmul.mubr.bf16.gmra.mrb[0].mxu0 %v24363_v6  ;;  %9180 = vmatmul.mubr.bf16.gmra.mrb[0].mxu1 %v24363_v6 }
 0x5e2   : > { %13948 = vmatprep.mubr.msk.bf16.mxu0 %vm1913_vm2, %v24364_v54  ;;  %13974 = vmatprep.mubr.msk.bf16.mxu1 %vm1913_vm2, %v24364_v54 }
 0x5e9   : > { %8877 = vmatmul.mubr.bf16.gmra.mrb[4].mxu0 %v24365_v4  ;;  %9190 = vmatmul.mubr.bf16.gmra.mrb[4].mxu1 %v24365_v4 }
 0x5ea   : > { %13949 = vmatprep.mubr.msk.bf16.mxu0 %vm1913_vm2, %v24366_v57  ;;  %13975 = vmatprep.mubr.msk.bf16.mxu1 %vm1913_vm2, %v24366_v57 }
 0x5f1   : > { %8887 = vmatmul.mubr.bf16.gmra.mrb[8].mxu0 %v24367_v45  ;;  %9200 = vmatmul.mubr.bf16.gmra.mrb[8].mxu1 %v24367_v45 }
 0x5f2   : > { %13950 = vmatprep.mubr.msk.bf16.mxu0 %vm1913_vm2, %v24368_v38  ;;  %13976 = vmatprep.mubr.msk.bf16.mxu1 %vm1913_vm2, %v24368_v38 }
 0x5f9   : > { %8897 = vmatmul.mubr.bf16.gmra.mrb[12].mxu0 %v24369_v63  ;;  %9210 = vmatmul.mubr.bf16.gmra.mrb[12].mxu1 %v24369_v63 }
 0x5fa   : > { %13951 = vmatprep.mubr.msk.bf16.mxu0 %vm1913_vm2, %v24370_v62  ;;  %13977 = vmatprep.mubr.msk.bf16.mxu1 %vm1913_vm2, %v24370_v62 }
 0x601   : > { %8907 = vmatmul.mubr.bf16.gmra.mrb[16].mxu0 %v24371_v5  ;;  %9220 = vmatmul.mubr.bf16.gmra.mrb[16].mxu1 %v24371_v5 }
 0x602   : > { %13952 = vmatprep.mubr.msk.bf16.mxu0 %vm1913_vm2, %v24372_v33  ;;  %13978 = vmatprep.mubr.msk.bf16.mxu1 %vm1913_vm2, %v24372_v33 }
 0x609   : > { %8917 = vmatmul.mubr.bf16.gmra.mrb[20].mxu0 %v24373_v27  ;;  %9230 = vmatmul.mubr.bf16.gmra.mrb[20].mxu1 %v24373_v27 }
 0x60a   : > { %13953 = vmatprep.mubr.msk.bf16.mxu0 %vm1913_vm2, %v24374_v28  ;;  %13979 = vmatprep.mubr.msk.bf16.mxu1 %vm1913_vm2, %v24374_v28 }
 0x611   : > { %8927 = vmatmul.mubr.bf16.gmra.mrb[24].mxu0 %v24375_v26  ;;  %9240 = vmatmul.mubr.bf16.gmra.mrb[24].mxu1 %v24375_v26 }
 0x612   : > { %13954 = vmatprep.mubr.msk.bf16.mxu0 %vm1913_vm2, %v24376_v41  ;;  %13980 = vmatprep.mubr.msk.bf16.mxu1 %vm1913_vm2, %v24376_v41 }
 0x619   : > { %8937 = vmatmul.mubr.bf16.gmra.mrb[28].mxu0 %v24377_v30  ;;  %9250 = vmatmul.mubr.bf16.gmra.mrb[28].mxu1 %v24377_v30 }
 0x61a   : > { %13955 = vmatprep.mubr.msk.bf16.mxu0 %vm1913_vm2, %v20994_v60  ;;  %13981 = vmatprep.mubr.msk.bf16.mxu1 %vm1913_vm2, %v20994_v60 }
 0x621   : > { %8947 = vmatmul.mubr.bf16.gmra.mrb[32].mxu0 %v20998_v42  ;;  %9260 = vmatmul.mubr.bf16.gmra.mrb[32].mxu1 %v20998_v42 }
 0x622   : > { %13956 = vmatprep.mubr.msk.bf16.mxu0 %vm1913_vm2, %v21066_v48  ;;  %13982 = vmatprep.mubr.msk.bf16.mxu1 %vm1913_vm2, %v21066_v48 }
 0x629   : > { %8957 = vmatmul.mubr.bf16.gmra.mrb[36].mxu0 %v21068_v44  ;;  %9270 = vmatmul.mubr.bf16.gmra.mrb[36].mxu1 %v21068_v44 }
 0x62a   : > { %13957 = vmatprep.mubr.msk.bf16.mxu0 %vm1913_vm2, %v21098_v59  ;;  %13983 = vmatprep.mubr.msk.bf16.mxu1 %vm1913_vm2, %v21098_v59 }
 0x631   : > { %8967 = vmatmul.mubr.bf16.gmra.mrb[40].mxu0 %v21100_v55  ;;  %9280 = vmatmul.mubr.bf16.gmra.mrb[40].mxu1 %v21100_v55 }
 0x632   : > { %13958 = vmatprep.mubr.msk.bf16.mxu0 %vm1913_vm2, %v21116_v35  ;;  %13984 = vmatprep.mubr.msk.bf16.mxu1 %vm1913_vm2, %v21116_v35 }
 0x639   : > { %8977 = vmatmul.mubr.bf16.gmra.mrb[44].mxu0 %v21118_v53  ;;  %9290 = vmatmul.mubr.bf16.gmra.mrb[44].mxu1 %v21118_v53 }
 0x63a   : > { %13959 = vmatprep.mubr.msk.bf16.mxu0 %vm1913_vm2, %v21134_v10  ;;  %13985 = vmatprep.mubr.msk.bf16.mxu1 %vm1913_vm2, %v21134_v10 }
 0x641   : > { %8987 = vmatmul.mubr.bf16.gmra.mrb[48].mxu0 %v21136_v56  ;;  %9300 = vmatmul.mubr.bf16.gmra.mrb[48].mxu1 %v21136_v56 }
 0x642   : > { %13960 = vmatprep.mubr.msk.bf16.mxu0 %vm1913_vm2, %v21152_v52  ;;  %13986 = vmatprep.mubr.msk.bf16.mxu1 %vm1913_vm2, %v21152_v52 }
 0x649   : > { %8997 = vmatmul.mubr.bf16.gmra.mrb[52].mxu0 %v21154_v31  ;;  %9310 = vmatmul.mubr.bf16.gmra.mrb[52].mxu1 %v21154_v31 }
 0x64a   : > { %13961 = vmatprep.mubr.msk.bf16.mxu0 %vm1913_vm2, %v21170_v20  ;;  %13987 = vmatprep.mubr.msk.bf16.mxu1 %vm1913_vm2, %v21170_v20 }
 0x651   : > { %9007 = vmatmul.mubr.bf16.gmra.mrb[56].mxu0 %v24385_v25  ;;  %9320 = vmatmul.mubr.bf16.gmra.mrb[56].mxu1 %v24385_v25 }
 0x652   : > { %13962 = vmatprep.mubr.msk.bf16.mxu0 %vm1913_vm2, %v21184_v22  ;;  %13988 = vmatprep.mubr.msk.bf16.mxu1 %vm1913_vm2, %v21184_v22 }
 0x659   : > { %9017 = vmatmul.mubr.bf16.gmra.mrb[60].mxu0 %v21194_v14  ;;  %9330 = vmatmul.mubr.bf16.gmra.mrb[60].mxu1 %v21194_v14 }
 0x65a   : > { %13963 = vmatprep.mubr.msk.bf16.mxu0 %vm1913_vm2, %v21892_v11  ;;  %13989 = vmatprep.mubr.msk.bf16.mxu1 %vm1913_vm2, %v21892_v11 }
 0x661   : > { %9027 = vmatmul.mubr.bf16.gmra.mrb[64].mxu0 %v24383_v8  ;;  %9340 = vmatmul.mubr.bf16.gmra.mrb[64].mxu1 %v24383_v8 }
 0x662   : > { %13964 = vmatprep.mubr.msk.bf16.mxu0 %vm1913_vm2, %v21908_v36  ;;  %13990 = vmatprep.mubr.msk.bf16.mxu1 %vm1913_vm2, %v21908_v36 }
 0x669   : > { %9037 = vmatmul.mubr.bf16.gmra.mrb[68].mxu0 %v24384_v1  ;;  %9350 = vmatmul.mubr.bf16.gmra.mrb[68].mxu1 %v24384_v1 }
 0x66a   : > { %9046 = vmatprep.mubr.bf16.mxu0 %v24386_v19  ;;  %9359 = vmatprep.mubr.bf16.mxu1 %v24386_v19 }
 0x671   : > { %9047 = vmatmul.mubr.bf16.gmra.mrb[72].mxu0 %v24386_v19  ;;  %9360 = vmatmul.mubr.bf16.gmra.mrb[72].mxu1 %v24386_v19 }
 0x672   : > { %9056 = vmatprep.mubr.bf16.mxu0 %v24386_v19  ;;  %9369 = vmatprep.mubr.bf16.mxu1 %v24386_v19 }
 0x679   : > { %9057 = vmatmul.mubr.bf16.gmra.mrb[76].mxu0 %v24386_v19  ;;  %9370 = vmatmul.mubr.bf16.gmra.mrb[76].mxu1 %v24386_v19 }
 0x67a   : > { %14103 = vmatprep.mubr.msk.bf16.mxu0 %vm1913_vm2, %v24350_v18  ;;  %14127 = vmatprep.mubr.msk.bf16.mxu1 %vm1913_vm2, %v24350_v18 }
 0x681   : > { %9974 = vmatmul.mubr.bf16.vlgmr.msra.gmra.mrb[224].mxu0 %v24351_v29  ;;  %10287 = vmatmul.mubr.bf16.vlgmr.msra.gmra.mrb[224].mxu1 %v24351_v29 }
 0x682   : > { %14104 = vmatprep.mubr.msk.bf16.mxu0 %vm1913_vm2, %v24352_v7  ;;  %14128 = vmatprep.mubr.msk.bf16.mxu1 %vm1913_vm2, %v24352_v7 }
 0x689   : > { %9984 = vmatmul.mubr.bf16.gmra.mrb[228].mxu0 %v24353_v50  ;;  %10297 = vmatmul.mubr.bf16.gmra.mrb[228].mxu1 %v24353_v50 }
 0x68a   : > { %14105 = vmatprep.mubr.msk.bf16.mxu0 %vm1913_vm2, %v24354_v58  ;;  %14129 = vmatprep.mubr.msk.bf16.mxu1 %vm1913_vm2, %v24354_v58 }
 0x691   : > { %9994 = vmatmul.mubr.bf16.gmra.mrb[232].mxu0 %v24355_v13  ;;  %10307 = vmatmul.mubr.bf16.gmra.mrb[232].mxu1 %v24355_v13 }
 0x692   : > { %14106 = vmatprep.mubr.msk.bf16.mxu0 %vm1913_vm2, %v24356_v46  ;;  %14130 = vmatprep.mubr.msk.bf16.mxu1 %vm1913_vm2, %v24356_v46 }
 0x699   : > { %10004 = vmatmul.mubr.bf16.gmra.mrb[236].mxu0 %v24357_v43  ;;  %10317 = vmatmul.mubr.bf16.gmra.mrb[236].mxu1 %v24357_v43 }
 0x69a   : > { %14107 = vmatprep.mubr.msk.bf16.mxu0 %vm1913_vm2, %v24358_v15  ;;  %14131 = vmatprep.mubr.msk.bf16.mxu1 %vm1913_vm2, %v24358_v15 }
 0x6a1   : > { %10014 = vmatmul.mubr.bf16.gmra.mrb[240].mxu0 %v24359_v39  ;;  %10327 = vmatmul.mubr.bf16.gmra.mrb[240].mxu1 %v24359_v39 }
 0x6a2   : > { %14108 = vmatprep.mubr.msk.bf16.mxu0 %vm1913_vm2, %v24360_v2  ;;  %14132 = vmatprep.mubr.msk.bf16.mxu1 %vm1913_vm2, %v24360_v2 }
 0x6a9   : > { %10024 = vmatmul.mubr.bf16.gmra.mrb[244].mxu0 %v24361_v49  ;;  %10337 = vmatmul.mubr.bf16.gmra.mrb[244].mxu1 %v24361_v49 }
 0x6aa   : > { %14109 = vmatprep.mubr.msk.bf16.mxu0 %vm1913_vm2, %v24362_v16  ;;  %14133 = vmatprep.mubr.msk.bf16.mxu1 %vm1913_vm2, %v24362_v16 }
 0x6b1   : > { %10034 = vmatmul.mubr.bf16.gmra.mrb[248].mxu0 %v24363_v6  ;;  %10347 = vmatmul.mubr.bf16.gmra.mrb[248].mxu1 %v24363_v6 }
 0x6b2   : > { %14110 = vmatprep.mubr.msk.bf16.mxu0 %vm1913_vm2, %v24364_v54  ;;  %14134 = vmatprep.mubr.msk.bf16.mxu1 %vm1913_vm2, %v24364_v54 }
 0x6b9   : > { %10044 = vmatmul.mubr.bf16.gmra.mrb[252].mxu0 %v24365_v4  ;;  %10357 = vmatmul.mubr.bf16.gmra.mrb[252].mxu1 %v24365_v4 }
 0x6ba   : > { %14111 = vmatprep.mubr.msk.bf16.mxu0 %vm1913_vm2, %v24366_v57  ;;  %14135 = vmatprep.mubr.msk.bf16.mxu1 %vm1913_vm2, %v24366_v57 }
 0x6c1   : > { %10054 = vmatmul.mubr.bf16.gmra.mrb[0].mxu0 %v24367_v45  ;;  %10367 = vmatmul.mubr.bf16.gmra.mrb[0].mxu1 %v24367_v45 }
 0x6c2   : > { %14112 = vmatprep.mubr.msk.bf16.mxu0 %vm1913_vm2, %v24368_v38  ;;  %14136 = vmatprep.mubr.msk.bf16.mxu1 %vm1913_vm2, %v24368_v38 }
 0x6c9   : > { %10064 = vmatmul.mubr.bf16.gmra.mrb[4].mxu0 %v24369_v63  ;;  %10377 = vmatmul.mubr.bf16.gmra.mrb[4].mxu1 %v24369_v63 }
 0x6ca   : > { %14113 = vmatprep.mubr.msk.bf16.mxu0 %vm1913_vm2, %v24370_v62  ;;  %14137 = vmatprep.mubr.msk.bf16.mxu1 %vm1913_vm2, %v24370_v62 }
 0x6d1   : > { %10074 = vmatmul.mubr.bf16.gmra.mrb[8].mxu0 %v24371_v5  ;;  %10387 = vmatmul.mubr.bf16.gmra.mrb[8].mxu1 %v24371_v5 }
 0x6d2   : > { %14114 = vmatprep.mubr.msk.bf16.mxu0 %vm1913_vm2, %v24372_v33  ;;  %14138 = vmatprep.mubr.msk.bf16.mxu1 %vm1913_vm2, %v24372_v33 }
 0x6d9   : > { %10084 = vmatmul.mubr.bf16.gmra.mrb[12].mxu0 %v24373_v27  ;;  %10397 = vmatmul.mubr.bf16.gmra.mrb[12].mxu1 %v24373_v27 }
 0x6da   : > { %14115 = vmatprep.mubr.msk.bf16.mxu0 %vm1913_vm2, %v24374_v28  ;;  %14139 = vmatprep.mubr.msk.bf16.mxu1 %vm1913_vm2, %v24374_v28 }
 0x6e1   : > { %10094 = vmatmul.mubr.bf16.gmra.mrb[16].mxu0 %v24375_v26  ;;  %10407 = vmatmul.mubr.bf16.gmra.mrb[16].mxu1 %v24375_v26 }
 0x6e2   : > { %14116 = vmatprep.mubr.msk.bf16.mxu0 %vm1913_vm2, %v24376_v41  ;;  %14140 = vmatprep.mubr.msk.bf16.mxu1 %vm1913_vm2, %v24376_v41 }
 0x6e9   : > { %10104 = vmatmul.mubr.bf16.gmra.mrb[20].mxu0 %v24377_v30  ;;  %10417 = vmatmul.mubr.bf16.gmra.mrb[20].mxu1 %v24377_v30 }
 0x6ea   : > { %14117 = vmatprep.mubr.msk.bf16.mxu0 %vm1913_vm2, %v20994_v60  ;;  %14141 = vmatprep.mubr.msk.bf16.mxu1 %vm1913_vm2, %v20994_v60 }
 0x6f1   : > { %10114 = vmatmul.mubr.bf16.gmra.mrb[24].mxu0 %v20998_v42  ;;  %10427 = vmatmul.mubr.bf16.gmra.mrb[24].mxu1 %v20998_v42 }
 0x6f2   : > { %14118 = vmatprep.mubr.msk.bf16.mxu0 %vm1913_vm2, %v21066_v48  ;;  %14142 = vmatprep.mubr.msk.bf16.mxu1 %vm1913_vm2, %v21066_v48 }
 0x6f9   : > { %10124 = vmatmul.mubr.bf16.gmra.mrb[28].mxu0 %v21068_v44  ;;  %10437 = vmatmul.mubr.bf16.gmra.mrb[28].mxu1 %v21068_v44 }
 0x6fa   : > { %14119 = vmatprep.mubr.msk.bf16.mxu0 %vm1913_vm2, %v21098_v59  ;;  %14143 = vmatprep.mubr.msk.bf16.mxu1 %vm1913_vm2, %v21098_v59 }
 0x701   : > { %10134 = vmatmul.mubr.bf16.gmra.mrb[32].mxu0 %v21100_v55  ;;  %10447 = vmatmul.mubr.bf16.gmra.mrb[32].mxu1 %v21100_v55 }
 0x702   : > { %14120 = vmatprep.mubr.msk.bf16.mxu0 %vm1913_vm2, %v21116_v35  ;;  %14144 = vmatprep.mubr.msk.bf16.mxu1 %vm1913_vm2, %v21116_v35  ;;  %v10791_v35 = vld [vmem:[%s23806_s4] sm:$0xf] }
 0x709   : > { %10144 = vmatmul.mubr.bf16.gmra.mrb[36].mxu0 %v21118_v53  ;;  %10457 = vmatmul.mubr.bf16.gmra.mrb[36].mxu1 %v21118_v53 }
 0x70a   : > { %14121 = vmatprep.mubr.msk.bf16.mxu0 %vm1913_vm2, %v21134_v10  ;;  %14145 = vmatprep.mubr.msk.bf16.mxu1 %vm1913_vm2, %v21134_v10 }
 0x711   : > { %10154 = vmatmul.mubr.bf16.gmra.mrb[40].mxu0 %v21136_v56  ;;  %10467 = vmatmul.mubr.bf16.gmra.mrb[40].mxu1 %v21136_v56  ;;  %v24387_v56 = vld [vmem:[#allocation6_spill] sm:$0xff] }
 0x712   : > { %14122 = vmatprep.mubr.msk.bf16.mxu0 %vm1913_vm2, %v21152_v52  ;;  %14146 = vmatprep.mubr.msk.bf16.mxu1 %vm1913_vm2, %v21152_v52  ;;  %v24388_v52 = vsub.s32 0, %v24387_v56  ;;  %v24391_v26 = vsub.s32 3, %v24387_v56 }
 0x714   : > { %v22421_v41 = vrot.slane %v10791_v35, %v24391_v26 }
 0x719   : > { %10164 = vmatmul.mubr.bf16.gmra.mrb[44].mxu0 %v21154_v31  ;;  %10477 = vmatmul.mubr.bf16.gmra.mrb[44].mxu1 %v21154_v31  ;;  %v22409_v31 = vrot.slane %v10791_v35, %v24388_v52 }
 0x71a   : > { %14123 = vmatprep.mubr.msk.bf16.mxu0 %vm1913_vm2, %v21170_v20  ;;  %14147 = vmatprep.mubr.msk.bf16.mxu1 %vm1913_vm2, %v21170_v20  ;;  %v24389_v20 = vsub.s32 2, %v24387_v56 }
 0x721   : > { %10174 = vmatmul.mubr.bf16.gmra.mrb[48].mxu0 %v24385_v25  ;;  %10487 = vmatmul.mubr.bf16.gmra.mrb[48].mxu1 %v24385_v25 }
 0x722   : > { %14124 = vmatprep.mubr.msk.bf16.mxu0 %vm1913_vm2, %v21184_v22  ;;  %14148 = vmatprep.mubr.msk.bf16.mxu1 %vm1913_vm2, %v21184_v22  ;;  %v22413_v22 = vrot.slane %v10791_v35, %v24389_v20 }
 0x729   : > { %10184 = vmatmul.mubr.bf16.gmra.mrb[52].mxu0 %v21194_v14  ;;  %10497 = vmatmul.mubr.bf16.gmra.mrb[52].mxu1 %v21194_v14  ;;  %v24390_v14 = vsub.s32 1, %v24387_v56 }
 0x72a   : > { %14125 = vmatprep.mubr.msk.bf16.mxu0 %vm1913_vm2, %v21892_v11  ;;  %14149 = vmatprep.mubr.msk.bf16.mxu1 %vm1913_vm2, %v21892_v11 }
 0x72b   : > { %v22417_v30 = vrot.slane %v10791_v35, %v24390_v14 }
 0x731   : > { %10194 = vmatmul.mubr.bf16.gmra.mrb[56].mxu0 %v24383_v8  ;;  %10507 = vmatmul.mubr.bf16.gmra.mrb[56].mxu1 %v24383_v8 }
 0x732   : > { %14126 = vmatprep.mubr.msk.bf16.mxu0 %vm1913_vm2, %v21908_v36  ;;  %14150 = vmatprep.mubr.msk.bf16.mxu1 %vm1913_vm2, %v21908_v36 }
 0x739   : > { %10204 = vmatmul.mubr.bf16.gmra.mrb[60].mxu0 %v24384_v1  ;;  %10517 = vmatmul.mubr.bf16.gmra.mrb[60].mxu1 %v24384_v1 }
 0x73a   : > { %10213 = vmatprep.mubr.bf16.mxu0 %v24386_v19  ;;  %10526 = vmatprep.mubr.bf16.mxu1 %v24386_v19 }
 0x741   : > { %10214 = vmatmul.mubr.bf16.gmra.mrb[64].mxu0 %v24386_v19  ;;  %10527 = vmatmul.mubr.bf16.gmra.mrb[64].mxu1 %v24386_v19 }
 0x742   : > { %10223 = vmatprep.mubr.bf16.mxu0 %v24386_v19  ;;  %10536 = vmatprep.mubr.bf16.mxu1 %v24386_v19 }
 0x749   : > { %10224 = vmatmul.mubr.bf16.gmra.mrb[68].mxu0 %v24386_v19  ;;  %10537 = vmatmul.mubr.bf16.gmra.mrb[68].mxu1 %v24386_v19 }
 0x74a   : > { %10233 = vmatprep.mubr.bf16.mxu0 %v24386_v19  ;;  %10546 = vmatprep.mubr.bf16.mxu1 %v24386_v19 }
 0x751   : > { %10234 = vmatmul.mubr.bf16.gmra.mrb[72].mxu0 %v24386_v19  ;;  %10547 = vmatmul.mubr.bf16.gmra.mrb[72].mxu1 %v24386_v19 }
 0x752   : > { %10243 = vmatprep.mubr.bf16.mxu0 %v24386_v19  ;;  %10556 = vmatprep.mubr.bf16.mxu1 %v24386_v19 }
 0x754   : > { %v9975_v60 = vpop.f32.mrb[224].mxu0  ;;  %v10288_v42 = vpop.f32.mrb[224].mxu1 }
 0x755   : > { %v9977_v48 = vpop.f32.mrb[225].mxu0  ;;  %v10290_v44 = vpop.f32.mrb[225].mxu1  ;;  %v10813_v58 = vadd.f32 %v22409_v31, %v9975_v60  ;;  %v10815_v13 = vadd.f32 %v22413_v22, %v10288_v42 }
 0x756   : > { %v9979_v59 = vpop.f32.mrb[226].mxu0  ;;  %v10292_v55 = vpop.f32.mrb[226].mxu1  ;;  %v10814_v46 = vadd.f32 %v22417_v30, %v9977_v48  ;;  %v10816_v43 = vadd.f32 %v22421_v41, %v10290_v44 }
 0x757   : > { %v9981_v53 = vpop.f32.mrb[227].mxu0  ;;  %v10294_v10 = vpop.f32.mrb[227].mxu1  ;;  %v10817_v2 = vadd.f32 %v22409_v31, %v9979_v59  ;;  %v10819_v49 = vadd.f32 %v22413_v22, %v10292_v55  ;;  %v11037_v38 = vmax.f32 %v10813_v58, 0.0  ;;  %v11039_v63 = vmax.f32 %v10815_v13, 0.0 }
 0x758   : > { %v10818_v16 = vadd.f32 %v22417_v30, %v9981_v53  ;;  %v10820_v6 = vadd.f32 %v22421_v41, %v10294_v10  ;;  %v11038_v62 = vmax.f32 %v10814_v46, 0.0  ;;  %v11040_v5 = vmax.f32 %v10816_v43, 0.0 }
 0x759   : > { %10244 = vmatmul.mubr.bf16.gmra.mrb[76].mxu0 %v24386_v19  ;;  %10557 = vmatmul.mubr.bf16.gmra.mrb[76].mxu1 %v24386_v19  ;;  %v11041_v33 = vmax.f32 %v10817_v2, 0.0  ;;  %v11043_v27 = vmax.f32 %v10819_v49, 0.0 }
 0x75a   : > { %v11042_v28 = vmax.f32 %v10818_v16, 0.0  ;;  %v11044_v11 = vmax.f32 %v10820_v6, 0.0 }
 0x75c   : > { %v9985_v18 = vpop.f32.mrb[228].mxu0  ;;  %v10298_v29 = vpop.f32.mrb[228].mxu1 }
 0x75d   : > { %v9987_v7 = vpop.f32.mrb[229].mxu0  ;;  %v10300_v50 = vpop.f32.mrb[229].mxu1  ;;  %v22432_v57 = vadd.f32 %v22409_v31, %v9985_v18  ;;  %v22435_v45 = vadd.f32 %v22413_v22, %v10298_v29 }
 0x75e   : > { %v9989_v15 = vpop.f32.mrb[230].mxu0  ;;  %v10302_v39 = vpop.f32.mrb[230].mxu1  ;;  %v22440_v1 = vadd.f32 %v22417_v30, %v9987_v7  ;;  %v22443_v23 = vadd.f32 %v22421_v41, %v10300_v50 }
 0x75f   : > { %v9991_v54 = vpop.f32.mrb[231].mxu0  ;;  %v10304_v4 = vpop.f32.mrb[231].mxu1  ;;  %v11045_v36 = vmax.f32 %v22432_v57, 0.0  ;;  %v11047_v8 = vmax.f32 %v22435_v45, 0.0  ;;  %v22446_v9 = vadd.f32 %v22409_v31, %v9989_v15  ;;  %v22449_v12 = vadd.f32 %v22413_v22, %v10302_v39 }
 0x760   : > { %v22454_v17 = vadd.f32 %v22417_v30, %v9991_v54  ;;  %v22457_v51 = vadd.f32 %v22421_v41, %v10304_v4  ;;  %v11046_v7 = vmax.f32 %v22440_v1, 0.0  ;;  %v11048_v50 = vmax.f32 %v22443_v23, 0.0 }
 0x761   : > { %v11049_v46 = vmax.f32 %v22446_v9, 0.0  ;;  %v11051_v16 = vmax.f32 %v22449_v12, 0.0 }
 0x762   : > { %v11050_v6 = vmax.f32 %v22454_v17, 0.0 }
 0x764   : > { %v9995_v21 = vpop.f32.mrb[232].mxu0  ;;  %v10308_v32 = vpop.f32.mrb[232].mxu1 }
 0x765   : > { %v10829_v61 = vadd.f32 %v22409_v31, %v9995_v21  ;;  %v10831_v37 = vadd.f32 %v22413_v22, %v10308_v32  ;;  %v9997_v3 = vpop.f32.mrb[233].mxu0  ;;  %v10310_v34 = vpop.f32.mrb[233].mxu1 }
 0x766   : > { %v10830_v40 = vadd.f32 %v22417_v30, %v9997_v3  ;;  %v10832_v47 = vadd.f32 %v22421_v41, %v10310_v34  ;;  %v9999_v24 = vpop.f32.mrb[234].mxu0  ;;  %v10312_v0 = vpop.f32.mrb[234].mxu1 }
 0x767   : > { %v11053_v25 = vmax.f32 %v10829_v61, 0.0  ;;  %v11055_v19 = vmax.f32 %v10831_v37, 0.0  ;;  %v10833_v60 = vadd.f32 %v22409_v31, %v9999_v24  ;;  %v10835_v42 = vadd.f32 %v22413_v22, %v10312_v0  ;;  %v10001_v48 = vpop.f32.mrb[235].mxu0  ;;  %v10314_v44 = vpop.f32.mrb[235].mxu1 }
 0x768   : > { %v11054_v59 = vmax.f32 %v10830_v40, 0.0  ;;  %v11056_v55 = vmax.f32 %v10832_v47, 0.0  ;;  %v10834_v35 = vadd.f32 %v22417_v30, %v10001_v48  ;;  %v10836_v53 = vadd.f32 %v22421_v41, %v10314_v44 }
 0x769   : > { %v22465_v10 = vmax.f32 %v11037_v38, %v11053_v25  ;;  %v22467_v56 = vmax.f32 %v11039_v63, %v11055_v19  ;;  %v11057_v52 = vmax.f32 %v10833_v60, 0.0  ;;  %v11059_v20 = vmax.f32 %v10835_v42, 0.0 }
 0x76a   : > { %v22469_v14 = vmax.f32 %v11038_v62, %v11054_v59  ;;  %v22471_v26 = vmax.f32 %v11040_v5, %v11056_v55  ;;  %v11058_v18 = vmax.f32 %v10834_v35, 0.0  ;;  %v11060_v29 = vmax.f32 %v10836_v53, 0.0 }
 0x76b   : > { %24392 = vst [vmem:[#allocation7_spill] sm:$0xff] %v22465_v10  ;;  %v22475_v58 = vmax.f32 %v11041_v33, %v11057_v52  ;;  %v22477_v13 = vmax.f32 %v11043_v27, %v11059_v20  ;;  %v11052_v62 = vmax.f32 %v22457_v51, 0.0 }
 0x76c   : > { %24393 = vst [vmem:[#allocation51_spill] sm:$0xff] %v22469_v14  ;;  %v22482_v15 = vmax.f32 %v11042_v28, %v11058_v18  ;;  %v22484_v39 = vmax.f32 %v11044_v11, %v11060_v29  ;;  %v10005_v2 = vpop.f32.mrb[236].mxu0  ;;  %v10318_v49 = vpop.f32.mrb[236].mxu1 }
 0x76d   : > { %24394 = vst [vmem:[#allocation12_spill] sm:$0xff] %v22475_v58  ;;  %v10837_v54 = vadd.f32 %v22409_v31, %v10005_v2  ;;  %v10839_v4 = vadd.f32 %v22413_v22, %v10318_v49  ;;  %v10007_v38 = vpop.f32.mrb[237].mxu0  ;;  %v10320_v63 = vpop.f32.mrb[237].mxu1 }
 0x76e   : > { %24395 = vst [vmem:[#allocation55_spill] sm:$0xff] %v22482_v15  ;;  %v10838_v33 = vadd.f32 %v22417_v30, %v10007_v38  ;;  %v10840_v27 = vadd.f32 %v22421_v41, %v10320_v63  ;;  %v10009_v28 = vpop.f32.mrb[238].mxu0  ;;  %v10322_v11 = vpop.f32.mrb[238].mxu1 }
 0x76f   : > { %v11061_v1 = vmax.f32 %v10837_v54, 0.0  ;;  %v11063_v23 = vmax.f32 %v10839_v4, 0.0  ;;  %v10841_v21 = vadd.f32 %v22409_v31, %v10009_v28  ;;  %v10843_v32 = vadd.f32 %v22413_v22, %v10322_v11  ;;  %v10011_v9 = vpop.f32.mrb[239].mxu0  ;;  %v10324_v12 = vpop.f32.mrb[239].mxu1 }
 0x770   : > { %v11062_v61 = vmax.f32 %v10838_v33, 0.0  ;;  %v11064_v37 = vmax.f32 %v10840_v27, 0.0  ;;  %v10842_v3 = vadd.f32 %v22417_v30, %v10011_v9  ;;  %v10844_v34 = vadd.f32 %v22421_v41, %v10324_v12 }
 0x771   : > { %v22501_v17 = vmax.f32 %v11045_v36, %v11061_v1  ;;  %v22505_v51 = vmax.f32 %v11047_v8, %v11063_v23  ;;  %v11065_v40 = vmax.f32 %v10841_v21, 0.0  ;;  %v11067_v47 = vmax.f32 %v10843_v32, 0.0  ;;  %v16546_v1 = vld [vmem:[%s23807_s5 + $0x40] sm:$0xff]  }
 0x772   : > { %v22507_v24 = vmax.f32 %v11046_v7, %v11062_v61  ;;  %v22509_v0 = vmax.f32 %v11048_v50, %v11064_v37  ;;  %v11066_v25 = vmax.f32 %v10842_v3, 0.0  ;;  %v11068_v19 = vmax.f32 %v10844_v34, 0.0  ;;  %v16547_v21 = vld [vmem:[%s23807_s5] sm:$0xff]   ;;  %14255 = vmatprep.subr.bf16.mxu0 %v16546_v1 }
 0x773   : > { %24396 = vst [vmem:[#allocation52_spill] sm:$0xff] %v22501_v17  ;;  %v22511_v60 = vmax.f32 %v11049_v46, %v11065_v40  ;;  %v22513_v42 = vmax.f32 %v11051_v16, %v11067_v47  ;;  %14256 = vmatpush3.bf16.msra.mxu0 %v16547_v21 }
 0x774   : > { %v22517_v36 = vmax.f32 %v11050_v6, %v11066_v25  ;;  %v22519_v45 = vmax.f32 %v11052_v62, %v11068_v19  ;;  %v10015_v8 = vpop.f32.mrb[240].mxu0  ;;  %v10328_v48 = vpop.f32.mrb[240].mxu1 }
 0x775   : > { %24397 = vst [vmem:[#allocation22_spill] sm:$0xff] %v22511_v60  ;;  %24398 = vst [vmem:[#allocation56_spill] sm:$0xff] %v22513_v42  ;;  %v10017_v44 = vpop.f32.mrb[241].mxu0  ;;  %v10330_v59 = vpop.f32.mrb[241].mxu1  ;;  %v10845_v46 = vadd.f32 %v22409_v31, %v10015_v8  ;;  %v10847_v2 = vadd.f32 %v22413_v22, %v10328_v48 }
 0x776   : > { %24399 = vst [vmem:[#allocation53_spill] sm:$0xff] %v22519_v45  ;;  %v10019_v35 = vpop.f32.mrb[242].mxu0  ;;  %v10332_v53 = vpop.f32.mrb[242].mxu1  ;;  %v10846_v49 = vadd.f32 %v22417_v30, %v10017_v44  ;;  %v10848_v16 = vadd.f32 %v22421_v41, %v10330_v59 }
 0x777   : > { %v10021_v52 = vpop.f32.mrb[243].mxu0  ;;  %v10334_v20 = vpop.f32.mrb[243].mxu1  ;;  %v22528_v4 = vadd.f32 %v22409_v31, %v10019_v35  ;;  %v22531_v38 = vadd.f32 %v22413_v22, %v10332_v53  ;;  %v11069_v32 = vmax.f32 %v10845_v46, 0.0  ;;  %v11071_v9 = vmax.f32 %v10847_v2, 0.0 }
 0x778   : > { %v22534_v63 = vadd.f32 %v22417_v30, %v10021_v52  ;;  %v22537_v62 = vadd.f32 %v22421_v41, %v10334_v20  ;;  %v11070_v12 = vmax.f32 %v10846_v49, 0.0  ;;  %v11072_v61 = vmax.f32 %v10848_v16, 0.0  ;;  %v16548_v16 = vld [vmem:[%s23807_s5 + $0xc0] sm:$0xff]  }
 0x779   : > { %v11073_v37 = vmax.f32 %v22528_v4, 0.0  ;;  %v11075_v3 = vmax.f32 %v22531_v38, 0.0  ;;  %14283 = vmatprep.subr.bf16.mxu1 %v16548_v16 }
 0x77a   : > { %v11074_v34 = vmax.f32 %v22534_v63, 0.0  ;;  %v11076_v40 = vmax.f32 %v22537_v62, 0.0 }
 0x77c   : > { %v10025_v18 = vpop.f32.mrb[244].mxu0  ;;  %v10338_v29 = vpop.f32.mrb[244].mxu1 }
 0x77d   : > { %v10027_v7 = vpop.f32.mrb[245].mxu0  ;;  %v10340_v50 = vpop.f32.mrb[245].mxu1  ;;  %v22540_v28 = vadd.f32 %v22409_v31, %v10025_v18  ;;  %v22543_v11 = vadd.f32 %v22413_v22, %v10338_v29 }
 0x77e   : > { %v10029_v6 = vpop.f32.mrb[246].mxu0  ;;  %v10342_v54 = vpop.f32.mrb[246].mxu1  ;;  %v22549_v23 = vadd.f32 %v22417_v30, %v10027_v7  ;;  %v22561_v19 = vadd.f32 %v22421_v41, %v10340_v50 }
 0x77f   : > { %v10031_v33 = vpop.f32.mrb[247].mxu0  ;;  %v10344_v27 = vpop.f32.mrb[247].mxu1  ;;  %v11077_v47 = vmax.f32 %v22540_v28, 0.0  ;;  %v11079_v25 = vmax.f32 %v22543_v11, 0.0  ;;  %v22564_v8 = vadd.f32 %v22409_v31, %v10029_v6  ;;  %v22568_v35 = vadd.f32 %v22413_v22, %v10342_v54 }
 0x780   : > { %v11078_v59 = vmax.f32 %v22549_v23, 0.0  ;;  %v22573_v29 = vadd.f32 %v22417_v30, %v10031_v33  ;;  %v22576_v7 = vadd.f32 %v22421_v41, %v10344_v27 }
 0x784   : > { %v10035_v48 = vpop.f32.mrb[248].mxu0  ;;  %v10348_v44 = vpop.f32.mrb[248].mxu1 }
 0x785   : > { %v10861_v53 = vadd.f32 %v22409_v31, %v10035_v48  ;;  %v10863_v52 = vadd.f32 %v22413_v22, %v10348_v44  ;;  %v10037_v20 = vpop.f32.mrb[249].mxu0  ;;  %v10350_v18 = vpop.f32.mrb[249].mxu1 }
 0x786   : > { %v10862_v50 = vadd.f32 %v22417_v30, %v10037_v20  ;;  %v10864_v46 = vadd.f32 %v22421_v41, %v10350_v18  ;;  %v10039_v2 = vpop.f32.mrb[250].mxu0  ;;  %v10352_v49 = vpop.f32.mrb[250].mxu1 }
 0x787   : > { %v11085_v6 = vmax.f32 %v10861_v53, 0.0  ;;  %v11087_v54 = vmax.f32 %v10863_v52, 0.0  ;;  %v10865_v4 = vadd.f32 %v22409_v31, %v10039_v2  ;;  %v10867_v38 = vadd.f32 %v22413_v22, %v10352_v49  ;;  %v10041_v63 = vpop.f32.mrb[251].mxu0  ;;  %v10354_v62 = vpop.f32.mrb[251].mxu1  ;;  %v16549_v53 = vld [vmem:[%s23807_s5 + $0x80] sm:$0xff]  }
 0x788   : > { %v11086_v33 = vmax.f32 %v10862_v50, 0.0  ;;  %v11088_v27 = vmax.f32 %v10864_v46, 0.0  ;;  %v10866_v1 = vadd.f32 %v22417_v30, %v10041_v63  ;;  %v10868_v21 = vadd.f32 %v22421_v41, %v10354_v62  ;;  %14284 = vmatpush3.bf16.msra.mxu1 %v16549_v53 }
 0x789   : > { %v22587_v48 = vmax.f32 %v11069_v32, %v11085_v6  ;;  %v11279_v44 = vmax.f32 %v11071_v9, %v11087_v54  ;;  %v11089_v20 = vmax.f32 %v10865_v4, 0.0  ;;  %v11091_v18 = vmax.f32 %v10867_v38, 0.0 }
 0x78a   : > { %v22592_v52 = vmax.f32 %v11070_v12, %v11086_v33  ;;  %v11280_v2 = vmax.f32 %v11072_v61, %v11088_v27  ;;  %v11090_v49 = vmax.f32 %v10866_v1, 0.0  ;;  %v11092_v50 = vmax.f32 %v10868_v21, 0.0 }
 0x78b   : > { %v11080_v46 = vmax.f32 %v22561_v19, 0.0  ;;  %v11081_v63 = vmax.f32 %v22564_v8, 0.0  ;;  %v22596_v62 = vmax.f32 %v11073_v37, %v11089_v20  ;;  %v11283_v32 = vmax.f32 %v11075_v3, %v11091_v18 }
 0x78c   : > { %v11083_v9 = vmax.f32 %v22568_v35, 0.0  ;;  %v15792_v16 = vpack.i.bf16 %v11279_v44, %v22592_v52  ;;  %v22600_v6 = vmax.f32 %v11074_v34, %v11090_v49  ;;  %v11284_v54 = vmax.f32 %v11076_v40, %v11092_v50  ;;  %v10045_v12 = vpop.f32.mrb[252].mxu0  ;;  %v10358_v4 = vpop.f32.mrb[252].mxu1 }
 0x78d   : > { %v11082_v61 = vmax.f32 %v22573_v29, 0.0  ;;  %v11084_v38 = vmax.f32 %v22576_v7, 0.0  ;;  %v10869_v19 = vadd.f32 %v22409_v31, %v10045_v12  ;;  %v10871_v37 = vadd.f32 %v22413_v22, %v10358_v4  ;;  %v10047_v8 = vpop.f32.mrb[253].mxu0  ;;  %v10360_v3 = vpop.f32.mrb[253].mxu1 }
 0x78e   : > { %v15797_v33 = vpack.i.bf16 %v11283_v32, %v22600_v6  ;;  %v15802_v35 = vpack.i.bf16 %v11284_v54, %v11280_v2  ;;  %v10870_v27 = vadd.f32 %v22417_v30, %v10047_v8  ;;  %v10872_v34 = vadd.f32 %v22421_v41, %v10360_v3  ;;  %v10362_v40 = vpop.f32.mrb[254].mxu1  ;;  %15793 = vrot.lane.b32.xlu0 %v15792_v16, %s16763_s11  ;;  %v10049_v1 = vpop.f32.mrb[254].mxu0 }
 0x78f   : > { %v11093_v29 = vmax.f32 %v10869_v19, 0.0  ;;  %v11095_v21 = vmax.f32 %v10871_v37, 0.0  ;;  %v10875_v7 = vadd.f32 %v22413_v22, %v10362_v40  ;;  %v10873_v44 = vadd.f32 %v22409_v31, %v10049_v1  ;;  %v10051_v20 = vpop.f32.mrb[255].mxu0  ;;  %v10364_v18 = vpop.f32.mrb[255].mxu1 }
 0x790   : > { %v11094_v53 = vmax.f32 %v10870_v27, 0.0  ;;  %v11096_v49 = vmax.f32 %v10872_v34, 0.0  ;;  %v10874_v2 = vadd.f32 %v22417_v30, %v10051_v20  ;;  %v10876_v50 = vadd.f32 %v22421_v41, %v10364_v18  ;;  %15798 = vrot.lane.b32.xlu1 %v15797_v33, %s16763_s11 }
 0x791   : > { %v22617_v32 = vmax.f32 %v11077_v47, %v11093_v29  ;;  %v22621_v16 = vmax.f32 %v11079_v25, %v11095_v21  ;;  %v11099_v54 = vmax.f32 %v10875_v7, 0.0  ;;  %v11097_v12 = vmax.f32 %v10873_v44, 0.0 }
 0x792   : > { %v22625_v4 = vmax.f32 %v11078_v59, %v11094_v53  ;;  %v22627_v19 = vmax.f32 %v11080_v46, %v11096_v49  ;;  %v11098_v37 = vmax.f32 %v10874_v2, 0.0  ;;  %v11100_v8 = vmax.f32 %v10876_v50, 0.0  ;;  %15803 = vrot.lane.b32.xlu0 %v15802_v35, %s16763_s11 }
 0x793   : > { %v22630_v3 = vmax.f32 %v11083_v9, %v11099_v54  ;;  %v22632_v28 = vmax.f32 %v11081_v63, %v11097_v12  ;;  %v16550_v63 = vld [vmem:[%s23807_s5 + $0x48] sm:$0xff]  }
 0x794   : > { %24400 = vst [vmem:[#allocation13_spill] sm:$0xff] %v22625_v4  ;;  %v22634_v47 = vmax.f32 %v11082_v61, %v11098_v37  ;;  %v22636_v11 = vmax.f32 %v11084_v38, %v11100_v8  ;;  %v10055_v25 = vpop.f32.mrb[0].mxu0  ;;  %v10368_v33 = vpop.f32.mrb[0].mxu1  ;;  %v16551_v9 = vld [vmem:[%s23807_s5 + $0x8] sm:$0xff]   ;;  %14257 = vmatprep.subr.bf16.mxu0 %v16550_v63 }
 0x795   : > { %v10057_v27 = vpop.f32.mrb[1].mxu0  ;;  %v10370_v23 = vpop.f32.mrb[1].mxu1  ;;  %v10877_v21 = vadd.f32 %v22409_v31, %v10055_v25  ;;  %v10879_v7 = vadd.f32 %v22413_v22, %v10368_v33  ;;  %14258 = vmatpush3.bf16.msra.mxu0 %v16551_v9  ;;  %v16552_v63 = vld [vmem:[%s23807_s5 + $0xc8] sm:$0xff]  }
 0x796   : > { %24401 = vst [vmem:[#allocation44_spill] sm:$0xff] %v22634_v47  ;;  %v10059_v46 = vpop.f32.mrb[2].mxu0  ;;  %v10372_v34 = vpop.f32.mrb[2].mxu1  ;;  %v10878_v44 = vadd.f32 %v22417_v30, %v10057_v27  ;;  %v10880_v20 = vadd.f32 %v22421_v41, %v10370_v23  ;;  %v16553_v9 = vld [vmem:[%s23807_s5 + $0x88] sm:$0xff]   ;;  %14285 = vmatprep.subr.bf16.mxu1 %v16552_v63 }
 0x797   : > { %v10061_v40 = vpop.f32.mrb[3].mxu0  ;;  %v10374_v1 = vpop.f32.mrb[3].mxu1  ;;  %v10881_v49 = vadd.f32 %v22409_v31, %v10059_v46  ;;  %v10883_v2 = vadd.f32 %v22413_v22, %v10372_v34  ;;  %v11101_v46 = vmax.f32 %v10877_v21, 0.0  ;;  %v11103_v34 = vmax.f32 %v10879_v7, 0.0  ;;  %14286 = vmatpush3.bf16.msra.mxu1 %v16553_v9 }
 0x798   : > { %v22653_v50 = vadd.f32 %v22417_v30, %v10061_v40  ;;  %v22656_v54 = vadd.f32 %v22421_v41, %v10374_v1  ;;  %v11102_v40 = vmax.f32 %v10878_v44, 0.0  ;;  %v11104_v1 = vmax.f32 %v10880_v20, 0.0 }
 0x79a   : > { %v11106_v55 = vmax.f32 %v22653_v50, 0.0  ;;  %v11108_v57 = vmax.f32 %v22656_v54, 0.0 }
 0x79c   : > { %v10065_v61 = vpop.f32.mrb[4].mxu0  ;;  %v10378_v38 = vpop.f32.mrb[4].mxu1 }
 0x79d   : > { %v10067_v35 = vpop.f32.mrb[5].mxu0  ;;  %v10380_v29 = vpop.f32.mrb[5].mxu1  ;;  %v22659_v8 = vadd.f32 %v22409_v31, %v10065_v61  ;;  %v22662_v25 = vadd.f32 %v22413_v22, %v10378_v38  ;;  %v11105_v61 = vmax.f32 %v10881_v49, 0.0  ;;  %v11107_v38 = vmax.f32 %v10883_v2, 0.0 }
 0x79e   : > { %v10069_v18 = vpop.f32.mrb[6].mxu0  ;;  %v10382_v53 = vpop.f32.mrb[6].mxu1  ;;  %v22669_v23 = vadd.f32 %v22417_v30, %v10067_v35  ;;  %v22682_v7 = vadd.f32 %v22421_v41, %v10380_v29 }
 0x79f   : > { %v10071_v12 = vpop.f32.mrb[7].mxu0  ;;  %v10384_v37 = vpop.f32.mrb[7].mxu1  ;;  %v22685_v44 = vadd.f32 %v22409_v31, %v10069_v18  ;;  %v22689_v2 = vadd.f32 %v22413_v22, %v10382_v53 }
 0x7a0   : > { %v22694_v29 = vadd.f32 %v22417_v30, %v10071_v12  ;;  %v22697_v18 = vadd.f32 %v22421_v41, %v10384_v37 }
 0x7a1   : > { %v11113_v45 = vmax.f32 %v22685_v44, 0.0 }
 0x7a4   : > { %v10075_v20 = vpop.f32.mrb[8].mxu0  ;;  %v10388_v5 = vpop.f32.mrb[8].mxu1 }
 0x7a5   : > { %v10893_v50 = vadd.f32 %v22409_v31, %v10075_v20  ;;  %v10895_v54 = vadd.f32 %v22413_v22, %v10388_v5  ;;  %v10077_v43 = vpop.f32.mrb[9].mxu0  ;;  %v10390_v59 = vpop.f32.mrb[9].mxu1 }
 0x7a6   : > { %v10894_v63 = vadd.f32 %v22417_v30, %v10077_v43  ;;  %v10896_v27 = vadd.f32 %v22421_v41, %v10390_v59  ;;  %v10079_v33 = vpop.f32.mrb[10].mxu0  ;;  %v10392_v53 = vpop.f32.mrb[10].mxu1 }
 0x7a7   : > { %v11117_v49 = vmax.f32 %v10893_v50, 0.0  ;;  %v11119_v21 = vmax.f32 %v10895_v54, 0.0  ;;  %v10897_v20 = vadd.f32 %v22409_v31, %v10079_v33  ;;  %v10899_v5 = vadd.f32 %v22413_v22, %v10392_v53  ;;  %v10081_v35 = vpop.f32.mrb[11].mxu0  ;;  %v10394_v9 = vpop.f32.mrb[11].mxu1 }
 0x7a8   : > { %v11118_v17 = vmax.f32 %v10894_v63, 0.0  ;;  %v11120_v12 = vmax.f32 %v10896_v27, 0.0  ;;  %v10898_v60 = vadd.f32 %v22417_v30, %v10081_v35  ;;  %v10900_v37 = vadd.f32 %v22421_v41, %v10394_v9 }
 0x7a9   : > { %v22705_v58 = vmax.f32 %v11101_v46, %v11117_v49  ;;  %v11295_v43 = vmax.f32 %v11103_v34, %v11119_v21  ;;  %v11121_v59 = vmax.f32 %v10897_v20, 0.0  ;;  %v11123_v10 = vmax.f32 %v10899_v5, 0.0 }
 0x7aa   : > { %v22707_v42 = vmax.f32 %v11102_v40, %v11118_v17  ;;  %v11296_v50 = vmax.f32 %v11104_v1, %v11120_v12  ;;  %v11122_v54 = vmax.f32 %v10898_v60, 0.0  ;;  %v11124_v33 = vmax.f32 %v10900_v37, 0.0 }
 0x7ab   : > { %v11112_v53 = vmax.f32 %v22682_v7, 0.0  ;;  %v22711_v63 = vmax.f32 %v11105_v61, %v11121_v59  ;;  %v11299_v27 = vmax.f32 %v11107_v38, %v11123_v10  ;;  %v11115_v35 = vmax.f32 %v22689_v2, 0.0 }
 0x7ac   : > { %24402 = vst [vmem:[#allocation33_spill] sm:$0xff] %v22707_v42  ;;  %v15807_v46 = vpack.i.bf16 %v11295_v43, %v22707_v42  ;;  %v22715_v49 = vmax.f32 %v11106_v55, %v11122_v54  ;;  %v11300_v34 = vmax.f32 %v11108_v57, %v11124_v33  ;;  %v10085_v21 = vpop.f32.mrb[12].mxu0  ;;  %v10398_v17 = vpop.f32.mrb[12].mxu1  ;;  %v11114_v40 = vmax.f32 %v22694_v29, 0.0 }
 0x7ad   : > { %v11116_v60 = vmax.f32 %v22697_v18, 0.0  ;;  %v10901_v1 = vadd.f32 %v22409_v31, %v10085_v21  ;;  %v10903_v7 = vadd.f32 %v22413_v22, %v10398_v17  ;;  %v10087_v61 = vpop.f32.mrb[13].mxu0  ;;  %v10400_v44 = vpop.f32.mrb[13].mxu1  ;;  %v24404_v33 = vmax.f32 %v22659_v8, 0.0 }
 0x7ae   : > { %24403 = vst [vmem:[#allocation28_spill] sm:$0xff] %v22715_v49  ;;  %v15812_v10 = vpack.i.bf16 %v11299_v27, %v22715_v49  ;;  %v15832_v38 = vpack.i.bf16 %v11300_v34, %v11296_v50  ;;  %v10902_v2 = vadd.f32 %v22417_v30, %v10087_v61  ;;  %v10904_v55 = vadd.f32 %v22421_v41, %v10400_v44  ;;  %v10402_v57 = vpop.f32.mrb[14].mxu1  ;;  %v10089_v20 = vpop.f32.mrb[14].mxu0 }
 0x7af   : > { %15808 = vrot.lane.b32.xlu1 %v15807_v46, %s16763_s11  ;;  %v11125_v29 = vmax.f32 %v10901_v1, 0.0  ;;  %v11127_v5 = vmax.f32 %v10903_v7, 0.0  ;;  %v10907_v18 = vadd.f32 %v22413_v22, %v10402_v57  ;;  %v10905_v9 = vadd.f32 %v22409_v31, %v10089_v20  ;;  %v10091_v12 = vpop.f32.mrb[15].mxu0  ;;  %v10404_v37 = vpop.f32.mrb[15].mxu1 }
 0x7b0   : > { %v11126_v43 = vmax.f32 %v10902_v2, 0.0  ;;  %v11128_v59 = vmax.f32 %v10904_v55, 0.0  ;;  %v10906_v50 = vadd.f32 %v22417_v30, %v10091_v12  ;;  %v10908_v54 = vadd.f32 %v22421_v41, %v10404_v37  ;;  %15813 = vrot.lane.b32.xlu0 %v15812_v10, %s16763_s11 }
 0x7b1   : > { %v22732_v27 = vmax.f32 %v24404_v33, %v11125_v29  ;;  %v24405_v46 = vmax.f32 %v22662_v25, 0.0  ;;  %v11131_v21 = vmax.f32 %v10907_v18, 0.0  ;;  %v11129_v17 = vmax.f32 %v10905_v9, 0.0 }
 0x7b2   : > { %v24406_v1 = vmax.f32 %v22669_v23, 0.0  ;;  %v22740_v61 = vmax.f32 %v11112_v53, %v11128_v59  ;;  %v11130_v44 = vmax.f32 %v10906_v50, 0.0  ;;  %v11132_v2 = vmax.f32 %v10908_v54, 0.0 }
 0x7b3   : > { %v11303_v34 = vmax.f32 %v24405_v46, %v11127_v5  ;;  %v24408_v10 = vpack.i.bf16 %v22621_v16, %v22625_v4  ;;  %v11307_v8 = vmax.f32 %v11115_v35, %v11131_v21  ;;  %v22746_v55 = vmax.f32 %v11113_v45, %v11129_v17  ;;  %v16554_v46 = vld [vmem:[%s23807_s5 + $0x50] sm:$0xff]  }
 0x7b4   : > { %v22738_v7 = vmax.f32 %v24406_v1, %v11126_v43  ;;  %v22748_v25 = vmax.f32 %v11114_v40, %v11130_v44  ;;  %v22750_v57 = vmax.f32 %v11116_v60, %v11132_v2  ;;  %v10408_v20 = vpop.f32.mrb[16].mxu1  ;;  %v24410_v23 = vpack.i.bf16 %v22630_v3, %v22634_v47  ;;  %v10095_v53 = vpop.f32.mrb[16].mxu0  ;;  %14259 = vmatprep.subr.bf16.mxu0 %v16554_v46 }
 0x7b5   : > { %15818 = vrot.lane.b32.xlu1 %v24408_v10, %s16763_s11  ;;  %v10097_v29 = vpop.f32.mrb[17].mxu0  ;;  %v10410_v5 = vpop.f32.mrb[17].mxu1  ;;  %v24411_v45 = vpack.i.bf16 %v22636_v11, %v22627_v19  ;;  %v10911_v19 = vadd.f32 %v22413_v22, %v10408_v20  ;;  %v10909_v11 = vadd.f32 %v22409_v31, %v10095_v53 }
 0x7b6   : > { %24407 = vst [vmem:[#allocation32_spill] sm:$0xff] %v22738_v7  ;;  %24409 = vst [vmem:[#allocation14_spill] sm:$0xff] %v22748_v25  ;;  %15823 = vrot.lane.b32.xlu0 %v24410_v23, %s16763_s11  ;;  %v10412_v18 = vpop.f32.mrb[18].mxu1  ;;  %v10099_v35 = vpop.f32.mrb[18].mxu0  ;;  %v15842_v9 = vpack.i.bf16 %v11307_v8, %v22748_v25  ;;  %v15837_v3 = vpack.i.bf16 %v11303_v34, %v22738_v7  ;;  %v10910_v50 = vadd.f32 %v22417_v30, %v10097_v29  ;;  %v16555_v34 = vld [vmem:[%s23807_s5 + $0x10] sm:$0xff]  }
 0x7b7   : > { %v10101_v40 = vpop.f32.mrb[19].mxu0  ;;  %v10414_v60 = vpop.f32.mrb[19].mxu1  ;;  %v10912_v54 = vadd.f32 %v22421_v41, %v10410_v5  ;;  %v22778_v21 = vadd.f32 %v22413_v22, %v10412_v18  ;;  %v10913_v17 = vadd.f32 %v22409_v31, %v10099_v35  ;;  %14260 = vmatpush3.bf16.msra.mxu0 %v16555_v34  ;;  %v11135_v53 = vmax.f32 %v10911_v19, 0.0 }
 0x7b8   : > { %v22782_v1 = vadd.f32 %v22417_v30, %v10101_v40  ;;  %v22785_v44 = vadd.f32 %v22421_v41, %v10414_v60  ;;  %v11133_v29 = vmax.f32 %v10909_v11, 0.0  ;;  %v11134_v5 = vmax.f32 %v10910_v50, 0.0 }
 0x7b9   : > { %15828 = vrot.lane.b32.xlu1 %v24411_v45, %s16763_s11  ;;  %v11136_v18 = vmax.f32 %v10912_v54, 0.0  ;;  %v11139_v45 = vmax.f32 %v22778_v21, 0.0  ;;  %v11137_v35 = vmax.f32 %v10913_v17, 0.0 }
 0x7ba   : > { %15833 = vrot.lane.b32.xlu0 %v15832_v38, %s16763_s11  ;;  %v11138_v40 = vmax.f32 %v22782_v1, 0.0  ;;  %v11140_v60 = vmax.f32 %v22785_v44, 0.0 }
 0x7bc   : > { %v10418_v12 = vpop.f32.mrb[20].mxu1  ;;  %v10105_v37 = vpop.f32.mrb[20].mxu0 }
 0x7bd   : > { %15843 = vrot.lane.b32.xlu1 %v15842_v9, %s16763_s11  ;;  %v10107_v43 = vpop.f32.mrb[21].mxu0  ;;  %v10420_v59 = vpop.f32.mrb[21].mxu1  ;;  %v22788_v8 = vadd.f32 %v22413_v22, %v10418_v12  ;;  %v22791_v20 = vadd.f32 %v22409_v31, %v10105_v37  ;;  %v16556_v9 = vld [vmem:[%s23807_s5 + $0xd0] sm:$0xff]  }
 0x7be   : > { %15838 = vrot.lane.b32.xlu0 %v15837_v3, %s16763_s11  ;;  %v10109_v33 = vpop.f32.mrb[22].mxu0  ;;  %v10422_v38 = vpop.f32.mrb[22].mxu1  ;;  %v22794_v23 = vadd.f32 %v22417_v30, %v10107_v43  ;;  %v16557_v3 = vld [vmem:[%s23807_s5 + $0x90] sm:$0xff]   ;;  %v22808_v43 = vadd.f32 %v22421_v41, %v10420_v59  ;;  %14287 = vmatprep.subr.bf16.mxu1 %v16556_v9 }
 0x7bf   : > { %v10111_v2 = vpop.f32.mrb[23].mxu0  ;;  %v10424_v10 = vpop.f32.mrb[23].mxu1  ;;  %v22811_v19 = vadd.f32 %v22409_v31, %v10109_v33  ;;  %v22815_v46 = vadd.f32 %v22413_v22, %v10422_v38  ;;  %14288 = vmatpush3.bf16.msra.mxu1 %v16557_v3 }
 0x7c0   : > { %v22820_v59 = vadd.f32 %v22417_v30, %v10111_v2  ;;  %v22823_v33 = vadd.f32 %v22421_v41, %v10424_v10 }
 0x7c1   : > { %v11145_v47 = vmax.f32 %v22811_v19, 0.0 }
 0x7c4   : > { %v10115_v11 = vpop.f32.mrb[24].mxu0  ;;  %v10428_v50 = vpop.f32.mrb[24].mxu1 }
 0x7c5   : > { %v10925_v34 = vadd.f32 %v22409_v31, %v10115_v11  ;;  %v10927_v21 = vadd.f32 %v22413_v22, %v10428_v50  ;;  %v10117_v17 = vpop.f32.mrb[25].mxu0  ;;  %v10430_v1 = vpop.f32.mrb[25].mxu1 }
 0x7c6   : > { %v10926_v44 = vadd.f32 %v22417_v30, %v10117_v17  ;;  %v10928_v16 = vadd.f32 %v22421_v41, %v10430_v1  ;;  %v10119_v54 = vpop.f32.mrb[26].mxu0  ;;  %v10432_v38 = vpop.f32.mrb[26].mxu1 }
 0x7c7   : > { %v11149_v12 = vmax.f32 %v10925_v34, 0.0  ;;  %v11151_v11 = vmax.f32 %v10927_v21, 0.0  ;;  %v10929_v50 = vadd.f32 %v22409_v31, %v10119_v54  ;;  %v10931_v37 = vadd.f32 %v22413_v22, %v10432_v38  ;;  %v10121_v9 = vpop.f32.mrb[27].mxu0  ;;  %v10434_v7 = vpop.f32.mrb[27].mxu1 }
 0x7c8   : > { %v11150_v2 = vmax.f32 %v10926_v44, 0.0  ;;  %v11152_v25 = vmax.f32 %v10928_v16, 0.0  ;;  %v10930_v10 = vadd.f32 %v22417_v30, %v10121_v9  ;;  %v10932_v49 = vadd.f32 %v22421_v41, %v10434_v7 }
 0x7c9   : > { %v22831_v17 = vmax.f32 %v11133_v29, %v11149_v12  ;;  %v11311_v1 = vmax.f32 %v11135_v53, %v11151_v11  ;;  %v11153_v42 = vmax.f32 %v10929_v50, 0.0  ;;  %v11155_v4 = vmax.f32 %v10931_v37, 0.0 }
 0x7ca   : > { %v22833_v3 = vmax.f32 %v11134_v5, %v11150_v2  ;;  %v11312_v34 = vmax.f32 %v11136_v18, %v11152_v25  ;;  %v11154_v21 = vmax.f32 %v10930_v10, 0.0  ;;  %v11156_v54 = vmax.f32 %v10932_v49, 0.0 }
 0x7cb   : > { %v11144_v38 = vmax.f32 %v22808_v43, 0.0  ;;  %v22837_v44 = vmax.f32 %v11137_v35, %v11153_v42  ;;  %v11315_v16 = vmax.f32 %v11139_v45, %v11155_v4  ;;  %v11147_v9 = vmax.f32 %v22815_v46, 0.0 }
 0x7cc   : > { %v15847_v7 = vpack.i.bf16 %v11311_v1, %v22833_v3  ;;  %v22841_v29 = vmax.f32 %v11138_v40, %v11154_v21  ;;  %v11316_v53 = vmax.f32 %v11140_v60, %v11156_v54  ;;  %v10125_v12 = vpop.f32.mrb[28].mxu0  ;;  %v10438_v5 = vpop.f32.mrb[28].mxu1  ;;  %v11146_v25 = vmax.f32 %v22820_v59, 0.0 }
 0x7cd   : > { %v11148_v49 = vmax.f32 %v22823_v33, 0.0  ;;  %v10933_v18 = vadd.f32 %v22409_v31, %v10125_v12  ;;  %v10935_v37 = vadd.f32 %v22413_v22, %v10438_v5  ;;  %v10127_v42 = vpop.f32.mrb[29].mxu0  ;;  %v10440_v35 = vpop.f32.mrb[29].mxu1  ;;  %v24412_v54 = vmax.f32 %v22791_v20, 0.0 }
 0x7ce   : > { %v15852_v4 = vpack.i.bf16 %v11315_v16, %v22841_v29  ;;  %v15872_v45 = vpack.i.bf16 %v11316_v53, %v11312_v34  ;;  %v10934_v43 = vadd.f32 %v22417_v30, %v10127_v42  ;;  %v10936_v40 = vadd.f32 %v22421_v41, %v10440_v35  ;;  %v10442_v60 = vpop.f32.mrb[30].mxu1  ;;  %15848 = vrot.lane.b32.xlu1 %v15847_v7, %s16763_s11  ;;  %v10129_v19 = vpop.f32.mrb[30].mxu0 }
 0x7cf   : > { %v11157_v46 = vmax.f32 %v10933_v18, 0.0  ;;  %v11159_v59 = vmax.f32 %v10935_v37, 0.0  ;;  %v10939_v33 = vadd.f32 %v22413_v22, %v10442_v60  ;;  %v10937_v11 = vadd.f32 %v22409_v31, %v10129_v19  ;;  %v10131_v50 = vpop.f32.mrb[31].mxu0  ;;  %v10444_v2 = vpop.f32.mrb[31].mxu1 }
 0x7d0   : > { %v11158_v10 = vmax.f32 %v10934_v43, 0.0  ;;  %v11160_v1 = vmax.f32 %v10936_v40, 0.0  ;;  %v10938_v34 = vadd.f32 %v22417_v30, %v10131_v50  ;;  %v10940_v21 = vadd.f32 %v22421_v41, %v10444_v2  ;;  %15853 = vrot.lane.b32.xlu0 %v15852_v4, %s16763_s11 }
 0x7d1   : > { %v22858_v16 = vmax.f32 %v24412_v54, %v11157_v46  ;;  %v24414_v7 = vmax.f32 %v22788_v8, 0.0  ;;  %v11163_v12 = vmax.f32 %v10939_v33, 0.0  ;;  %v11161_v5 = vmax.f32 %v10937_v11, 0.0 }
 0x7d2   : > { %v24415_v18 = vmax.f32 %v22794_v23, 0.0  ;;  %v11320_v42 = vmax.f32 %v11144_v38, %v11160_v1  ;;  %v11162_v35 = vmax.f32 %v10938_v34, 0.0  ;;  %v11164_v43 = vmax.f32 %v10940_v21, 0.0 }
 0x7d3   : > { %24413 = vst [vmem:[#allocation38_spill] sm:$0xff] %v22858_v16  ;;  %v11319_v53 = vmax.f32 %v24414_v7, %v11159_v59  ;;  %v24417_v4 = vpack.i.bf16 %v22471_v26, %v22467_v56  ;;  %v11323_v20 = vmax.f32 %v11147_v9, %v11163_v12  ;;  %v22870_v40 = vmax.f32 %v11145_v47, %v11161_v5  ;;  %v16558_v9 = vld [vmem:[%s23807_s5 + $0x58] sm:$0xff]  }
 0x7d4   : > { %v22864_v37 = vmax.f32 %v24415_v18, %v11158_v10  ;;  %v22872_v60 = vmax.f32 %v11146_v25, %v11162_v35  ;;  %v11324_v8 = vmax.f32 %v11148_v49, %v11164_v43  ;;  %v10448_v19 = vpop.f32.mrb[32].mxu1  ;;  %v24420_v23 = vpack.i.bf16 %v22750_v57, %v22740_v61  ;;  %v10135_v38 = vpop.f32.mrb[32].mxu0  ;;  %v16559_v25 = vld [vmem:[%s23807_s5 + $0x18] sm:$0xff]   ;;  %14261 = vmatprep.subr.bf16.mxu0 %v16558_v9 }
 0x7d5   : > { %15863 = vrot.lane.b32.xlu1 %v24417_v4, %s16763_s11  ;;  %24418 = vst [vmem:[#allocation21_spill] sm:$0xff] %v22870_v40  ;;  %v10137_v46 = vpop.f32.mrb[33].mxu0  ;;  %v10450_v59 = vpop.f32.mrb[33].mxu1  ;;  %v15877_v61 = vpack.i.bf16 %v22482_v15, %v22469_v14  ;;  %v24421_v57 = vpack.i.bf16 %v22484_v39, %v22477_v13  ;;  %14262 = vmatpush3.bf16.msra.mxu0 %v16559_v25  ;;  %v16560_v43 = vld [vmem:[%s23807_s5 + $0xd8] sm:$0xff]  }
 0x7d6   : > { %24416 = vst [vmem:[#allocation42_spill] sm:$0xff] %v22864_v37  ;;  %24419 = vst [vmem:[#allocation24_spill] sm:$0xff] %v22872_v60  ;;  %15858 = vrot.lane.b32.xlu0 %v24420_v23, %s16763_s11  ;;  %v15892_v33 = vpack.i.bf16 %v11324_v8, %v11320_v42  ;;  %v10452_v11 = vpop.f32.mrb[34].mxu1  ;;  %v10139_v56 = vpop.f32.mrb[34].mxu0  ;;  %v15887_v49 = vpack.i.bf16 %v11323_v20, %v22872_v60  ;;  %v10943_v34 = vadd.f32 %v22413_v22, %v10448_v19  ;;  %v16561_v4 = vld [vmem:[%s23807_s5 + $0x98] sm:$0xff]  }
 0x7d7   : > { %v10141_v26 = vpop.f32.mrb[35].mxu0  ;;  %v10454_v47 = vpop.f32.mrb[35].mxu1  ;;  %v10941_v21 = vadd.f32 %v22409_v31, %v10135_v38  ;;  %v22898_v13 = vadd.f32 %v22417_v30, %v10137_v46  ;;  %v22901_v39 = vadd.f32 %v22421_v41, %v10450_v59  ;;  %v22908_v12 = vadd.f32 %v22409_v31, %v10139_v56  ;;  %14289 = vmatprep.subr.bf16.mxu1 %v16560_v43 }
 0x7d8   : > { %v22911_v5 = vadd.f32 %v22417_v30, %v10141_v26  ;;  %v22914_v18 = vadd.f32 %v22421_v41, %v10454_v47  ;;  %v11167_v8 = vmax.f32 %v10943_v34, 0.0  ;;  %14290 = vmatpush3.bf16.msra.mxu1 %v16561_v4 }
 0x7d9   : > { %15873 = vrot.lane.b32.xlu1 %v15872_v45, %s16763_s11  ;;  %v15882_v45 = vpack.i.bf16 %v11319_v53, %v22864_v37  ;;  %v22905_v53 = vadd.f32 %v22413_v22, %v10452_v11  ;;  %v11165_v19 = vmax.f32 %v10941_v21, 0.0  ;;  %v11166_v23 = vmax.f32 %v22898_v13, 0.0 }
 0x7da   : > { %15868 = vrot.lane.b32.xlu0 %v24421_v57, %s16763_s11  ;;  %v11168_v38 = vmax.f32 %v22901_v39, 0.0  ;;  %v11169_v59 = vmax.f32 %v22908_v12, 0.0  ;;  %v11170_v11 = vmax.f32 %v22911_v5, 0.0  ;;  %v11172_v56 = vmax.f32 %v22914_v18, 0.0 }
 0x7db   : > { %v11171_v46 = vmax.f32 %v22905_v53, 0.0 }
 0x7dc   : > { %v10458_v50 = vpop.f32.mrb[36].mxu1  ;;  %v10145_v2 = vpop.f32.mrb[36].mxu0 }
 0x7dd   : > { %15878 = vrot.lane.b32.xlu1 %v15877_v61, %s16763_s11  ;;  %v10147_v10 = vpop.f32.mrb[37].mxu0  ;;  %v10460_v1 = vpop.f32.mrb[37].mxu1  ;;  %v22923_v20 = vadd.f32 %v22413_v22, %v10458_v50 }
 0x7de   : > { %15888 = vrot.lane.b32.xlu0 %v15887_v49, %s16763_s11  ;;  %v10462_v54 = vpop.f32.mrb[38].mxu1  ;;  %v10149_v7 = vpop.f32.mrb[38].mxu0  ;;  %v22937_v47 = vadd.f32 %v22417_v30, %v10147_v10  ;;  %v22940_v9 = vadd.f32 %v22421_v41, %v10460_v1 }
 0x7df   : > { %v10151_v42 = vpop.f32.mrb[39].mxu0  ;;  %v10464_v35 = vpop.f32.mrb[39].mxu1  ;;  %v22943_v57 = vadd.f32 %v22413_v22, %v10462_v54  ;;  %v22946_v49 = vadd.f32 %v22409_v31, %v10149_v7 }
 0x7e0   : > { %v22951_v10 = vadd.f32 %v22417_v30, %v10151_v42  ;;  %v22954_v1 = vadd.f32 %v22421_v41, %v10464_v35  ;;  %v16562_v42 = vld [vmem:[%s23807_s5 + $0x60] sm:$0xff]  }
 0x7e1   : > { %15883 = vrot.lane.b32.xlu1 %v15882_v45, %s16763_s11  ;;  %v16563_v35 = vld [vmem:[%s23807_s5 + $0x20] sm:$0xff]   ;;  %14263 = vmatprep.subr.bf16.mxu0 %v16562_v42 }
 0x7e2   : > { %15893 = vrot.lane.b32.xlu0 %v15892_v33, %s16763_s11  ;;  %v22934_v33 = vadd.f32 %v22409_v31, %v10145_v2  ;;  %14264 = vmatpush3.bf16.msra.mxu0 %v16563_v35 }
 0x7e4   : > { %v10155_v25 = vpop.f32.mrb[40].mxu0  ;;  %v10468_v61 = vpop.f32.mrb[40].mxu1 }
 0x7e5   : > { %v10957_v45 = vadd.f32 %v22409_v31, %v10155_v25  ;;  %v10959_v50 = vadd.f32 %v22413_v22, %v10468_v61  ;;  %v10157_v2 = vpop.f32.mrb[41].mxu0  ;;  %v10470_v34 = vpop.f32.mrb[41].mxu1 }
 0x7e6   : > { %v10958_v21 = vadd.f32 %v22417_v30, %v10157_v2  ;;  %v10960_v13 = vadd.f32 %v22421_v41, %v10470_v34  ;;  %v10159_v39 = vpop.f32.mrb[42].mxu0  ;;  %v10472_v54 = vpop.f32.mrb[42].mxu1  ;;  %v16565_v2 = vld [vmem:[%s23807_s5 + $0xe0] sm:$0xff]  }
 0x7e7   : > { %v11181_v7 = vmax.f32 %v10957_v45, 0.0  ;;  %v11183_v53 = vmax.f32 %v10959_v50, 0.0  ;;  %v10961_v12 = vadd.f32 %v22409_v31, %v10159_v39  ;;  %v10963_v5 = vadd.f32 %v22413_v22, %v10472_v54  ;;  %v10161_v18 = vpop.f32.mrb[43].mxu0  ;;  %v10474_v43 = vpop.f32.mrb[43].mxu1  ;;  %v16564_v50 = vld [vmem:[%s23807_s5 + $0x68] sm:$0xff]   ;;  %14291 = vmatprep.subr.bf16.mxu1 %v16565_v2 }
 0x7e8   : > { %v11182_v4 = vmax.f32 %v10958_v21, 0.0  ;;  %v11184_v25 = vmax.f32 %v10960_v13, 0.0  ;;  %v10962_v61 = vadd.f32 %v22417_v30, %v10161_v18  ;;  %v10964_v45 = vadd.f32 %v22421_v41, %v10474_v43  ;;  %v16567_v21 = vld [vmem:[%s23807_s5 + $0xa0] sm:$0xff]   ;;  %14265 = vmatprep.subr.bf16.mxu0 %v16564_v50 }
 0x7e9   : > { %v22974_v34 = vmax.f32 %v11165_v19, %v11181_v7  ;;  %v22976_v39 = vmax.f32 %v11167_v8, %v11183_v53  ;;  %v11185_v54 = vmax.f32 %v10961_v12, 0.0  ;;  %v11187_v26 = vmax.f32 %v10963_v5, 0.0  ;;  %v16566_v8 = vld [vmem:[%s23807_s5 + $0x28] sm:$0xff]   ;;  %14292 = vmatpush3.bf16.msra.mxu1 %v16567_v21 }
 0x7ea   : > { %v22981_v13 = vmax.f32 %v11166_v23, %v11182_v4  ;;  %v22983_v18 = vmax.f32 %v11168_v38, %v11184_v25  ;;  %v11186_v43 = vmax.f32 %v10962_v61, 0.0  ;;  %v11188_v14 = vmax.f32 %v10964_v45, 0.0  ;;  %v16568_v23 = vld [vmem:[%s23807_s5 + $0x70] sm:$0xff]   ;;  %14266 = vmatpush3.bf16.msra.mxu0 %v16566_v8 }
 0x7eb   : > { %24422 = vst [vmem:[#allocation15_spill] sm:$0xff] %v22974_v34  ;;  %24423 = vst [vmem:[#allocation10_spill] sm:$0xff] %v22976_v39  ;;  %v11173_v19 = vmax.f32 %v22934_v33, 0.0  ;;  %v11174_v7 = vmax.f32 %v22937_v47, 0.0  ;;  %v22990_v53 = vmax.f32 %v11169_v59, %v11185_v54  ;;  %v22992_v12 = vmax.f32 %v11171_v46, %v11187_v26  ;;  %14267 = vmatprep.subr.bf16.mxu0 %v16568_v23 }
 0x7ec   : > { %24424 = vst [vmem:[#allocation20_spill] sm:$0xff] %v22983_v18  ;;  %v11176_v38 = vmax.f32 %v22940_v9, 0.0  ;;  %v11179_v5 = vmax.f32 %v22943_v57, 0.0  ;;  %v22999_v42 = vmax.f32 %v11170_v11, %v11186_v43  ;;  %v23001_v35 = vmax.f32 %v11172_v56, %v11188_v14  ;;  %v10165_v33 = vpop.f32.mrb[44].mxu0  ;;  %v10478_v47 = vpop.f32.mrb[44].mxu1  ;;  %v16570_v43 = vld [vmem:[%s23807_s5 + $0x78] sm:$0xff]  }
 0x7ed   : > { %24425 = vst [vmem:[#allocation9_spill] sm:$0xff] %v22990_v53  ;;  %24426 = vst [vmem:[#allocation25_spill] sm:$0xff] %v22992_v12  ;;  %v11177_v59 = vmax.f32 %v22946_v49, 0.0  ;;  %v11178_v46 = vmax.f32 %v22951_v10, 0.0  ;;  %v10965_v26 = vadd.f32 %v22409_v31, %v10165_v33  ;;  %v10967_v4 = vadd.f32 %v22413_v22, %v10478_v47  ;;  %v10167_v25 = vpop.f32.mrb[45].mxu0  ;;  %v10480_v61 = vpop.f32.mrb[45].mxu1 }
 0x7ee   : > { %24427 = vst [vmem:[#allocation36_spill] sm:$0xff] %v22999_v42  ;;  %24428 = vst [vmem:[#allocation34_spill] sm:$0xff] %v23001_v35  ;;  %v11180_v9 = vmax.f32 %v22954_v1, 0.0  ;;  %v10966_v14 = vadd.f32 %v22417_v30, %v10167_v25  ;;  %v10968_v56 = vadd.f32 %v22421_v41, %v10480_v61  ;;  %v10169_v57 = vpop.f32.mrb[46].mxu0  ;;  %v10482_v45 = vpop.f32.mrb[46].mxu1  ;;  %v16569_v49 = vld [vmem:[%s23807_s5 + $0x30] sm:$0xff]  }
 0x7ef   : > { %v11189_v10 = vmax.f32 %v10965_v26, 0.0  ;;  %v11191_v50 = vmax.f32 %v10967_v4, 0.0  ;;  %v10969_v2 = vadd.f32 %v22409_v31, %v10169_v57  ;;  %v10971_v1 = vadd.f32 %v22413_v22, %v10482_v45  ;;  %v10171_v54 = vpop.f32.mrb[47].mxu0  ;;  %v10484_v21 = vpop.f32.mrb[47].mxu1  ;;  %14268 = vmatpush3.bf16.msra.mxu0 %v16569_v49 }
 0x7f0   : > { %v11190_v33 = vmax.f32 %v10966_v14, 0.0  ;;  %v11192_v47 = vmax.f32 %v10968_v56, 0.0  ;;  %v10970_v8 = vadd.f32 %v22417_v30, %v10171_v54  ;;  %v10972_v25 = vadd.f32 %v22421_v41, %v10484_v21  ;;  %v16571_v14 = vld [vmem:[%s23807_s5 + $0x38] sm:$0xff]   ;;  %14269 = vmatprep.subr.bf16.mxu0 %v16570_v43 }
 0x7f1   : > { %v23022_v61 = vmax.f32 %v11173_v19, %v11189_v10  ;;  %v24430_v26 = vmax.f32 %v22923_v20, 0.0  ;;  %v11193_v57 = vmax.f32 %v10969_v2, 0.0  ;;  %v11195_v45 = vmax.f32 %v10971_v1, 0.0 }
 0x7f2   : > { %v23028_v11 = vmax.f32 %v11174_v7, %v11190_v33  ;;  %v23030_v23 = vmax.f32 %v11176_v38, %v11192_v47  ;;  %v11194_v53 = vmax.f32 %v10970_v8, 0.0  ;;  %v11196_v34 = vmax.f32 %v10972_v25, 0.0 }
 0x7f3   : > { %24429 = vst [vmem:[#allocation18_spill] sm:$0xff] %v23022_v61  ;;  %v23026_v4 = vmax.f32 %v24430_v26, %v11191_v50  ;;  %v23035_v56 = vmax.f32 %v11177_v59, %v11193_v57  ;;  %v23037_v19 = vmax.f32 %v11179_v5, %v11195_v45  ;;  %14270 = vmatpush3.bf16.msra.mxu0 %v16571_v14 }
 0x7f4   : > { %24432 = vst [vmem:[#allocation45_spill] sm:$0xff] %v23028_v11  ;;  %24433 = vst [vmem:[#allocation37_spill] sm:$0xff] %v23030_v23  ;;  %v23039_v20 = vmax.f32 %v11178_v46, %v11194_v53  ;;  %v23041_v10 = vmax.f32 %v11180_v9, %v11196_v34  ;;  %v10175_v7 = vpop.f32.mrb[48].mxu0  ;;  %v10488_v50 = vpop.f32.mrb[48].mxu1 }
 0x7f5   : > { %24431 = vst [vmem:[#allocation23_spill] sm:$0xff] %v23026_v4  ;;  %24434 = vst [vmem:[#allocation50_spill] sm:$0xff] %v23035_v56  ;;  %v10177_v38 = vpop.f32.mrb[49].mxu0  ;;  %v10490_v2 = vpop.f32.mrb[49].mxu1  ;;  %v23046_v5 = vadd.f32 %v22409_v31, %v10175_v7  ;;  %v23049_v53 = vadd.f32 %v22413_v22, %v10488_v50 }
 0x7f6   : > { %24435 = vst [vmem:[#allocation43_spill] sm:$0xff] %v23037_v19  ;;  %24436 = vst [vmem:[#allocation47_spill] sm:$0xff] %v23039_v20  ;;  %v10179_v1 = vpop.f32.mrb[50].mxu0  ;;  %v10492_v54 = vpop.f32.mrb[50].mxu1  ;;  %v23052_v34 = vadd.f32 %v22417_v30, %v10177_v38  ;;  %v23055_v46 = vadd.f32 %v22421_v41, %v10490_v2 }
 0x7f7   : > { %24437 = vst [vmem:[#allocation29_spill] sm:$0xff] %v23041_v10  ;;  %v10181_v21 = vpop.f32.mrb[51].mxu0  ;;  %v10494_v59 = vpop.f32.mrb[51].mxu1  ;;  %v23058_v9 = vadd.f32 %v22409_v31, %v10179_v1  ;;  %v23061_v47 = vadd.f32 %v22413_v22, %v10492_v54  ;;  %v11197_v38 = vmax.f32 %v23046_v5, 0.0  ;;  %v11199_v2 = vmax.f32 %v23049_v53, 0.0 }
 0x7f8   : > { %v23064_v8 = vadd.f32 %v22417_v30, %v10181_v21  ;;  %v23067_v57 = vadd.f32 %v22421_v41, %v10494_v59  ;;  %v11198_v1 = vmax.f32 %v23052_v34, 0.0  ;;  %v11200_v49 = vmax.f32 %v23055_v46, 0.0 }
 0x7f9   : > { %v11203_v53 = vmax.f32 %v23061_v47, 0.0 }
 0x7fc   : > { %v10185_v43 = vpop.f32.mrb[52].mxu0  ;;  %v10498_v33 = vpop.f32.mrb[52].mxu1 }
 0x7fd   : > { %v10187_v25 = vpop.f32.mrb[53].mxu0  ;;  %v10500_v26 = vpop.f32.mrb[53].mxu1  ;;  %v23070_v45 = vadd.f32 %v22409_v31, %v10185_v43  ;;  %v23073_v14 = vadd.f32 %v22413_v22, %v10498_v33 }
 0x7fe   : > { %v10189_v7 = vpop.f32.mrb[54].mxu0  ;;  %v10502_v50 = vpop.f32.mrb[54].mxu1  ;;  %v23079_v54 = vadd.f32 %v22417_v30, %v10187_v25  ;;  %v23084_v33 = vadd.f32 %v22421_v41, %v10500_v26 }
 0x7ff   : > { %v10191_v21 = vpop.f32.mrb[55].mxu0  ;;  %v10504_v59 = vpop.f32.mrb[55].mxu1  ;;  %v23087_v56 = vadd.f32 %v22409_v31, %v10189_v7  ;;  %v23095_v43 = vadd.f32 %v22413_v22, %v10502_v50 }
 0x800   : > { %v15794_v5 = vpop.permute.xlu0 %15793  ;;  %v23102_v15 = vadd.f32 %v22417_v30, %v10191_v21  ;;  %v23105_v23 = vadd.f32 %v22421_v41, %v10504_v59 }
 0x801   : > { %v15796_v61 = vunpack.i.h.bf16 %v15794_v5  ;;  %v15795_v25 = vunpack.i.l.bf16 %v15794_v5 }
 0x802   : > { %v15799_v26 = vpop.permute.xlu1 %15798 }
 0x803   : > { %v11633_v10 = vsel %vm1631_vm0, %v15795_v25, %v15796_v61  ;;  %v15801_v18 = vunpack.i.h.bf16 %v15799_v26  ;;  %v15800_v47 = vunpack.i.l.bf16 %v15799_v26 }
 0x804   : > { %v10508_v46 = vpop.f32.mrb[56].mxu1  ;;  %v15804_v50 = vpop.permute.xlu0 %15803  ;;  %v11745_v34 = vmax.f32 %v22587_v48, %v11633_v10 }
 0x805   : > { %v11635_v35 = vsel %vm1631_vm0, %v15800_v47, %v15801_v18  ;;  %v10991_v7 = vadd.f32 %v22413_v22, %v10508_v46  ;;  %v15806_v60 = vunpack.i.h.bf16 %v15804_v50  ;;  %v15805_v25 = vunpack.i.l.bf16 %v15804_v50  ;;  %v10195_v37 = vpop.f32.mrb[56].mxu0  ;;  %v10510_v26 = vpop.f32.mrb[57].mxu1 }
 0x806   : > { %v11747_v5 = vmax.f32 %v22596_v62, %v11635_v35  ;;  %v10989_v21 = vadd.f32 %v22409_v31, %v10195_v37  ;;  %v10197_v4 = vpop.f32.mrb[57].mxu0  ;;  %v10992_v59 = vadd.f32 %v22421_v41, %v10510_v26  ;;  %v10512_v11 = vpop.f32.mrb[58].mxu1 }
 0x807   : > { %v11215_v19 = vmax.f32 %v10991_v7, 0.0  ;;  %v11634_v20 = vsel %vm1631_vm0, %v15796_v61, %v15805_v25  ;;  %v11636_v47 = vsel %vm1631_vm0, %v15801_v18, %v15806_v60  ;;  %v10990_v46 = vadd.f32 %v22417_v30, %v10197_v4  ;;  %v10199_v50 = vpop.f32.mrb[58].mxu0  ;;  %v10514_v12 = vpop.f32.mrb[59].mxu1 }
 0x808   : > { %v11746_v42 = vmax.f32 %v22592_v52, %v11634_v20  ;;  %v11748_v48 = vmax.f32 %v22600_v6, %v11636_v47  ;;  %v11213_v62 = vmax.f32 %v10989_v21, 0.0  ;;  %v11216_v35 = vmax.f32 %v10992_v59, 0.0  ;;  %v10201_v37 = vpop.f32.mrb[59].mxu0 }
 0x809   : > { %v11343_v10 = vmax.f32 %v11199_v2, %v11215_v19  ;;  %v11214_v16 = vmax.f32 %v10990_v46, 0.0  ;;  %v10993_v26 = vadd.f32 %v22409_v31, %v10199_v50  ;;  %v10995_v7 = vadd.f32 %v22413_v22, %v10512_v11 }
 0x80a   : > { %v23120_v61 = vmax.f32 %v11197_v38, %v11213_v62  ;;  %v23122_v60 = vmax.f32 %v11200_v49, %v11216_v35  ;;  %v10994_v18 = vadd.f32 %v22417_v30, %v10201_v37  ;;  %v10996_v4 = vadd.f32 %v22421_v41, %v10514_v12 }
 0x80b   : > { %v23126_v52 = vmax.f32 %v11198_v1, %v11214_v16  ;;  %v11217_v6 = vmax.f32 %v10993_v26, 0.0  ;;  %v11219_v20 = vmax.f32 %v10995_v7, 0.0  ;;  %v11797_v25 = vpack.c.bf16 %v11747_v5, %v11745_v34 }
 0x80c   : > { %24438 = vst [vmem:[#allocation49_spill] sm:$0xff] %v23120_v61  ;;  %v11211_v19 = vmax.f32 %v23095_v43, 0.0  ;;  %v11218_v2 = vmax.f32 %v10994_v18, 0.0  ;;  %v11220_v21 = vmax.f32 %v10996_v4, 0.0  ;;  %v10205_v59 = vpop.f32.mrb[60].mxu0  ;;  %v10518_v47 = vpop.f32.mrb[60].mxu1  ;;  %v11798_v11 = vpack.c.bf16 %v11748_v48, %v11746_v42 }
 0x80d   : > { %24439 = vst [vmem:[#allocation17_spill] sm:$0xff] %v23126_v52  ;;  %v15897_v38 = vpack.i.bf16 %v11343_v10, %v23126_v52  ;;  %v24440_v49 = vmax.f32 %v23058_v9, 0.0  ;;  %v11347_v50 = vmax.f32 %v11203_v53, %v11219_v20  ;;  %11825 = vrot.lane.b32.xlu0 %v11797_v25, %s16764_s24  ;;  %v10997_v16 = vadd.f32 %v22409_v31, %v10205_v59  ;;  %v10207_v12 = vpop.f32.mrb[61].mxu0  ;;  %v10520_v1 = vpop.f32.mrb[61].mxu1  ;;  %v16572_v20 = vld [vmem:[%s23807_s5 + $0xe8] sm:$0xff]  }
 0x80e   : > { %v24442_v43 = vmax.f32 %v23064_v8, 0.0  ;;  %v24444_v5 = vmax.f32 %v23067_v57, 0.0  ;;  %v10999_v48 = vadd.f32 %v22413_v22, %v10518_v47  ;;  %v10998_v9 = vadd.f32 %v22417_v30, %v10207_v12  ;;  %v10522_v62 = vpop.f32.mrb[62].mxu1  ;;  %v10209_v35 = vpop.f32.mrb[62].mxu0  ;;  %v16573_v25 = vld [vmem:[%s23807_s5 + $0xa8] sm:$0xff]   ;;  %14293 = vmatprep.subr.bf16.mxu1 %v16572_v20 }
 0x80f   : > { %v23132_v46 = vmax.f32 %v24440_v49, %v11217_v6  ;;  %v11221_v53 = vmax.f32 %v10997_v16, 0.0  ;;  %v11000_v37 = vadd.f32 %v22421_v41, %v10520_v1  ;;  %v11003_v10 = vadd.f32 %v22413_v22, %v10522_v62  ;;  %15898 = vrot.lane.b32.xlu1 %v15897_v38, %s16763_s11  ;;  %v10211_v26 = vpop.f32.mrb[63].mxu0  ;;  %v10524_v7 = vpop.f32.mrb[63].mxu1  ;;  %14294 = vmatpush3.bf16.msra.mxu1 %v16573_v25 }
 0x810   : > { %v23138_v34 = vmax.f32 %v24442_v43, %v11218_v2  ;;  %v11348_v42 = vmax.f32 %v24444_v5, %v11220_v21  ;;  %v11001_v8 = vadd.f32 %v22409_v31, %v10209_v35  ;;  %v11223_v4 = vmax.f32 %v10999_v48, 0.0  ;;  %v16574_v2 = vld [vmem:[%s23807_s5 + $0xf0] sm:$0xff]  }
 0x811   : > { %24441 = vst [vmem:[#allocation19_spill] sm:$0xff] %v23132_v46  ;;  %v11222_v6 = vmax.f32 %v10998_v9, 0.0  ;;  %v24445_v21 = vmax.f32 %v23070_v45, 0.0  ;;  %v11227_v47 = vmax.f32 %v11003_v10, 0.0  ;;  %11827 = vrot.lane.b32.xlu0 %v11798_v11, %s16764_s24  ;;  %v24447_v49 = vmax.f32 %v23073_v14, 0.0  ;;  %14295 = vmatprep.subr.bf16.mxu1 %v16574_v2 }
 0x812   : > { %24443 = vst [vmem:[#allocation39_spill] sm:$0xff] %v23138_v34  ;;  %v15902_v57 = vpack.i.bf16 %v23138_v34, %v23122_v60  ;;  %v15907_v18 = vpack.i.bf16 %v11348_v42, %v11347_v50  ;;  %v11224_v60 = vmax.f32 %v11000_v37, 0.0  ;;  %v11225_v38 = vmax.f32 %v11001_v8, 0.0 }
 0x813   : > { %v23161_v59 = vmax.f32 %v24445_v21, %v11221_v53  ;;  %v11351_v50 = vmax.f32 %v24447_v49, %v11223_v4  ;;  %v24448_v16 = vmax.f32 %v23079_v54, 0.0  ;;  %v11002_v1 = vadd.f32 %v22417_v30, %v10211_v26  ;;  %v16575_v54 = vld [vmem:[%s23807_s5 + $0xb0] sm:$0xff]   ;;  %v16577_v4 = vld [vmem:[%s23807_s5 + $0xb8] sm:$0xff]  }
 0x814   : > { %v11004_v43 = vadd.f32 %v22421_v41, %v10524_v7  ;;  %v11210_v45 = vmax.f32 %v23102_v15, 0.0  ;;  %v24450_v5 = vmax.f32 %v23084_v33, 0.0  ;;  %v23175_v48 = vmax.f32 %v11211_v19, %v11227_v47  ;;  %15908 = vrot.lane.b32.xlu1 %v15907_v18, %s16763_s11  ;;  %v10215_v35 = vpop.f32.mrb[64].mxu0  ;;  %v10528_v33 = vpop.f32.mrb[64].mxu1  ;;  %14296 = vmatpush3.bf16.msra.mxu1 %v16575_v54 }
 0x815   : > { %24446 = vst [vmem:[#allocation40_spill] sm:$0xff] %v23161_v59  ;;  %v23168_v12 = vmax.f32 %v24448_v16, %v11222_v6  ;;  %v24451_v11 = vmax.f32 %v23087_v56, 0.0  ;;  %v11212_v9 = vmax.f32 %v23105_v23, 0.0  ;;  %v11226_v62 = vmax.f32 %v11002_v1, 0.0  ;;  %v16576_v56 = vld [vmem:[%s23807_s5 + $0xf8] sm:$0xff]   ;;  %15903 = vrot.lane.b32.xlu0 %v15902_v57, %s16763_s11  ;;  %v10217_v53 = vpop.f32.mrb[65].mxu0 }
 0x816   : > { %v11352_v42 = vmax.f32 %v24450_v5, %v11224_v60  ;;  %v11228_v15 = vmax.f32 %v11004_v43, 0.0  ;;  %v10530_v37 = vpop.f32.mrb[65].mxu1  ;;  %v10219_v26 = vpop.f32.mrb[66].mxu0  ;;  %14297 = vmatprep.subr.bf16.mxu1 %v16576_v56  ;;  %v11005_v60 = vadd.f32 %v22409_v31, %v10215_v35  ;;  %v11007_v47 = vadd.f32 %v22413_v22, %v10528_v33 }
 0x817   : > { %24449 = vst [vmem:[#allocation26_spill] sm:$0xff] %v23168_v12  ;;  %v23179_v14 = vmax.f32 %v24451_v11, %v11225_v38  ;;  %v15912_v19 = vpack.i.bf16 %v11351_v50, %v23168_v12  ;;  %v23191_v10 = vmax.f32 %v11210_v45, %v11226_v62  ;;  %v10532_v23 = vpop.f32.mrb[66].mxu1  ;;  %v10221_v7 = vpop.f32.mrb[67].mxu0  ;;  %v23206_v38 = vadd.f32 %v22417_v30, %v10217_v53 }
 0x818   : > { %v23193_v8 = vmax.f32 %v11212_v9, %v11228_v15  ;;  %v10534_v18 = vpop.f32.mrb[67].mxu1  ;;  %14298 = vmatpush3.bf16.msra.mxu1 %v16577_v4  ;;  %v11008_v49 = vadd.f32 %v22421_v41, %v10530_v37  ;;  %v11011_v1 = vadd.f32 %v22413_v22, %v10532_v23  ;;  %v23213_v43 = vadd.f32 %v22409_v31, %v10219_v26 }
 0x819   : > { %24452 = vst [vmem:[#allocation8_spill] sm:$0xff] %v23179_v14  ;;  %24453 = vst [vmem:[#allocation48_spill] sm:$0xff] %v23191_v10  ;;  %v15917_v6 = vpack.i.bf16 %v23191_v10, %v11352_v42  ;;  %15913 = vrot.lane.b32.xlu0 %v15912_v19, %s16763_s11  ;;  %v23220_v42 = vadd.f32 %v22417_v30, %v10221_v7  ;;  %v23223_v11 = vadd.f32 %v22421_v41, %v10534_v18 }
 0x81a   : > { %v11229_v15 = vmax.f32 %v11005_v60, 0.0  ;;  %v11231_v35 = vmax.f32 %v11007_v47, 0.0  ;;  %v11230_v33 = vmax.f32 %v23206_v38, 0.0  ;;  %v11232_v56 = vmax.f32 %v11008_v49, 0.0 }
 0x81b   : > { %15918 = vrot.lane.b32.xlu1 %v15917_v6, %s16763_s11  ;;  %v11235_v53 = vmax.f32 %v11011_v1, 0.0  ;;  %v11233_v37 = vmax.f32 %v23213_v43, 0.0  ;;  %v11234_v7 = vmax.f32 %v23220_v42, 0.0 }
 0x81c   : > { %v10225_v20 = vpop.f32.mrb[68].mxu0  ;;  %v10538_v25 = vpop.f32.mrb[68].mxu1 }
 0x81d   : > { %v10227_v2 = vpop.f32.mrb[69].mxu0  ;;  %v10540_v21 = vpop.f32.mrb[69].mxu1  ;;  %v23228_v9 = vadd.f32 %v22409_v31, %v10225_v20  ;;  %v23231_v62 = vadd.f32 %v22413_v22, %v10538_v25 }
 0x81e   : > { %v10229_v50 = vpop.f32.mrb[70].mxu0  ;;  %v23209_v16 = vpop.f32.mrb[70].mxu1  ;;  %v23242_v4 = vadd.f32 %v22417_v30, %v10227_v2  ;;  %v23245_v6 = vadd.f32 %v22421_v41, %v10540_v21 }
 0x81f   : > { %v23215_v45 = vpop.f32.mrb[71].mxu0  ;;  %v23217_v5 = vpop.f32.mrb[71].mxu1 }
 0x821   : > { %v23225_v54 = vpop.permute.xlu1 %15808 }
 0x822   : > { %v23234_v19 = vpop.permute.xlu0 %15813  ;;  %v15810_v42 = vunpack.i.l.bf16 %v23225_v54 }
 0x823   : > { %v23981_v23 = vunpack.i.h.bf16 %v23234_v19  ;;  %v15815_v26 = vunpack.i.l.bf16 %v23234_v19 }
 0x824   : > { %v10548_v20 = vpop.f32.mrb[72].mxu1  ;;  %v10235_v1 = vpop.f32.mrb[72].mxu0 }
 0x825   : > { %v11023_v49 = vadd.f32 %v22413_v22, %v10548_v20  ;;  %v10550_v43 = vpop.f32.mrb[73].mxu1  ;;  %v23257_v2 = vsel %vm1631_vm0, %v15815_v26, %v23981_v23  ;;  %v11021_v21 = vadd.f32 %v22409_v31, %v10235_v1  ;;  %v10237_v57 = vpop.f32.mrb[73].mxu0 }
 0x826   : > { %v11024_v60 = vadd.f32 %v22421_v41, %v10550_v43  ;;  %v10552_v18 = vpop.f32.mrb[74].mxu1  ;;  %v11022_v20 = vadd.f32 %v22417_v30, %v10237_v57  ;;  %v10239_v14 = vpop.f32.mrb[74].mxu0 }
 0x827   : > { %v23247_v25 = vpop.permute.xlu1 %15818  ;;  %v11247_v47 = vmax.f32 %v11023_v49, 0.0  ;;  %v11027_v12 = vadd.f32 %v22413_v22, %v10552_v18  ;;  %v11245_v26 = vmax.f32 %v11021_v21, 0.0  ;;  %v10241_v52 = vpop.f32.mrb[75].mxu0  ;;  %v11025_v40 = vadd.f32 %v22409_v31, %v10239_v14 }
 0x828   : > { %v23264_v10 = vpop.permute.xlu0 %15823  ;;  %v15820_v59 = vunpack.i.l.bf16 %v23247_v25  ;;  %v11248_v23 = vmax.f32 %v11024_v60, 0.0  ;;  %v10554_v46 = vpop.f32.mrb[75].mxu1  ;;  %v11246_v49 = vmax.f32 %v11022_v20, 0.0  ;;  %v11026_v21 = vadd.f32 %v22417_v30, %v10241_v52 }
 0x829   : > { %v23268_v43 = vmax.f32 %v11231_v35, %v11247_v47  ;;  %v11251_v61 = vmax.f32 %v11027_v12, 0.0  ;;  %v15825_v38 = vunpack.i.l.bf16 %v23264_v10  ;;  %v23273_v18 = vmax.f32 %v11229_v15, %v11245_v26 }
 0x82a   : > { %v11360_v34 = vmax.f32 %v11232_v56, %v11248_v23  ;;  %v23278_v60 = vadd.f32 %v22409_v31, %v10229_v50  ;;  %v23280_v1 = vmax.f32 %v11230_v33, %v11246_v49  ;;  %v11028_v12 = vadd.f32 %v22421_v41, %v10554_v46 }
 0x82b   : > { %v23271_v57 = vpop.permute.xlu1 %15828  ;;  %24454 = vst [vmem:[#allocation46_spill] sm:$0xff] %v23273_v18  ;;  %v23282_v35 = vmax.f32 %v11235_v53, %v11251_v61  ;;  %v23289_v15 = vadd.f32 %v22413_v22, %v23209_v16  ;;  %v24455_v56 = vunpack.i.h.bf16 %v23225_v54  ;;  %v11249_v52 = vmax.f32 %v11025_v40, 0.0  ;;  %v16578_v61 = vld [vmem:[%s23807_s5 + $0x140] sm:$0xff]  }
 0x82c   : > { %v23285_v47 = vpop.permute.xlu0 %15833  ;;  %v11250_v23 = vmax.f32 %v11026_v21, 0.0  ;;  %v10558_v50 = vpop.f32.mrb[76].mxu1  ;;  %v11755_v46 = vmax.f32 %v22711_v63, %v23257_v2  ;;  %v24456_v33 = vunpack.i.h.bf16 %v23247_v25  ;;  %v24457_v53 = vunpack.i.h.bf16 %v23264_v10  ;;  %14311 = vmatprep.subr.bf16.mxu0 %v16578_v61 }
 0x82d   : > { %v11641_v14 = vsel %vm1631_vm0, %v15810_v42, %v24455_v56  ;;  %v10245_v20 = vpop.f32.mrb[76].mxu0  ;;  %v11252_v42 = vmax.f32 %v11028_v12, 0.0  ;;  %v11238_v21 = vmax.f32 %v23242_v4, 0.0  ;;  %v11240_v56 = vmax.f32 %v23245_v6, 0.0  ;;  %v10560_v63 = vpop.f32.mrb[77].mxu1 }
 0x82e   : > { %v11637_v16 = vsel %vm1631_vm0, %v15820_v59, %v24456_v33  ;;  %v11639_v26 = vsel %vm1631_vm0, %v15825_v38, %v24457_v53  ;;  %v10247_v49 = vpop.f32.mrb[77].mxu0  ;;  %v23309_v18 = vmax.f32 %v11233_v37, %v11249_v52  ;;  %v23311_v39 = vmax.f32 %v11234_v7, %v11250_v23  ;;  %v10562_v53 = vpop.f32.mrb[78].mxu1 }
 0x82f   : > { %v23305_v40 = vpop.permute.xlu1 %15843  ;;  %v10249_v2 = vpop.f32.mrb[78].mxu0  ;;  %v11018_v59 = vadd.f32 %v22417_v30, %v23215_v45  ;;  %v11020_v38 = vadd.f32 %v22421_v41, %v23217_v5  ;;  %v11753_v12 = vmax.f32 %v22705_v58, %v11641_v14  ;;  %v24458_v33 = vmax.f32 %v23223_v11, 0.0 }
 0x830   : > { %v23320_v6 = vpop.permute.xlu0 %15838  ;;  %v11243_v37 = vmax.f32 %v23289_v15, 0.0  ;;  %v11749_v7 = vmax.f32 %v22617_v32, %v11637_v16  ;;  %v11751_v52 = vmax.f32 %v22632_v28, %v11639_v26  ;;  %v15927_v23 = vpack.i.bf16 %v23311_v39, %v11360_v34  ;;  %v10251_v45 = vpop.f32.mrb[79].mxu0 }
 0x831   : > { %v11364_v4 = vmax.f32 %v24458_v33, %v11252_v42  ;;  %v10564_v61 = vpop.f32.mrb[79].mxu1  ;;  %v15922_v5 = vpack.i.bf16 %v23268_v43, %v23280_v1  ;;  %v11801_v11 = vpack.c.bf16 %v11755_v46, %v11753_v12  ;;  %v11031_v14 = vadd.f32 %v22413_v22, %v10558_v50  ;;  %v16582_v50 = vld [vmem:[%s23807_s5 + $0x1c0] sm:$0xff]  }
 0x832   : > { %v15846_v42 = vunpack.i.h.bf16 %v23305_v40  ;;  %v15845_v15 = vunpack.i.l.bf16 %v23305_v40  ;;  %v11029_v32 = vadd.f32 %v22409_v31, %v10245_v20  ;;  %v11030_v28 = vadd.f32 %v22417_v30, %v10247_v49  ;;  %15928 = vrot.lane.b32.xlu0 %v15927_v23, %s16763_s11  ;;  %14339 = vmatprep.subr.bf16.mxu1 %v16582_v50  ;;  %v24479_v40 = vld [vmem:[#allocation36_spill] sm:$0xff] }
 0x833   : > { %v15937_v58 = vpack.i.bf16 %v11364_v4, %v23282_v35  ;;  %11842 = vrot.lane.b32.xlu1 %v11801_v11, %s16765_s10  ;;  %v11255_v34 = vmax.f32 %v11031_v14, 0.0  ;;  %v11032_v43 = vadd.f32 %v22421_v41, %v10560_v63  ;;  %v11035_v35 = vadd.f32 %v22413_v22, %v10562_v53 }
 0x834   : > { %v15841_v46 = vunpack.i.h.bf16 %v23320_v6  ;;  %v11647_v20 = vsel %vm1631_vm0, %v15845_v15, %v15846_v42  ;;  %v11253_v16 = vmax.f32 %v11029_v32, 0.0  ;;  %v11254_v26 = vmax.f32 %v11030_v28, 0.0 }
 0x835   : > { %v15840_v49 = vunpack.i.l.bf16 %v23320_v6  ;;  %v24459_v12 = vmax.f32 %v23231_v62, 0.0  ;;  %v11759_v63 = vmax.f32 %v22746_v55, %v11647_v20  ;;  %v11256_v22 = vmax.f32 %v11032_v43, 0.0 }
 0x836   : > { %v11259_v4 = vmax.f32 %v11035_v35, 0.0  ;;  %v24460_v53 = vmax.f32 %v23228_v9, 0.0  ;;  %v23353_v11 = vmax.f32 %v11238_v21, %v11254_v26  ;;  %v11033_v15 = vadd.f32 %v22409_v31, %v10249_v2 }
 0x837   : > { %v11367_v33 = vmax.f32 %v24459_v12, %v11255_v34  ;;  %v11645_v14 = vsel %vm1631_vm0, %v15840_v49, %v15841_v46  ;;  %v24461_v62 = vpack.i.bf16 %v23193_v8, %v23175_v48  ;;  %v11368_v55 = vmax.f32 %v11240_v56, %v11256_v22  ;;  %15923 = vrot.lane.b32.xlu1 %v15922_v5, %s16763_s11 }
 0x838   : > { %v23351_v23 = vmax.f32 %v24460_v53, %v11253_v16  ;;  %v11371_v32 = vmax.f32 %v11243_v37, %v11259_v4  ;;  %v11757_v28 = vmax.f32 %v22732_v27, %v11645_v14  ;;  %v11034_v9 = vadd.f32 %v22417_v30, %v10251_v45  ;;  %v24466_v4 = vld [vmem:[#allocation13_spill] sm:$0xff] }
 0x839   : > { %15933 = vrot.lane.b32.xlu0 %v24461_v62, %s16763_s11  ;;  %v11241_v21 = vmax.f32 %v23278_v60, 0.0  ;;  %v11257_v34 = vmax.f32 %v11033_v15, 0.0  ;;  %v11036_v43 = vadd.f32 %v22421_v41, %v10564_v61  ;;  %v11799_v35 = vpack.c.bf16 %v11751_v52, %v11749_v7 }
 0x83a   : > { %v11242_v31 = vmax.f32 %v11018_v59, 0.0  ;;  %v11258_v2 = vmax.f32 %v11034_v9, 0.0  ;;  %v11803_v50 = vpack.c.bf16 %v11759_v63, %v11757_v28  ;;  %v11244_v20 = vmax.f32 %v11020_v38, 0.0  ;;  %v24465_v63 = vld [vmem:[#allocation44_spill] sm:$0xff]  ;;  %v24469_v9 = vld [vmem:[#allocation53_spill] sm:$0xff] }
 0x83b   : > { %v23368_v48 = vmax.f32 %v11241_v21, %v11257_v34  ;;  %v11260_v8 = vmax.f32 %v11036_v43, 0.0  ;;  %v15942_v56 = vpack.i.bf16 %v11367_v33, %v23353_v11  ;;  %15938 = vrot.lane.b32.xlu1 %v15937_v58, %s16763_s11  ;;  %v15831_v60 = vunpack.i.h.bf16 %v23271_v57  ;;  %v24470_v21 = vld [vmem:[#allocation56_spill] sm:$0xff] }
 0x83c   : > { %v23371_v27 = vmax.f32 %v11242_v31, %v11258_v2  ;;  %v15830_v41 = vunpack.i.l.bf16 %v23271_v57  ;;  %v15836_v38 = vunpack.i.h.bf16 %v23285_v47  ;;  %v24462_v52 = vunpack.i.h.bf16 %v23264_v10  ;;  %v24473_v31 = vld [vmem:[#allocation28_spill] sm:$0xff] }
 0x83d   : > { %v11372_v30 = vmax.f32 %v11244_v20, %v11260_v8  ;;  %v15835_v61 = vunpack.i.l.bf16 %v23285_v47  ;;  %v24463_v16 = vunpack.i.h.bf16 %v23247_v25  ;;  %v24464_v49 = vpack.i.bf16 %v22509_v0, %v22505_v51 }
 0x83e   : > { %v15947_v37 = vpack.i.bf16 %v23371_v27, %v11368_v55  ;;  %v11640_v45 = vsel %vm1631_vm0, %v24462_v52, %v15831_v60  ;;  %v15967_v47 = vpack.i.bf16 %v22517_v36, %v22507_v24  ;;  %v24467_v14 = vunpack.i.h.bf16 %v23225_v54  ;;  %v24472_v54 = vld [vmem:[#allocation33_spill] sm:$0xff] }
 0x83f   : > { %v15957_v59 = vpack.i.bf16 %v11372_v30, %v11371_v32  ;;  %15943 = vrot.lane.b32.xlu1 %v15942_v56, %s16763_s11  ;;  %v11638_v57 = vsel %vm1631_vm0, %v24463_v16, %v15830_v41  ;;  %v11752_v22 = vmax.f32 %v24465_v63, %v11640_v45  ;;  %v24468_v51 = vunpack.i.h.bf16 %v23234_v19 }
 0x840   : > { %15948 = vrot.lane.b32.xlu0 %v15947_v37, %s16763_s11  ;;  %v15849_v7 = vpop.permute.xlu1 %15848  ;;  %v11750_v53 = vmax.f32 %v24466_v4, %v11638_v57  ;;  %v11642_v15 = vsel %vm1631_vm0, %v24467_v14, %v15835_v61  ;;  %v24471_v34 = vpack.i.bf16 %v24469_v9, %v24470_v21  ;;  %v24480_v21 = vld [vmem:[#allocation25_spill] sm:$0xff] }
 0x841   : > { %v15851_v5 = vunpack.i.h.bf16 %v15849_v7  ;;  %v15850_v58 = vunpack.i.l.bf16 %v15849_v7  ;;  %v11644_v0 = vsel %vm1631_vm0, %v24468_v51, %v15836_v38  ;;  %v11754_v43 = vmax.f32 %v24472_v54, %v11642_v15  ;;  %v24482_v54 = vld [vmem:[#allocation32_spill] sm:$0xff] }
 0x842   : > { %v15854_v26 = vpop.permute.xlu0 %15853  ;;  %v11756_v19 = vmax.f32 %v24473_v31, %v11644_v0  ;;  %v11800_v8 = vpack.c.bf16 %v11752_v22, %v11750_v53 }
 0x843   : > { %15958 = vrot.lane.b32.xlu1 %v15957_v59, %s16763_s11  ;;  %v11649_v10 = vsel %vm1631_vm0, %v15850_v58, %v15851_v5  ;;  %v15856_v12 = vunpack.i.h.bf16 %v15854_v26  ;;  %v15855_v33 = vunpack.i.l.bf16 %v15854_v26 }
 0x844   : > { %15953 = vrot.lane.b32.xlu0 %v24464_v49, %s16763_s11  ;;  %v11761_v55 = vmax.f32 %v22831_v17, %v11649_v10  ;;  %v11802_v37 = vpack.c.bf16 %v11756_v19, %v11754_v43  ;;  %v24474_v10 = vld [vmem:[#allocation7_spill] sm:$0xff] }
 0x845   : > { %v11651_v62 = vsel %vm1631_vm0, %v15855_v33, %v15856_v12  ;;  %v24475_v33 = vld [vmem:[#allocation12_spill] sm:$0xff] }
 0x846   : > { %v11763_v32 = vmax.f32 %v22837_v44, %v11651_v62 }
 0x847   : > { %v23396_v25 = vpop.permute.xlu1 %15863  ;;  %15963 = vrot.lane.b32.xlu1 %v24471_v34, %s16763_s11  ;;  %v24481_v34 = vld [vmem:[#allocation14_spill] sm:$0xff] }
 0x848   : > { %v15859_v28 = vpop.permute.xlu0 %15858  ;;  %15968 = vrot.lane.b32.xlu0 %v15967_v47, %s16763_s11  ;;  %v11805_v20 = vpack.c.bf16 %v11763_v32, %v11761_v55  ;;  %v15865_v59 = vunpack.i.l.bf16 %v23396_v25  ;;  %v24477_v55 = vld [vmem:[#allocation21_spill] sm:$0xff] }
 0x849   : > { %v15861_v45 = vunpack.i.h.bf16 %v15859_v28  ;;  %v15860_v61 = vunpack.i.l.bf16 %v15859_v28  ;;  %v24478_v28 = vld [vmem:[#allocation38_spill] sm:$0xff] }
 0x84b   : > { %v15874_v2 = vpop.permute.xlu1 %15873  ;;  %11829 = vrot.lane.b32.xlu1 %v11799_v35, %s16764_s24  ;;  %v11648_v53 = vsel %vm1631_vm0, %v15846_v42, %v15861_v45  ;;  %v11646_v14 = vsel %vm1631_vm0, %v15841_v46, %v15860_v61  ;;  %v15977_v42 = vpack.i.bf16 %v24480_v21, %v24479_v40  ;;  %v24488_v45 = vld [vmem:[#allocation24_spill] sm:$0xff] }
 0x84c   : > { %v15876_v56 = vunpack.i.h.bf16 %v15874_v2  ;;  %v15875_v30 = vunpack.i.l.bf16 %v15874_v2  ;;  %v23415_v17 = vpop.permute.xlu0 %15868  ;;  %11831 = vrot.lane.b32.xlu0 %v11800_v8, %s16764_s24  ;;  %v11760_v6 = vmax.f32 %v24481_v34, %v11648_v53  ;;  %v11758_v46 = vmax.f32 %v24482_v54, %v11646_v14  ;;  %v24483_v2 = vld [vmem:[#allocation47_spill] sm:$0xff]  ;;  %v16579_v53 = vld [vmem:[%s23807_s5 + $0x100] sm:$0xff]   ;;  %v16587_v54 = vld [vmem:[%s23807_s5 + $0x158] sm:$0xff]  }
 0x84d   : > { %v15870_v38 = vunpack.i.l.bf16 %v23415_v17  ;;  %v16581_v14 = vld [vmem:[%s23807_s5 + $0x108] sm:$0xff]  }
 0x84e   : > { %v11650_v44 = vsel %vm1631_vm0, %v15851_v5, %v15875_v30  ;;  %v11652_v60 = vsel %vm1631_vm0, %v15856_v12, %v15876_v56  ;;  %v11804_v56 = vpack.c.bf16 %v11760_v6, %v11758_v46  ;;  %v24497_v46 = vld [vmem:[#allocation39_spill] sm:$0xff] }
 0x84f   : > { %v15879_v41 = vpop.permute.xlu1 %15878  ;;  %v11762_v58 = vmax.f32 %v22833_v3, %v11650_v44  ;;  %v11764_v35 = vmax.f32 %v22841_v29, %v11652_v60  ;;  %11846 = vrot.lane.b32.xlu1 %v11803_v50, %s16765_s10  ;;  %v24476_v3 = vld [vmem:[#allocation10_spill] sm:$0xff]  ;;  %v24485_v60 = vld [vmem:[#allocation45_spill] sm:$0xff] }
 0x850   : > { %v15881_v7 = vunpack.i.h.bf16 %v15879_v41  ;;  %v15880_v52 = vunpack.i.l.bf16 %v15879_v41  ;;  %v15889_v16 = vpop.permute.xlu0 %15888  ;;  %11844 = vrot.lane.b32.xlu0 %v11802_v37, %s16765_s10  ;;  %v15972_v22 = vpack.i.bf16 %v24476_v3, %v22981_v13  ;;  %v24486_v37 = vld [vmem:[#allocation23_spill] sm:$0xff] }
 0x851   : > { %v15891_v26 = vunpack.i.h.bf16 %v15889_v16  ;;  %v15890_v49 = vunpack.i.l.bf16 %v15889_v16  ;;  %v11806_v0 = vpack.c.bf16 %v11764_v35, %v11762_v58  ;;  %v15982_v41 = vpack.i.bf16 %v24486_v37, %v24485_v60  ;;  %v24489_v35 = vld [vmem:[#allocation34_spill] sm:$0xff]  ;;  %v24490_v16 = vld [vmem:[#allocation20_spill] sm:$0xff] }
 0x852   : > { %v11625_v5 = vsel %vm1631_vm0, %v15880_v52, %v15865_v59  ;;  %v11627_v57 = vsel %vm1631_vm0, %v15881_v7, %v15870_v38  ;;  %v24487_v7 = vld [vmem:[#allocation42_spill] sm:$0xff] }
 0x853   : > { %v11737_v12 = vmax.f32 %v24474_v10, %v11625_v5  ;;  %v11739_v47 = vmax.f32 %v24475_v33, %v11627_v57  ;;  %v15884_v63 = vpop.permute.xlu1 %15883  ;;  %v11655_v29 = vsel %vm1631_vm0, %v15890_v49, %v15891_v26  ;;  %11859 = vrot.lane.b32.xlu1 %v11805_v20, %s16763_s11  ;;  %v24484_v20 = vld [vmem:[#allocation43_spill] sm:$0xff]  ;;  %v24491_v5 = vpack.i.bf16 %v24489_v35, %v24490_v16  ;;  %v24492_v57 = vld [vmem:[#allocation29_spill] sm:$0xff]  ;;  %v16599_v16 = vld [vmem:[%s23807_s5 + $0x170] sm:$0xff]  }
 0x854   : > { %v15886_v4 = vunpack.i.h.bf16 %v15884_v63  ;;  %v15885_v50 = vunpack.i.l.bf16 %v15884_v63  ;;  %15973 = vrot.lane.b32.xlu0 %v15972_v22, %s16763_s11  ;;  %v15894_v62 = vpop.permute.xlu0 %15893  ;;  %v11767_v32 = vmax.f32 %v24477_v55, %v11655_v29  ;;  %v15987_v8 = vpack.i.bf16 %v24484_v20, %v24483_v2  ;;  %v24495_v63 = vld [vmem:[#allocation55_spill] sm:$0xff]  ;;  %v24498_v20 = vld [vmem:[#allocation49_spill] sm:$0xff] }
 0x855   : > { %v11793_v15 = vpack.c.bf16 %v11739_v47, %v11737_v12  ;;  %v15896_v43 = vunpack.i.h.bf16 %v15894_v62  ;;  %v15895_v31 = vunpack.i.l.bf16 %v15894_v62  ;;  %v15871_v10 = vunpack.i.h.bf16 %v23415_v17  ;;  %v24496_v22 = vld [vmem:[#allocation51_spill] sm:$0xff]  ;;  %v16583_v62 = vld [vmem:[%s23807_s5 + $0x150] sm:$0xff]  }
 0x856   : > { %v11653_v51 = vsel %vm1631_vm0, %v15885_v50, %v15886_v4  ;;  %v15866_v12 = vunpack.i.h.bf16 %v23396_v25  ;;  %v16580_v25 = vld [vmem:[%s23807_s5 + $0x148] sm:$0xff]  }
 0x857   : > { %v11765_v9 = vmax.f32 %v24478_v28, %v11653_v51  ;;  %15978 = vrot.lane.b32.xlu1 %v15977_v42, %s16763_s11  ;;  %v11654_v30 = vsel %vm1631_vm0, %v15886_v4, %v15895_v31  ;;  %v11656_v44 = vsel %vm1631_vm0, %v15891_v26, %v15896_v43  ;;  %v24493_v26 = vld [vmem:[#allocation37_spill] sm:$0xff]  ;;  %v11628_v33 = vsel %vm1631_vm0, %v15870_v38, %v15871_v10  ;;  %v16597_v35 = vld [vmem:[%s23807_s5 + $0x128] sm:$0xff]  }
 0x858   : > { %11861 = vrot.lane.b32.xlu0 %v11806_v0, %s16763_s11  ;;  %v11766_v52 = vmax.f32 %v24487_v7, %v11654_v30  ;;  %v11768_v61 = vmax.f32 %v24488_v45, %v11656_v44  ;;  %v24494_v49 = vpack.i.bf16 %v24492_v57, %v24493_v26  ;;  %v11626_v47 = vsel %vm1631_vm0, %v15865_v59, %v15866_v12  ;;  %v24500_v44 = vld [vmem:[#allocation17_spill] sm:$0xff]  ;;  %v16591_v45 = vld [vmem:[%s23807_s5 + $0x160] sm:$0xff]  }
 0x859   : > { %v11807_v19 = vpack.c.bf16 %v11767_v32, %v11765_v9  ;;  %v11740_v3 = vmax.f32 %v24495_v63, %v11628_v33  ;;  %v11738_v29 = vmax.f32 %v24496_v22, %v11626_v47  ;;  %v16603_v57 = vld [vmem:[%s23807_s5 + $0x178] sm:$0xff]   ;;  %v16584_v22 = vld [vmem:[%s23807_s5 + $0x180] sm:$0xff]  }
 0x85a   : > { %v11808_v58 = vpack.c.bf16 %v11768_v61, %v11766_v52  ;;  %v16593_v61 = vld [vmem:[%s23807_s5 + $0x120] sm:$0xff]   ;;  %v16605_v26 = vld [vmem:[%s23807_s5 + $0x138] sm:$0xff]  }
 0x85b   : > { %11848 = vrot.lane.b32.xlu1 %v11804_v56, %s16765_s10  ;;  %v11794_v4 = vpack.c.bf16 %v11740_v3, %v11738_v29  ;;  %v24499_v56 = vld [vmem:[#allocation19_spill] sm:$0xff] }
 0x85c   : > { %15988 = vrot.lane.b32.xlu0 %v15987_v8, %s16763_s11 }
 0x85f   : > { %15983 = vrot.lane.b32.xlu1 %v15982_v41, %s16763_s11  ;;  %v16589_v41 = vld [vmem:[%s23807_s5 + $0x118] sm:$0xff]  }
 0x860   : > { %11863 = vrot.lane.b32.xlu0 %v11807_v19, %s16763_s11 }
 0x863   : > { %15993 = vrot.lane.b32.xlu1 %v24491_v5, %s16763_s11  ;;  %v16601_v5 = vld [vmem:[%s23807_s5 + $0x130] sm:$0xff]  }
 0x864   : > { %11865 = vrot.lane.b32.xlu0 %v11808_v58, %s16763_s11  ;;  %v16595_v58 = vld [vmem:[%s23807_s5 + $0x168] sm:$0xff]  }
 0x867   : > { %15998 = vrot.lane.b32.xlu1 %v24494_v49, %s16763_s11  ;;  %v16610_v49 = vld [vmem:[%s23807_s5 + $0x240] sm:$0xff]  }
 0x87f   : > { %v23478_v50 = vpop.permute.xlu0 %11825 }
 0x880   : > { %v11906_v17 = vsel %vm1913_vm2, %v11794_v4, %v23478_v50  ;;  %v16586_v4 = vld [vmem:[%s23807_s5 + $0x1c8] sm:$0xff]  }
 0x881   : > { %12773 = vmatprep.mubr.bf16.mxu0 %v11906_v17  ;;  %v15899_v59 = vpop.permute.xlu1 %15898 }
 0x882   : > { %12774 = vmatmul.mubr.bf16.vlgmr.msra.gmra.mrb[80].mxu0 %v11793_v15  ;;  %v15901_v51 = vunpack.i.h.bf16 %v15899_v59  ;;  %v15900_v0 = vunpack.i.l.bf16 %v15899_v59  ;;  %v16585_v15 = vld [vmem:[%s23807_s5 + $0x110] sm:$0xff]  }
 0x883   : > { %v11828_v38 = vpop.permute.xlu0 %11827  ;;  %14312 = vmatpush3.bf16.msra.mxu0 %v16579_v53 }
 0x884   : > { %14313 = vmatprep.subr.bf16.mxu0 %v16580_v25  ;;  %v11665_v21 = vsel %vm1631_vm0, %v15900_v0, %v15901_v51  ;;  %v11834_v53 = vsel %vm1913_vm2, %v23478_v50, %v11828_v38  ;;  %v16588_v0 = vld [vmem:[%s23807_s5 + $0x188] sm:$0xff]   ;;  %v16590_v50 = vld [vmem:[%s23807_s5 + $0x1d0] sm:$0xff]  }
 0x885   : > { %v11777_v8 = vmax.f32 %v24498_v20, %v11665_v21  ;;  %v24502_v21 = vld [vmem:[#allocation8_spill] sm:$0xff] }
 0x886   : > { %v15909_v55 = vpop.permute.xlu1 %15908 }
 0x887   : > { %v15911_v32 = vunpack.i.h.bf16 %v15909_v55  ;;  %v15910_v28 = vunpack.i.l.bf16 %v15909_v55  ;;  %v15904_v9 = vpop.permute.xlu0 %15903  ;;  %14314 = vmatpush3.bf16.msra.mxu0 %v16581_v14 }
 0x888   : > { %v15906_v34 = vunpack.i.h.bf16 %v15904_v9  ;;  %v15905_v6 = vunpack.i.l.bf16 %v15904_v9  ;;  %14315 = vmatprep.subr.bf16.mxu0 %v16583_v62 }
 0x889   : > { %v11668_v42 = vsel %vm1631_vm0, %v15910_v28, %v15911_v32 }
 0x88a   : > { %v11780_v43 = vmax.f32 %v24497_v46, %v11668_v42  ;;  %v11667_v31 = vsel %vm1631_vm0, %v15906_v34, %v15910_v28  ;;  %v11666_v19 = vsel %vm1631_vm0, %v15901_v51, %v15905_v6  ;;  %v24501_v28 = vld [vmem:[#allocation40_spill] sm:$0xff] }
 0x88b   : > { %v11779_v30 = vmax.f32 %v24499_v56, %v11667_v31  ;;  %v11778_v37 = vmax.f32 %v24500_v44, %v11666_v19  ;;  %14316 = vmatpush3.bf16.msra.mxu0 %v16585_v15  ;;  %v15914_v10 = vpop.permute.xlu0 %15913  ;;  %v16594_v56 = vld [vmem:[%s23807_s5 + $0x1d8] sm:$0xff]  }
 0x88c   : > { %14317 = vmatprep.subr.bf16.mxu0 %v16587_v54  ;;  %v15916_v47 = vunpack.i.h.bf16 %v15914_v10  ;;  %v15915_v63 = vunpack.i.l.bf16 %v15914_v10  ;;  %v24504_v10 = vld [vmem:[#allocation48_spill] sm:$0xff] }
 0x88d   : > { %v11813_v7 = vpack.c.bf16 %v11779_v30, %v11777_v8  ;;  %v11814_v52 = vpack.c.bf16 %v11780_v43, %v11778_v37  ;;  %v15919_v12 = vpop.permute.xlu1 %15918  ;;  %v16592_v43 = vld [vmem:[%s23807_s5 + $0x190] sm:$0xff]  }
 0x88e   : > { %v11669_v25 = vsel %vm1631_vm0, %v15915_v63, %v15916_v47  ;;  %v15921_v59 = vunpack.i.h.bf16 %v15919_v12  ;;  %v15920_v34 = vunpack.i.l.bf16 %v15919_v12 }
 0x88f   : > { %11876 = vrot.lane.b32.xlu1 %v11813_v7, %s16764_s24  ;;  %11878 = vrot.lane.b32.xlu0 %v11814_v52, %s16764_s24  ;;  %v11781_v9 = vmax.f32 %v24501_v28, %v11669_v25 }
 0x890   : > { %14318 = vmatpush3.bf16.msra.mxu0 %v16589_v41  ;;  %v24503_v41 = vld [vmem:[#allocation46_spill] sm:$0xff] }
 0x891   : > { %14319 = vmatprep.subr.bf16.mxu0 %v16591_v45 }
 0x894   : > { %14320 = vmatpush3.bf16.msra.mxu0 %v16593_v61 }
 0x895   : > { %14321 = vmatprep.subr.bf16.mxu0 %v16595_v58 }
 0x898   : > { %14322 = vmatpush3.bf16.msra.mxu0 %v16597_v35 }
 0x899   : > { %14323 = vmatprep.subr.bf16.mxu0 %v16599_v16  ;;  %v11670_v16 = vsel %vm1631_vm0, %v15916_v47, %v15920_v34 }
 0x89c   : > { %14324 = vmatpush3.bf16.msra.mxu0 %v16601_v5 }
 0x89d   : > { %14325 = vmatprep.subr.bf16.mxu0 %v16603_v57 }
 0x8a0   : > { %14326 = vmatpush3.bf16.msra.mxu0 %v16605_v26 }
 0x8a1   : > { %14367 = vmatprep.subr.bf16.mxu0 %v16610_v49  ;;  %v16596_v49 = vld [vmem:[%s23807_s5 + $0x198] sm:$0xff]  }
 0x8a4   : > { %v15929_v33 = vpop.permute.xlu0 %15928 }
 0x8a5   : > { %v23540_v3 = vpop.permute.xlu1 %11842  ;;  %v15930_v32 = vunpack.i.l.bf16 %v15929_v33  ;;  %v15931_v54 = vunpack.i.h.bf16 %v15929_v33 }
 0x8a6   : > { %v11914_v29 = vsel %vm1800_vm1, %v11828_v38, %v23540_v3 }
 0x8a7   : > { %12822 = vmatprep.mubr.bf16.mxu1 %v11914_v29 }
 0x8a8   : > { %12823 = vmatmul.mubr.bf16.vlgmr.msra.gmra.mrb[80].mxu1 %v11834_v53 }
 0x8a9   : > { %v15924_v14 = vpop.permute.xlu1 %15923  ;;  %14340 = vmatpush3.bf16.msra.mxu1 %v16584_v22 }
 0x8aa   : > { %v15926_v62 = vunpack.i.h.bf16 %v15924_v14  ;;  %v15925_v55 = vunpack.i.l.bf16 %v15924_v14  ;;  %14341 = vmatprep.subr.bf16.mxu1 %v16586_v4 }
 0x8ab   : > { %v15934_v17 = vpop.permute.xlu0 %15933 }
 0x8ac   : > { %v15935_v51 = vunpack.i.l.bf16 %v15934_v17  ;;  %v15936_v15 = vunpack.i.h.bf16 %v15934_v17  ;;  %v11673_v6 = vsel %vm1631_vm0, %v15925_v55, %v15926_v62  ;;  %v11674_v31 = vsel %vm1631_vm0, %v15926_v62, %v15930_v32  ;;  %v16602_v62 = vld [vmem:[%s23807_s5 + $0x1e8] sm:$0xff]  }
 0x8ad   : > { %v15939_v46 = vpop.permute.xlu1 %15938  ;;  %14342 = vmatpush3.bf16.msra.mxu1 %v16588_v0  ;;  %v11785_v7 = vmax.f32 %v24503_v41, %v11673_v6  ;;  %v11786_v52 = vmax.f32 %v23280_v1, %v11674_v31 }
 0x8ae   : > { %v11671_v38 = vsel %vm1631_vm0, %v15921_v59, %v15935_v51  ;;  %v15941_v19 = vunpack.i.h.bf16 %v15939_v46  ;;  %v15940_v20 = vunpack.i.l.bf16 %v15939_v46  ;;  %14343 = vmatprep.subr.bf16.mxu1 %v16590_v50  ;;  %v11672_v37 = vsel %vm1631_vm0, %v15935_v51, %v15936_v15  ;;  %v16600_v51 = vld [vmem:[%s23807_s5 + $0x1a0] sm:$0xff]  }
 0x8af   : > { %v11783_v42 = vmax.f32 %v24502_v21, %v11671_v38  ;;  %v11784_v12 = vmax.f32 %v24504_v10, %v11672_v37 }
 0x8b0   : > { %v11675_v30 = vsel %vm1631_vm0, %v15931_v54, %v15940_v20  ;;  %v11676_v44 = vsel %vm1631_vm0, %v15940_v20, %v15941_v19  ;;  %v16604_v54 = vld [vmem:[%s23807_s5 + $0x1a8] sm:$0xff]  }
 0x8b1   : > { %v11815_v8 = vpack.c.bf16 %v11783_v42, %v11781_v9  ;;  %v11787_v45 = vmax.f32 %v23309_v18, %v11675_v30  ;;  %v11788_v61 = vmax.f32 %v23311_v39, %v11676_v44  ;;  %v15944_v58 = vpop.permute.xlu1 %15943  ;;  %14344 = vmatpush3.bf16.msra.mxu1 %v16592_v43  ;;  %v16598_v39 = vld [vmem:[%s23807_s5 + $0x1e0] sm:$0xff]   ;;  %v24507_v44 = vld [vmem:[#allocation52_spill] sm:$0xff] }
 0x8b2   : > { %v15949_v35 = vpop.permute.xlu0 %15948  ;;  %v15946_v5 = vunpack.i.h.bf16 %v15944_v58  ;;  %v15945_v57 = vunpack.i.l.bf16 %v15944_v58  ;;  %14345 = vmatprep.subr.bf16.mxu1 %v16594_v56  ;;  %v24505_v18 = vld [vmem:[#allocation26_spill] sm:$0xff] }
 0x8b3   : > { %v15950_v26 = vunpack.i.l.bf16 %v15949_v35  ;;  %v11818_v1 = vpack.c.bf16 %v11788_v61, %v11786_v52  ;;  %v11817_v33 = vpack.c.bf16 %v11787_v45, %v11785_v7  ;;  %v11782_v63 = vmax.f32 %v24505_v18, %v11670_v16  ;;  %v24506_v56 = vld [vmem:[#allocation22_spill] sm:$0xff] }
 0x8b4   : > { %v11677_v47 = vsel %vm1631_vm0, %v15945_v57, %v15946_v5  ;;  %v15951_v22 = vunpack.i.h.bf16 %v15949_v35 }
 0x8b5   : > { %v11678_v29 = vsel %vm1631_vm0, %v15946_v5, %v15950_v26  ;;  %11894 = vrot.lane.b32.xlu1 %v11818_v1, %s16765_s10  ;;  %v15959_v4 = vpop.permute.xlu1 %15958  ;;  %11892 = vrot.lane.b32.xlu0 %v11817_v33, %s16765_s10  ;;  %v11816_v0 = vpack.c.bf16 %v11784_v12, %v11782_v63  ;;  %v11789_v55 = vmax.f32 %v23351_v23, %v11677_v47  ;;  %v16609_v5 = vld [vmem:[%s23807_s5 + $0x1b8] sm:$0xff]   ;;  %v16626_v26 = vld [vmem:[%s23807_s5 + $0x2c0] sm:$0xff]  }
 0x8b6   : > { %v15954_v53 = vpop.permute.xlu0 %15953  ;;  %v15961_v17 = vunpack.i.h.bf16 %v15959_v4  ;;  %v15960_v25 = vunpack.i.l.bf16 %v15959_v4  ;;  %14346 = vmatpush3.bf16.msra.mxu1 %v16596_v49  ;;  %v11790_v32 = vmax.f32 %v23353_v11, %v11678_v29  ;;  %v16612_v47 = vld [vmem:[%s23807_s5 + $0x248] sm:$0xff]  }
 0x8b7   : > { %v15956_v59 = vunpack.i.h.bf16 %v15954_v53  ;;  %v15955_v14 = vunpack.i.l.bf16 %v15954_v53  ;;  %14347 = vmatprep.subr.bf16.mxu1 %v16598_v39  ;;  %v16611_v39 = vld [vmem:[%s23807_s5 + $0x200] sm:$0xff]  }
 0x8b8   : > { %v11679_v50 = vsel %vm1631_vm0, %v15951_v22, %v15960_v25  ;;  %v11680_v38 = vsel %vm1631_vm0, %v15960_v25, %v15961_v17  ;;  %v16613_v25 = vld [vmem:[%s23807_s5 + $0x208] sm:$0xff]  }
 0x8b9   : > { %v11791_v28 = vmax.f32 %v23368_v48, %v11679_v50  ;;  %v11792_v9 = vmax.f32 %v23371_v27, %v11680_v38  ;;  %v11630_v15 = vsel %vm1631_vm0, %v15955_v14, %v15956_v59  ;;  %11882 = vrot.lane.b32.xlu1 %v11816_v0, %s16764_s24  ;;  %v15964_v21 = vpop.permute.xlu1 %15963  ;;  %11880 = vrot.lane.b32.xlu0 %v11815_v8, %s16764_s24  ;;  %v16606_v27 = vld [vmem:[%s23807_s5 + $0x1f0] sm:$0xff]   ;;  %v24509_v0 = vld [vmem:[#allocation9_spill] sm:$0xff] }
 0x8ba   : > { %v15969_v42 = vpop.permute.xlu0 %15968  ;;  %v15966_v34 = vunpack.i.h.bf16 %v15964_v21  ;;  %v15965_v23 = vunpack.i.l.bf16 %v15964_v21  ;;  %14348 = vmatpush3.bf16.msra.mxu1 %v16600_v51  ;;  %v11742_v43 = vmax.f32 %v22507_v24, %v11630_v15  ;;  %v16607_v24 = vld [vmem:[%s23807_s5 + $0x1b0] sm:$0xff]  }
 0x8bb   : > { %v15971_v6 = vunpack.i.h.bf16 %v15969_v42  ;;  %v15970_v11 = vunpack.i.l.bf16 %v15969_v42  ;;  %v11819_v48 = vpack.c.bf16 %v11791_v28, %v11789_v55  ;;  %v11820_v46 = vpack.c.bf16 %v11792_v9, %v11790_v32  ;;  %14349 = vmatprep.subr.bf16.mxu1 %v16602_v62  ;;  %v16614_v55 = vld [vmem:[%s23807_s5 + $0x250] sm:$0xff]   ;;  %v16627_v28 = vld [vmem:[%s23807_s5 + $0x280] sm:$0xff]   ;;  %v16628_v9 = vld [vmem:[%s23807_s5 + $0x2c8] sm:$0xff]  }
 0x8bc   : > { %v11632_v31 = vsel %vm1631_vm0, %v15965_v23, %v15966_v34  ;;  %v16615_v34 = vld [vmem:[%s23807_s5 + $0x210] sm:$0xff]  }
 0x8bd   : > { %v11631_v19 = vsel %vm1631_vm0, %v15971_v6, %v15965_v23  ;;  %v11629_v20 = vsel %vm1631_vm0, %v15970_v11, %v15955_v14  ;;  %v11744_v8 = vmax.f32 %v22517_v36, %v11632_v31  ;;  %v11830_v41 = vpop.permute.xlu1 %11829  ;;  %11896 = vrot.lane.b32.xlu0 %v11819_v48, %s16765_s10  ;;  %11898 = vrot.lane.b32.xlu1 %v11820_v46, %s16765_s10  ;;  %v16608_v36 = vld [vmem:[%s23807_s5 + $0x1f8] sm:$0xff]   ;;  %v24508_v14 = vld [vmem:[#allocation15_spill] sm:$0xff]  ;;  %v16630_v31 = vld [vmem:[%s23807_s5 + $0x2d0] sm:$0xff]   ;;  %s844_s10 = scalar_lea.vmem %s23809_s7, %s13174_s26 }
 0x8be   : > { %v11743_v30 = vmax.f32 %v24506_v56, %v11631_v19  ;;  %v11741_v37 = vmax.f32 %v24507_v44, %v11629_v20  ;;  %v11832_v7 = vpop.permute.xlu0 %11831  ;;  %14350 = vmatpush3.bf16.msra.mxu1 %v16604_v54  ;;  %v16616_v48 = vld [vmem:[%s23807_s5 + $0x258] sm:$0xff]  }
 0x8bf   : > { %v11796_v45 = vpack.c.bf16 %v11744_v8, %v11742_v43  ;;  %14351 = vmatprep.subr.bf16.mxu1 %v16606_v27  ;;  %v11835_v57 = vsel %vm1913_vm2, %v11830_v41, %v11832_v7  ;;  %v16629_v27 = vld [vmem:[%s23807_s5 + $0x288] sm:$0xff]   ;;  %v24510_v8 = vld [vmem:[#allocation18_spill] sm:$0xff] }
 0x8c0   : > { %v11795_v52 = vpack.c.bf16 %v11743_v30, %v11741_v37  ;;  %v24511_v30 = vld [vmem:[#allocation50_spill] sm:$0xff]  ;;  %v16617_v37 = vld [vmem:[%s23807_s5 + $0x218] sm:$0xff]  }
 0x8c1   : > { %v11847_v61 = vpop.permute.xlu1 %11846  ;;  %v11910_v58 = vsel %vm1913_vm2, %v11796_v45, %v11830_v41  ;;  %v16618_v41 = vld [vmem:[%s23807_s5 + $0x260] sm:$0xff]   ;;  %v16632_v45 = vld [vmem:[%s23807_s5 + $0x2d8] sm:$0xff]  }
 0x8c2   : > { %v11845_v35 = vpop.permute.xlu0 %11844  ;;  %12781 = vmatprep.mubr.bf16.mxu0 %v11910_v58  ;;  %v11918_v16 = vsel %vm1800_vm1, %v11832_v7, %v11847_v61  ;;  %14352 = vmatpush3.bf16.msra.mxu1 %v16607_v24 }
 0x8c3   : > { %12830 = vmatprep.mubr.bf16.mxu1 %v11918_v16  ;;  %12782 = vmatmul.mubr.bf16.gmra.mrb[84].mxu0 %v11795_v52  ;;  %v11851_v22 = vsel %vm1800_vm1, %v23540_v3, %v11845_v35  ;;  %v16631_v52 = vld [vmem:[%s23807_s5 + $0x290] sm:$0xff]   ;;  %v16620_v16 = vld [vmem:[%s23807_s5 + $0x268] sm:$0xff]  }
 0x8c4   : > { %12831 = vmatmul.mubr.bf16.gmra.mrb[84].mxu1 %v11835_v57  ;;  %14353 = vmatprep.subr.bf16.mxu1 %v16608_v36 }
 0x8c5   : > { %v11860_v49 = vpop.permute.xlu1 %11859 }
 0x8c6   : > { %v23635_v10 = vpop.permute.xlu0 %15973  ;;  %v11922_v33 = vsel %vm1631_vm0, %v11845_v35, %v11860_v49  ;;  %14354 = vmatpush3.bf16.msra.mxu1 %v16609_v5  ;;  %v16633_v5 = vld [vmem:[%s23807_s5 + $0x298] sm:$0xff]  }
 0x8c7   : > { %v15976_v12 = vunpack.i.h.bf16 %v23635_v10  ;;  %v15975_v1 = vunpack.i.l.bf16 %v23635_v10  ;;  %12871 = vmatprep.mubr.bf16.mxu0 %v11922_v33  ;;  %14395 = vmatprep.subr.bf16.mxu1 %v16626_v26  ;;  %v16643_v10 = vld [vmem:[%s23807_s5 + $0x308] sm:$0xff]  }
 0x8c9   : > { %v23643_v18 = vpop.permute.xlu1 %15978  ;;  %v11657_v29 = vsel %vm1631_vm0, %v15975_v1, %v15976_v12 }
 0x8ca   : > { %v11862_v63 = vpop.permute.xlu0 %11861  ;;  %v15981_v4 = vunpack.i.h.bf16 %v23643_v18  ;;  %v15980_v53 = vunpack.i.l.bf16 %v23643_v18  ;;  %v11769_v51 = vmax.f32 %v24508_v14, %v11657_v29  ;;  %v16624_v29 = vld [vmem:[%s23807_s5 + $0x278] sm:$0xff]  }
 0x8cb   : > { %12872 = vmatmul.mubr.bf16.vlgmr.msra.gmra.mrb[88].mxu0 %v11851_v22  ;;  %v11868_v15 = vsel %vm1631_vm0, %v11860_v49, %v11862_v63  ;;  %v16634_v49 = vld [vmem:[%s23807_s5 + $0x2e0] sm:$0xff]   ;;  %v16622_v63 = vld [vmem:[%s23807_s5 + $0x270] sm:$0xff]   ;;  %v16641_v14 = vld [vmem:[%s23807_s5 + $0x2f8] sm:$0xff]  }
 0x8cc   : > { %v11659_v17 = vsel %vm1631_vm0, %v15980_v53, %v15981_v4  ;;  %14368 = vmatpush3.bf16.msra.mxu0 %v16611_v39  ;;  %v16621_v39 = vld [vmem:[%s23807_s5 + $0x228] sm:$0xff]  }
 0x8cd   : > { %v11849_v59 = vpop.permute.xlu1 %11848  ;;  %v11771_v62 = vmax.f32 %v24509_v0, %v11659_v17  ;;  %14369 = vmatprep.subr.bf16.mxu0 %v16612_v47  ;;  %v16635_v47 = vld [vmem:[%s23807_s5 + $0x2a0] sm:$0xff]   ;;  %v16637_v53 = vld [vmem:[%s23807_s5 + $0x2a8] sm:$0xff]   ;;  %v16638_v17 = vld [vmem:[%s23807_s5 + $0x2f0] sm:$0xff]  }
 0x8ce   : > { %v15989_v3 = vpop.permute.xlu0 %15988  ;;  %v11852_v46 = vsel %vm1800_vm1, %v11847_v61, %v11849_v59  ;;  %v16619_v61 = vld [vmem:[%s23807_s5 + $0x220] sm:$0xff]  }
 0x8cf   : > { %v15991_v32 = vunpack.i.h.bf16 %v15989_v3  ;;  %v15990_v50 = vunpack.i.l.bf16 %v15989_v3  ;;  %v11809_v38 = vpack.c.bf16 %v11771_v62, %v11769_v51  ;;  %v16639_v3 = vld [vmem:[%s23807_s5 + $0x2b0] sm:$0xff]   ;;  %v16642_v51 = vld [vmem:[%s23807_s5 + $0x2b8] sm:$0xff]  }
 0x8d0   : > { %14370 = vmatpush3.bf16.msra.mxu0 %v16613_v25  ;;  %v16625_v25 = vld [vmem:[%s23807_s5 + $0x238] sm:$0xff]  }
 0x8d1   : > { %v15984_v21 = vpop.permute.xlu1 %15983  ;;  %12920 = vmatprep.mubr.bf16.mxu1 %v11809_v38  ;;  %14371 = vmatprep.subr.bf16.mxu0 %v16614_v55  ;;  %v11663_v23 = vsel %vm1631_vm0, %v15990_v50, %v15991_v32 }
 0x8d2   : > { %v11864_v42 = vpop.permute.xlu0 %11863  ;;  %v15986_v6 = vunpack.i.h.bf16 %v15984_v21  ;;  %v15985_v11 = vunpack.i.l.bf16 %v15984_v21  ;;  %12921 = vmatmul.mubr.bf16.vlgmr.msra.gmra.mrb[88].mxu1 %v11868_v15  ;;  %v11775_v44 = vmax.f32 %v24511_v30, %v11663_v23 }
 0x8d3   : > { %v11926_v54 = vsel %vm1631_vm0, %v11849_v59, %v11864_v42  ;;  %14396 = vmatpush3.bf16.msra.mxu1 %v16627_v28  ;;  %v16640_v59 = vld [vmem:[%s23807_s5 + $0x300] sm:$0xff]  }
 0x8d4   : > { %12879 = vmatprep.mubr.bf16.mxu0 %v11926_v54  ;;  %v11661_v43 = vsel %vm1631_vm0, %v15985_v11, %v15986_v6  ;;  %14397 = vmatprep.subr.bf16.mxu1 %v16628_v9 }
 0x8d5   : > { %12880 = vmatmul.mubr.bf16.gmra.mrb[92].mxu0 %v11852_v46  ;;  %v23689_v19 = vpop.permute.xlu1 %15993  ;;  %v11773_v56 = vmax.f32 %v24510_v8, %v11661_v43 }
 0x8d6   : > { %v11866_v20 = vpop.permute.xlu0 %11865  ;;  %14372 = vmatpush3.bf16.msra.mxu0 %v16615_v34  ;;  %v15996_v0 = vunpack.i.h.bf16 %v23689_v19  ;;  %v15995_v62 = vunpack.i.l.bf16 %v23689_v19 }
 0x8d7   : > { %14373 = vmatprep.subr.bf16.mxu0 %v16616_v48  ;;  %v11869_v7 = vsel %vm1631_vm0, %v11864_v42, %v11866_v20  ;;  %v11811_v24 = vpack.c.bf16 %v11775_v44, %v11773_v56  ;;  %14398 = vmatpush3.bf16.msra.mxu1 %v16629_v27  ;;  %v14151_v56 = vld [vmem:[%s23808_s6] ss:$0 sm:$0xff] }
 0x8d8   : > { %14399 = vmatprep.subr.bf16.mxu1 %v16630_v31  ;;  %v11658_v55 = vsel %vm1631_vm0, %v15976_v12, %v15995_v62 }
 0x8d9   : > { %v15999_v36 = vpop.permute.xlu1 %15998  ;;  %12928 = vmatprep.mubr.bf16.mxu1 %v11811_v24  ;;  %v11770_v50 = vmax.f32 %v22981_v13, %v11658_v55 }
 0x8da   : > { %14374 = vmatpush3.bf16.msra.mxu0 %v16617_v37  ;;  %v16001_v58 = vunpack.i.h.bf16 %v15999_v36  ;;  %v16000_v35 = vunpack.i.l.bf16 %v15999_v36  ;;  %12929 = vmatmul.mubr.bf16.gmra.mrb[92].mxu1 %v11869_v7 }
 0x8db   : > { %14375 = vmatprep.subr.bf16.mxu0 %v16618_v41  ;;  %14400 = vmatpush3.bf16.msra.mxu1 %v16631_v52 }
 0x8dc   : > { %v11662_v57 = vsel %vm1631_vm0, %v15986_v6, %v16000_v35  ;;  %v11664_v26 = vsel %vm1631_vm0, %v15991_v32, %v16001_v58  ;;  %14401 = vmatprep.subr.bf16.mxu1 %v16632_v45  ;;  %v11660_v32 = vsel %vm1631_vm0, %v15981_v4, %v15996_v0 }
 0x8dd   : > { %v11774_v1 = vmax.f32 %v24485_v60, %v11662_v57  ;;  %v11776_v33 = vmax.f32 %v24483_v2, %v11664_v26  ;;  %v16636_v2 = vld [vmem:[%s23807_s5 + $0x2e8] sm:$0xff]   ;;  %v16623_v60 = vld [vmem:[%s23807_s5 + $0x230] sm:$0xff]   ;;  %v11772_v38 = vmax.f32 %v24479_v40, %v11660_v32 }
 0x8de   : > { %14376 = vmatpush3.bf16.msra.mxu0 %v16619_v61 }
 0x8df   : > { %14377 = vmatprep.subr.bf16.mxu0 %v16620_v16  ;;  %14402 = vmatpush3.bf16.msra.mxu1 %v16633_v5  ;;  %v11812_v22 = vpack.c.bf16 %v11776_v33, %v11774_v1  ;;  %v11810_v28 = vpack.c.bf16 %v11772_v38, %v11770_v50 }
 0x8e0   : > { %14403 = vmatprep.subr.bf16.mxu1 %v16634_v49 }
 0x8e2   : > { %14378 = vmatpush3.bf16.msra.mxu0 %v16621_v39 }
 0x8e3   : > { %14379 = vmatprep.subr.bf16.mxu0 %v16622_v63  ;;  %14404 = vmatpush3.bf16.msra.mxu1 %v16635_v47 }
 0x8e4   : > { %14405 = vmatprep.subr.bf16.mxu1 %v16636_v2 }
 0x8e6   : > { %14380 = vmatpush3.bf16.msra.mxu0 %v16623_v60 }
 0x8e7   : > { %14381 = vmatprep.subr.bf16.mxu0 %v16624_v29  ;;  %14406 = vmatpush3.bf16.msra.mxu1 %v16637_v53 }
 0x8e8   : > { %14407 = vmatprep.subr.bf16.mxu1 %v16638_v17 }
 0x8ea   : > { %14382 = vmatpush3.bf16.msra.mxu0 %v16625_v25 }
 0x8eb   : > { %14427 = vmatprep.subr.bf16.mxu0 %v16640_v59  ;;  %14408 = vmatpush3.bf16.msra.mxu1 %v16639_v3 }
 0x8ec   : > { %14409 = vmatprep.subr.bf16.mxu1 %v16641_v14 }
 0x8ef   : > { %14410 = vmatpush3.bf16.msra.mxu1 %v16642_v51 }
 0x901   : > { %v11877_v9 = vpop.permute.xlu1 %11876  ;;  %v11879_v15 = vpop.permute.xlu0 %11878 }
 0x902   : > { %v11930_v21 = vsel %vm1913_vm2, %v11810_v28, %v11877_v9  ;;  %v11884_v42 = vsel %vm1913_vm2, %v11877_v9, %v11879_v15 }
 0x903   : > { %12969 = vmatprep.mubr.bf16.mxu0 %v11884_v42 }
 0x904   : > { %12970 = vmatmul.mubr.bf16.vlgmr.msra.gmra.mrb[96].mxu0 %v11930_v21 }
 0x905   : > { %14428 = vmatpush3.bf16.msra.mxu0 %v16640_v59 }
 0x906   : > { %14429 = vmatprep.subr.bf16.mxu0 %v16643_v10 }
 0x909   : > { %14430 = vmatpush3.bf16.msra.mxu0 %v16643_v10 }
 0x927   : > { %v11895_v12 = vpop.permute.xlu1 %11894  ;;  %v11893_v13 = vpop.permute.xlu0 %11892 }
 0x928   : > { %v11938_v40 = vsel %vm1800_vm1, %v11879_v15, %v11893_v13  ;;  %v11900_v18 = vsel %vm1800_vm1, %v11893_v13, %v11895_v12 }
 0x929   : > { %13018 = vmatprep.mubr.bf16.mxu1 %v11900_v18 }
 0x92a   : > { %13019 = vmatmul.mubr.bf16.vlgmr.msra.gmra.mrb[96].mxu1 %v11938_v40 }
 0x92b   : > { %v11883_v4 = vpop.permute.xlu1 %11882  ;;  %v11881_v34 = vpop.permute.xlu0 %11880 }
 0x92c   : > { %v11934_v23 = vsel %vm1913_vm2, %v11812_v22, %v11881_v34  ;;  %v11885_v6 = vsel %vm1913_vm2, %v11881_v34, %v11883_v4 }
 0x92d   : > { %12977 = vmatprep.mubr.bf16.mxu0 %v11885_v6 }
 0x92e   : > { %12978 = vmatmul.mubr.bf16.gmra.mrb[100].mxu0 %v11934_v23 }
 0x92f   : > { %14431 = vmatprep.mubr.msk.bf16.mxu0 %vm1631_vm0, %v11895_v12  ;;  %v11897_v11 = vpop.permute.xlu0 %11896  ;;  %v11899_v54 = vpop.permute.xlu1 %11898 }
 0x930   : > { %v11942_v48 = vsel %vm1800_vm1, %v11883_v4, %v11897_v11  ;;  %v11901_v46 = vsel %vm1800_vm1, %v11897_v11, %v11899_v54 }
 0x931   : > { %13026 = vmatprep.mubr.bf16.mxu1 %v11901_v46 }
 0x932   : > { %13027 = vmatmul.mubr.bf16.gmra.mrb[100].mxu1 %v11942_v48 }
 0x936   : > { %14432 = vmatmul.mubr.msk.bf16.vlgmr.msra.gmra.mrb[104].mxu0 %vm1631_vm0, %v11899_v54 }
 0x955   : > { %v14271_v27 = vpop.f32.mrb[80].mxu0 }
 0x956   : > { %v14272_v43 = vpop.f32.mrb[81].mxu0 }
 0x957   : > { %v14273_v31 = vadd.f32 %v14272_v43, %v14271_v27  ;;  %v14274_v19 = vpop.f32.mrb[82].mxu0 }
 0x958   : > { %v14275_v20 = vpop.f32.mrb[83].mxu0 }
 0x959   : > { %v14276_v8 = vadd.f32 %v14275_v20, %v14274_v19  ;;  %v12776_v37 = vadd.f32 %v14273_v31, %v14151_v56 }
 0x95b   : > { %v12779_v52 = vadd.f32 %v14276_v8, %v14151_v56 }
 0x97b   : > { %v14299_v30 = vpop.f32.mrb[80].mxu1 }
 0x97c   : > { %v14300_v44 = vpop.f32.mrb[81].mxu1 }
 0x97d   : > { %v14301_v41 = vadd.f32 %v14300_v44, %v14299_v30  ;;  %v14302_v7 = vpop.f32.mrb[82].mxu1 }
 0x97e   : > { %v14303_v24 = vpop.f32.mrb[83].mxu1 }
 0x97f   : > { %v12825_v45 = vadd.f32 %v14301_v41, %v12776_v37  ;;  %v14304_v36 = vadd.f32 %v14303_v24, %v14302_v7 }
 0x981   : > { %v12828_v61 = vadd.f32 %v14304_v36, %v12779_v52 }
 0x996   : > { %v14277_v58 = vpop.f32.mrb[84].mxu0 }
 0x997   : > { %v14278_v35 = vpop.f32.mrb[85].mxu0  ;;  %v14305_v16 = vpop.f32.mrb[84].mxu1 }
 0x998   : > { %v14279_v5 = vadd.f32 %v14278_v35, %v14277_v58  ;;  %v14280_v57 = vpop.f32.mrb[86].mxu0  ;;  %v14306_v26 = vpop.f32.mrb[85].mxu1 }
 0x999   : > { %v14307_v49 = vadd.f32 %v14306_v26, %v14305_v16  ;;  %v14281_v1 = vpop.f32.mrb[87].mxu0  ;;  %v14308_v33 = vpop.f32.mrb[86].mxu1 }
 0x99a   : > { %v12784_v39 = vadd.f32 %v14279_v5, %v14151_v56  ;;  %v14282_v63 = vadd.f32 %v14281_v1, %v14280_v57  ;;  %v14309_v47 = vpop.f32.mrb[87].mxu1 }
 0x99b   : > { %v14310_v22 = vadd.f32 %v14309_v47, %v14308_v33 }
 0x99c   : > { %v12833_v2 = vadd.f32 %v14307_v49, %v12784_v39  ;;  %v12787_v60 = vadd.f32 %v14282_v63, %v14151_v56 }
 0x99e   : > { %v12836_v29 = vadd.f32 %v14310_v22, %v12787_v60  ;;  %v14327_v53 = vpop.f32.mrb[88].mxu0 }
 0x99f   : > { %v14328_v17 = vpop.f32.mrb[89].mxu0 }
 0x9a0   : > { %v14329_v25 = vadd.f32 %v14328_v17, %v14327_v53  ;;  %v14330_v59 = vpop.f32.mrb[90].mxu0 }
 0x9a1   : > { %v14331_v3 = vpop.f32.mrb[91].mxu0 }
 0x9a2   : > { %v12874_v14 = vadd.f32 %v14329_v25, %v12825_v45  ;;  %v14332_v51 = vadd.f32 %v14331_v3, %v14330_v59 }
 0x9a4   : > { %v12877_v0 = vadd.f32 %v14332_v51, %v12828_v61 }
 0x9a5   : > { %v14355_v62 = vpop.f32.mrb[88].mxu1 }
 0x9a6   : > { %v14356_v55 = vpop.f32.mrb[89].mxu1 }
 0x9a7   : > { %v14357_v32 = vadd.f32 %v14356_v55, %v14355_v62  ;;  %v14358_v50 = vpop.f32.mrb[90].mxu1 }
 0x9a8   : > { %v14333_v38 = vpop.f32.mrb[92].mxu0  ;;  %v14359_v28 = vpop.f32.mrb[91].mxu1 }
 0x9a9   : > { %v14334_v9 = vpop.f32.mrb[93].mxu0  ;;  %v12923_v15 = vadd.f32 %v14357_v32, %v12874_v14  ;;  %v14360_v21 = vadd.f32 %v14359_v28, %v14358_v50 }
 0x9aa   : > { %v14335_v42 = vadd.f32 %v14334_v9, %v14333_v38  ;;  %v14336_v10 = vpop.f32.mrb[94].mxu0 }
 0x9ab   : > { %v14337_v12 = vpop.f32.mrb[95].mxu0  ;;  %v12926_v13 = vadd.f32 %v14360_v21, %v12877_v0 }
 0x9ac   : > { %v12882_v40 = vadd.f32 %v14335_v42, %v12833_v2  ;;  %v14338_v18 = vadd.f32 %v14337_v12, %v14336_v10 }
 0x9ad   : > { %v14361_v34 = vpop.f32.mrb[92].mxu1 }
 0x9ae   : > { %v12885_v4 = vadd.f32 %v14338_v18, %v12836_v29  ;;  %v14362_v23 = vpop.f32.mrb[93].mxu1 }
 0x9af   : > { %v14363_v6 = vadd.f32 %v14362_v23, %v14361_v34  ;;  %v14364_v11 = vpop.f32.mrb[94].mxu1 }
 0x9b0   : > { %v14365_v54 = vpop.f32.mrb[95].mxu1 }
 0x9b1   : > { %v12931_v48 = vadd.f32 %v14363_v6, %v12882_v40  ;;  %v14366_v46 = vadd.f32 %v14365_v54, %v14364_v11 }
 0x9b3   : > { %v12934_v27 = vadd.f32 %v14366_v46, %v12885_v4 }
 0x9d7   : > { %v14383_v43 = vpop.f32.mrb[96].mxu0 }
 0x9d8   : > { %v14384_v31 = vpop.f32.mrb[97].mxu0 }
 0x9d9   : > { %v14385_v19 = vadd.f32 %v14384_v31, %v14383_v43  ;;  %v14386_v20 = vpop.f32.mrb[98].mxu0 }
 0x9da   : > { %v14387_v8 = vpop.f32.mrb[99].mxu0 }
 0x9db   : > { %v12972_v56 = vadd.f32 %v14385_v19, %v12923_v15  ;;  %v14388_v30 = vadd.f32 %v14387_v8, %v14386_v20 }
 0x9dd   : > { %v12975_v44 = vadd.f32 %v14388_v30, %v12926_v13 }
 0x9fd   : > { %v14411_v37 = vpop.f32.mrb[96].mxu1 }
 0x9fe   : > { %v14412_v41 = vpop.f32.mrb[97].mxu1 }
 0x9ff   : > { %v14413_v7 = vadd.f32 %v14412_v41, %v14411_v37  ;;  %v14414_v24 = vpop.f32.mrb[98].mxu1 }
 0xa00   : > { %v14415_v52 = vpop.f32.mrb[99].mxu1 }
 0xa01   : > { %v14416_v45 = vadd.f32 %v14415_v52, %v14414_v24  ;;  %v14389_v36 = vpop.f32.mrb[100].mxu0  ;;  %v13021_v61 = vadd.f32 %v14413_v7, %v12972_v56 }
 0xa02   : > { %v14390_v58 = vpop.f32.mrb[101].mxu0 }
 0xa03   : > { %v14391_v35 = vadd.f32 %v14390_v58, %v14389_v36  ;;  %v14392_v16 = vpop.f32.mrb[102].mxu0  ;;  %v13024_v5 = vadd.f32 %v14416_v45, %v12975_v44 }
 0xa04   : > { %v14393_v57 = vpop.f32.mrb[103].mxu0 }
 0xa05   : > { %v12980_v26 = vadd.f32 %v14391_v35, %v12931_v48  ;;  %v14394_v49 = vadd.f32 %v14393_v57, %v14392_v16  ;;  %v14417_v1 = vpop.f32.mrb[100].mxu1 }
 0xa06   : > { %v14418_v33 = vpop.f32.mrb[101].mxu1 }
 0xa07   : > { %v12983_v39 = vadd.f32 %v14394_v49, %v12934_v27  ;;  %v14419_v63 = vadd.f32 %v14418_v33, %v14417_v1  ;;  %v14420_v47 = vpop.f32.mrb[102].mxu1 }
 0xa08   : > { %v14421_v22 = vpop.f32.mrb[103].mxu1 }
 0xa09   : > { %v14422_v2 = vadd.f32 %v14421_v22, %v14420_v47  ;;  %v13029_v60 = vadd.f32 %v14419_v63, %v12980_v26  ;;  %v14433_v29 = vpop.f32.mrb[104].mxu0 }
 0xa0a   : > { %v13069_v53 = vpop.f32.mrb[105].mxu0 }
 0xa0b   : > { %v13078_v17 = vadd.f32 %v14433_v29, %v13029_v60  ;;  %v13070_v25 = vadd.f32 %v13069_v53, %v13021_v61  ;;  %v13032_v59 = vadd.f32 %v14422_v2, %v12983_v39  ;;  %v14434_v3 = vpop.f32.mrb[106].mxu0 }
 0xa0c   : > { %v13072_v14 = vpop.f32.mrb[107].mxu0 }
 0xa0d   : > { %13084 = vst [vmem:[%s844_s10] sm:$0xff] %v13070_v25  ;;  %v13081_v51 = vadd.f32 %v14434_v3, %v13032_v59  ;;  %v13073_v0 = vadd.f32 %v13072_v14, %v13024_v5  ;;  %13086 = vst [vmem:[%s844_s10 + $0x10] sm:$0xff] %v13078_v17 }
 0xa0f   : > { %13085 = vst [vmem:[%s844_s10 + $0x8] sm:$0xff] %v13073_v0  ;;  %13087 = vst [vmem:[%s844_s10 + $0x18] sm:$0xff] %v13081_v51 }
 0xa10 PF: > { %p15_p9 = scmp.ge.s32.totalorder %s16824_s28, 4   ;;  %s24512_s24 = smov %s16754_s25 }
 0xa11   : > { %s24513_s25 = smov %s16834_s8  ;;  %s24514_s26 = smov %s16824_s28 }
 0xa12   :  { %17 = sbr.rel (!%p15_p9) target bundleno = 2 (0x2), region = 133 }
 0xa19   :  { %13110 = vsyncpa [#allocation4], 1 }
 0xa1a   :  { %13112 = vsyncpa [#allocation4 + $0x1], 1 }

</bundles_post_ra>
